<compile_context>
chip_gen: v7x
topology: tpu7x:2x2x1
jax: 0.10.0
libtpu: 0.0.40
codegen_flags: <defaults>
</compile_context>

<pallas_src>
import functools

import jax
import jax.numpy as jnp
import numpy as np
from jax.experimental import pallas as pl
from jax.experimental.pallas import tpu as pltpu

EPS = 1e-5  # nn.BatchNorm2d default eps


def _convlstm_kernel(xg_ref, wh_ref, mask_ref, gamma_ref, beta_ref, out_ref,
                     h_ref, cx_ref, *, B, H, W, F, S):
    """Sequential ConvLSTM recurrence, fully resident in VMEM (grid=()).

    xg_ref    : (S, BHW, 4F) bf16  precomputed conv(x_t, W_x) for all steps
    wh_ref    : (9F, 4F)    bf16   hidden-state conv weights, rows = (ky, kx, c)
    mask_ref  : (BHW, 9F)   f32    0/1 "same"-padding validity per tap
    gamma_ref : (1, 4F)     f32    BatchNorm affine scale
    beta_ref  : (1, 4F)     f32    BatchNorm affine shift
    out_ref   : (S, BHW, F) f32
    h_ref     : (BHW, F)    f32    hidden state  (scratch, pixel-major b,y,x)
    cx_ref    : (BHW, F)    f32    cell state    (scratch)
    """
    BHW = B * H * W
    inv_n = jnp.float32(1.0 / BHW)

    # Zero initial hidden / cell state.
    h_ref[...] = jnp.zeros_like(h_ref)
    cx_ref[...] = jnp.zeros_like(cx_ref)

    # Loop-invariant reads hoisted out of the recurrence.
    gamma = gamma_ref[...]   # (1, 4F)
    beta = beta_ref[...]     # (1, 4F)

    def step(t, carry):
        h = h_ref[...]       # (BHW, F) f32

        # --- Register-level im2col of the 3x3 hidden-state conv. -------------
        # Tap (ey, ex) is a sublane roll of the pixel-major hidden state; zeros
        # of the "same" padding (and roll wrap across rows / batches) come from
        # the precomputed mask.  Everything stays in registers -> no scratch
        # buffer, no masked partial stores.
        taps = []
        for ey in (-1, 0, 1):
            for ex in (-1, 0, 1):
                s = ey * W + ex
                taps.append(h if s == 0 else pltpu.roll(h, (-s) % BHW, axis=0))
        cols = jnp.concatenate(taps, axis=1) * mask_ref[...]     # (BHW, 9F)

        # --- Single MXU matmul (bf16 operands, f32 accumulate) + x-conv. -----
        gates = jnp.dot(cols.astype(jnp.bfloat16), wh_ref[...],
                        preferred_element_type=jnp.float32)
        gates = gates + xg_ref[t].astype(jnp.float32)            # (BHW, 4F)

        # --- BatchNorm2d (training mode): two-pass centered batch stats. -----
        mean = jnp.sum(gates, axis=0, keepdims=True) * inv_n
        d = gates - mean
        var = jnp.sum(d * d, axis=0, keepdims=True) * inv_n
        g_bn = d * (jax.lax.rsqrt(var + EPS) * gamma) + beta

        # --- LSTM gate math: ONE full-width sigmoid, slice i/f/o from it. ----
        # (NOTE: no tanh on cellgate, matching the module.)
        sg = jax.nn.sigmoid(g_bn)
        ingate = sg[:, 0 * F:1 * F]
        forgetgate = sg[:, 1 * F:2 * F]
        cellgate = g_bn[:, 2 * F:3 * F]
        outgate = sg[:, 3 * F:4 * F]

        cy = forgetgate * cx_ref[...] + ingate * cellgate
        hy = outgate * jnp.tanh(cy)

        cx_ref[...] = cy
        h_ref[...] = hy          # dense f32 writeback (no strided halo store)
        out_ref[t] = hy
        return carry

    jax.lax.fori_loop(0, S, step, 0)


def convlstm_block_pallas(x_bschw, w_pt, gamma, beta):
    """x_bschw: (B, S, Cin, H, W) f32.  Returns (B, S, F, H, W) like PyTorch."""
    B, S, Cin, H, W = x_bschw.shape
    F4, Ctot, K, K2 = w_pt.shape
    F = F4 // 4
    assert Ctot == Cin + F and K == K2 == 3
    BHW = B * H * W

    # Conv is linear in channels: conv(cat[x, h], W) = conv(x, Wx) + conv(h, Wh).
    w_x = w_pt[:, :Cin]   # (4F, Cin, 3, 3)
    w_h = w_pt[:, Cin:]   # (4F, F,   3, 3)

    # ---- Hoisted, time-parallel half: xg[t] = conv(x_t, Wx), all S at once ---
    x_nhwc = jnp.transpose(x_bschw, (1, 0, 3, 4, 2)).reshape(S * B, H, W, Cin)
    w_x_hwio = jnp.transpose(w_x, (2, 3, 1, 0))           # (3, 3, Cin, 4F)
    xg = jax.lax.conv_general_dilated(
        x_nhwc, w_x_hwio, window_strides=(1, 1), padding="SAME",
        dimension_numbers=("NHWC", "HWIO", "NHWC"))       # (S*B, H, W, 4F)
    xg = xg.reshape(S, BHW, 4 * F).astype(jnp.bfloat16)

    # ---- Recurrent conv weight as a (9F, 4F) matrix, rows ordered (ky, kx, c)
    #      to match the in-kernel tap / concat order.  No explicit zero pad. ---
    w_h_mat = jnp.transpose(w_h, (2, 3, 1, 0)).reshape(9 * F, 4 * F)
    w_h_mat = w_h_mat.astype(jnp.bfloat16)

    # ---- Precomputed 0/1 tap validity mask ("same" padding + roll wrap). -----
    r = np.arange(BHW)
    yy = (r // W) % H
    xx = r % W
    blocks = []
    for ey in (-1, 0, 1):
        for ex in (-1, 0, 1):
            valid = ((yy + ey >= 0) & (yy + ey < H) &
                     (xx + ex >= 0) & (xx + ex < W))
            blocks.append(np.repeat(valid[:, None], F, axis=1))
    tap_mask = jnp.asarray(np.concatenate(blocks, axis=1), dtype=jnp.float32)

    gamma2 = gamma.reshape(1, 4 * F).astype(jnp.float32)
    beta2 = beta.reshape(1, 4 * F).astype(jnp.float32)

    kernel = functools.partial(_convlstm_kernel, B=B, H=H, W=W, F=F, S=S)

    out = pl.pallas_call(
        kernel,
        out_shape=jax.ShapeDtypeStruct((S, BHW, F), jnp.float32),
        in_specs=[pl.BlockSpec(memory_space=pltpu.MemorySpace.VMEM)] * 5,
        out_specs=pl.BlockSpec(memory_space=pltpu.MemorySpace.VMEM),
        scratch_shapes=[
            pltpu.VMEM((BHW, F), jnp.float32),   # hidden state h_t
            pltpu.VMEM((BHW, F), jnp.float32),   # cell state  c_t
        ],
        compiler_params=pltpu.CompilerParams(
            vmem_limit_bytes=32 * 1024 * 1024),  # actual use ~5 MB; v7x-safe
    )(xg, w_h_mat, tap_mask, gamma2, beta2)

    out = out.reshape(S, B, H, W, F)
    return jnp.transpose(out, (1, 0, 4, 2, 3))   # (B, S, F, H, W)


def convlstm_block_reference(x_bschw, w_pt, gamma, beta):
    """Pure-JAX reference mirroring the PyTorch forward (NCHW, f32)."""
    B, S, Cin, H, W = x_bschw.shape
    F = w_pt.shape[0] // 4
    hx = jnp.zeros((B, F, H, W), jnp.float32)
    cx = jnp.zeros((B, F, H, W), jnp.float32)
    g1 = gamma.reshape(1, -1, 1, 1)
    b1 = beta.reshape(1, -1, 1, 1)
    outs = []
    for t in range(S):
        comb = jnp.concatenate([x_bschw[:, t], hx], axis=1)
        g = jax.lax.conv_general_dilated(
            comb, w_pt, window_strides=(1, 1), padding="SAME",
            dimension_numbers=("NCHW", "OIHW", "NCHW"))
        mean = jnp.mean(g, axis=(0, 2, 3), keepdims=True)
        var = jnp.mean((g - mean) ** 2, axis=(0, 2, 3), keepdims=True)
        g = (g - mean) * jax.lax.rsqrt(var + EPS) * g1 + b1
        i, f, c, o = jnp.split(g, 4, axis=1)
        cy = jax.nn.sigmoid(f) * cx + jax.nn.sigmoid(i) * c
        hy = jax.nn.sigmoid(o) * jnp.tanh(cy)
        outs.append(hy)
        hx, cx = hy, cy
    return jnp.stack(outs, axis=1)   # (B, S, F, H, W)


if __name__ == "__main__":
    # ConvLSTMBlock(in_channels=4, num_features=32, kernel_size=3, padding=1, stride=1)
    B, S, Cin, H, W = 2, 8, 4, 16, 16
    F = 32
    Ctot = Cin + F
    K = 3

    key = jax.random.PRNGKey(0)
    kx, kw, kg, kb = jax.random.split(key, 4)

    x = jax.random.normal(kx, (B, S, Cin, H, W), dtype=jnp.float32)
    # Conv2d weight, PyTorch layout (out=4F, in=Cin+F, K, K).
    w_pt = 0.2 * jax.random.normal(kw, (4 * F, Ctot, K, K), dtype=jnp.float32)
    # BatchNorm2d affine params (perturbed from defaults to exercise the path).
    gamma = 1.0 + 0.1 * jax.random.normal(kg, (4 * F,), dtype=jnp.float32)
    beta = 0.1 * jax.random.normal(kb, (4 * F,), dtype=jnp.float32)

    out = jax.block_until_ready(convlstm_block_pallas(x, w_pt, gamma, beta))
    assert out.shape == (B, S, F, H, W), out.shape

    ref = jax.block_until_ready(convlstm_block_reference(x, w_pt, gamma, beta))
    # Recurrent conv runs with bf16 MXU operands (h/c carries stay f32);
    # outputs are tanh*sigmoid bounded (<1), so 3e-2 absolute tolerance is
    # comfortable.
    np.testing.assert_allclose(np.asarray(out), np.asarray(ref),
                               rtol=2e-2, atol=3e-2)

    print("KERNEL_OK")
</pallas_src>

<mosaic_0001>
module attributes {stable_mosaic.version = 11 : i64} {
  func.func @_convlstm_kernel(%arg0: memref<8x512x128xbf16, #tpu.memory_space<vmem>>, %arg1: memref<288x128xbf16, #tpu.memory_space<vmem>>, %arg2: memref<512x288xf32, #tpu.memory_space<vmem>>, %arg3: memref<1x128xf32, #tpu.memory_space<vmem>>, %arg4: memref<1x128xf32, #tpu.memory_space<vmem>>, %arg5: memref<8x512x32xf32, #tpu.memory_space<vmem>>, %arg6: memref<512x32xf32, #tpu.memory_space<vmem>>, %arg7: memref<512x32xf32, #tpu.memory_space<vmem>>) attributes {dimension_semantics = [], scalar_prefetch = 0 : i64, scratch_operands = 2 : i64, tpu.core_type = #tpu.core_type<tc>} {
    %cst = arith.constant 0.000000e+00 : f32
    %0 = vector.broadcast %cst : f32 to vector<512x32xf32>
    %c0 = arith.constant 0 : index
    %c0_0 = arith.constant 0 : index
    %1 = vector.load %arg6[%c0, %c0_0] : memref<512x32xf32, #tpu.memory_space<vmem>>, vector<512x32xf32>
    tpu.vector_store %arg6[%c0, %c0_0], %0 {strides = array<i32>} : memref<512x32xf32, #tpu.memory_space<vmem>>, vector<512x32xf32>,
    %cst_1 = arith.constant 0.000000e+00 : f32
    %2 = vector.broadcast %cst_1 : f32 to vector<512x32xf32>
    %c0_2 = arith.constant 0 : index
    %c0_3 = arith.constant 0 : index
    %3 = vector.load %arg7[%c0_2, %c0_3] : memref<512x32xf32, #tpu.memory_space<vmem>>, vector<512x32xf32>
    tpu.vector_store %arg7[%c0_2, %c0_3], %2 {strides = array<i32>} : memref<512x32xf32, #tpu.memory_space<vmem>>, vector<512x32xf32>,
    %c0_4 = arith.constant 0 : index
    %c0_5 = arith.constant 0 : index
    %4 = vector.load %arg3[%c0_4, %c0_5] : memref<1x128xf32, #tpu.memory_space<vmem>>, vector<1x128xf32>
    %c0_6 = arith.constant 0 : index
    %c0_7 = arith.constant 0 : index
    %5 = vector.load %arg4[%c0_6, %c0_7] : memref<1x128xf32, #tpu.memory_space<vmem>>, vector<1x128xf32>
    %cst_8 = arith.constant 0.001953125 : f32
    %c0_i32 = arith.constant 0 : i32
    %c8_i32 = arith.constant 8 : i32
    %6 = arith.addi %c0_i32, %c8_i32 : i32
    %c1_i32 = arith.constant 1 : i32
    scf.for %arg8 = %c0_i32 to %6 step %c1_i32  : i32 {
      %c0_10 = arith.constant 0 : index
      %c0_11 = arith.constant 0 : index
      %7 = vector.load %arg6[%c0_10, %c0_11] : memref<512x32xf32, #tpu.memory_space<vmem>>, vector<512x32xf32>
      %c17_i32 = arith.constant 17 : i32
      %8 = tpu.dynamic_rotate %7 by %c17_i32 dim 0 : vector<512x32xf32>, i32 -> vector<512x32xf32>
      %c16_i32 = arith.constant 16 : i32
      %9 = tpu.dynamic_rotate %7 by %c16_i32 dim 0 : vector<512x32xf32>, i32 -> vector<512x32xf32>
      %c15_i32 = arith.constant 15 : i32
      %10 = tpu.dynamic_rotate %7 by %c15_i32 dim 0 : vector<512x32xf32>, i32 -> vector<512x32xf32>
      %c1_i32_12 = arith.constant 1 : i32
      %11 = tpu.dynamic_rotate %7 by %c1_i32_12 dim 0 : vector<512x32xf32>, i32 -> vector<512x32xf32>
      %c511_i32 = arith.constant 511 : i32
      %12 = tpu.dynamic_rotate %7 by %c511_i32 dim 0 : vector<512x32xf32>, i32 -> vector<512x32xf32>
      %c497_i32 = arith.constant 497 : i32
      %13 = tpu.dynamic_rotate %7 by %c497_i32 dim 0 : vector<512x32xf32>, i32 -> vector<512x32xf32>
      %c496_i32 = arith.constant 496 : i32
      %14 = tpu.dynamic_rotate %7 by %c496_i32 dim 0 : vector<512x32xf32>, i32 -> vector<512x32xf32>
      %c495_i32 = arith.constant 495 : i32
      %15 = tpu.dynamic_rotate %7 by %c495_i32 dim 0 : vector<512x32xf32>, i32 -> vector<512x32xf32>
      %16 = tpu.concatenate %8, %9, %10, %11, %7, %12, %13, %14, %15 in 1 : vector<512x32xf32>, vector<512x32xf32>, vector<512x32xf32>, vector<512x32xf32>, vector<512x32xf32>, vector<512x32xf32>, vector<512x32xf32>, vector<512x32xf32>, vector<512x32xf32> -> vector<512x288xf32>
      %c0_13 = arith.constant 0 : index
      %c0_14 = arith.constant 0 : index
      %17 = vector.load %arg2[%c0_13, %c0_14] : memref<512x288xf32, #tpu.memory_space<vmem>>, vector<512x288xf32>
      %18 = arith.mulf %16, %17 : vector<512x288xf32>
      %19 = arith.truncf %18 : vector<512x288xf32> to vector<512x288xbf16>
      %c0_15 = arith.constant 0 : index
      %c0_16 = arith.constant 0 : index
      %20 = vector.load %arg1[%c0_15, %c0_16] : memref<288x128xbf16, #tpu.memory_space<vmem>>, vector<288x128xbf16>
      %cst_17 = arith.constant dense<0.000000e+00> : vector<512x128xf32>
      %21 = tpu.matmul %19, %20, %cst_17 {dimension_numbers = #tpu.dot_dimension_numbers<[1], [0], [0], [1], [0, 0, 1, 1], [], []>} : vector<512x288xbf16>, vector<288x128xbf16>, vector<512x128xf32> -> vector<512x128xf32>
      %22 = arith.index_cast %arg8 : i32 to index
      %c0_18 = arith.constant 0 : index
      %c0_19 = arith.constant 0 : index
      %23 = vector.load %arg0[%22, %c0_18, %c0_19] : memref<8x512x128xbf16, #tpu.memory_space<vmem>>, vector<1x512x128xbf16>
      %24 = vector.shape_cast %23 : vector<1x512x128xbf16> to vector<512x128xbf16>
      %25 = arith.extf %24 : vector<512x128xbf16> to vector<512x128xf32>
      %26 = arith.addf %21, %25 : vector<512x128xf32>
      %cst_20 = arith.constant dense<0.000000e+00> : vector<128xf32>
      %27 = vector.multi_reduction <add>, %26, %cst_20 [0] : vector<512x128xf32> to vector<128xf32>
      %28 = vector.shape_cast %27 : vector<128xf32> to vector<1x128xf32>
      %29 = vector.broadcast %cst_8 : f32 to vector<1x128xf32>
      %30 = arith.mulf %28, %29 : vector<1x128xf32>
      %31 = vector.broadcast %30 : vector<1x128xf32> to vector<512x128xf32>
      %32 = arith.subf %26, %31 : vector<512x128xf32>
      %33 = arith.mulf %32, %32 : vector<512x128xf32>
      %cst_21 = arith.constant dense<0.000000e+00> : vector<128xf32>
      %34 = vector.multi_reduction <add>, %33, %cst_21 [0] : vector<512x128xf32> to vector<128xf32>
      %35 = vector.shape_cast %34 : vector<128xf32> to vector<1x128xf32>
      %36 = vector.broadcast %cst_8 : f32 to vector<1x128xf32>
      %37 = arith.mulf %35, %36 : vector<1x128xf32>
      %cst_22 = arith.constant 9.99999974E-6 : f32
      %38 = vector.broadcast %cst_22 : f32 to vector<1x128xf32>
      %39 = arith.addf %37, %38 : vector<1x128xf32>
      %40 = math.rsqrt %39 : vector<1x128xf32>
      %41 = arith.mulf %40, %4 : vector<1x128xf32>
      %42 = vector.broadcast %41 : vector<1x128xf32> to vector<512x128xf32>
      %43 = arith.mulf %32, %42 : vector<512x128xf32>
      %44 = vector.broadcast %5 : vector<1x128xf32> to vector<512x128xf32>
      %45 = arith.addf %43, %44 : vector<512x128xf32>
      %46 = arith.negf %45 : vector<512x128xf32>
      %47 = math.exp %46 : vector<512x128xf32>
      %cst_23 = arith.constant 1.000000e+00 : f32
      %48 = vector.broadcast %cst_23 : f32 to vector<512x128xf32>
      %49 = arith.addf %48, %47 : vector<512x128xf32>
      %50 = arith.divf %48, %49 : vector<512x128xf32>
      %51 = vector.extract_strided_slice %50 {offsets = [0, 0], sizes = [512, 32], strides = [1, 1]} : vector<512x128xf32> to vector<512x32xf32>
      %52 = vector.extract_strided_slice %50 {offsets = [0, 32], sizes = [512, 32], strides = [1, 1]} : vector<512x128xf32> to vector<512x32xf32>
      %53 = vector.extract_strided_slice %45 {offsets = [0, 64], sizes = [512, 32], strides = [1, 1]} : vector<512x128xf32> to vector<512x32xf32>
      %54 = vector.extract_strided_slice %50 {offsets = [0, 96], sizes = [512, 32], strides = [1, 1]} : vector<512x128xf32> to vector<512x32xf32>
      %c0_24 = arith.constant 0 : index
      %c0_25 = arith.constant 0 : index
      %55 = vector.load %arg7[%c0_24, %c0_25] : memref<512x32xf32, #tpu.memory_space<vmem>>, vector<512x32xf32>
      %56 = arith.mulf %52, %55 : vector<512x32xf32>
      %57 = arith.mulf %51, %53 : vector<512x32xf32>
      %58 = arith.addf %56, %57 : vector<512x32xf32>
      %59 = math.tanh %58 : vector<512x32xf32>
      %60 = arith.mulf %54, %59 : vector<512x32xf32>
      %c0_26 = arith.constant 0 : index
      %c0_27 = arith.constant 0 : index
      %61 = vector.load %arg7[%c0_26, %c0_27] : memref<512x32xf32, #tpu.memory_space<vmem>>, vector<512x32xf32>
      tpu.vector_store %arg7[%c0_26, %c0_27], %58 {strides = array<i32>} : memref<512x32xf32, #tpu.memory_space<vmem>>, vector<512x32xf32>,
      %c0_28 = arith.constant 0 : index
      %c0_29 = arith.constant 0 : index
      %62 = vector.load %arg6[%c0_28, %c0_29] : memref<512x32xf32, #tpu.memory_space<vmem>>, vector<512x32xf32>
      tpu.vector_store %arg6[%c0_28, %c0_29], %60 {strides = array<i32>} : memref<512x32xf32, #tpu.memory_space<vmem>>, vector<512x32xf32>,
      %63 = arith.index_cast %arg8 : i32 to index
      %c0_30 = arith.constant 0 : index
      %c0_31 = arith.constant 0 : index
      %64 = vector.load %arg5[%63, %c0_30, %c0_31] : memref<8x512x32xf32, #tpu.memory_space<vmem>>, vector<1x512x32xf32>
      %65 = vector.shape_cast %64 : vector<1x512x32xf32> to vector<512x32xf32>
      %66 = vector.shape_cast %60 : vector<512x32xf32> to vector<1x512x32xf32>
      tpu.vector_store %arg5[%63, %c0_30, %c0_31], %66 {strides = array<i32>} : memref<8x512x32xf32, #tpu.memory_space<vmem>>, vector<1x512x32xf32>,
    }
    %c8_i32_9 = arith.constant 8 : i32
    return
  }
}

</mosaic_0001>

<bundles_post_ra>
// kernel: tpu_custom_call.1
= control target key start
LH: loop header
LB: loop body
LE: loop exit
PB: predicated region body
PF: predicated region fallthrough
CT: control target
= control target key end

     0   :  { %10 = vsyncpa [#allocation5], 0  ;;  %s14501_s0 = inlined_call_operand.vmem [shape: bf16[8,512,128], index: 0, kind: input, shape index: {}]   ;;  %s14502_s1 = inlined_call_operand.hbm [shape: bf16[288,128], index: 1, kind: input, shape index: {}]   ;;  %s14503_s2 = inlined_call_operand.vmem [shape: f32[512,288], index: 2, kind: input, shape index: {}]   ;;  %s14504_s3 = inlined_call_operand.hbm [shape: f32[1,128], index: 3, kind: input, shape index: {}]   ;;  %s14505_s4 = inlined_call_operand.hbm [shape: f32[1,128], index: 4, kind: input, shape index: {}]   ;;  %s14506_s5 = inlined_call_operand.vmem [shape: f32[8,512,32], index: 5, kind: output, shape index: {}]  }
   0x1   :  { %11 = vsyncpa [#allocation7], 0  ;;  %s7606_s18 = smov [#allocation6]   ;;  %s7607_s20 = smov [#allocation4]  }
   0x2   :  { %s34_s19 = sshll.u32 %s7606_s18, 4  ;;  %s19_s21 = sshll.u32 %s7607_s20, 4  ;;  %s35_s19 = int_to_ptr.vmem [resolvable:$true] %s34_s19  ;;  %s7646_s21 = int_to_ptr.vmem [resolvable:$true] %s19_s21 }
   0x3   :  { %s7528_s24 = scalar_lea.hbm %s14504_s3, 16 }
   0x4   :  { %p7529_p0 = scmp.ne.s32.totalorder %s14504_s3, %s7528_s24  ;;  %p7532_p1 = scmp.lt.u32.totalorder %s7528_s24, %s14504_s3 }
   0x6   :  { %p7534_p2 = pnand %p7532_p1, %p7529_p0 }
   0x8   :  { %7537 = shalt.err (!%p7534_p2)
}
   0x9   :  { %s7538_s29 = scalar_lea.vmem %s35_s19, 16  ;;  %s7542_s30 = scalar_lea.vmem %s35_s19, 32 }
   0xa   :  { %p7539_p3 = scmp.ne.s32.totalorder %s35_s19, %s7538_s29  ;;  %p7543_p4 = scmp.lt.s32.totalorder %s35_s19, %s35_s19 }
   0xb   :  { %p7544_p5 = scmp.lt.s32.totalorder %s7542_s30, %s7538_s29 }
   0xd   :  { %p7545_p6 = por %p7544_p5, %p7543_p4 }
   0xf   :  { %p7546_p7 = pnand %p7545_p6, %p7539_p3 }
  0x11   :  { %7549 = shalt.err (!%p7546_p7)
}
  0x12   :  { %37 = dma.hbm_to_vmem [thread:$0]  %s14504_s3, 16, %s35_s19, [#allocation7]  }
  0x13   :  { %s7550_s10 = scalar_lea.hbm %s14502_s1, 2304 }
  0x14   :  { %p7551_p8 = scmp.ne.s32.totalorder %s14502_s1, %s7550_s10  ;;  %p7554_p9 = scmp.lt.u32.totalorder %s7550_s10, %s14502_s1 }
  0x16   :  { %p7556_p10 = pnand %p7554_p9, %p7551_p8 }
  0x18   :  { %7559 = shalt.err (!%p7556_p10)
}
  0x19   :  { %s7560_s15 = scalar_lea.vmem %s7646_s21, 2304  ;;  %p7565_p12 = scmp.lt.s32.totalorder %s7646_s21, %s7646_s21 }
  0x1a   :  { %p7561_p11 = scmp.ne.s32.totalorder %s7646_s21, %s7560_s15  ;;  %p7566_p13 = scmp.lt.s32.totalorder %s7560_s15, %s7560_s15 }
  0x1c   :  { %p7567_p0 = por %p7566_p13, %p7565_p12 }
  0x1e   :  { %p7568_p1 = pnand %p7567_p0, %p7561_p11 }
  0x20   :  { %7571 = shalt.err (!%p7568_p1)
}
  0x21   :  { %s7608_s3 = smov 64   ;;  %s7609_s16 = smov 4  }
  0x22   :  { %25 = dma.hbm_to_vmem [thread:$0]  %s14502_s1, 2304, %s7646_s21, [#allocation5], %s7608_s3, %s7608_s3, %s7609_s16  }
  0x23   :  { %s7610_s19 = smov [#allocation8]   ;;  %s7572_s24 = scalar_lea.hbm %s14505_s4, 16 }
  0x24   :  { %s44_s20 = sshll.u32 %s7610_s19, 4  ;;  %p7573_p2 = scmp.ne.s32.totalorder %s14505_s4, %s7572_s24  ;;  %s45_s20 = int_to_ptr.vmem [resolvable:$true] %s44_s20 }
  0x25   :  { %p7576_p3 = scmp.lt.u32.totalorder %s7572_s24, %s14505_s4 }
  0x27   :  { %p7578_p4 = pnand %p7576_p3, %p7573_p2 }
  0x29   :  { %7581 = shalt.err (!%p7578_p4)
}
  0x2a   :  { %s7582_s29 = scalar_lea.vmem %s45_s20, 16  ;;  %s7586_s1 = scalar_lea.vmem %s45_s20, 32 }
  0x2b   :  { %p7583_p5 = scmp.ne.s32.totalorder %s45_s20, %s7582_s29  ;;  %p7587_p6 = scmp.lt.s32.totalorder %s45_s20, %s45_s20 }
  0x2c   :  { %p7588_p7 = scmp.lt.s32.totalorder %s7586_s1, %s7582_s29 }
  0x2e   :  { %p7589_p8 = por %p7588_p7, %p7587_p6 }
  0x30   :  { %p7590_p9 = pnand %p7589_p8, %p7583_p5 }
  0x32   :  { %7593 = shalt.err (!%p7590_p9)
}
  0x33   :  { %47 = dma.hbm_to_vmem [thread:$0]  %s14505_s4, 16, %s45_s20, [#allocation7]  }
  0x34   :  { %7598 = dma.done.wait [#allocation5], 2304  }
  0x35   :  { %7599 = vsyncadd [#allocation5], 4294964992 }
  0x36   :  { %7600 = dma.done.wait [#allocation7], 32  }
  0x37   :  { %7601 = vsyncadd [#allocation7], 4294967264  ;;  %vm58_vm0 = vcmask 261120   ;;  %v7611_v0 = vmov 0.0   ;;  %v7945_v1 = vld [vmem:[#allocation6] sm:$0x1] }
  0x38   :  { %59 = vst.msk [vmem:[#allocation2] sm:$0xff] %vm58_vm0, %v7611_v0  ;;  %60 = vst.msk [vmem:[#allocation2 + $0x8] sm:$0xff] %vm58_vm0, %v7611_v0  ;;  %v7947_v2 = vld [vmem:[#allocation8] ss:$0 sm:$0xff]  ;;  %s7949_s4 = smov 0  }
  0x39   :  { %61 = vst.msk [vmem:[#allocation2 + $0x10] sm:$0xff] %vm58_vm0, %v7611_v0  ;;  %62 = vst.msk [vmem:[#allocation2 + $0x18] sm:$0xff] %vm58_vm0, %v7611_v0 }
  0x3a   :  { %63 = vst.msk [vmem:[#allocation2 + $0x20] sm:$0xff] %vm58_vm0, %v7611_v0  ;;  %64 = vst.msk [vmem:[#allocation2 + $0x28] sm:$0xff] %vm58_vm0, %v7611_v0 }
  0x3b   :  { %65 = vst.msk [vmem:[#allocation2 + $0x30] sm:$0xff] %vm58_vm0, %v7611_v0  ;;  %66 = vst.msk [vmem:[#allocation2 + $0x38] sm:$0xff] %vm58_vm0, %v7611_v0 }
  0x3c   :  { %67 = vst.msk [vmem:[#allocation2 + $0x40] sm:$0xff] %vm58_vm0, %v7611_v0  ;;  %68 = vst.msk [vmem:[#allocation2 + $0x48] sm:$0xff] %vm58_vm0, %v7611_v0 }
  0x3d   :  { %69 = vst.msk [vmem:[#allocation2 + $0x50] sm:$0xff] %vm58_vm0, %v7611_v0  ;;  %70 = vst.msk [vmem:[#allocation2 + $0x58] sm:$0xff] %vm58_vm0, %v7611_v0 }
  0x3e   :  { %71 = vst.msk [vmem:[#allocation2 + $0x60] sm:$0xff] %vm58_vm0, %v7611_v0  ;;  %72 = vst.msk [vmem:[#allocation2 + $0x68] sm:$0xff] %vm58_vm0, %v7611_v0 }
  0x3f   :  { %73 = vst.msk [vmem:[#allocation2 + $0x70] sm:$0xff] %vm58_vm0, %v7611_v0  ;;  %74 = vst.msk [vmem:[#allocation2 + $0x78] sm:$0xff] %vm58_vm0, %v7611_v0 }
  0x40   :  { %75 = vst.msk [vmem:[#allocation2 + $0x80] sm:$0xff] %vm58_vm0, %v7611_v0  ;;  %76 = vst.msk [vmem:[#allocation2 + $0x88] sm:$0xff] %vm58_vm0, %v7611_v0 }
  0x41   :  { %77 = vst.msk [vmem:[#allocation2 + $0x90] sm:$0xff] %vm58_vm0, %v7611_v0  ;;  %78 = vst.msk [vmem:[#allocation2 + $0x98] sm:$0xff] %vm58_vm0, %v7611_v0 }
  0x42   :  { %79 = vst.msk [vmem:[#allocation2 + $0xa0] sm:$0xff] %vm58_vm0, %v7611_v0  ;;  %80 = vst.msk [vmem:[#allocation2 + $0xa8] sm:$0xff] %vm58_vm0, %v7611_v0 }
  0x43   :  { %81 = vst.msk [vmem:[#allocation2 + $0xb0] sm:$0xff] %vm58_vm0, %v7611_v0  ;;  %82 = vst.msk [vmem:[#allocation2 + $0xb8] sm:$0xff] %vm58_vm0, %v7611_v0 }
  0x44   :  { %83 = vst.msk [vmem:[#allocation2 + $0xc0] sm:$0xff] %vm58_vm0, %v7611_v0  ;;  %84 = vst.msk [vmem:[#allocation2 + $0xc8] sm:$0xff] %vm58_vm0, %v7611_v0 }
  0x45   :  { %85 = vst.msk [vmem:[#allocation2 + $0xd0] sm:$0xff] %vm58_vm0, %v7611_v0  ;;  %86 = vst.msk [vmem:[#allocation2 + $0xd8] sm:$0xff] %vm58_vm0, %v7611_v0 }
  0x46   :  { %87 = vst.msk [vmem:[#allocation2 + $0xe0] sm:$0xff] %vm58_vm0, %v7611_v0  ;;  %88 = vst.msk [vmem:[#allocation2 + $0xe8] sm:$0xff] %vm58_vm0, %v7611_v0 }
  0x47   :  { %89 = vst.msk [vmem:[#allocation2 + $0xf0] sm:$0xff] %vm58_vm0, %v7611_v0  ;;  %90 = vst.msk [vmem:[#allocation2 + $0xf8] sm:$0xff] %vm58_vm0, %v7611_v0 }
  0x48   :  { %91 = vst.msk [vmem:[#allocation2 + $0x100] sm:$0xff] %vm58_vm0, %v7611_v0  ;;  %92 = vst.msk [vmem:[#allocation2 + $0x108] sm:$0xff] %vm58_vm0, %v7611_v0 }
  0x49   :  { %93 = vst.msk [vmem:[#allocation2 + $0x110] sm:$0xff] %vm58_vm0, %v7611_v0  ;;  %94 = vst.msk [vmem:[#allocation2 + $0x118] sm:$0xff] %vm58_vm0, %v7611_v0 }
  0x4a   :  { %95 = vst.msk [vmem:[#allocation2 + $0x120] sm:$0xff] %vm58_vm0, %v7611_v0  ;;  %96 = vst.msk [vmem:[#allocation2 + $0x128] sm:$0xff] %vm58_vm0, %v7611_v0 }
  0x4b   :  { %97 = vst.msk [vmem:[#allocation2 + $0x130] sm:$0xff] %vm58_vm0, %v7611_v0  ;;  %98 = vst.msk [vmem:[#allocation2 + $0x138] sm:$0xff] %vm58_vm0, %v7611_v0 }
  0x4c   :  { %99 = vst.msk [vmem:[#allocation2 + $0x140] sm:$0xff] %vm58_vm0, %v7611_v0  ;;  %100 = vst.msk [vmem:[#allocation2 + $0x148] sm:$0xff] %vm58_vm0, %v7611_v0 }
  0x4d   :  { %101 = vst.msk [vmem:[#allocation2 + $0x150] sm:$0xff] %vm58_vm0, %v7611_v0  ;;  %102 = vst.msk [vmem:[#allocation2 + $0x158] sm:$0xff] %vm58_vm0, %v7611_v0 }
  0x4e   :  { %103 = vst.msk [vmem:[#allocation2 + $0x160] sm:$0xff] %vm58_vm0, %v7611_v0  ;;  %104 = vst.msk [vmem:[#allocation2 + $0x168] sm:$0xff] %vm58_vm0, %v7611_v0 }
  0x4f   :  { %105 = vst.msk [vmem:[#allocation2 + $0x170] sm:$0xff] %vm58_vm0, %v7611_v0  ;;  %106 = vst.msk [vmem:[#allocation2 + $0x178] sm:$0xff] %vm58_vm0, %v7611_v0 }
  0x50   :  { %107 = vst.msk [vmem:[#allocation2 + $0x180] sm:$0xff] %vm58_vm0, %v7611_v0  ;;  %108 = vst.msk [vmem:[#allocation2 + $0x188] sm:$0xff] %vm58_vm0, %v7611_v0 }
  0x51   :  { %109 = vst.msk [vmem:[#allocation2 + $0x190] sm:$0xff] %vm58_vm0, %v7611_v0  ;;  %110 = vst.msk [vmem:[#allocation2 + $0x198] sm:$0xff] %vm58_vm0, %v7611_v0 }
  0x52   :  { %111 = vst.msk [vmem:[#allocation2 + $0x1a0] sm:$0xff] %vm58_vm0, %v7611_v0  ;;  %112 = vst.msk [vmem:[#allocation2 + $0x1a8] sm:$0xff] %vm58_vm0, %v7611_v0 }
  0x53   :  { %113 = vst.msk [vmem:[#allocation2 + $0x1b0] sm:$0xff] %vm58_vm0, %v7611_v0  ;;  %114 = vst.msk [vmem:[#allocation2 + $0x1b8] sm:$0xff] %vm58_vm0, %v7611_v0 }
  0x54   :  { %115 = vst.msk [vmem:[#allocation2 + $0x1c0] sm:$0xff] %vm58_vm0, %v7611_v0  ;;  %116 = vst.msk [vmem:[#allocation2 + $0x1c8] sm:$0xff] %vm58_vm0, %v7611_v0 }
  0x55   :  { %117 = vst.msk [vmem:[#allocation2 + $0x1d0] sm:$0xff] %vm58_vm0, %v7611_v0  ;;  %118 = vst.msk [vmem:[#allocation2 + $0x1d8] sm:$0xff] %vm58_vm0, %v7611_v0 }
  0x56   :  { %119 = vst.msk [vmem:[#allocation2 + $0x1e0] sm:$0xff] %vm58_vm0, %v7611_v0  ;;  %120 = vst.msk [vmem:[#allocation2 + $0x1e8] sm:$0xff] %vm58_vm0, %v7611_v0 }
  0x57   :  { %121 = vst.msk [vmem:[#allocation2 + $0x1f0] sm:$0xff] %vm58_vm0, %v7611_v0  ;;  %122 = vst.msk [vmem:[#allocation2 + $0x1f8] sm:$0xff] %vm58_vm0, %v7611_v0 }
  0x58   :  { %123 = vst.msk [vmem:[#allocation3] sm:$0xff] %vm58_vm0, %v7611_v0  ;;  %124 = vst.msk [vmem:[#allocation3 + $0x8] sm:$0xff] %vm58_vm0, %v7611_v0 }
  0x59   :  { %125 = vst.msk [vmem:[#allocation3 + $0x10] sm:$0xff] %vm58_vm0, %v7611_v0  ;;  %126 = vst.msk [vmem:[#allocation3 + $0x18] sm:$0xff] %vm58_vm0, %v7611_v0 }
  0x5a   :  { %127 = vst.msk [vmem:[#allocation3 + $0x20] sm:$0xff] %vm58_vm0, %v7611_v0  ;;  %128 = vst.msk [vmem:[#allocation3 + $0x28] sm:$0xff] %vm58_vm0, %v7611_v0 }
  0x5b   :  { %129 = vst.msk [vmem:[#allocation3 + $0x30] sm:$0xff] %vm58_vm0, %v7611_v0  ;;  %130 = vst.msk [vmem:[#allocation3 + $0x38] sm:$0xff] %vm58_vm0, %v7611_v0 }
  0x5c   :  { %131 = vst.msk [vmem:[#allocation3 + $0x40] sm:$0xff] %vm58_vm0, %v7611_v0  ;;  %132 = vst.msk [vmem:[#allocation3 + $0x48] sm:$0xff] %vm58_vm0, %v7611_v0 }
  0x5d   :  { %133 = vst.msk [vmem:[#allocation3 + $0x50] sm:$0xff] %vm58_vm0, %v7611_v0  ;;  %134 = vst.msk [vmem:[#allocation3 + $0x58] sm:$0xff] %vm58_vm0, %v7611_v0 }
  0x5e   :  { %135 = vst.msk [vmem:[#allocation3 + $0x60] sm:$0xff] %vm58_vm0, %v7611_v0  ;;  %136 = vst.msk [vmem:[#allocation3 + $0x68] sm:$0xff] %vm58_vm0, %v7611_v0 }
  0x5f   :  { %137 = vst.msk [vmem:[#allocation3 + $0x70] sm:$0xff] %vm58_vm0, %v7611_v0  ;;  %138 = vst.msk [vmem:[#allocation3 + $0x78] sm:$0xff] %vm58_vm0, %v7611_v0 }
  0x60   :  { %139 = vst.msk [vmem:[#allocation3 + $0x80] sm:$0xff] %vm58_vm0, %v7611_v0  ;;  %140 = vst.msk [vmem:[#allocation3 + $0x88] sm:$0xff] %vm58_vm0, %v7611_v0 }
  0x61   :  { %141 = vst.msk [vmem:[#allocation3 + $0x90] sm:$0xff] %vm58_vm0, %v7611_v0  ;;  %142 = vst.msk [vmem:[#allocation3 + $0x98] sm:$0xff] %vm58_vm0, %v7611_v0 }
  0x62   :  { %143 = vst.msk [vmem:[#allocation3 + $0xa0] sm:$0xff] %vm58_vm0, %v7611_v0  ;;  %144 = vst.msk [vmem:[#allocation3 + $0xa8] sm:$0xff] %vm58_vm0, %v7611_v0 }
  0x63   :  { %145 = vst.msk [vmem:[#allocation3 + $0xb0] sm:$0xff] %vm58_vm0, %v7611_v0  ;;  %146 = vst.msk [vmem:[#allocation3 + $0xb8] sm:$0xff] %vm58_vm0, %v7611_v0 }
  0x64   :  { %147 = vst.msk [vmem:[#allocation3 + $0xc0] sm:$0xff] %vm58_vm0, %v7611_v0  ;;  %148 = vst.msk [vmem:[#allocation3 + $0xc8] sm:$0xff] %vm58_vm0, %v7611_v0 }
  0x65   :  { %149 = vst.msk [vmem:[#allocation3 + $0xd0] sm:$0xff] %vm58_vm0, %v7611_v0  ;;  %150 = vst.msk [vmem:[#allocation3 + $0xd8] sm:$0xff] %vm58_vm0, %v7611_v0 }
  0x66   :  { %151 = vst.msk [vmem:[#allocation3 + $0xe0] sm:$0xff] %vm58_vm0, %v7611_v0  ;;  %152 = vst.msk [vmem:[#allocation3 + $0xe8] sm:$0xff] %vm58_vm0, %v7611_v0 }
  0x67   :  { %153 = vst.msk [vmem:[#allocation3 + $0xf0] sm:$0xff] %vm58_vm0, %v7611_v0  ;;  %154 = vst.msk [vmem:[#allocation3 + $0xf8] sm:$0xff] %vm58_vm0, %v7611_v0 }
  0x68   :  { %155 = vst.msk [vmem:[#allocation3 + $0x100] sm:$0xff] %vm58_vm0, %v7611_v0  ;;  %156 = vst.msk [vmem:[#allocation3 + $0x108] sm:$0xff] %vm58_vm0, %v7611_v0 }
  0x69   :  { %157 = vst.msk [vmem:[#allocation3 + $0x110] sm:$0xff] %vm58_vm0, %v7611_v0  ;;  %158 = vst.msk [vmem:[#allocation3 + $0x118] sm:$0xff] %vm58_vm0, %v7611_v0 }
  0x6a   :  { %159 = vst.msk [vmem:[#allocation3 + $0x120] sm:$0xff] %vm58_vm0, %v7611_v0  ;;  %160 = vst.msk [vmem:[#allocation3 + $0x128] sm:$0xff] %vm58_vm0, %v7611_v0 }
  0x6b   :  { %161 = vst.msk [vmem:[#allocation3 + $0x130] sm:$0xff] %vm58_vm0, %v7611_v0  ;;  %162 = vst.msk [vmem:[#allocation3 + $0x138] sm:$0xff] %vm58_vm0, %v7611_v0 }
  0x6c   :  { %163 = vst.msk [vmem:[#allocation3 + $0x140] sm:$0xff] %vm58_vm0, %v7611_v0  ;;  %164 = vst.msk [vmem:[#allocation3 + $0x148] sm:$0xff] %vm58_vm0, %v7611_v0 }
  0x6d   :  { %165 = vst.msk [vmem:[#allocation3 + $0x150] sm:$0xff] %vm58_vm0, %v7611_v0  ;;  %166 = vst.msk [vmem:[#allocation3 + $0x158] sm:$0xff] %vm58_vm0, %v7611_v0 }
  0x6e   :  { %167 = vst.msk [vmem:[#allocation3 + $0x160] sm:$0xff] %vm58_vm0, %v7611_v0  ;;  %168 = vst.msk [vmem:[#allocation3 + $0x168] sm:$0xff] %vm58_vm0, %v7611_v0 }
  0x6f   :  { %169 = vst.msk [vmem:[#allocation3 + $0x170] sm:$0xff] %vm58_vm0, %v7611_v0  ;;  %170 = vst.msk [vmem:[#allocation3 + $0x178] sm:$0xff] %vm58_vm0, %v7611_v0 }
  0x70   :  { %171 = vst.msk [vmem:[#allocation3 + $0x180] sm:$0xff] %vm58_vm0, %v7611_v0  ;;  %172 = vst.msk [vmem:[#allocation3 + $0x188] sm:$0xff] %vm58_vm0, %v7611_v0 }
  0x71   :  { %173 = vst.msk [vmem:[#allocation3 + $0x190] sm:$0xff] %vm58_vm0, %v7611_v0  ;;  %174 = vst.msk [vmem:[#allocation3 + $0x198] sm:$0xff] %vm58_vm0, %v7611_v0 }
  0x72   :  { %175 = vst.msk [vmem:[#allocation3 + $0x1a0] sm:$0xff] %vm58_vm0, %v7611_v0  ;;  %176 = vst.msk [vmem:[#allocation3 + $0x1a8] sm:$0xff] %vm58_vm0, %v7611_v0 }
  0x73   :  { %177 = vst.msk [vmem:[#allocation3 + $0x1b0] sm:$0xff] %vm58_vm0, %v7611_v0  ;;  %178 = vst.msk [vmem:[#allocation3 + $0x1b8] sm:$0xff] %vm58_vm0, %v7611_v0 }
  0x74   :  { %179 = vst.msk [vmem:[#allocation3 + $0x1c0] sm:$0xff] %vm58_vm0, %v7611_v0  ;;  %180 = vst.msk [vmem:[#allocation3 + $0x1c8] sm:$0xff] %vm58_vm0, %v7611_v0 }
  0x75   :  { %181 = vst.msk [vmem:[#allocation3 + $0x1d0] sm:$0xff] %vm58_vm0, %v7611_v0  ;;  %182 = vst.msk [vmem:[#allocation3 + $0x1d8] sm:$0xff] %vm58_vm0, %v7611_v0 }
  0x76   :  { %183 = vst.msk [vmem:[#allocation3 + $0x1e0] sm:$0xff] %vm58_vm0, %v7611_v0  ;;  %184 = vst.msk [vmem:[#allocation3 + $0x1e8] sm:$0xff] %vm58_vm0, %v7611_v0 }
  0x77   :  { %185 = vst.msk [vmem:[#allocation3 + $0x1f0] sm:$0xff] %vm58_vm0, %v7611_v0  ;;  %186 = vst.msk [vmem:[#allocation3 + $0x1f8] sm:$0xff] %vm58_vm0, %v7611_v0 }
  0x78   :  { %14886 = vst [vmem:[#allocation11_spill] sm:$0xff] %v7945_v1  ;;  %14887 = vst [vmem:[#allocation12_spill] sm:$0xff] %v7947_v2 }
  0x79 LB: > { %v7954_v3 = vld [vmem:[#allocation2 + $0x1f0] sm:$0xff]  ;;  %v7956_v4 = vld [vmem:[#allocation2] sm:$0xff]  ;;  %s7612_s6 = smov 32   ;;  %v7962_v5 = vld [vmem:[#allocation2 + $0x1f8] sm:$0xff]  ;;  %v323_v2 = vlaneseq  ;;  %s7613_s7 = smov 64   ;;  %vm1927_vm3 = vcmask 523264   ;;  %s7604_s4 = sphi %s7949_s4, %s194_s4  }
  0x7a   : > { %14888 = vst [vmem:[#allocation13_spill] sm:$0xff] %v7956_v4  ;;  %583 = vrot.lane.b32.xlu0 %v7954_v3, %s7612_s6  ;;  %587 = vrot.lane.b32.xlu1 %v7956_v4, %s7612_s6  ;;  %14889 = vst [vmem:[#allocation14_spill] sm:$0xff] %v7962_v5  ;;  %v7964_v6 = vld [vmem:[#allocation2 + $0x8] sm:$0xff]  ;;  %v7970_v7 = vld [vmem:[#allocation2 + $0x10] sm:$0xff]  ;;  %s7614_s8 = smov 96   ;;  %vm1992_vm4 = vcmask 785408  }
  0x7b   : > { %14890 = vst [vmem:[#allocation15_spill] sm:$0xff] %v7964_v6  ;;  %14891 = vst [vmem:[#allocation16_spill] sm:$0xff] %v7970_v7  ;;  %v7972_v8 = vld [vmem:[#allocation2 + $0x18] sm:$0xff]  ;;  %v7978_v9 = vld [vmem:[#allocation2 + $0x20] sm:$0xff]  ;;  %s6718_s9 = sshll.u32 %s7604_s4, 8 }
  0x7c   : > { %v7980_v10 = vld [vmem:[#allocation2 + $0x28] sm:$0xff]  ;;  %v7986_v11 = vld [vmem:[#allocation2 + $0x30] sm:$0xff]  ;;  %v7988_v12 = vld [vmem:[#allocation2 + $0x38] sm:$0xff]  ;;  %s11789_s12 = scalar_lea.vmem %s14501_s0, %s6718_s9 }
  0x7d   : > { %v7994_v13 = vld [vmem:[#allocation2 + $0x40] sm:$0xff]  ;;  %v7996_v14 = vld [vmem:[#allocation2 + $0x48] sm:$0xff]  ;;  %v8002_v15 = vld [vmem:[#allocation2 + $0x50] sm:$0xff] }
  0x7e   : > { %585 = vrot.lane.b32.xlu0 %v7962_v5, %s7612_s6  ;;  %589 = vrot.lane.b32.xlu1 %v7964_v6, %s7612_s6  ;;  %v8004_v16 = vld [vmem:[#allocation2 + $0x58] sm:$0xff]  ;;  %v8010_v17 = vld [vmem:[#allocation2 + $0x60] sm:$0xff]  ;;  %v8012_v18 = vld [vmem:[#allocation2 + $0x68] sm:$0xff] }
  0x7f   : > { %v8018_v19 = vld [vmem:[#allocation2 + $0x70] sm:$0xff]  ;;  %v8020_v20 = vld [vmem:[#allocation2 + $0x78] sm:$0xff]  ;;  %v8026_v21 = vld [vmem:[#allocation2 + $0x80] sm:$0xff] }
  0x80   : > { %v8028_v22 = vld [vmem:[#allocation2 + $0x88] sm:$0xff]  ;;  %v8034_v23 = vld [vmem:[#allocation2 + $0x90] sm:$0xff]  ;;  %v8036_v24 = vld [vmem:[#allocation2 + $0x98] sm:$0xff] }
  0x81   : > { %v8042_v25 = vld [vmem:[#allocation2 + $0xa0] sm:$0xff]  ;;  %v8044_v26 = vld [vmem:[#allocation2 + $0xa8] sm:$0xff]  ;;  %v8050_v27 = vld [vmem:[#allocation2 + $0xb0] sm:$0xff] }
  0x82   : > { %591 = vrot.lane.b32.xlu0 %v7970_v7, %s7612_s6  ;;  %593 = vrot.lane.b32.xlu1 %v7972_v8, %s7612_s6  ;;  %v8052_v28 = vld [vmem:[#allocation2 + $0xb8] sm:$0xff]  ;;  %v8058_v29 = vld [vmem:[#allocation2 + $0xc0] sm:$0xff]  ;;  %v8060_v30 = vld [vmem:[#allocation2 + $0xc8] sm:$0xff] }
  0x83   : > { %v8066_v31 = vld [vmem:[#allocation2 + $0xd0] sm:$0xff]  ;;  %v8068_v32 = vld [vmem:[#allocation2 + $0xd8] sm:$0xff]  ;;  %v8074_v33 = vld [vmem:[#allocation2 + $0xe0] sm:$0xff] }
  0x84   : > { %v8076_v34 = vld [vmem:[#allocation2 + $0xe8] sm:$0xff]  ;;  %v8082_v35 = vld [vmem:[#allocation2 + $0xf0] sm:$0xff]  ;;  %v8084_v36 = vld [vmem:[#allocation2 + $0xf8] sm:$0xff] }
  0x85   : > { %v8090_v37 = vld [vmem:[#allocation2 + $0x100] sm:$0xff]  ;;  %v8092_v38 = vld [vmem:[#allocation2 + $0x108] sm:$0xff]  ;;  %v8098_v39 = vld [vmem:[#allocation2 + $0x110] sm:$0xff] }
  0x86   : > { %595 = vrot.lane.b32.xlu0 %v7978_v9, %s7612_s6  ;;  %597 = vrot.lane.b32.xlu1 %v7980_v10, %s7612_s6  ;;  %v8100_v40 = vld [vmem:[#allocation2 + $0x118] sm:$0xff]  ;;  %v8106_v41 = vld [vmem:[#allocation2 + $0x120] sm:$0xff]  ;;  %v8108_v42 = vld [vmem:[#allocation2 + $0x128] sm:$0xff] }
  0x87   : > { %v8114_v43 = vld [vmem:[#allocation2 + $0x130] sm:$0xff]  ;;  %v8116_v44 = vld [vmem:[#allocation2 + $0x138] sm:$0xff]  ;;  %v8122_v45 = vld [vmem:[#allocation2 + $0x140] sm:$0xff] }
  0x88   : > { %v8124_v46 = vld [vmem:[#allocation2 + $0x148] sm:$0xff]  ;;  %v8130_v47 = vld [vmem:[#allocation2 + $0x150] sm:$0xff]  ;;  %v8132_v48 = vld [vmem:[#allocation2 + $0x158] sm:$0xff] }
  0x89   : > { %v8138_v49 = vld [vmem:[#allocation2 + $0x160] sm:$0xff]  ;;  %v8140_v50 = vld [vmem:[#allocation2 + $0x168] sm:$0xff]  ;;  %v8146_v51 = vld [vmem:[#allocation2 + $0x170] sm:$0xff] }
  0x8a   : > { %599 = vrot.lane.b32.xlu0 %v7986_v11, %s7612_s6  ;;  %601 = vrot.lane.b32.xlu1 %v7988_v12, %s7612_s6  ;;  %v8148_v52 = vld [vmem:[#allocation2 + $0x178] sm:$0xff]  ;;  %v8154_v53 = vld [vmem:[#allocation2 + $0x180] sm:$0xff]  ;;  %v8156_v54 = vld [vmem:[#allocation2 + $0x188] sm:$0xff] }
  0x8b   : > { %14892 = vst [vmem:[#allocation17_spill] sm:$0xff] %v8156_v54  ;;  %v8162_v55 = vld [vmem:[#allocation2 + $0x190] sm:$0xff]  ;;  %v8164_v56 = vld [vmem:[#allocation2 + $0x198] sm:$0xff]  ;;  %v8170_v57 = vld [vmem:[#allocation2 + $0x1a0] sm:$0xff] }
  0x8c   : > { %14893 = vst [vmem:[#allocation18_spill] sm:$0xff] %v8162_v55  ;;  %14894 = vst [vmem:[#allocation19_spill] sm:$0xff] %v8164_v56  ;;  %v8172_v58 = vld [vmem:[#allocation2 + $0x1a8] sm:$0xff]  ;;  %v8178_v59 = vld [vmem:[#allocation2 + $0x1b0] sm:$0xff] }
  0x8d   : > { %14895 = vst [vmem:[#allocation20_spill] sm:$0xff] %v8170_v57  ;;  %14896 = vst [vmem:[#allocation21_spill] sm:$0xff] %v8172_v58  ;;  %v8180_v60 = vld [vmem:[#allocation2 + $0x1b8] sm:$0xff]  ;;  %v8186_v61 = vld [vmem:[#allocation2 + $0x1c0] sm:$0xff] }
  0x8e   : > { %603 = vrot.lane.b32.xlu0 %v7994_v13, %s7612_s6  ;;  %605 = vrot.lane.b32.xlu1 %v7996_v14, %s7612_s6  ;;  %14897 = vst [vmem:[#allocation22_spill] sm:$0xff] %v8178_v59  ;;  %14898 = vst [vmem:[#allocation23_spill] sm:$0xff] %v8180_v60  ;;  %v8188_v62 = vld [vmem:[#allocation2 + $0x1c8] sm:$0xff]  ;;  %v8198_v1 = vld [vmem:[#allocation2 + $0x1d0] sm:$0xff] }
  0x8f   : > { %14899 = vst [vmem:[#allocation24_spill] sm:$0xff] %v8186_v61  ;;  %14900 = vst [vmem:[#allocation25_spill] sm:$0xff] %v8188_v62 }
  0x90   : > { %14903 = vst [vmem:[#allocation28_spill] sm:$0xff] %v8198_v1 }
  0x92   : > { %607 = vrot.lane.b32.xlu0 %v8002_v15, %s7612_s6  ;;  %609 = vrot.lane.b32.xlu1 %v8004_v16, %s7612_s6 }
  0x96   : > { %611 = vrot.lane.b32.xlu0 %v8010_v17, %s7612_s6  ;;  %613 = vrot.lane.b32.xlu1 %v8012_v18, %s7612_s6 }
  0x9a   : > { %615 = vrot.lane.b32.xlu0 %v8018_v19, %s7612_s6  ;;  %617 = vrot.lane.b32.xlu1 %v8020_v20, %s7612_s6 }
  0x9e   : > { %619 = vrot.lane.b32.xlu0 %v8026_v21, %s7612_s6  ;;  %621 = vrot.lane.b32.xlu1 %v8028_v22, %s7612_s6 }
  0xa2   : > { %623 = vrot.lane.b32.xlu0 %v8034_v23, %s7612_s6  ;;  %625 = vrot.lane.b32.xlu1 %v8036_v24, %s7612_s6 }
  0xa6   : > { %627 = vrot.lane.b32.xlu0 %v8042_v25, %s7612_s6  ;;  %629 = vrot.lane.b32.xlu1 %v8044_v26, %s7612_s6 }
  0xaa   : > { %631 = vrot.lane.b32.xlu0 %v8050_v27, %s7612_s6  ;;  %633 = vrot.lane.b32.xlu1 %v8052_v28, %s7612_s6 }
  0xae   : > { %635 = vrot.lane.b32.xlu0 %v8058_v29, %s7612_s6  ;;  %637 = vrot.lane.b32.xlu1 %v8060_v30, %s7612_s6 }
  0xb2   : > { %639 = vrot.lane.b32.xlu0 %v8066_v31, %s7612_s6  ;;  %641 = vrot.lane.b32.xlu1 %v8068_v32, %s7612_s6 }
  0xb6   : > { %643 = vrot.lane.b32.xlu0 %v8074_v33, %s7612_s6  ;;  %645 = vrot.lane.b32.xlu1 %v8076_v34, %s7612_s6 }
  0xba   : > { %647 = vrot.lane.b32.xlu0 %v8082_v35, %s7612_s6  ;;  %649 = vrot.lane.b32.xlu1 %v8084_v36, %s7612_s6 }
  0xbe   : > { %651 = vrot.lane.b32.xlu0 %v8090_v37, %s7612_s6  ;;  %653 = vrot.lane.b32.xlu1 %v8092_v38, %s7612_s6 }
  0xc2   : > { %655 = vrot.lane.b32.xlu0 %v8098_v39, %s7612_s6  ;;  %657 = vrot.lane.b32.xlu1 %v8100_v40, %s7612_s6 }
  0xc6   : > { %659 = vrot.lane.b32.xlu0 %v8106_v41, %s7612_s6  ;;  %661 = vrot.lane.b32.xlu1 %v8108_v42, %s7612_s6 }
  0xca   : > { %663 = vrot.lane.b32.xlu0 %v8114_v43, %s7612_s6  ;;  %665 = vrot.lane.b32.xlu1 %v8116_v44, %s7612_s6 }
  0xce   : > { %667 = vrot.lane.b32.xlu0 %v8122_v45, %s7612_s6  ;;  %669 = vrot.lane.b32.xlu1 %v8124_v46, %s7612_s6 }
  0xd2   : > { %671 = vrot.lane.b32.xlu0 %v8130_v47, %s7612_s6  ;;  %673 = vrot.lane.b32.xlu1 %v8132_v48, %s7612_s6 }
  0xd6   : > { %675 = vrot.lane.b32.xlu0 %v8138_v49, %s7612_s6  ;;  %677 = vrot.lane.b32.xlu1 %v8140_v50, %s7612_s6 }
  0xda   : > { %679 = vrot.lane.b32.xlu0 %v8146_v51, %s7612_s6  ;;  %681 = vrot.lane.b32.xlu1 %v8148_v52, %s7612_s6 }
  0xde   : > { %683 = vrot.lane.b32.xlu0 %v8154_v53, %s7612_s6  ;;  %685 = vrot.lane.b32.xlu1 %v8156_v54, %s7612_s6 }
  0xe2   : > { %687 = vrot.lane.b32.xlu0 %v8162_v55, %s7612_s6  ;;  %689 = vrot.lane.b32.xlu1 %v8164_v56, %s7612_s6 }
  0xe6   : > { %691 = vrot.lane.b32.xlu0 %v8170_v57, %s7612_s6  ;;  %693 = vrot.lane.b32.xlu1 %v8172_v58, %s7612_s6  ;;  %v8206_v57 = vshrl.u32 %v323_v2, 7  ;;  %v8222_v2 = vld [vmem:[#allocation2 + $0x1e8] sm:$0xff] }
  0xe7   : > { %14910 = vst [vmem:[#allocation35_spill] sm:$0xff] %v8222_v2 }
  0xe8   : > { %14906 = vst [vmem:[#allocation31_spill] sm:$0xff] %v8206_v57  ;;  %vm454_vm1 = vcmp.lt.s32.totalorder %v8206_v57, 7  ;;  %vm325_vm2 = vcmp.lt.s32.totalorder %v8206_v57, 1 }
  0xea   : > { %695 = vrot.lane.b32.xlu0 %v8178_v59, %s7612_s6  ;;  %697 = vrot.lane.b32.xlu1 %v8180_v60, %s7612_s6  ;;  %v8200_v59 = vld [vmem:[#allocation2 + $0x1d8] sm:$0xff] }
  0xec   : > { %v8190_v63 = vpop.permute.xlu0 %583  ;;  %v8192_v0 = vpop.permute.xlu1 %587 }
  0xed   : > { %14901 = vst [vmem:[#allocation26_spill] sm:$0xff] %v8190_v63  ;;  %14902 = vst [vmem:[#allocation27_spill] sm:$0xff] %v8192_v0  ;;  %v8212_v0 = vld [vmem:[#allocation2 + $0x1e0] sm:$0xff]  ;;  %v14527_v63 = vrot.slane %v7954_v3, 1 }
  0xee   : > { %699 = vrot.lane.b32.xlu0 %v8186_v61, %s7612_s6  ;;  %701 = vrot.lane.b32.xlu1 %v8188_v62, %s7612_s6  ;;  %14907 = vst [vmem:[#allocation32_spill] sm:$0xff] %v8212_v0  ;;  %v453_v62 = vrot.slane %v7962_v5, 1  ;;  %v390_v61 = vrot.slane %v7956_v4, 1  ;;  %v392_v4 = vrot.slane %v7970_v7, 1  ;;  %v393_v7 = vrot.slane %v7972_v8, 1 }
  0xf0   : > { %v8202_v60 = vpop.permute.xlu0 %585  ;;  %v8204_v58 = vpop.permute.xlu1 %589 }
  0xf1   : > { %14904 = vst [vmem:[#allocation29_spill] sm:$0xff] %v8202_v60  ;;  %14905 = vst [vmem:[#allocation30_spill] sm:$0xff] %v8204_v58  ;;  %v8232_v58 = vsel %vm454_vm1, %v14527_v63, %v453_v62 }
  0xf2   : > { %703 = vrot.lane.b32.xlu0 %v8198_v1, %s7612_s6  ;;  %705 = vrot.lane.b32.xlu1 %v8200_v59, %s7612_s6  ;;  %14911 = vst [vmem:[#allocation36_spill] sm:$0xff] %v8232_v58 }
  0xf4   : > { %v8217_v56 = vpop.permute.xlu0 %591  ;;  %v8219_v60 = vpop.permute.xlu1 %593 }
  0xf5   : > { %14908 = vst [vmem:[#allocation33_spill] sm:$0xff] %v8217_v56  ;;  %14909 = vst [vmem:[#allocation34_spill] sm:$0xff] %v8219_v60  ;;  %v8236_v56 = vsel %vm454_vm1, %v453_v62, %v390_v61  ;;  %v391_v60 = vrot.slane %v7964_v6, 1 }
  0xf6   : > { %707 = vrot.lane.b32.xlu0 %v8212_v0, %s7612_s6  ;;  %709 = vrot.lane.b32.xlu1 %v8222_v2, %s7612_s6  ;;  %14912 = vst [vmem:[#allocation37_spill] sm:$0xff] %v8236_v56 }
  0xf7   : > { %v8250_v63 = vsel %vm454_vm1, %v391_v60, %v392_v4  ;;  %v8254_v62 = vsel %vm454_vm1, %v390_v61, %v391_v60  ;;  %v8272_v60 = vsel %vm454_vm1, %v392_v4, %v393_v7  ;;  %v395_v61 = vrot.slane %v7980_v10, 1 }
  0xf8   : > { %v8240_v5 = vpop.permute.xlu0 %595  ;;  %v8242_v0 = vpop.permute.xlu1 %597  ;;  %14915 = vst [vmem:[#allocation40_spill] sm:$0xff] %v8250_v63  ;;  %14916 = vst [vmem:[#allocation41_spill] sm:$0xff] %v8254_v62 }
  0xf9   : > { %14913 = vst [vmem:[#allocation38_spill] sm:$0xff] %v8240_v5  ;;  %14914 = vst [vmem:[#allocation39_spill] sm:$0xff] %v8242_v0  ;;  %v394_v5 = vrot.slane %v7978_v9, 1 }
  0xfa   : > { %839 = vrot.lane.b32.xlu0 %v8232_v58, %s7613_s7  ;;  %841 = vrot.lane.b32.xlu1 %v8236_v56, %s7613_s7  ;;  %14920 = vst [vmem:[#allocation45_spill] sm:$0xff] %v8272_v60 }
  0xfb   : > { %v8268_v56 = vsel %vm454_vm1, %v393_v7, %v394_v5  ;;  %v8290_v4 = vsel %vm454_vm1, %v394_v5, %v395_v61  ;;  %v397_v7 = vrot.slane %v7988_v12, 1 }
  0xfc   : > { %v8258_v0 = vpop.permute.xlu0 %599  ;;  %v8260_v6 = vpop.permute.xlu1 %601  ;;  %14919 = vst [vmem:[#allocation44_spill] sm:$0xff] %v8268_v56  ;;  %14924 = vst [vmem:[#allocation49_spill] sm:$0xff] %v8290_v4 }
  0xfd   : > { %14917 = vst [vmem:[#allocation42_spill] sm:$0xff] %v8258_v0  ;;  %14918 = vst [vmem:[#allocation43_spill] sm:$0xff] %v8260_v6  ;;  %v396_v0 = vrot.slane %v7986_v11, 1 }
  0xfe   : > { %845 = vrot.lane.b32.xlu1 %v8250_v63, %s7613_s7  ;;  %843 = vrot.lane.b32.xlu0 %v8254_v62, %s7613_s7 }
  0xff   : > { %v8286_v63 = vsel %vm454_vm1, %v395_v61, %v396_v0  ;;  %v8308_v5 = vsel %vm454_vm1, %v396_v0, %v397_v7  ;;  %v399_v61 = vrot.slane %v7996_v14, 1 }
 0x100   : > { %v8276_v58 = vpop.permute.xlu0 %603  ;;  %v8278_v6 = vpop.permute.xlu1 %605  ;;  %14923 = vst [vmem:[#allocation48_spill] sm:$0xff] %v8286_v63  ;;  %14928 = vst [vmem:[#allocation53_spill] sm:$0xff] %v8308_v5 }
 0x101   : > { %14921 = vst [vmem:[#allocation46_spill] sm:$0xff] %v8276_v58  ;;  %14922 = vst [vmem:[#allocation47_spill] sm:$0xff] %v8278_v6  ;;  %v398_v58 = vrot.slane %v7994_v13, 1 }
 0x102   : > { %849 = vrot.lane.b32.xlu1 %v8268_v56, %s7613_s7  ;;  %847 = vrot.lane.b32.xlu0 %v8272_v60, %s7613_s7 }
 0x103   : > { %v8304_v56 = vsel %vm454_vm1, %v397_v7, %v398_v58  ;;  %v8326_v0 = vsel %vm454_vm1, %v398_v58, %v399_v61  ;;  %v401_v7 = vrot.slane %v8004_v16, 1  ;;  %v15186_v57 = vld [vmem:[#allocation44_spill] sm:$0xff] }
 0x104   : > { %v8294_v62 = vpop.permute.xlu0 %607  ;;  %v8296_v6 = vpop.permute.xlu1 %609  ;;  %14927 = vst [vmem:[#allocation52_spill] sm:$0xff] %v8304_v56  ;;  %14932 = vst [vmem:[#allocation57_spill] sm:$0xff] %v8326_v0 }
 0x105   : > { %14925 = vst [vmem:[#allocation50_spill] sm:$0xff] %v8294_v62  ;;  %14926 = vst [vmem:[#allocation51_spill] sm:$0xff] %v8296_v6  ;;  %v400_v62 = vrot.slane %v8002_v15, 1 }
 0x106   : > { %853 = vrot.lane.b32.xlu1 %v8286_v63, %s7613_s7  ;;  %851 = vrot.lane.b32.xlu0 %v8290_v4, %s7613_s7 }
 0x107   : > { %v8322_v63 = vsel %vm454_vm1, %v399_v61, %v400_v62  ;;  %v8344_v58 = vsel %vm454_vm1, %v400_v62, %v401_v7  ;;  %v403_v61 = vrot.slane %v8012_v18, 1 }
 0x108   : > { %v8312_v60 = vpop.permute.xlu0 %611  ;;  %v8314_v6 = vpop.permute.xlu1 %613  ;;  %14931 = vst [vmem:[#allocation56_spill] sm:$0xff] %v8322_v63  ;;  %14936 = vst [vmem:[#allocation61_spill] sm:$0xff] %v8344_v58 }
 0x109   : > { %14929 = vst [vmem:[#allocation54_spill] sm:$0xff] %v8312_v60  ;;  %14930 = vst [vmem:[#allocation55_spill] sm:$0xff] %v8314_v6  ;;  %v402_v60 = vrot.slane %v8010_v17, 1 }
 0x10a   : > { %857 = vrot.lane.b32.xlu1 %v8304_v56, %s7613_s7  ;;  %855 = vrot.lane.b32.xlu0 %v8308_v5, %s7613_s7 }
 0x10b   : > { %v8340_v56 = vsel %vm454_vm1, %v401_v7, %v402_v60  ;;  %v8362_v62 = vsel %vm454_vm1, %v402_v60, %v403_v61  ;;  %v405_v7 = vrot.slane %v8020_v20, 1 }
 0x10c   : > { %v8330_v4 = vpop.permute.xlu0 %615  ;;  %v8332_v6 = vpop.permute.xlu1 %617  ;;  %14935 = vst [vmem:[#allocation60_spill] sm:$0xff] %v8340_v56  ;;  %14940 = vst [vmem:[#allocation65_spill] sm:$0xff] %v8362_v62 }
 0x10d   : > { %14933 = vst [vmem:[#allocation58_spill] sm:$0xff] %v8330_v4  ;;  %14934 = vst [vmem:[#allocation59_spill] sm:$0xff] %v8332_v6  ;;  %v404_v4 = vrot.slane %v8018_v19, 1 }
 0x10e   : > { %861 = vrot.lane.b32.xlu1 %v8322_v63, %s7613_s7  ;;  %859 = vrot.lane.b32.xlu0 %v8326_v0, %s7613_s7 }
 0x10f   : > { %v8358_v63 = vsel %vm454_vm1, %v403_v61, %v404_v4  ;;  %v8380_v60 = vsel %vm454_vm1, %v404_v4, %v405_v7  ;;  %v407_v61 = vrot.slane %v8028_v22, 1 }
 0x110   : > { %v8348_v5 = vpop.permute.xlu0 %619  ;;  %v8350_v6 = vpop.permute.xlu1 %621  ;;  %14939 = vst [vmem:[#allocation64_spill] sm:$0xff] %v8358_v63  ;;  %14944 = vst [vmem:[#allocation69_spill] sm:$0xff] %v8380_v60 }
 0x111   : > { %14937 = vst [vmem:[#allocation62_spill] sm:$0xff] %v8348_v5  ;;  %14938 = vst [vmem:[#allocation63_spill] sm:$0xff] %v8350_v6  ;;  %v406_v5 = vrot.slane %v8026_v21, 1 }
 0x112   : > { %865 = vrot.lane.b32.xlu1 %v8340_v56, %s7613_s7  ;;  %863 = vrot.lane.b32.xlu0 %v8344_v58, %s7613_s7 }
 0x113   : > { %v8376_v56 = vsel %vm454_vm1, %v405_v7, %v406_v5  ;;  %v8398_v4 = vsel %vm454_vm1, %v406_v5, %v407_v61  ;;  %v409_v7 = vrot.slane %v8036_v24, 1 }
 0x114   : > { %v8366_v0 = vpop.permute.xlu0 %623  ;;  %v8368_v6 = vpop.permute.xlu1 %625  ;;  %14943 = vst [vmem:[#allocation68_spill] sm:$0xff] %v8376_v56  ;;  %14948 = vst [vmem:[#allocation73_spill] sm:$0xff] %v8398_v4 }
 0x115   : > { %14941 = vst [vmem:[#allocation66_spill] sm:$0xff] %v8366_v0  ;;  %14942 = vst [vmem:[#allocation67_spill] sm:$0xff] %v8368_v6  ;;  %v408_v0 = vrot.slane %v8034_v23, 1 }
 0x116   : > { %869 = vrot.lane.b32.xlu1 %v8358_v63, %s7613_s7  ;;  %867 = vrot.lane.b32.xlu0 %v8362_v62, %s7613_s7 }
 0x117   : > { %v8394_v63 = vsel %vm454_vm1, %v407_v61, %v408_v0  ;;  %v8416_v5 = vsel %vm454_vm1, %v408_v0, %v409_v7  ;;  %v411_v61 = vrot.slane %v8044_v26, 1 }
 0x118   : > { %v8384_v58 = vpop.permute.xlu0 %627  ;;  %v8386_v6 = vpop.permute.xlu1 %629  ;;  %14947 = vst [vmem:[#allocation72_spill] sm:$0xff] %v8394_v63  ;;  %14952 = vst [vmem:[#allocation77_spill] sm:$0xff] %v8416_v5 }
 0x119   : > { %14945 = vst [vmem:[#allocation70_spill] sm:$0xff] %v8384_v58  ;;  %14946 = vst [vmem:[#allocation71_spill] sm:$0xff] %v8386_v6  ;;  %v410_v58 = vrot.slane %v8042_v25, 1 }
 0x11a   : > { %873 = vrot.lane.b32.xlu1 %v8376_v56, %s7613_s7  ;;  %871 = vrot.lane.b32.xlu0 %v8380_v60, %s7613_s7 }
 0x11b   : > { %v8412_v56 = vsel %vm454_vm1, %v409_v7, %v410_v58  ;;  %v8434_v0 = vsel %vm454_vm1, %v410_v58, %v411_v61  ;;  %v413_v7 = vrot.slane %v8052_v28, 1 }
 0x11c   : > { %v8402_v62 = vpop.permute.xlu0 %631  ;;  %v8404_v6 = vpop.permute.xlu1 %633  ;;  %14951 = vst [vmem:[#allocation76_spill] sm:$0xff] %v8412_v56  ;;  %14956 = vst [vmem:[#allocation81_spill] sm:$0xff] %v8434_v0 }
 0x11d   : > { %14949 = vst [vmem:[#allocation74_spill] sm:$0xff] %v8402_v62  ;;  %14950 = vst [vmem:[#allocation75_spill] sm:$0xff] %v8404_v6  ;;  %v412_v62 = vrot.slane %v8050_v27, 1 }
 0x11e   : > { %877 = vrot.lane.b32.xlu1 %v8394_v63, %s7613_s7  ;;  %875 = vrot.lane.b32.xlu0 %v8398_v4, %s7613_s7 }
 0x11f   : > { %v8430_v63 = vsel %vm454_vm1, %v411_v61, %v412_v62  ;;  %v8452_v58 = vsel %vm454_vm1, %v412_v62, %v413_v7  ;;  %v415_v61 = vrot.slane %v8060_v30, 1 }
 0x120   : > { %v8420_v60 = vpop.permute.xlu0 %635  ;;  %v8422_v6 = vpop.permute.xlu1 %637  ;;  %14955 = vst [vmem:[#allocation80_spill] sm:$0xff] %v8430_v63  ;;  %14960 = vst [vmem:[#allocation85_spill] sm:$0xff] %v8452_v58 }
 0x121   : > { %14953 = vst [vmem:[#allocation78_spill] sm:$0xff] %v8420_v60  ;;  %14954 = vst [vmem:[#allocation79_spill] sm:$0xff] %v8422_v6  ;;  %v414_v60 = vrot.slane %v8058_v29, 1 }
 0x122   : > { %881 = vrot.lane.b32.xlu1 %v8412_v56, %s7613_s7  ;;  %879 = vrot.lane.b32.xlu0 %v8416_v5, %s7613_s7 }
 0x123   : > { %v8448_v56 = vsel %vm454_vm1, %v413_v7, %v414_v60  ;;  %v8470_v62 = vsel %vm454_vm1, %v414_v60, %v415_v61  ;;  %v417_v7 = vrot.slane %v8068_v32, 1 }
 0x124   : > { %v8438_v4 = vpop.permute.xlu0 %639  ;;  %v8440_v6 = vpop.permute.xlu1 %641  ;;  %14959 = vst [vmem:[#allocation84_spill] sm:$0xff] %v8448_v56  ;;  %14964 = vst [vmem:[#allocation89_spill] sm:$0xff] %v8470_v62 }
 0x125   : > { %14957 = vst [vmem:[#allocation82_spill] sm:$0xff] %v8438_v4  ;;  %14958 = vst [vmem:[#allocation83_spill] sm:$0xff] %v8440_v6  ;;  %v416_v4 = vrot.slane %v8066_v31, 1 }
 0x126   : > { %885 = vrot.lane.b32.xlu1 %v8430_v63, %s7613_s7  ;;  %883 = vrot.lane.b32.xlu0 %v8434_v0, %s7613_s7 }
 0x127   : > { %v8466_v63 = vsel %vm454_vm1, %v415_v61, %v416_v4  ;;  %v8488_v60 = vsel %vm454_vm1, %v416_v4, %v417_v7  ;;  %v419_v61 = vrot.slane %v8076_v34, 1 }
 0x128   : > { %v8456_v5 = vpop.permute.xlu0 %643  ;;  %v8458_v6 = vpop.permute.xlu1 %645  ;;  %14963 = vst [vmem:[#allocation88_spill] sm:$0xff] %v8466_v63  ;;  %14968 = vst [vmem:[#allocation93_spill] sm:$0xff] %v8488_v60 }
 0x129   : > { %14961 = vst [vmem:[#allocation86_spill] sm:$0xff] %v8456_v5  ;;  %14962 = vst [vmem:[#allocation87_spill] sm:$0xff] %v8458_v6  ;;  %v418_v5 = vrot.slane %v8074_v33, 1 }
 0x12a   : > { %889 = vrot.lane.b32.xlu1 %v8448_v56, %s7613_s7  ;;  %887 = vrot.lane.b32.xlu0 %v8452_v58, %s7613_s7 }
 0x12b   : > { %v8484_v56 = vsel %vm454_vm1, %v417_v7, %v418_v5  ;;  %v8506_v4 = vsel %vm454_vm1, %v418_v5, %v419_v61  ;;  %v421_v7 = vrot.slane %v8084_v36, 1 }
 0x12c   : > { %v8474_v0 = vpop.permute.xlu0 %647  ;;  %v8476_v6 = vpop.permute.xlu1 %649  ;;  %14967 = vst [vmem:[#allocation92_spill] sm:$0xff] %v8484_v56  ;;  %14972 = vst [vmem:[#allocation97_spill] sm:$0xff] %v8506_v4 }
 0x12d   : > { %14965 = vst [vmem:[#allocation90_spill] sm:$0xff] %v8474_v0  ;;  %14966 = vst [vmem:[#allocation91_spill] sm:$0xff] %v8476_v6  ;;  %v420_v0 = vrot.slane %v8082_v35, 1 }
 0x12e   : > { %893 = vrot.lane.b32.xlu1 %v8466_v63, %s7613_s7  ;;  %891 = vrot.lane.b32.xlu0 %v8470_v62, %s7613_s7 }
 0x12f   : > { %v8502_v63 = vsel %vm454_vm1, %v419_v61, %v420_v0  ;;  %v8524_v5 = vsel %vm454_vm1, %v420_v0, %v421_v7  ;;  %v423_v61 = vrot.slane %v8092_v38, 1 }
 0x130   : > { %v8492_v58 = vpop.permute.xlu0 %651  ;;  %v8494_v6 = vpop.permute.xlu1 %653  ;;  %14971 = vst [vmem:[#allocation96_spill] sm:$0xff] %v8502_v63  ;;  %14976 = vst [vmem:[#allocation101_spill] sm:$0xff] %v8524_v5 }
 0x131   : > { %14969 = vst [vmem:[#allocation94_spill] sm:$0xff] %v8492_v58  ;;  %14970 = vst [vmem:[#allocation95_spill] sm:$0xff] %v8494_v6  ;;  %v422_v58 = vrot.slane %v8090_v37, 1 }
 0x132   : > { %897 = vrot.lane.b32.xlu1 %v8484_v56, %s7613_s7  ;;  %895 = vrot.lane.b32.xlu0 %v8488_v60, %s7613_s7 }
 0x133   : > { %v8520_v56 = vsel %vm454_vm1, %v421_v7, %v422_v58  ;;  %v8542_v0 = vsel %vm454_vm1, %v422_v58, %v423_v61  ;;  %v425_v7 = vrot.slane %v8100_v40, 1 }
 0x134   : > { %v8510_v62 = vpop.permute.xlu0 %655  ;;  %v8512_v6 = vpop.permute.xlu1 %657  ;;  %14975 = vst [vmem:[#allocation100_spill] sm:$0xff] %v8520_v56  ;;  %14980 = vst [vmem:[#allocation105_spill] sm:$0xff] %v8542_v0 }
 0x135   : > { %14973 = vst [vmem:[#allocation98_spill] sm:$0xff] %v8510_v62  ;;  %14974 = vst [vmem:[#allocation99_spill] sm:$0xff] %v8512_v6  ;;  %v424_v62 = vrot.slane %v8098_v39, 1 }
 0x136   : > { %901 = vrot.lane.b32.xlu1 %v8502_v63, %s7613_s7  ;;  %899 = vrot.lane.b32.xlu0 %v8506_v4, %s7613_s7 }
 0x137   : > { %v8538_v63 = vsel %vm454_vm1, %v423_v61, %v424_v62  ;;  %v8560_v58 = vsel %vm454_vm1, %v424_v62, %v425_v7  ;;  %v427_v61 = vrot.slane %v8108_v42, 1 }
 0x138   : > { %v8528_v60 = vpop.permute.xlu0 %659  ;;  %v8530_v6 = vpop.permute.xlu1 %661  ;;  %14979 = vst [vmem:[#allocation104_spill] sm:$0xff] %v8538_v63  ;;  %14984 = vst [vmem:[#allocation109_spill] sm:$0xff] %v8560_v58 }
 0x139   : > { %14977 = vst [vmem:[#allocation102_spill] sm:$0xff] %v8528_v60  ;;  %14978 = vst [vmem:[#allocation103_spill] sm:$0xff] %v8530_v6  ;;  %v426_v60 = vrot.slane %v8106_v41, 1 }
 0x13a   : > { %905 = vrot.lane.b32.xlu1 %v8520_v56, %s7613_s7  ;;  %903 = vrot.lane.b32.xlu0 %v8524_v5, %s7613_s7 }
 0x13b   : > { %v8556_v56 = vsel %vm454_vm1, %v425_v7, %v426_v60  ;;  %v8578_v62 = vsel %vm454_vm1, %v426_v60, %v427_v61  ;;  %v429_v7 = vrot.slane %v8116_v44, 1 }
 0x13c   : > { %v8546_v4 = vpop.permute.xlu0 %663  ;;  %v8548_v6 = vpop.permute.xlu1 %665  ;;  %14983 = vst [vmem:[#allocation108_spill] sm:$0xff] %v8556_v56  ;;  %14988 = vst [vmem:[#allocation113_spill] sm:$0xff] %v8578_v62 }
 0x13d   : > { %14981 = vst [vmem:[#allocation106_spill] sm:$0xff] %v8546_v4  ;;  %14982 = vst [vmem:[#allocation107_spill] sm:$0xff] %v8548_v6  ;;  %v428_v4 = vrot.slane %v8114_v43, 1 }
 0x13e   : > { %909 = vrot.lane.b32.xlu1 %v8538_v63, %s7613_s7  ;;  %907 = vrot.lane.b32.xlu0 %v8542_v0, %s7613_s7 }
 0x13f   : > { %v8574_v63 = vsel %vm454_vm1, %v427_v61, %v428_v4  ;;  %v8596_v60 = vsel %vm454_vm1, %v428_v4, %v429_v7  ;;  %v431_v61 = vrot.slane %v8124_v46, 1 }
 0x140   : > { %v8564_v5 = vpop.permute.xlu0 %667  ;;  %v8566_v6 = vpop.permute.xlu1 %669  ;;  %14987 = vst [vmem:[#allocation112_spill] sm:$0xff] %v8574_v63  ;;  %14992 = vst [vmem:[#allocation117_spill] sm:$0xff] %v8596_v60 }
 0x141   : > { %14985 = vst [vmem:[#allocation110_spill] sm:$0xff] %v8564_v5  ;;  %14986 = vst [vmem:[#allocation111_spill] sm:$0xff] %v8566_v6  ;;  %v430_v5 = vrot.slane %v8122_v45, 1 }
 0x142   : > { %913 = vrot.lane.b32.xlu1 %v8556_v56, %s7613_s7  ;;  %911 = vrot.lane.b32.xlu0 %v8560_v58, %s7613_s7 }
 0x143   : > { %v8592_v56 = vsel %vm454_vm1, %v429_v7, %v430_v5  ;;  %v8614_v4 = vsel %vm454_vm1, %v430_v5, %v431_v61  ;;  %v433_v7 = vrot.slane %v8132_v48, 1 }
 0x144   : > { %v8582_v0 = vpop.permute.xlu0 %671  ;;  %v8584_v6 = vpop.permute.xlu1 %673  ;;  %14991 = vst [vmem:[#allocation116_spill] sm:$0xff] %v8592_v56  ;;  %14996 = vst [vmem:[#allocation121_spill] sm:$0xff] %v8614_v4 }
 0x145   : > { %14989 = vst [vmem:[#allocation114_spill] sm:$0xff] %v8582_v0  ;;  %14990 = vst [vmem:[#allocation115_spill] sm:$0xff] %v8584_v6  ;;  %v432_v0 = vrot.slane %v8130_v47, 1 }
 0x146   : > { %917 = vrot.lane.b32.xlu1 %v8574_v63, %s7613_s7  ;;  %915 = vrot.lane.b32.xlu0 %v8578_v62, %s7613_s7 }
 0x147   : > { %v8610_v63 = vsel %vm454_vm1, %v431_v61, %v432_v0  ;;  %v8632_v5 = vsel %vm454_vm1, %v432_v0, %v433_v7  ;;  %v435_v61 = vrot.slane %v8140_v50, 1 }
 0x148   : > { %v8600_v58 = vpop.permute.xlu0 %675  ;;  %v8602_v6 = vpop.permute.xlu1 %677  ;;  %14995 = vst [vmem:[#allocation120_spill] sm:$0xff] %v8610_v63  ;;  %15000 = vst [vmem:[#allocation125_spill] sm:$0xff] %v8632_v5 }
 0x149   : > { %14993 = vst [vmem:[#allocation118_spill] sm:$0xff] %v8600_v58  ;;  %14994 = vst [vmem:[#allocation119_spill] sm:$0xff] %v8602_v6  ;;  %v434_v58 = vrot.slane %v8138_v49, 1 }
 0x14a   : > { %921 = vrot.lane.b32.xlu1 %v8592_v56, %s7613_s7  ;;  %919 = vrot.lane.b32.xlu0 %v8596_v60, %s7613_s7 }
 0x14b   : > { %v8628_v56 = vsel %vm454_vm1, %v433_v7, %v434_v58  ;;  %v8650_v0 = vsel %vm454_vm1, %v434_v58, %v435_v61  ;;  %v437_v7 = vrot.slane %v8148_v52, 1 }
 0x14c   : > { %v8618_v62 = vpop.permute.xlu0 %679  ;;  %v8620_v6 = vpop.permute.xlu1 %681  ;;  %14999 = vst [vmem:[#allocation124_spill] sm:$0xff] %v8628_v56  ;;  %15004 = vst [vmem:[#allocation129_spill] sm:$0xff] %v8650_v0 }
 0x14d   : > { %14997 = vst [vmem:[#allocation122_spill] sm:$0xff] %v8618_v62  ;;  %14998 = vst [vmem:[#allocation123_spill] sm:$0xff] %v8620_v6  ;;  %v436_v62 = vrot.slane %v8146_v51, 1 }
 0x14e   : > { %925 = vrot.lane.b32.xlu1 %v8610_v63, %s7613_s7  ;;  %923 = vrot.lane.b32.xlu0 %v8614_v4, %s7613_s7 }
 0x14f   : > { %v8646_v63 = vsel %vm454_vm1, %v435_v61, %v436_v62  ;;  %v8668_v58 = vsel %vm454_vm1, %v436_v62, %v437_v7  ;;  %v439_v61 = vrot.slane %v8156_v54, 1 }
 0x150   : > { %v8636_v60 = vpop.permute.xlu0 %683  ;;  %v8638_v6 = vpop.permute.xlu1 %685  ;;  %15003 = vst [vmem:[#allocation128_spill] sm:$0xff] %v8646_v63  ;;  %15008 = vst [vmem:[#allocation133_spill] sm:$0xff] %v8668_v58 }
 0x151   : > { %15001 = vst [vmem:[#allocation126_spill] sm:$0xff] %v8636_v60  ;;  %15002 = vst [vmem:[#allocation127_spill] sm:$0xff] %v8638_v6  ;;  %v438_v60 = vrot.slane %v8154_v53, 1 }
 0x152   : > { %929 = vrot.lane.b32.xlu1 %v8628_v56, %s7613_s7  ;;  %927 = vrot.lane.b32.xlu0 %v8632_v5, %s7613_s7 }
 0x153   : > { %v8664_v56 = vsel %vm454_vm1, %v437_v7, %v438_v60  ;;  %v8686_v62 = vsel %vm454_vm1, %v438_v60, %v439_v61  ;;  %v15013_v7 = vld [vmem:[#allocation19_spill] sm:$0xff] }
 0x154   : > { %v8654_v4 = vpop.permute.xlu0 %687  ;;  %v8656_v6 = vpop.permute.xlu1 %689  ;;  %15007 = vst [vmem:[#allocation132_spill] sm:$0xff] %v8664_v56  ;;  %15012 = vst [vmem:[#allocation137_spill] sm:$0xff] %v8686_v62 }
 0x155   : > { %15005 = vst [vmem:[#allocation130_spill] sm:$0xff] %v8654_v4  ;;  %15006 = vst [vmem:[#allocation131_spill] sm:$0xff] %v8656_v6  ;;  %v440_v4 = vrot.slane %v8162_v55, 1  ;;  %v15014_v55 = vld [vmem:[#allocation20_spill] sm:$0xff] }
 0x156   : > { %933 = vrot.lane.b32.xlu1 %v8646_v63, %s7613_s7  ;;  %931 = vrot.lane.b32.xlu0 %v8650_v0, %s7613_s7  ;;  %v441_v0 = vrot.slane %v15013_v7, 1 }
 0x157   : > { %v8682_v63 = vsel %vm454_vm1, %v439_v61, %v440_v4  ;;  %v15019_v61 = vld [vmem:[#allocation21_spill] sm:$0xff] }
 0x158   : > { %v8672_v5 = vpop.permute.xlu0 %691  ;;  %v8674_v6 = vpop.permute.xlu1 %693  ;;  %15011 = vst [vmem:[#allocation136_spill] sm:$0xff] %v8682_v63  ;;  %v8704_v60 = vsel %vm454_vm1, %v440_v4, %v441_v0 }
 0x159   : > { %15009 = vst [vmem:[#allocation134_spill] sm:$0xff] %v8672_v5  ;;  %15010 = vst [vmem:[#allocation135_spill] sm:$0xff] %v8674_v6  ;;  %v442_v5 = vrot.slane %v15014_v55, 1  ;;  %v15020_v55 = vld [vmem:[#allocation22_spill] sm:$0xff] }
 0x15a   : > { %937 = vrot.lane.b32.xlu1 %v8664_v56, %s7613_s7  ;;  %935 = vrot.lane.b32.xlu0 %v8668_v58, %s7613_s7  ;;  %15018 = vst [vmem:[#allocation141_spill] sm:$0xff] %v8704_v60  ;;  %v443_v58 = vrot.slane %v15019_v61, 1 }
 0x15b   : > { %v8700_v56 = vsel %vm454_vm1, %v441_v0, %v442_v5  ;;  %v15025_v0 = vld [vmem:[#allocation23_spill] sm:$0xff] }
 0x15c   : > { %v8690_v54 = vpop.permute.xlu0 %695  ;;  %v8692_v6 = vpop.permute.xlu1 %697  ;;  %15017 = vst [vmem:[#allocation140_spill] sm:$0xff] %v8700_v56  ;;  %v8722_v4 = vsel %vm454_vm1, %v442_v5, %v443_v58 }
 0x15d   : > { %15015 = vst [vmem:[#allocation138_spill] sm:$0xff] %v8690_v54  ;;  %15016 = vst [vmem:[#allocation139_spill] sm:$0xff] %v8692_v6  ;;  %v444_v54 = vrot.slane %v15020_v55, 1  ;;  %v15026_v55 = vld [vmem:[#allocation24_spill] sm:$0xff] }
 0x15e   : > { %941 = vrot.lane.b32.xlu1 %v8682_v63, %s7613_s7  ;;  %939 = vrot.lane.b32.xlu0 %v8686_v62, %s7613_s7  ;;  %15024 = vst [vmem:[#allocation145_spill] sm:$0xff] %v8722_v4  ;;  %v445_v62 = vrot.slane %v15025_v0, 1 }
 0x15f   : > { %v8718_v63 = vsel %vm454_vm1, %v443_v58, %v444_v54  ;;  %v15031_v58 = vld [vmem:[#allocation25_spill] sm:$0xff] }
 0x160   : > { %v8708_v7 = vpop.permute.xlu0 %699  ;;  %v8710_v6 = vpop.permute.xlu1 %701  ;;  %15023 = vst [vmem:[#allocation144_spill] sm:$0xff] %v8718_v63  ;;  %v8740_v5 = vsel %vm454_vm1, %v444_v54, %v445_v62 }
 0x161   : > { %15021 = vst [vmem:[#allocation142_spill] sm:$0xff] %v8708_v7  ;;  %15022 = vst [vmem:[#allocation143_spill] sm:$0xff] %v8710_v6  ;;  %v446_v7 = vrot.slane %v15026_v55, 1 }
 0x162   : > { %945 = vrot.lane.b32.xlu1 %v8700_v56, %s7613_s7  ;;  %943 = vrot.lane.b32.xlu0 %v8704_v60, %s7613_s7  ;;  %15030 = vst [vmem:[#allocation148_spill] sm:$0xff] %v8740_v5  ;;  %v447_v60 = vrot.slane %v15031_v58, 1 }
 0x163   : > { %v8736_v56 = vsel %vm454_vm1, %v445_v62, %v446_v7  ;;  %v449_v62 = vrot.slane %v8200_v59, 1 }
 0x164   : > { %v8726_v61 = vpop.permute.xlu0 %703  ;;  %v8728_v6 = vpop.permute.xlu1 %705  ;;  %15029 = vst [vmem:[#allocation147_spill] sm:$0xff] %v8736_v56  ;;  %v8758_v54 = vsel %vm454_vm1, %v446_v7, %v447_v60 }
 0x165   : > { %15027 = vst [vmem:[#allocation23_spill] sm:$0xff] %v8726_v61  ;;  %15028 = vst [vmem:[#allocation146_spill] sm:$0xff] %v8728_v6  ;;  %v448_v61 = vrot.slane %v8198_v1, 1 }
 0x166   : > { %949 = vrot.lane.b32.xlu1 %v8718_v63, %s7613_s7  ;;  %947 = vrot.lane.b32.xlu0 %v8722_v4, %s7613_s7  ;;  %15035 = vst [vmem:[#allocation151_spill] sm:$0xff] %v8758_v54  ;;  %v15036_v4 = vld [vmem:[#allocation32_spill] sm:$0xff] }
 0x167   : > { %v8754_v63 = vsel %vm454_vm1, %v447_v60, %v448_v61  ;;  %v8776_v7 = vsel %vm454_vm1, %v448_v61, %v449_v62  ;;  %v451_v60 = vrot.slane %v8222_v2, 1 }
 0x168   : > { %v8744_v55 = vpop.permute.xlu0 %707  ;;  %v8746_v6 = vpop.permute.xlu1 %709  ;;  %15034 = vst [vmem:[#allocation150_spill] sm:$0xff] %v8754_v63  ;;  %15040 = vst [vmem:[#allocation155_spill] sm:$0xff] %v8776_v7 }
 0x169   : > { %15032 = vst [vmem:[#allocation25_spill] sm:$0xff] %v8744_v55  ;;  %15033 = vst [vmem:[#allocation149_spill] sm:$0xff] %v8746_v6  ;;  %v450_v55 = vrot.slane %v15036_v4, 1  ;;  %v15050_v4 = vld [vmem:[#allocation15_spill] sm:$0xff] }
 0x16a   : > { %953 = vrot.lane.b32.xlu1 %v8736_v56, %s7613_s7  ;;  %951 = vrot.lane.b32.xlu0 %v8740_v5, %s7613_s7 }
 0x16b   : > { %v8772_v56 = vsel %vm454_vm1, %v449_v62, %v450_v55  ;;  %v8795_v61 = vsel %vm454_vm1, %v450_v55, %v451_v60 }
 0x16c   : > { %v8762_v1 = vpop.permute.xlu0 %839  ;;  %v8764_v6 = vpop.permute.xlu1 %841  ;;  %15039 = vst [vmem:[#allocation154_spill] sm:$0xff] %v8772_v56  ;;  %15045 = vst [vmem:[#allocation159_spill] sm:$0xff] %v8795_v61 }
 0x16d   : > { %15037 = vst [vmem:[#allocation152_spill] sm:$0xff] %v8762_v1  ;;  %15038 = vst [vmem:[#allocation153_spill] sm:$0xff] %v8764_v6  ;;  %v15043_v6 = vrot.slane %v7954_v3, 1 }
 0x16e   : > { %957 = vrot.lane.b32.xlu1 %v8754_v63, %s7613_s7  ;;  %955 = vrot.lane.b32.xlu0 %v8758_v54, %s7613_s7 }
 0x16f   : > { %v8791_v63 = vsel %vm454_vm1, %v451_v60, %v15043_v6 }
 0x170   : > { %v8779_v5 = vpop.permute.xlu1 %845  ;;  %v8781_v1 = vpop.permute.xlu0 %843  ;;  %15044 = vst [vmem:[#allocation158_spill] sm:$0xff] %v8791_v63 }
 0x171   : > { %15041 = vst [vmem:[#allocation156_spill] sm:$0xff] %v8779_v5  ;;  %15042 = vst [vmem:[#allocation157_spill] sm:$0xff] %v8781_v1  ;;  %v15048_v1 = vld [vmem:[#allocation14_spill] sm:$0xff] }
 0x172   : > { %961 = vrot.lane.b32.xlu1 %v8772_v56, %s7613_s7  ;;  %959 = vrot.lane.b32.xlu0 %v8776_v7, %s7613_s7  ;;  %v14658_v54 = vrot.slane %v15048_v1, 7  ;;  %v15049_v56 = vld [vmem:[#allocation13_spill] sm:$0xff]  ;;  %v260_v7 = vrot.slane %v15050_v4, 7  ;;  %v15055_v4 = vld [vmem:[#allocation16_spill] sm:$0xff] }
 0x173   : > { %v259_v2 = vrot.slane %v15049_v56, 7  ;;  %v261_v60 = vrot.slane %v15055_v4, 7  ;;  %v264_v4 = vrot.slane %v7980_v10, 7  ;;  %v266_v10 = vrot.slane %v7988_v12, 7 }
 0x174   : > { %v8797_v62 = vpop.permute.xlu1 %849  ;;  %v8799_v5 = vpop.permute.xlu0 %847  ;;  %v268_v12 = vrot.slane %v7996_v14, 7  ;;  %v270_v14 = vrot.slane %v8004_v16, 7  ;;  %v272_v16 = vrot.slane %v8012_v18, 7  ;;  %v274_v18 = vrot.slane %v8020_v20, 7 }
 0x175   : > { %15046 = vst [vmem:[#allocation160_spill] sm:$0xff] %v8797_v62  ;;  %15047 = vst [vmem:[#allocation161_spill] sm:$0xff] %v8799_v5  ;;  %v8817_v55 = vsel %vm325_vm2, %v14658_v54, %v259_v2  ;;  %v8821_v56 = vsel %vm325_vm2, %v259_v2, %v260_v7  ;;  %v262_v62 = vrot.slane %v7972_v8, 7  ;;  %v8835_v54 = vsel %vm325_vm2, %v260_v7, %v261_v60 }
 0x176   : > { %965 = vrot.lane.b32.xlu1 %v8791_v63, %s7613_s7  ;;  %963 = vrot.lane.b32.xlu0 %v8795_v61, %s7613_s7  ;;  %15053 = vst [vmem:[#allocation15_spill] sm:$0xff] %v8817_v55  ;;  %15054 = vst [vmem:[#allocation162_spill] sm:$0xff] %v8821_v56  ;;  %v263_v8 = vrot.slane %v7978_v9, 7  ;;  %v265_v9 = vrot.slane %v7986_v11, 7  ;;  %v267_v11 = vrot.slane %v7994_v13, 7  ;;  %v269_v13 = vrot.slane %v8002_v15, 7 }
 0x177   : > { %v8839_v2 = vsel %vm325_vm2, %v261_v60, %v262_v62  ;;  %v271_v15 = vrot.slane %v8010_v17, 7  ;;  %v273_v17 = vrot.slane %v8018_v19, 7  ;;  %v275_v19 = vrot.slane %v8026_v21, 7 }
 0x178   : > { %v8809_v3 = vpop.permute.xlu1 %853  ;;  %v8811_v6 = vpop.permute.xlu0 %851  ;;  %v8853_v7 = vsel %vm325_vm2, %v262_v62, %v263_v8  ;;  %v8857_v60 = vsel %vm325_vm2, %v263_v8, %v264_v4  ;;  %v8871_v62 = vsel %vm325_vm2, %v264_v4, %v265_v9  ;;  %v8875_v8 = vsel %vm325_vm2, %v265_v9, %v266_v10 }
 0x179   : > { %15051 = vst [vmem:[#allocation14_spill] sm:$0xff] %v8809_v3  ;;  %15052 = vst [vmem:[#allocation13_spill] sm:$0xff] %v8811_v6  ;;  %v8889_v4 = vsel %vm325_vm2, %v266_v10, %v267_v11  ;;  %v8893_v9 = vsel %vm325_vm2, %v267_v11, %v268_v12  ;;  %v8907_v10 = vsel %vm325_vm2, %v268_v12, %v269_v13  ;;  %v276_v20 = vrot.slane %v8028_v22, 7 }
 0x17a   : > { %1095 = vrot.lane.b32.xlu0 %v8817_v55, %s7614_s8  ;;  %1097 = vrot.lane.b32.xlu1 %v8821_v56, %s7614_s8  ;;  %v8911_v11 = vsel %vm325_vm2, %v269_v13, %v270_v14  ;;  %v8925_v12 = vsel %vm325_vm2, %v270_v14, %v271_v15  ;;  %v8929_v13 = vsel %vm325_vm2, %v271_v15, %v272_v16  ;;  %v277_v21 = vrot.slane %v8034_v23, 7  ;;  %v15143_v56 = vld [vmem:[#allocation19_spill] sm:$0xff] }
 0x17b   : > { %15068 = vst [vmem:[#allocation174_spill] sm:$0xff] %v8925_v12  ;;  %15069 = vst [vmem:[#allocation175_spill] sm:$0xff] %v8929_v13  ;;  %v8943_v14 = vsel %vm325_vm2, %v272_v16, %v273_v17  ;;  %v8947_v15 = vsel %vm325_vm2, %v273_v17, %v274_v18  ;;  %v8961_v16 = vsel %vm325_vm2, %v274_v18, %v275_v19  ;;  %v278_v22 = vrot.slane %v8036_v24, 7 }
 0x17c   : > { %v8829_v3 = vpop.permute.xlu1 %857  ;;  %v8831_v6 = vpop.permute.xlu0 %855  ;;  %15072 = vst [vmem:[#allocation178_spill] sm:$0xff] %v8943_v14  ;;  %15073 = vst [vmem:[#allocation179_spill] sm:$0xff] %v8947_v15  ;;  %v8965_v17 = vsel %vm325_vm2, %v275_v19, %v276_v20  ;;  %v8979_v18 = vsel %vm325_vm2, %v276_v20, %v277_v21  ;;  %v279_v23 = vrot.slane %v8042_v25, 7  ;;  %v280_v24 = vrot.slane %v8044_v26, 7 }
 0x17d   : > { %15056 = vst [vmem:[#allocation16_spill] sm:$0xff] %v8829_v3  ;;  %15057 = vst [vmem:[#allocation163_spill] sm:$0xff] %v8831_v6  ;;  %v8983_v19 = vsel %vm325_vm2, %v277_v21, %v278_v22  ;;  %v281_v25 = vrot.slane %v8050_v27, 7  ;;  %v282_v26 = vrot.slane %v8052_v28, 7  ;;  %v283_v27 = vrot.slane %v8058_v29, 7 }
 0x17e   : > { %1099 = vrot.lane.b32.xlu0 %v8835_v54, %s7614_s8  ;;  %1101 = vrot.lane.b32.xlu1 %v8839_v2, %s7614_s8  ;;  %15076 = vst [vmem:[#allocation182_spill] sm:$0xff] %v8961_v16  ;;  %15077 = vst [vmem:[#allocation183_spill] sm:$0xff] %v8965_v17  ;;  %v8997_v20 = vsel %vm325_vm2, %v278_v22, %v279_v23  ;;  %v9001_v21 = vsel %vm325_vm2, %v279_v23, %v280_v24  ;;  %v284_v28 = vrot.slane %v8060_v30, 7 }
 0x17f   : > { %15080 = vst [vmem:[#allocation186_spill] sm:$0xff] %v8979_v18  ;;  %15081 = vst [vmem:[#allocation187_spill] sm:$0xff] %v8983_v19  ;;  %v9015_v22 = vsel %vm325_vm2, %v280_v24, %v281_v25  ;;  %v9019_v23 = vsel %vm325_vm2, %v281_v25, %v282_v26  ;;  %v9033_v24 = vsel %vm325_vm2, %v282_v26, %v283_v27  ;;  %v285_v29 = vrot.slane %v8066_v31, 7 }
 0x180   : > { %v8847_v3 = vpop.permute.xlu1 %861  ;;  %v8849_v6 = vpop.permute.xlu0 %859  ;;  %15084 = vst [vmem:[#allocation190_spill] sm:$0xff] %v8997_v20  ;;  %15085 = vst [vmem:[#allocation191_spill] sm:$0xff] %v9001_v21  ;;  %v9037_v25 = vsel %vm325_vm2, %v283_v27, %v284_v28  ;;  %v286_v30 = vrot.slane %v8068_v32, 7  ;;  %v287_v31 = vrot.slane %v8074_v33, 7  ;;  %v288_v32 = vrot.slane %v8076_v34, 7 }
 0x181   : > { %15058 = vst [vmem:[#allocation164_spill] sm:$0xff] %v8847_v3  ;;  %15059 = vst [vmem:[#allocation165_spill] sm:$0xff] %v8849_v6  ;;  %v9051_v26 = vsel %vm325_vm2, %v284_v28, %v285_v29  ;;  %v289_v33 = vrot.slane %v8082_v35, 7  ;;  %v290_v34 = vrot.slane %v8084_v36, 7  ;;  %v291_v35 = vrot.slane %v8090_v37, 7 }
 0x182   : > { %1103 = vrot.lane.b32.xlu0 %v8853_v7, %s7614_s8  ;;  %1105 = vrot.lane.b32.xlu1 %v8857_v60, %s7614_s8  ;;  %15088 = vst [vmem:[#allocation194_spill] sm:$0xff] %v9015_v22  ;;  %15089 = vst [vmem:[#allocation195_spill] sm:$0xff] %v9019_v23  ;;  %v9055_v27 = vsel %vm325_vm2, %v285_v29, %v286_v30  ;;  %v9069_v28 = vsel %vm325_vm2, %v286_v30, %v287_v31  ;;  %v292_v36 = vrot.slane %v8092_v38, 7 }
 0x183   : > { %15092 = vst [vmem:[#allocation198_spill] sm:$0xff] %v9033_v24  ;;  %15093 = vst [vmem:[#allocation199_spill] sm:$0xff] %v9037_v25  ;;  %v9073_v29 = vsel %vm325_vm2, %v287_v31, %v288_v32  ;;  %v9087_v30 = vsel %vm325_vm2, %v288_v32, %v289_v33  ;;  %v9091_v31 = vsel %vm325_vm2, %v289_v33, %v290_v34  ;;  %v293_v37 = vrot.slane %v8098_v39, 7 }
 0x184   : > { %v8865_v3 = vpop.permute.xlu1 %865  ;;  %v8867_v6 = vpop.permute.xlu0 %863  ;;  %15096 = vst [vmem:[#allocation202_spill] sm:$0xff] %v9051_v26  ;;  %15097 = vst [vmem:[#allocation203_spill] sm:$0xff] %v9055_v27  ;;  %v9105_v32 = vsel %vm325_vm2, %v290_v34, %v291_v35  ;;  %v9109_v33 = vsel %vm325_vm2, %v291_v35, %v292_v36  ;;  %v294_v38 = vrot.slane %v8100_v40, 7  ;;  %v295_v39 = vrot.slane %v8106_v41, 7 }
 0x185   : > { %15060 = vst [vmem:[#allocation166_spill] sm:$0xff] %v8865_v3  ;;  %15061 = vst [vmem:[#allocation167_spill] sm:$0xff] %v8867_v6  ;;  %v9123_v34 = vsel %vm325_vm2, %v292_v36, %v293_v37  ;;  %v296_v40 = vrot.slane %v8108_v42, 7  ;;  %v297_v41 = vrot.slane %v8114_v43, 7  ;;  %v298_v42 = vrot.slane %v8116_v44, 7 }
 0x186   : > { %1107 = vrot.lane.b32.xlu0 %v8871_v62, %s7614_s8  ;;  %1109 = vrot.lane.b32.xlu1 %v8875_v8, %s7614_s8  ;;  %15100 = vst [vmem:[#allocation206_spill] sm:$0xff] %v9069_v28  ;;  %15101 = vst [vmem:[#allocation207_spill] sm:$0xff] %v9073_v29  ;;  %v9127_v35 = vsel %vm325_vm2, %v293_v37, %v294_v38  ;;  %v9141_v36 = vsel %vm325_vm2, %v294_v38, %v295_v39  ;;  %v299_v43 = vrot.slane %v8122_v45, 7 }
 0x187   : > { %15104 = vst [vmem:[#allocation210_spill] sm:$0xff] %v9087_v30  ;;  %15105 = vst [vmem:[#allocation211_spill] sm:$0xff] %v9091_v31  ;;  %v9145_v37 = vsel %vm325_vm2, %v295_v39, %v296_v40  ;;  %v9159_v38 = vsel %vm325_vm2, %v296_v40, %v297_v41  ;;  %v9163_v39 = vsel %vm325_vm2, %v297_v41, %v298_v42  ;;  %v300_v44 = vrot.slane %v8124_v46, 7 }
 0x188   : > { %v8883_v3 = vpop.permute.xlu1 %869  ;;  %v8885_v6 = vpop.permute.xlu0 %867  ;;  %15108 = vst [vmem:[#allocation214_spill] sm:$0xff] %v9105_v32  ;;  %15109 = vst [vmem:[#allocation215_spill] sm:$0xff] %v9109_v33  ;;  %v9177_v40 = vsel %vm325_vm2, %v298_v42, %v299_v43  ;;  %v301_v45 = vrot.slane %v8130_v47, 7  ;;  %v302_v46 = vrot.slane %v8132_v48, 7  ;;  %v303_v47 = vrot.slane %v8138_v49, 7 }
 0x189   : > { %15062 = vst [vmem:[#allocation168_spill] sm:$0xff] %v8883_v3  ;;  %15063 = vst [vmem:[#allocation169_spill] sm:$0xff] %v8885_v6  ;;  %v9181_v41 = vsel %vm325_vm2, %v299_v43, %v300_v44  ;;  %v304_v48 = vrot.slane %v8140_v50, 7  ;;  %v305_v49 = vrot.slane %v8146_v51, 7  ;;  %v306_v50 = vrot.slane %v8148_v52, 7  ;;  %v15138_v52 = vld [vmem:[#allocation17_spill] sm:$0xff] }
 0x18a   : > { %1111 = vrot.lane.b32.xlu0 %v8889_v4, %s7614_s8  ;;  %1113 = vrot.lane.b32.xlu1 %v8893_v9, %s7614_s8  ;;  %15112 = vst [vmem:[#allocation218_spill] sm:$0xff] %v9123_v34  ;;  %15113 = vst [vmem:[#allocation219_spill] sm:$0xff] %v9127_v35  ;;  %v9195_v42 = vsel %vm325_vm2, %v300_v44, %v301_v45  ;;  %v9199_v43 = vsel %vm325_vm2, %v301_v45, %v302_v46  ;;  %v307_v51 = vrot.slane %v8154_v53, 7  ;;  %v15142_v53 = vld [vmem:[#allocation18_spill] sm:$0xff] }
 0x18b   : > { %15116 = vst [vmem:[#allocation222_spill] sm:$0xff] %v9141_v36  ;;  %15117 = vst [vmem:[#allocation223_spill] sm:$0xff] %v9145_v37  ;;  %v9213_v44 = vsel %vm325_vm2, %v302_v46, %v303_v47  ;;  %v9217_v45 = vsel %vm325_vm2, %v303_v47, %v304_v48  ;;  %v9231_v46 = vsel %vm325_vm2, %v304_v48, %v305_v49  ;;  %v308_v5 = vrot.slane %v15138_v52, 7 }
 0x18c   : > { %v8901_v3 = vpop.permute.xlu1 %873  ;;  %v8903_v6 = vpop.permute.xlu0 %871  ;;  %15120 = vst [vmem:[#allocation226_spill] sm:$0xff] %v9159_v38  ;;  %15121 = vst [vmem:[#allocation227_spill] sm:$0xff] %v9163_v39  ;;  %v9235_v47 = vsel %vm325_vm2, %v305_v49, %v306_v50  ;;  %v9249_v48 = vsel %vm325_vm2, %v306_v50, %v307_v51  ;;  %v309_v52 = vrot.slane %v15142_v53, 7  ;;  %v310_v55 = vrot.slane %v15143_v56, 7  ;;  %v15147_v53 = vld [vmem:[#allocation20_spill] sm:$0xff] }
 0x18d   : > { %15064 = vst [vmem:[#allocation170_spill] sm:$0xff] %v8901_v3  ;;  %15065 = vst [vmem:[#allocation171_spill] sm:$0xff] %v8903_v6  ;;  %v9253_v49 = vsel %vm325_vm2, %v307_v51, %v308_v5  ;;  %v311_v56 = vrot.slane %v15147_v53, 7  ;;  %v15153_v53 = vld [vmem:[#allocation22_spill] sm:$0xff] }
 0x18e   : > { %1115 = vrot.lane.b32.xlu0 %v8907_v10, %s7614_s8  ;;  %1117 = vrot.lane.b32.xlu1 %v8911_v11, %s7614_s8  ;;  %15124 = vst [vmem:[#allocation230_spill] sm:$0xff] %v9177_v40  ;;  %15125 = vst [vmem:[#allocation231_spill] sm:$0xff] %v9181_v41  ;;  %v9267_v50 = vsel %vm325_vm2, %v308_v5, %v309_v52  ;;  %v9271_v51 = vsel %vm325_vm2, %v309_v52, %v310_v55 }
 0x18f   : > { %15128 = vst [vmem:[#allocation234_spill] sm:$0xff] %v9195_v42  ;;  %15129 = vst [vmem:[#allocation235_spill] sm:$0xff] %v9199_v43  ;;  %v9285_v5 = vsel %vm325_vm2, %v310_v55, %v311_v56 }
 0x190   : > { %v8919_v3 = vpop.permute.xlu1 %877  ;;  %v8921_v6 = vpop.permute.xlu0 %875  ;;  %15132 = vst [vmem:[#allocation238_spill] sm:$0xff] %v9213_v44  ;;  %15133 = vst [vmem:[#allocation239_spill] sm:$0xff] %v9217_v45 }
 0x191   : > { %15066 = vst [vmem:[#allocation172_spill] sm:$0xff] %v8919_v3  ;;  %15067 = vst [vmem:[#allocation173_spill] sm:$0xff] %v8921_v6 }
 0x192   : > { %1119 = vrot.lane.b32.xlu0 %v8925_v12, %s7614_s8  ;;  %1121 = vrot.lane.b32.xlu1 %v8929_v13, %s7614_s8  ;;  %15136 = vst [vmem:[#allocation242_spill] sm:$0xff] %v9231_v46  ;;  %15137 = vst [vmem:[#allocation243_spill] sm:$0xff] %v9235_v47 }
 0x193   : > { %15141 = vst [vmem:[#allocation245_spill] sm:$0xff] %v9253_v49  ;;  %15146 = vst [vmem:[#allocation246_spill] sm:$0xff] %v9271_v51 }
 0x194   : > { %v8937_v3 = vpop.permute.xlu1 %881  ;;  %v8939_v6 = vpop.permute.xlu0 %879  ;;  %15151 = vst [vmem:[#allocation247_spill] sm:$0xff] %v9285_v5 }
 0x195   : > { %15070 = vst [vmem:[#allocation176_spill] sm:$0xff] %v8937_v3  ;;  %15071 = vst [vmem:[#allocation177_spill] sm:$0xff] %v8939_v6 }
 0x196   : > { %1123 = vrot.lane.b32.xlu0 %v8943_v14, %s7614_s8  ;;  %1125 = vrot.lane.b32.xlu1 %v8947_v15, %s7614_s8 }
 0x198   : > { %v8955_v3 = vpop.permute.xlu1 %885  ;;  %v8957_v6 = vpop.permute.xlu0 %883 }
 0x199   : > { %15074 = vst [vmem:[#allocation180_spill] sm:$0xff] %v8955_v3  ;;  %15075 = vst [vmem:[#allocation181_spill] sm:$0xff] %v8957_v6 }
 0x19a   : > { %1127 = vrot.lane.b32.xlu0 %v8961_v16, %s7614_s8  ;;  %1129 = vrot.lane.b32.xlu1 %v8965_v17, %s7614_s8 }
 0x19c   : > { %v8973_v3 = vpop.permute.xlu1 %889  ;;  %v8975_v6 = vpop.permute.xlu0 %887 }
 0x19d   : > { %15078 = vst [vmem:[#allocation184_spill] sm:$0xff] %v8973_v3  ;;  %15079 = vst [vmem:[#allocation185_spill] sm:$0xff] %v8975_v6 }
 0x19e   : > { %1131 = vrot.lane.b32.xlu0 %v8979_v18, %s7614_s8  ;;  %1133 = vrot.lane.b32.xlu1 %v8983_v19, %s7614_s8 }
 0x1a0   : > { %v8991_v3 = vpop.permute.xlu1 %893  ;;  %v8993_v6 = vpop.permute.xlu0 %891 }
 0x1a1   : > { %15082 = vst [vmem:[#allocation188_spill] sm:$0xff] %v8991_v3  ;;  %15083 = vst [vmem:[#allocation189_spill] sm:$0xff] %v8993_v6 }
 0x1a2   : > { %1135 = vrot.lane.b32.xlu0 %v8997_v20, %s7614_s8  ;;  %1137 = vrot.lane.b32.xlu1 %v9001_v21, %s7614_s8 }
 0x1a4   : > { %v9009_v3 = vpop.permute.xlu1 %897  ;;  %v9011_v6 = vpop.permute.xlu0 %895 }
 0x1a5   : > { %15086 = vst [vmem:[#allocation192_spill] sm:$0xff] %v9009_v3  ;;  %15087 = vst [vmem:[#allocation193_spill] sm:$0xff] %v9011_v6 }
 0x1a6   : > { %1139 = vrot.lane.b32.xlu0 %v9015_v22, %s7614_s8  ;;  %1141 = vrot.lane.b32.xlu1 %v9019_v23, %s7614_s8 }
 0x1a8   : > { %v9027_v3 = vpop.permute.xlu1 %901  ;;  %v9029_v6 = vpop.permute.xlu0 %899 }
 0x1a9   : > { %15090 = vst [vmem:[#allocation196_spill] sm:$0xff] %v9027_v3  ;;  %15091 = vst [vmem:[#allocation197_spill] sm:$0xff] %v9029_v6 }
 0x1aa   : > { %1143 = vrot.lane.b32.xlu0 %v9033_v24, %s7614_s8  ;;  %1145 = vrot.lane.b32.xlu1 %v9037_v25, %s7614_s8 }
 0x1ac   : > { %v9045_v3 = vpop.permute.xlu1 %905  ;;  %v9047_v6 = vpop.permute.xlu0 %903 }
 0x1ad   : > { %15094 = vst [vmem:[#allocation200_spill] sm:$0xff] %v9045_v3  ;;  %15095 = vst [vmem:[#allocation201_spill] sm:$0xff] %v9047_v6 }
 0x1ae   : > { %1147 = vrot.lane.b32.xlu0 %v9051_v26, %s7614_s8  ;;  %1149 = vrot.lane.b32.xlu1 %v9055_v27, %s7614_s8 }
 0x1b0   : > { %v9063_v3 = vpop.permute.xlu1 %909  ;;  %v9065_v6 = vpop.permute.xlu0 %907 }
 0x1b1   : > { %15098 = vst [vmem:[#allocation204_spill] sm:$0xff] %v9063_v3  ;;  %15099 = vst [vmem:[#allocation205_spill] sm:$0xff] %v9065_v6 }
 0x1b2   : > { %1151 = vrot.lane.b32.xlu0 %v9069_v28, %s7614_s8  ;;  %1153 = vrot.lane.b32.xlu1 %v9073_v29, %s7614_s8 }
 0x1b4   : > { %v9081_v3 = vpop.permute.xlu1 %913  ;;  %v9083_v6 = vpop.permute.xlu0 %911 }
 0x1b5   : > { %15102 = vst [vmem:[#allocation208_spill] sm:$0xff] %v9081_v3  ;;  %15103 = vst [vmem:[#allocation209_spill] sm:$0xff] %v9083_v6 }
 0x1b6   : > { %1155 = vrot.lane.b32.xlu0 %v9087_v30, %s7614_s8  ;;  %1157 = vrot.lane.b32.xlu1 %v9091_v31, %s7614_s8 }
 0x1b8   : > { %v9099_v3 = vpop.permute.xlu1 %917  ;;  %v9101_v6 = vpop.permute.xlu0 %915 }
 0x1b9   : > { %15106 = vst [vmem:[#allocation212_spill] sm:$0xff] %v9099_v3  ;;  %15107 = vst [vmem:[#allocation213_spill] sm:$0xff] %v9101_v6 }
 0x1ba   : > { %1159 = vrot.lane.b32.xlu0 %v9105_v32, %s7614_s8  ;;  %1161 = vrot.lane.b32.xlu1 %v9109_v33, %s7614_s8 }
 0x1bc   : > { %v9117_v3 = vpop.permute.xlu1 %921  ;;  %v9119_v6 = vpop.permute.xlu0 %919 }
 0x1bd   : > { %15110 = vst [vmem:[#allocation216_spill] sm:$0xff] %v9117_v3  ;;  %15111 = vst [vmem:[#allocation217_spill] sm:$0xff] %v9119_v6 }
 0x1be   : > { %1163 = vrot.lane.b32.xlu0 %v9123_v34, %s7614_s8  ;;  %1165 = vrot.lane.b32.xlu1 %v9127_v35, %s7614_s8 }
 0x1c0   : > { %v9135_v3 = vpop.permute.xlu1 %925  ;;  %v9137_v6 = vpop.permute.xlu0 %923 }
 0x1c1   : > { %15114 = vst [vmem:[#allocation220_spill] sm:$0xff] %v9135_v3  ;;  %15115 = vst [vmem:[#allocation221_spill] sm:$0xff] %v9137_v6 }
 0x1c2   : > { %1167 = vrot.lane.b32.xlu0 %v9141_v36, %s7614_s8  ;;  %1169 = vrot.lane.b32.xlu1 %v9145_v37, %s7614_s8 }
 0x1c4   : > { %v9153_v3 = vpop.permute.xlu1 %929  ;;  %v9155_v6 = vpop.permute.xlu0 %927 }
 0x1c5   : > { %15118 = vst [vmem:[#allocation224_spill] sm:$0xff] %v9153_v3  ;;  %15119 = vst [vmem:[#allocation225_spill] sm:$0xff] %v9155_v6 }
 0x1c6   : > { %1171 = vrot.lane.b32.xlu0 %v9159_v38, %s7614_s8  ;;  %1173 = vrot.lane.b32.xlu1 %v9163_v39, %s7614_s8 }
 0x1c8   : > { %v9171_v3 = vpop.permute.xlu1 %933  ;;  %v9173_v6 = vpop.permute.xlu0 %931 }
 0x1c9   : > { %15122 = vst [vmem:[#allocation228_spill] sm:$0xff] %v9171_v3  ;;  %15123 = vst [vmem:[#allocation229_spill] sm:$0xff] %v9173_v6 }
 0x1ca   : > { %1175 = vrot.lane.b32.xlu0 %v9177_v40, %s7614_s8  ;;  %1177 = vrot.lane.b32.xlu1 %v9181_v41, %s7614_s8 }
 0x1cc   : > { %v9189_v3 = vpop.permute.xlu1 %937  ;;  %v9191_v6 = vpop.permute.xlu0 %935 }
 0x1cd   : > { %15126 = vst [vmem:[#allocation232_spill] sm:$0xff] %v9189_v3  ;;  %15127 = vst [vmem:[#allocation233_spill] sm:$0xff] %v9191_v6 }
 0x1ce   : > { %1179 = vrot.lane.b32.xlu0 %v9195_v42, %s7614_s8  ;;  %1181 = vrot.lane.b32.xlu1 %v9199_v43, %s7614_s8 }
 0x1d0   : > { %v9207_v3 = vpop.permute.xlu1 %941  ;;  %v9209_v6 = vpop.permute.xlu0 %939 }
 0x1d1   : > { %15130 = vst [vmem:[#allocation236_spill] sm:$0xff] %v9207_v3  ;;  %15131 = vst [vmem:[#allocation237_spill] sm:$0xff] %v9209_v6 }
 0x1d2   : > { %1183 = vrot.lane.b32.xlu0 %v9213_v44, %s7614_s8  ;;  %1185 = vrot.lane.b32.xlu1 %v9217_v45, %s7614_s8 }
 0x1d4   : > { %v9225_v3 = vpop.permute.xlu1 %945  ;;  %v9227_v6 = vpop.permute.xlu0 %943 }
 0x1d5   : > { %15134 = vst [vmem:[#allocation240_spill] sm:$0xff] %v9225_v3  ;;  %15135 = vst [vmem:[#allocation241_spill] sm:$0xff] %v9227_v6 }
 0x1d6   : > { %1187 = vrot.lane.b32.xlu0 %v9231_v46, %s7614_s8  ;;  %1189 = vrot.lane.b32.xlu1 %v9235_v47, %s7614_s8  ;;  %v15148_v47 = vld [vmem:[#allocation21_spill] sm:$0xff] }
 0x1d7   : > { %v312_v46 = vrot.slane %v15148_v47, 7  ;;  %v313_v47 = vrot.slane %v15153_v53, 7  ;;  %v15158_v53 = vld [vmem:[#allocation24_spill] sm:$0xff] }
 0x1d8   : > { %v9243_v3 = vpop.permute.xlu1 %949  ;;  %v9245_v6 = vpop.permute.xlu0 %947 }
 0x1d9   : > { %15139 = vst [vmem:[#allocation17_spill] sm:$0xff] %v9243_v3  ;;  %15140 = vst [vmem:[#allocation244_spill] sm:$0xff] %v9245_v6  ;;  %v9289_v52 = vsel %vm325_vm2, %v311_v56, %v312_v46  ;;  %v9303_v55 = vsel %vm325_vm2, %v312_v46, %v313_v47 }
 0x1da   : > { %1191 = vrot.lane.b32.xlu0 %v9249_v48, %s7614_s8  ;;  %1193 = vrot.lane.b32.xlu1 %v9253_v49, %s7614_s8  ;;  %15152 = vst [vmem:[#allocation248_spill] sm:$0xff] %v9289_v52  ;;  %v314_v49 = vrot.slane %v15025_v0, 7  ;;  %15156 = vst [vmem:[#allocation250_spill] sm:$0xff] %v9303_v55  ;;  %v315_v0 = vrot.slane %v15158_v53, 7  ;;  %v15163_v53 = vld [vmem:[#allocation28_spill] sm:$0xff] }
 0x1dc   : > { %v9261_v3 = vpop.permute.xlu1 %953  ;;  %v9263_v6 = vpop.permute.xlu0 %951  ;;  %v9307_v56 = vsel %vm325_vm2, %v313_v47, %v314_v49  ;;  %v9321_v46 = vsel %vm325_vm2, %v314_v49, %v315_v0 }
 0x1dd   : > { %15144 = vst [vmem:[#allocation18_spill] sm:$0xff] %v9261_v3  ;;  %15145 = vst [vmem:[#allocation19_spill] sm:$0xff] %v9263_v6 }
 0x1de   : > { %1195 = vrot.lane.b32.xlu0 %v9267_v50, %s7614_s8  ;;  %1197 = vrot.lane.b32.xlu1 %v9271_v51, %s7614_s8  ;;  %15157 = vst [vmem:[#allocation251_spill] sm:$0xff] %v9307_v56  ;;  %v316_v51 = vrot.slane %v15031_v58, 7  ;;  %15161 = vst [vmem:[#allocation253_spill] sm:$0xff] %v9321_v46  ;;  %v317_v58 = vrot.slane %v15163_v53, 7  ;;  %v15168_v53 = vld [vmem:[#allocation32_spill] sm:$0xff] }
 0x1e0   : > { %v9279_v3 = vpop.permute.xlu1 %957  ;;  %v9281_v6 = vpop.permute.xlu0 %955  ;;  %v9325_v47 = vsel %vm325_vm2, %v315_v0, %v316_v51  ;;  %v9339_v49 = vsel %vm325_vm2, %v316_v51, %v317_v58  ;;  %v9355_v51 = vld [vmem:[#allocation2 + $0x1f0] sm:$0xff] }
 0x1e1   : > { %15149 = vst [vmem:[#allocation20_spill] sm:$0xff] %v9279_v3  ;;  %15150 = vst [vmem:[#allocation21_spill] sm:$0xff] %v9281_v6 }
 0x1e2   : > { %1199 = vrot.lane.b32.xlu0 %v9285_v5, %s7614_s8  ;;  %1201 = vrot.lane.b32.xlu1 %v9289_v52, %s7614_s8  ;;  %15162 = vst [vmem:[#allocation254_spill] sm:$0xff] %v9325_v47  ;;  %v318_v52 = vrot.slane %v8200_v59, 7  ;;  %15166 = vst [vmem:[#allocation256_spill] sm:$0xff] %v9339_v49  ;;  %v319_v59 = vrot.slane %v15168_v53, 7 }
 0x1e3   : > { %15172 = vst [vmem:[#allocation258_spill] sm:$0xff] %v9355_v51 }
 0x1e4   : > { %v9297_v3 = vpop.permute.xlu1 %961  ;;  %v9299_v6 = vpop.permute.xlu0 %959  ;;  %v9343_v0 = vsel %vm325_vm2, %v317_v58, %v318_v52  ;;  %v9360_v58 = vsel %vm325_vm2, %v318_v52, %v319_v59  ;;  %v15177_v52 = vrot.slane %v15048_v1, 7 }
 0x1e5   : > { %15154 = vst [vmem:[#allocation22_spill] sm:$0xff] %v9297_v3  ;;  %15155 = vst [vmem:[#allocation249_spill] sm:$0xff] %v9299_v6 }
 0x1e6   : > { %1203 = vrot.lane.b32.xlu0 %v9303_v55, %s7614_s8  ;;  %1205 = vrot.lane.b32.xlu1 %v9307_v56, %s7614_s8  ;;  %15167 = vst [vmem:[#allocation257_spill] sm:$0xff] %v9343_v0  ;;  %v321_v56 = vrot.slane %v9355_v51, 7  ;;  %15173 = vst [vmem:[#allocation259_spill] sm:$0xff] %v9360_v58 }
 0x1e8   : > { %v9315_v3 = vpop.permute.xlu1 %965  ;;  %v9317_v6 = vpop.permute.xlu0 %963 }
 0x1e9   : > { %15159 = vst [vmem:[#allocation24_spill] sm:$0xff] %v9315_v3  ;;  %15160 = vst [vmem:[#allocation252_spill] sm:$0xff] %v9317_v6 }
 0x1ea   : > { %1207 = vrot.lane.b32.xlu0 %v9321_v46, %s7614_s8  ;;  %1209 = vrot.lane.b32.xlu1 %v9325_v47, %s7614_s8  ;;  %v15169_v47 = vld [vmem:[#allocation35_spill] sm:$0xff] }
 0x1ec   : > { %v9333_v3 = vpop.permute.xlu0 %1095  ;;  %v9335_v6 = vpop.permute.xlu1 %1097 }
 0x1ed   : > { %15164 = vst [vmem:[#allocation28_spill] sm:$0xff] %v9333_v3  ;;  %15165 = vst [vmem:[#allocation255_spill] sm:$0xff] %v9335_v6  ;;  %v320_v3 = vrot.slane %v15169_v47, 7 }
 0x1ee   : > { %1211 = vrot.lane.b32.xlu0 %v9339_v49, %s7614_s8  ;;  %1213 = vrot.lane.b32.xlu1 %v9343_v0, %s7614_s8 }
 0x1ef   : > { %v9364_v53 = vsel %vm325_vm2, %v319_v59, %v320_v3  ;;  %v9382_v59 = vsel %vm325_vm2, %v321_v56, %v15177_v52  ;;  %v15185_v52 = vld [vmem:[#allocation45_spill] sm:$0xff] }
 0x1f0   : > { %v9351_v46 = vpop.permute.xlu0 %1099  ;;  %v9353_v6 = vpop.permute.xlu1 %1101  ;;  %15174 = vst [vmem:[#allocation260_spill] sm:$0xff] %v9364_v53  ;;  %15178 = vst [vmem:[#allocation263_spill] sm:$0xff] %v9382_v59 }
 0x1f1   : > { %15170 = vst [vmem:[#allocation32_spill] sm:$0xff] %v9351_v46  ;;  %15171 = vst [vmem:[#allocation35_spill] sm:$0xff] %v9353_v6  ;;  %v9376_v46 = vsel %vm325_vm2, %v320_v3, %v321_v56  ;;  %v15182_v3 = vld [vmem:[#allocation40_spill] sm:$0xff] }
 0x1f2   : > { %1215 = vrot.lane.b32.xlu0 %v9360_v58, %s7614_s8  ;;  %1217 = vrot.lane.b32.xlu1 %v9364_v53, %s7614_s8 }
 0x1f4   : > { %v9370_v47 = vpop.permute.xlu0 %1103  ;;  %v9372_v6 = vpop.permute.xlu1 %1105 }
 0x1f5   : > { %15175 = vst [vmem:[#allocation261_spill] sm:$0xff] %v9370_v47  ;;  %15176 = vst [vmem:[#allocation262_spill] sm:$0xff] %v9372_v6  ;;  %v15181_v6 = vld [vmem:[#allocation41_spill] sm:$0xff] }
 0x1f6   : > { %1219 = vrot.lane.b32.xlu0 %v9376_v46, %s7614_s8  ;;  %1221 = vrot.lane.b32.xlu1 %v9382_v59, %s7614_s8 }
 0x1f8   : > { %v9388_v51 = vpop.permute.xlu0 %1107  ;;  %v9390_v47 = vpop.permute.xlu1 %1109 }
 0x1f9   : > { %15179 = vst [vmem:[#allocation264_spill] sm:$0xff] %v9388_v51  ;;  %15180 = vst [vmem:[#allocation265_spill] sm:$0xff] %v9390_v47  ;;  %v15189_v47 = vld [vmem:[#allocation49_spill] sm:$0xff] }
 0x1fa   : > { %1287 = vrot.lane.b32.xlu0 %v15181_v6, %s7612_s6  ;;  %1289 = vrot.lane.b32.xlu1 %v15182_v3, %s7612_s6  ;;  %v15190_v6 = vld [vmem:[#allocation48_spill] sm:$0xff] }
 0x1fc   : > { %v9396_v1 = vpop.permute.xlu0 %1111  ;;  %v9398_v56 = vpop.permute.xlu1 %1113 }
 0x1fd   : > { %15183 = vst [vmem:[#allocation266_spill] sm:$0xff] %v9396_v1  ;;  %15184 = vst [vmem:[#allocation267_spill] sm:$0xff] %v9398_v56  ;;  %v15193_v56 = vld [vmem:[#allocation53_spill] sm:$0xff] }
 0x1fe   : > { %1291 = vrot.lane.b32.xlu0 %v15185_v52, %s7612_s6  ;;  %1293 = vrot.lane.b32.xlu1 %v15186_v57, %s7612_s6  ;;  %v15194_v52 = vld [vmem:[#allocation52_spill] sm:$0xff] }
 0x200   : > { %v9404_v59 = vpop.permute.xlu0 %1115  ;;  %v9406_v51 = vpop.permute.xlu1 %1117 }
 0x201   : > { %15187 = vst [vmem:[#allocation268_spill] sm:$0xff] %v9404_v59  ;;  %15188 = vst [vmem:[#allocation269_spill] sm:$0xff] %v9406_v51  ;;  %v15197_v51 = vld [vmem:[#allocation57_spill] sm:$0xff] }
 0x202   : > { %1295 = vrot.lane.b32.xlu0 %v15189_v47, %s7612_s6  ;;  %1297 = vrot.lane.b32.xlu1 %v15190_v6, %s7612_s6  ;;  %v15198_v47 = vld [vmem:[#allocation56_spill] sm:$0xff] }
 0x204   : > { %v9412_v3 = vpop.permute.xlu0 %1119  ;;  %v9414_v1 = vpop.permute.xlu1 %1121 }
 0x205   : > { %15191 = vst [vmem:[#allocation270_spill] sm:$0xff] %v9412_v3  ;;  %15192 = vst [vmem:[#allocation271_spill] sm:$0xff] %v9414_v1  ;;  %v15201_v1 = vld [vmem:[#allocation61_spill] sm:$0xff] }
 0x206   : > { %1299 = vrot.lane.b32.xlu0 %v15193_v56, %s7612_s6  ;;  %1301 = vrot.lane.b32.xlu1 %v15194_v52, %s7612_s6  ;;  %v15202_v56 = vld [vmem:[#allocation60_spill] sm:$0xff] }
 0x208   : > { %v9420_v57 = vpop.permute.xlu0 %1123  ;;  %v9422_v59 = vpop.permute.xlu1 %1125 }
 0x209   : > { %15195 = vst [vmem:[#allocation272_spill] sm:$0xff] %v9420_v57  ;;  %15196 = vst [vmem:[#allocation273_spill] sm:$0xff] %v9422_v59  ;;  %v15205_v59 = vld [vmem:[#allocation65_spill] sm:$0xff] }
 0x20a   : > { %1303 = vrot.lane.b32.xlu0 %v15197_v51, %s7612_s6  ;;  %1305 = vrot.lane.b32.xlu1 %v15198_v47, %s7612_s6  ;;  %v15206_v51 = vld [vmem:[#allocation64_spill] sm:$0xff] }
 0x20c   : > { %v9428_v6 = vpop.permute.xlu0 %1127  ;;  %v9430_v3 = vpop.permute.xlu1 %1129 }
 0x20d   : > { %15199 = vst [vmem:[#allocation274_spill] sm:$0xff] %v9428_v6  ;;  %15200 = vst [vmem:[#allocation275_spill] sm:$0xff] %v9430_v3  ;;  %v15209_v3 = vld [vmem:[#allocation69_spill] sm:$0xff] }
 0x20e   : > { %1307 = vrot.lane.b32.xlu0 %v15201_v1, %s7612_s6  ;;  %1309 = vrot.lane.b32.xlu1 %v15202_v56, %s7612_s6  ;;  %v15210_v1 = vld [vmem:[#allocation68_spill] sm:$0xff] }
 0x210   : > { %v9436_v52 = vpop.permute.xlu0 %1131  ;;  %v9438_v57 = vpop.permute.xlu1 %1133 }
 0x211   : > { %15203 = vst [vmem:[#allocation276_spill] sm:$0xff] %v9436_v52  ;;  %15204 = vst [vmem:[#allocation277_spill] sm:$0xff] %v9438_v57  ;;  %v15213_v57 = vld [vmem:[#allocation73_spill] sm:$0xff] }
 0x212   : > { %1311 = vrot.lane.b32.xlu0 %v15205_v59, %s7612_s6  ;;  %1313 = vrot.lane.b32.xlu1 %v15206_v51, %s7612_s6  ;;  %v15214_v59 = vld [vmem:[#allocation72_spill] sm:$0xff] }
 0x214   : > { %v9444_v47 = vpop.permute.xlu0 %1135  ;;  %v9446_v6 = vpop.permute.xlu1 %1137 }
 0x215   : > { %15207 = vst [vmem:[#allocation278_spill] sm:$0xff] %v9444_v47  ;;  %15208 = vst [vmem:[#allocation279_spill] sm:$0xff] %v9446_v6  ;;  %v15217_v6 = vld [vmem:[#allocation77_spill] sm:$0xff] }
 0x216   : > { %1315 = vrot.lane.b32.xlu0 %v15209_v3, %s7612_s6  ;;  %1317 = vrot.lane.b32.xlu1 %v15210_v1, %s7612_s6  ;;  %v15218_v3 = vld [vmem:[#allocation76_spill] sm:$0xff] }
 0x218   : > { %v9452_v56 = vpop.permute.xlu0 %1139  ;;  %v9454_v52 = vpop.permute.xlu1 %1141 }
 0x219   : > { %15211 = vst [vmem:[#allocation280_spill] sm:$0xff] %v9452_v56  ;;  %15212 = vst [vmem:[#allocation281_spill] sm:$0xff] %v9454_v52  ;;  %v15221_v52 = vld [vmem:[#allocation81_spill] sm:$0xff] }
 0x21a   : > { %1319 = vrot.lane.b32.xlu0 %v15213_v57, %s7612_s6  ;;  %1321 = vrot.lane.b32.xlu1 %v15214_v59, %s7612_s6  ;;  %v15222_v57 = vld [vmem:[#allocation80_spill] sm:$0xff] }
 0x21c   : > { %v9460_v51 = vpop.permute.xlu0 %1143  ;;  %v9462_v47 = vpop.permute.xlu1 %1145 }
 0x21d   : > { %15215 = vst [vmem:[#allocation282_spill] sm:$0xff] %v9460_v51  ;;  %15216 = vst [vmem:[#allocation283_spill] sm:$0xff] %v9462_v47  ;;  %v15225_v47 = vld [vmem:[#allocation85_spill] sm:$0xff] }
 0x21e   : > { %1323 = vrot.lane.b32.xlu0 %v15217_v6, %s7612_s6  ;;  %1325 = vrot.lane.b32.xlu1 %v15218_v3, %s7612_s6  ;;  %v15226_v6 = vld [vmem:[#allocation84_spill] sm:$0xff] }
 0x220   : > { %v9468_v1 = vpop.permute.xlu0 %1147  ;;  %v9470_v56 = vpop.permute.xlu1 %1149 }
 0x221   : > { %15219 = vst [vmem:[#allocation284_spill] sm:$0xff] %v9468_v1  ;;  %15220 = vst [vmem:[#allocation285_spill] sm:$0xff] %v9470_v56  ;;  %v15229_v56 = vld [vmem:[#allocation89_spill] sm:$0xff] }
 0x222   : > { %1327 = vrot.lane.b32.xlu0 %v15221_v52, %s7612_s6  ;;  %1329 = vrot.lane.b32.xlu1 %v15222_v57, %s7612_s6  ;;  %v15230_v52 = vld [vmem:[#allocation88_spill] sm:$0xff] }
 0x224   : > { %v9476_v59 = vpop.permute.xlu0 %1151  ;;  %v9478_v51 = vpop.permute.xlu1 %1153 }
 0x225   : > { %15223 = vst [vmem:[#allocation286_spill] sm:$0xff] %v9476_v59  ;;  %15224 = vst [vmem:[#allocation287_spill] sm:$0xff] %v9478_v51  ;;  %v15233_v51 = vld [vmem:[#allocation93_spill] sm:$0xff] }
 0x226   : > { %1331 = vrot.lane.b32.xlu0 %v15225_v47, %s7612_s6  ;;  %1333 = vrot.lane.b32.xlu1 %v15226_v6, %s7612_s6  ;;  %v15234_v47 = vld [vmem:[#allocation92_spill] sm:$0xff] }
 0x228   : > { %v9484_v3 = vpop.permute.xlu0 %1155  ;;  %v9486_v1 = vpop.permute.xlu1 %1157 }
 0x229   : > { %15227 = vst [vmem:[#allocation288_spill] sm:$0xff] %v9484_v3  ;;  %15228 = vst [vmem:[#allocation289_spill] sm:$0xff] %v9486_v1  ;;  %v15237_v1 = vld [vmem:[#allocation97_spill] sm:$0xff] }
 0x22a   : > { %1335 = vrot.lane.b32.xlu0 %v15229_v56, %s7612_s6  ;;  %1337 = vrot.lane.b32.xlu1 %v15230_v52, %s7612_s6  ;;  %v15238_v56 = vld [vmem:[#allocation96_spill] sm:$0xff] }
 0x22c   : > { %v9492_v57 = vpop.permute.xlu0 %1159  ;;  %v9494_v59 = vpop.permute.xlu1 %1161 }
 0x22d   : > { %15231 = vst [vmem:[#allocation290_spill] sm:$0xff] %v9492_v57  ;;  %15232 = vst [vmem:[#allocation291_spill] sm:$0xff] %v9494_v59  ;;  %v15241_v59 = vld [vmem:[#allocation101_spill] sm:$0xff] }
 0x22e   : > { %1339 = vrot.lane.b32.xlu0 %v15233_v51, %s7612_s6  ;;  %1341 = vrot.lane.b32.xlu1 %v15234_v47, %s7612_s6  ;;  %v15242_v51 = vld [vmem:[#allocation100_spill] sm:$0xff] }
 0x230   : > { %v9500_v6 = vpop.permute.xlu0 %1163  ;;  %v9502_v3 = vpop.permute.xlu1 %1165 }
 0x231   : > { %15235 = vst [vmem:[#allocation292_spill] sm:$0xff] %v9500_v6  ;;  %15236 = vst [vmem:[#allocation293_spill] sm:$0xff] %v9502_v3  ;;  %v15245_v3 = vld [vmem:[#allocation105_spill] sm:$0xff] }
 0x232   : > { %1343 = vrot.lane.b32.xlu0 %v15237_v1, %s7612_s6  ;;  %1345 = vrot.lane.b32.xlu1 %v15238_v56, %s7612_s6  ;;  %v15246_v1 = vld [vmem:[#allocation104_spill] sm:$0xff] }
 0x234   : > { %v9508_v52 = vpop.permute.xlu0 %1167  ;;  %v9510_v57 = vpop.permute.xlu1 %1169 }
 0x235   : > { %15239 = vst [vmem:[#allocation294_spill] sm:$0xff] %v9508_v52  ;;  %15240 = vst [vmem:[#allocation295_spill] sm:$0xff] %v9510_v57  ;;  %v15249_v57 = vld [vmem:[#allocation109_spill] sm:$0xff] }
 0x236   : > { %1347 = vrot.lane.b32.xlu0 %v15241_v59, %s7612_s6  ;;  %1349 = vrot.lane.b32.xlu1 %v15242_v51, %s7612_s6  ;;  %v15250_v59 = vld [vmem:[#allocation108_spill] sm:$0xff] }
 0x238   : > { %v9516_v47 = vpop.permute.xlu0 %1171  ;;  %v9518_v6 = vpop.permute.xlu1 %1173 }
 0x239   : > { %15243 = vst [vmem:[#allocation296_spill] sm:$0xff] %v9516_v47  ;;  %15244 = vst [vmem:[#allocation297_spill] sm:$0xff] %v9518_v6  ;;  %v15253_v6 = vld [vmem:[#allocation113_spill] sm:$0xff] }
 0x23a   : > { %1351 = vrot.lane.b32.xlu0 %v15245_v3, %s7612_s6  ;;  %1353 = vrot.lane.b32.xlu1 %v15246_v1, %s7612_s6  ;;  %v15254_v3 = vld [vmem:[#allocation112_spill] sm:$0xff] }
 0x23c   : > { %v9524_v56 = vpop.permute.xlu0 %1175  ;;  %v9526_v52 = vpop.permute.xlu1 %1177 }
 0x23d   : > { %15247 = vst [vmem:[#allocation298_spill] sm:$0xff] %v9524_v56  ;;  %15248 = vst [vmem:[#allocation299_spill] sm:$0xff] %v9526_v52  ;;  %v15257_v52 = vld [vmem:[#allocation117_spill] sm:$0xff] }
 0x23e   : > { %1355 = vrot.lane.b32.xlu0 %v15249_v57, %s7612_s6  ;;  %1357 = vrot.lane.b32.xlu1 %v15250_v59, %s7612_s6  ;;  %v15258_v57 = vld [vmem:[#allocation116_spill] sm:$0xff] }
 0x240   : > { %v9532_v51 = vpop.permute.xlu0 %1179  ;;  %v9534_v47 = vpop.permute.xlu1 %1181 }
 0x241   : > { %15251 = vst [vmem:[#allocation300_spill] sm:$0xff] %v9532_v51  ;;  %15252 = vst [vmem:[#allocation301_spill] sm:$0xff] %v9534_v47  ;;  %v15261_v47 = vld [vmem:[#allocation121_spill] sm:$0xff] }
 0x242   : > { %1359 = vrot.lane.b32.xlu0 %v15253_v6, %s7612_s6  ;;  %1361 = vrot.lane.b32.xlu1 %v15254_v3, %s7612_s6  ;;  %v15262_v6 = vld [vmem:[#allocation120_spill] sm:$0xff] }
 0x244   : > { %v9540_v1 = vpop.permute.xlu0 %1183  ;;  %v9542_v56 = vpop.permute.xlu1 %1185 }
 0x245   : > { %15255 = vst [vmem:[#allocation302_spill] sm:$0xff] %v9540_v1  ;;  %15256 = vst [vmem:[#allocation303_spill] sm:$0xff] %v9542_v56  ;;  %v15265_v56 = vld [vmem:[#allocation125_spill] sm:$0xff] }
 0x246   : > { %1363 = vrot.lane.b32.xlu0 %v15257_v52, %s7612_s6  ;;  %1365 = vrot.lane.b32.xlu1 %v15258_v57, %s7612_s6  ;;  %v15266_v52 = vld [vmem:[#allocation124_spill] sm:$0xff] }
 0x248   : > { %v9548_v59 = vpop.permute.xlu0 %1187  ;;  %v9550_v51 = vpop.permute.xlu1 %1189 }
 0x249   : > { %15259 = vst [vmem:[#allocation304_spill] sm:$0xff] %v9548_v59  ;;  %15260 = vst [vmem:[#allocation305_spill] sm:$0xff] %v9550_v51  ;;  %v15269_v51 = vld [vmem:[#allocation129_spill] sm:$0xff] }
 0x24a   : > { %1367 = vrot.lane.b32.xlu0 %v15261_v47, %s7612_s6  ;;  %1369 = vrot.lane.b32.xlu1 %v15262_v6, %s7612_s6  ;;  %v15270_v47 = vld [vmem:[#allocation128_spill] sm:$0xff] }
 0x24c   : > { %v9556_v3 = vpop.permute.xlu0 %1191  ;;  %v9558_v1 = vpop.permute.xlu1 %1193 }
 0x24d   : > { %15263 = vst [vmem:[#allocation306_spill] sm:$0xff] %v9556_v3  ;;  %15264 = vst [vmem:[#allocation307_spill] sm:$0xff] %v9558_v1  ;;  %v15273_v1 = vld [vmem:[#allocation133_spill] sm:$0xff] }
 0x24e   : > { %1371 = vrot.lane.b32.xlu0 %v15265_v56, %s7612_s6  ;;  %1373 = vrot.lane.b32.xlu1 %v15266_v52, %s7612_s6  ;;  %v15274_v56 = vld [vmem:[#allocation132_spill] sm:$0xff] }
 0x250   : > { %v9564_v57 = vpop.permute.xlu0 %1195  ;;  %v9566_v59 = vpop.permute.xlu1 %1197 }
 0x251   : > { %15267 = vst [vmem:[#allocation308_spill] sm:$0xff] %v9564_v57  ;;  %15268 = vst [vmem:[#allocation309_spill] sm:$0xff] %v9566_v59  ;;  %v15277_v59 = vld [vmem:[#allocation137_spill] sm:$0xff] }
 0x252   : > { %1375 = vrot.lane.b32.xlu0 %v15269_v51, %s7612_s6  ;;  %1377 = vrot.lane.b32.xlu1 %v15270_v47, %s7612_s6  ;;  %v15278_v51 = vld [vmem:[#allocation136_spill] sm:$0xff] }
 0x254   : > { %v9572_v6 = vpop.permute.xlu0 %1199  ;;  %v9574_v3 = vpop.permute.xlu1 %1201 }
 0x255   : > { %15271 = vst [vmem:[#allocation310_spill] sm:$0xff] %v9572_v6  ;;  %15272 = vst [vmem:[#allocation311_spill] sm:$0xff] %v9574_v3  ;;  %v15281_v3 = vld [vmem:[#allocation141_spill] sm:$0xff] }
 0x256   : > { %1379 = vrot.lane.b32.xlu0 %v15273_v1, %s7612_s6  ;;  %1381 = vrot.lane.b32.xlu1 %v15274_v56, %s7612_s6  ;;  %v15282_v1 = vld [vmem:[#allocation140_spill] sm:$0xff] }
 0x258   : > { %v9580_v52 = vpop.permute.xlu0 %1203  ;;  %v9582_v57 = vpop.permute.xlu1 %1205 }
 0x259   : > { %15275 = vst [vmem:[#allocation312_spill] sm:$0xff] %v9580_v52  ;;  %15276 = vst [vmem:[#allocation313_spill] sm:$0xff] %v9582_v57  ;;  %v15285_v57 = vld [vmem:[#allocation145_spill] sm:$0xff] }
 0x25a   : > { %1383 = vrot.lane.b32.xlu0 %v15277_v59, %s7612_s6  ;;  %1385 = vrot.lane.b32.xlu1 %v15278_v51, %s7612_s6  ;;  %v15286_v59 = vld [vmem:[#allocation144_spill] sm:$0xff] }
 0x25c   : > { %v9588_v47 = vpop.permute.xlu0 %1207  ;;  %v9590_v6 = vpop.permute.xlu1 %1209 }
 0x25d   : > { %15279 = vst [vmem:[#allocation314_spill] sm:$0xff] %v9588_v47  ;;  %15280 = vst [vmem:[#allocation315_spill] sm:$0xff] %v9590_v6  ;;  %v15289_v6 = vld [vmem:[#allocation148_spill] sm:$0xff] }
 0x25e   : > { %1387 = vrot.lane.b32.xlu0 %v15281_v3, %s7612_s6  ;;  %1389 = vrot.lane.b32.xlu1 %v15282_v1, %s7612_s6  ;;  %v15290_v3 = vld [vmem:[#allocation147_spill] sm:$0xff] }
 0x260   : > { %v9596_v56 = vpop.permute.xlu0 %1211  ;;  %v9598_v52 = vpop.permute.xlu1 %1213 }
 0x261   : > { %15283 = vst [vmem:[#allocation316_spill] sm:$0xff] %v9596_v56  ;;  %15284 = vst [vmem:[#allocation317_spill] sm:$0xff] %v9598_v52  ;;  %v15293_v52 = vld [vmem:[#allocation151_spill] sm:$0xff] }
 0x262   : > { %1391 = vrot.lane.b32.xlu0 %v15285_v57, %s7612_s6  ;;  %1393 = vrot.lane.b32.xlu1 %v15286_v59, %s7612_s6  ;;  %v15294_v57 = vld [vmem:[#allocation150_spill] sm:$0xff] }
 0x264   : > { %v9604_v51 = vpop.permute.xlu0 %1215  ;;  %v9606_v47 = vpop.permute.xlu1 %1217 }
 0x265   : > { %15287 = vst [vmem:[#allocation318_spill] sm:$0xff] %v9604_v51  ;;  %15288 = vst [vmem:[#allocation319_spill] sm:$0xff] %v9606_v47  ;;  %v15295_v47 = vld [vmem:[#allocation155_spill] sm:$0xff] }
 0x266   : > { %1395 = vrot.lane.b32.xlu0 %v15289_v6, %s7612_s6  ;;  %1397 = vrot.lane.b32.xlu1 %v15290_v3, %s7612_s6  ;;  %v15296_v6 = vld [vmem:[#allocation154_spill] sm:$0xff] }
 0x268   : > { %v9612_v1 = vpop.permute.xlu0 %1219  ;;  %v9614_v56 = vpop.permute.xlu1 %1221 }
 0x269   : > { %15291 = vst [vmem:[#allocation320_spill] sm:$0xff] %v9612_v1  ;;  %15292 = vst [vmem:[#allocation321_spill] sm:$0xff] %v9614_v56  ;;  %v15298_v56 = vld [vmem:[#allocation36_spill] sm:$0xff] }
 0x26a   : > { %1399 = vrot.lane.b32.xlu0 %v15293_v52, %s7612_s6  ;;  %1401 = vrot.lane.b32.xlu1 %v15294_v57, %s7612_s6 }
 0x26c   : > { %v9620_v59 = vpop.permute.xlu0 %1287  ;;  %v9622_v51 = vpop.permute.xlu1 %1289 }
 0x26e   : > { %1403 = vrot.lane.b32.xlu0 %v15295_v47, %s7612_s6  ;;  %1405 = vrot.lane.b32.xlu1 %v15296_v6, %s7612_s6  ;;  %v15299_v47 = vld [vmem:[#allocation37_spill] sm:$0xff] }
 0x270   : > { %v9628_v3 = vpop.permute.xlu0 %1291  ;;  %v9630_v1 = vpop.permute.xlu1 %1293 }
 0x271   : > { %15297 = vst [vmem:[#allocation322_spill] sm:$0xff] %v9628_v3 }
 0x272   : > { %1407 = vrot.lane.b32.xlu0 %v8795_v61, %s7612_s6  ;;  %1409 = vrot.lane.b32.xlu1 %v8791_v63, %s7612_s6 }
 0x274   : > { %v9636_v52 = vpop.permute.xlu0 %1295  ;;  %v9638_v57 = vpop.permute.xlu1 %1297 }
 0x276   : > { %1411 = vrot.lane.b32.xlu0 %v15298_v56, %s7612_s6  ;;  %1413 = vrot.lane.b32.xlu1 %v15299_v47, %s7612_s6 }
 0x278   : > { %v9644_v6 = vpop.permute.xlu0 %1299  ;;  %v9646_v3 = vpop.permute.xlu1 %1301 }
 0x279   : > { %15300 = vst [vmem:[#allocation323_spill] sm:$0xff] %v9646_v3 }
 0x27a   : > { %1479 = vrot.lane.b32.xlu0 %v8835_v54, %s7613_s7  ;;  %1481 = vrot.lane.b32.xlu1 %v8839_v2, %s7613_s7 }
 0x27c   : > { %v9652_v61 = vpop.permute.xlu0 %1303  ;;  %v9654_v63 = vpop.permute.xlu1 %1305 }
 0x27d   : > { %15301 = vst [vmem:[#allocation324_spill] sm:$0xff] %v9652_v61  ;;  %15302 = vst [vmem:[#allocation325_spill] sm:$0xff] %v9654_v63 }
 0x27e   : > { %1483 = vrot.lane.b32.xlu0 %v8853_v7, %s7613_s7  ;;  %1485 = vrot.lane.b32.xlu1 %v8857_v60, %s7613_s7 }
 0x280   : > { %v9660_v47 = vpop.permute.xlu0 %1307  ;;  %v9662_v56 = vpop.permute.xlu1 %1309 }
 0x281   : > { %15303 = vst [vmem:[#allocation326_spill] sm:$0xff] %v9660_v47  ;;  %15304 = vst [vmem:[#allocation327_spill] sm:$0xff] %v9662_v56 }
 0x282   : > { %1487 = vrot.lane.b32.xlu0 %v8871_v62, %s7613_s7  ;;  %1489 = vrot.lane.b32.xlu1 %v8875_v8, %s7613_s7 }
 0x284   : > { %v9668_v3 = vpop.permute.xlu0 %1311  ;;  %v9670_v61 = vpop.permute.xlu1 %1313 }
 0x285   : > { %15305 = vst [vmem:[#allocation328_spill] sm:$0xff] %v9668_v3  ;;  %15306 = vst [vmem:[#allocation329_spill] sm:$0xff] %v9670_v61 }
 0x286   : > { %1491 = vrot.lane.b32.xlu0 %v8889_v4, %s7613_s7  ;;  %1493 = vrot.lane.b32.xlu1 %v8893_v9, %s7613_s7 }
 0x288   : > { %v9676_v63 = vpop.permute.xlu0 %1315  ;;  %v9678_v47 = vpop.permute.xlu1 %1317 }
 0x289   : > { %15307 = vst [vmem:[#allocation330_spill] sm:$0xff] %v9676_v63  ;;  %15308 = vst [vmem:[#allocation331_spill] sm:$0xff] %v9678_v47  ;;  %v7030_v47 = vld [vmem:[#allocation4] sm:$0xff]  }
 0x28a   : > { %1495 = vrot.lane.b32.xlu0 %v8907_v10, %s7613_s7  ;;  %1497 = vrot.lane.b32.xlu1 %v8911_v11, %s7613_s7 }
 0x28c   : > { %v9684_v56 = vpop.permute.xlu0 %1319  ;;  %v9686_v3 = vpop.permute.xlu1 %1321 }
 0x28d   : > { %15309 = vst [vmem:[#allocation332_spill] sm:$0xff] %v9684_v56  ;;  %15310 = vst [vmem:[#allocation333_spill] sm:$0xff] %v9686_v3  ;;  %v7615_v56 = vmov 0  }
 0x28e   : > { %1499 = vrot.lane.b32.xlu0 %v8925_v12, %s7613_s7  ;;  %1501 = vrot.lane.b32.xlu1 %v8929_v13, %s7613_s7  ;;  %v9992_v13 = vld [vmem:[#allocation2 + $0x68] sm:$0xff] }
 0x28f   : > { %3100 = vmatprep.subr.bf16.mxu0 %v7615_v56  ;;  %6980 = vmatprep.subr.bf16.mxu1 %v7615_v56  ;;  %15372 = vst [vmem:[#allocation384_spill] sm:$0xff] %v9992_v13 }
 0x290   : > { %v9692_v61 = vpop.permute.xlu0 %1323  ;;  %v9694_v63 = vpop.permute.xlu1 %1325  ;;  %3101 = vmatpush1.bf16.msra.mxu0 %v7030_v47  ;;  %6996 = vmatpush1.bf16.msra.mxu1 %v7030_v47  ;;  %v7032_v47 = vld [vmem:[#allocation4 + $0x10] sm:$0xff]  }
 0x291   : > { %15311 = vst [vmem:[#allocation334_spill] sm:$0xff] %v9692_v61  ;;  %15312 = vst [vmem:[#allocation335_spill] sm:$0xff] %v9694_v63  ;;  %3102 = vmatprep.subr.bf16.mxu0 %v7615_v56  ;;  %6981 = vmatprep.subr.bf16.mxu1 %v7615_v56  ;;  %v7031_v63 = vld [vmem:[#allocation4 + $0x8] sm:$0xff]  }
 0x292   : > { %1503 = vrot.lane.b32.xlu0 %v8943_v14, %s7613_s7  ;;  %1505 = vrot.lane.b32.xlu1 %v8947_v15, %s7613_s7 }
 0x294   : > { %v9702_v3 = vpop.permute.xlu0 %1327  ;;  %v9704_v12 = vpop.permute.xlu1 %1329  ;;  %3103 = vmatpush1.bf16.msra.mxu0 %v7031_v63  ;;  %6997 = vmatpush1.bf16.msra.mxu1 %v7031_v63  ;;  %v7033_v63 = vld [vmem:[#allocation4 + $0x18] sm:$0xff]  }
 0x295   : > { %15313 = vst [vmem:[#allocation336_spill] sm:$0xff] %v9702_v3  ;;  %15314 = vst [vmem:[#allocation337_spill] sm:$0xff] %v9704_v12  ;;  %3104 = vmatprep.subr.bf16.mxu0 %v7615_v56  ;;  %6982 = vmatprep.subr.bf16.mxu1 %v7615_v56 }
 0x296   : > { %1507 = vrot.lane.b32.xlu0 %v8961_v16, %s7613_s7  ;;  %1509 = vrot.lane.b32.xlu1 %v8965_v17, %s7613_s7  ;;  %v9958_v17 = vld [vmem:[#allocation2 + $0x50] sm:$0xff] }
 0x297   : > { %15362 = vst [vmem:[#allocation374_spill] sm:$0xff] %v9958_v17 }
 0x298   : > { %v9712_v61 = vpop.permute.xlu0 %1331  ;;  %v9714_v15 = vpop.permute.xlu1 %1333  ;;  %3105 = vmatpush1.bf16.msra.mxu0 %v7032_v47  ;;  %6998 = vmatpush1.bf16.msra.mxu1 %v7032_v47  ;;  %v7034_v47 = vld [vmem:[#allocation4 + $0x20] sm:$0xff]  }
 0x299   : > { %15315 = vst [vmem:[#allocation338_spill] sm:$0xff] %v9712_v61  ;;  %15316 = vst [vmem:[#allocation339_spill] sm:$0xff] %v9714_v15  ;;  %3106 = vmatprep.subr.bf16.mxu0 %v7615_v56  ;;  %6983 = vmatprep.subr.bf16.mxu1 %v7615_v56 }
 0x29a   : > { %1511 = vrot.lane.b32.xlu0 %v8979_v18, %s7613_s7  ;;  %1513 = vrot.lane.b32.xlu1 %v8983_v19, %s7613_s7  ;;  %v9946_v19 = vld [vmem:[#allocation2 + $0x190] sm:$0xff] }
 0x29c   : > { %v9722_v12 = vpop.permute.xlu0 %1335  ;;  %v9724_v3 = vpop.permute.xlu1 %1337  ;;  %3107 = vmatpush1.bf16.msra.mxu0 %v7033_v63  ;;  %6999 = vmatpush1.bf16.msra.mxu1 %v7033_v63  ;;  %v7035_v63 = vld [vmem:[#allocation4 + $0x28] sm:$0xff]  }
 0x29d   : > { %15317 = vst [vmem:[#allocation340_spill] sm:$0xff] %v9722_v12  ;;  %15318 = vst [vmem:[#allocation341_spill] sm:$0xff] %v9724_v3  ;;  %3108 = vmatprep.subr.bf16.mxu0 %v7615_v56  ;;  %6984 = vmatprep.subr.bf16.mxu1 %v7615_v56 }
 0x29e   : > { %1515 = vrot.lane.b32.xlu0 %v8997_v20, %s7613_s7  ;;  %1517 = vrot.lane.b32.xlu1 %v9001_v21, %s7613_s7  ;;  %v9936_v21 = vld [vmem:[#allocation2 + $0x48] sm:$0xff] }
 0x2a0   : > { %v9732_v15 = vpop.permute.xlu0 %1339  ;;  %v9734_v61 = vpop.permute.xlu1 %1341  ;;  %3109 = vmatpush1.bf16.msra.mxu0 %v7034_v47  ;;  %7000 = vmatpush1.bf16.msra.mxu1 %v7034_v47  ;;  %v7036_v47 = vld [vmem:[#allocation4 + $0x30] sm:$0xff]  }
 0x2a1   : > { %15319 = vst [vmem:[#allocation342_spill] sm:$0xff] %v9732_v15  ;;  %15320 = vst [vmem:[#allocation343_spill] sm:$0xff] %v9734_v61  ;;  %3110 = vmatprep.subr.bf16.mxu0 %v7615_v56  ;;  %6985 = vmatprep.subr.bf16.mxu1 %v7615_v56 }
 0x2a2   : > { %1519 = vrot.lane.b32.xlu0 %v9015_v22, %s7613_s7  ;;  %1521 = vrot.lane.b32.xlu1 %v9019_v23, %s7613_s7  ;;  %v15359_v23 = vld [vmem:[#allocation251_spill] sm:$0xff] }
 0x2a4   : > { %v9742_v3 = vpop.permute.xlu0 %1343  ;;  %v9744_v12 = vpop.permute.xlu1 %1345  ;;  %3111 = vmatpush1.bf16.msra.mxu0 %v7035_v63  ;;  %7001 = vmatpush1.bf16.msra.mxu1 %v7035_v63  ;;  %v7037_v63 = vld [vmem:[#allocation4 + $0x38] sm:$0xff]  }
 0x2a5   : > { %15321 = vst [vmem:[#allocation344_spill] sm:$0xff] %v9742_v3  ;;  %15322 = vst [vmem:[#allocation345_spill] sm:$0xff] %v9744_v12  ;;  %3112 = vmatprep.subr.bf16.mxu0 %v7615_v56  ;;  %6986 = vmatprep.subr.bf16.mxu1 %v7615_v56 }
 0x2a6   : > { %1523 = vrot.lane.b32.xlu0 %v9033_v24, %s7613_s7  ;;  %1525 = vrot.lane.b32.xlu1 %v9037_v25, %s7613_s7 }
 0x2a8   : > { %v9752_v61 = vpop.permute.xlu0 %1347  ;;  %v9754_v15 = vpop.permute.xlu1 %1349  ;;  %3113 = vmatpush1.bf16.msra.mxu0 %v7036_v47  ;;  %7002 = vmatpush1.bf16.msra.mxu1 %v7036_v47  ;;  %v7038_v47 = vld [vmem:[#allocation4 + $0x40] sm:$0xff]  }
 0x2a9   : > { %15323 = vst [vmem:[#allocation346_spill] sm:$0xff] %v9752_v61  ;;  %15324 = vst [vmem:[#allocation347_spill] sm:$0xff] %v9754_v15  ;;  %3114 = vmatprep.subr.bf16.mxu0 %v7615_v56  ;;  %6987 = vmatprep.subr.bf16.mxu1 %v7615_v56 }
 0x2aa   : > { %1527 = vrot.lane.b32.xlu0 %v9051_v26, %s7613_s7  ;;  %1529 = vrot.lane.b32.xlu1 %v9055_v27, %s7613_s7  ;;  %v9912_v27 = vld [vmem:[#allocation2 + $0x30] sm:$0xff]  ;;  %v9916_v26 = vld [vmem:[#allocation2 + $0x38] sm:$0xff] }
 0x2ac   : > { %v9762_v12 = vpop.permute.xlu0 %1351  ;;  %v9764_v3 = vpop.permute.xlu1 %1353  ;;  %3115 = vmatpush1.bf16.msra.mxu0 %v7037_v63  ;;  %7003 = vmatpush1.bf16.msra.mxu1 %v7037_v63  ;;  %v7039_v63 = vld [vmem:[#allocation4 + $0x48] sm:$0xff]  }
 0x2ad   : > { %15325 = vst [vmem:[#allocation348_spill] sm:$0xff] %v9762_v12  ;;  %15326 = vst [vmem:[#allocation349_spill] sm:$0xff] %v9764_v3  ;;  %3116 = vmatprep.subr.bf16.mxu0 %v7615_v56  ;;  %6988 = vmatprep.subr.bf16.mxu1 %v7615_v56 }
 0x2ae   : > { %1531 = vrot.lane.b32.xlu0 %v9069_v28, %s7613_s7  ;;  %1533 = vrot.lane.b32.xlu1 %v9073_v29, %s7613_s7 }
 0x2b0   : > { %v9772_v15 = vpop.permute.xlu0 %1355  ;;  %v9774_v61 = vpop.permute.xlu1 %1357  ;;  %3117 = vmatpush1.bf16.msra.mxu0 %v7038_v47  ;;  %7004 = vmatpush1.bf16.msra.mxu1 %v7038_v47  ;;  %v7040_v47 = vld [vmem:[#allocation4 + $0x50] sm:$0xff]  }
 0x2b1   : > { %15327 = vst [vmem:[#allocation350_spill] sm:$0xff] %v9772_v15  ;;  %15328 = vst [vmem:[#allocation351_spill] sm:$0xff] %v9774_v61  ;;  %3118 = vmatprep.subr.bf16.mxu0 %v7615_v56  ;;  %6989 = vmatprep.subr.bf16.mxu1 %v7615_v56 }
 0x2b2   : > { %1535 = vrot.lane.b32.xlu0 %v9087_v30, %s7613_s7  ;;  %1537 = vrot.lane.b32.xlu1 %v9091_v31, %s7613_s7  ;;  %v15356_v30 = vld [vmem:[#allocation248_spill] sm:$0xff] }
 0x2b4   : > { %v9782_v3 = vpop.permute.xlu0 %1359  ;;  %v9784_v12 = vpop.permute.xlu1 %1361  ;;  %3119 = vmatpush1.bf16.msra.mxu0 %v7039_v63  ;;  %7005 = vmatpush1.bf16.msra.mxu1 %v7039_v63  ;;  %v7041_v63 = vld [vmem:[#allocation4 + $0x58] sm:$0xff]  }
 0x2b5   : > { %15329 = vst [vmem:[#allocation352_spill] sm:$0xff] %v9782_v3  ;;  %15330 = vst [vmem:[#allocation353_spill] sm:$0xff] %v9784_v12  ;;  %3120 = vmatprep.subr.bf16.mxu0 %v7615_v56  ;;  %6990 = vmatprep.subr.bf16.mxu1 %v7615_v56 }
 0x2b6   : > { %1539 = vrot.lane.b32.xlu0 %v9105_v32, %s7613_s7  ;;  %1541 = vrot.lane.b32.xlu1 %v9109_v33, %s7613_s7  ;;  %v9896_v33 = vld [vmem:[#allocation2 + $0x28] sm:$0xff] }
 0x2b8   : > { %v9792_v61 = vpop.permute.xlu0 %1363  ;;  %v9794_v15 = vpop.permute.xlu1 %1365  ;;  %3121 = vmatpush1.bf16.msra.mxu0 %v7040_v47  ;;  %7006 = vmatpush1.bf16.msra.mxu1 %v7040_v47  ;;  %v7042_v47 = vld [vmem:[#allocation4 + $0x60] sm:$0xff]  }
 0x2b9   : > { %15331 = vst [vmem:[#allocation354_spill] sm:$0xff] %v9792_v61  ;;  %15332 = vst [vmem:[#allocation355_spill] sm:$0xff] %v9794_v15  ;;  %3122 = vmatprep.subr.bf16.mxu0 %v7615_v56  ;;  %6991 = vmatprep.subr.bf16.mxu1 %v7615_v56 }
 0x2ba   : > { %1543 = vrot.lane.b32.xlu0 %v9123_v34, %s7613_s7  ;;  %1545 = vrot.lane.b32.xlu1 %v9127_v35, %s7613_s7  ;;  %v9892_v34 = vld [vmem:[#allocation2 + $0x20] sm:$0xff] }
 0x2bc   : > { %v9802_v12 = vpop.permute.xlu0 %1367  ;;  %v9804_v3 = vpop.permute.xlu1 %1369  ;;  %3123 = vmatpush1.bf16.msra.mxu0 %v7041_v63  ;;  %7007 = vmatpush1.bf16.msra.mxu1 %v7041_v63  ;;  %v7043_v63 = vld [vmem:[#allocation4 + $0x68] sm:$0xff]  }
 0x2bd   : > { %15333 = vst [vmem:[#allocation356_spill] sm:$0xff] %v9802_v12  ;;  %15334 = vst [vmem:[#allocation357_spill] sm:$0xff] %v9804_v3  ;;  %3124 = vmatprep.subr.bf16.mxu0 %v7615_v56  ;;  %6992 = vmatprep.subr.bf16.mxu1 %v7615_v56 }
 0x2be   : > { %1547 = vrot.lane.b32.xlu0 %v9141_v36, %s7613_s7  ;;  %1549 = vrot.lane.b32.xlu1 %v9145_v37, %s7613_s7  ;;  %v15351_v37 = vld [vmem:[#allocation246_spill] sm:$0xff] }
 0x2c0   : > { %v9812_v15 = vpop.permute.xlu0 %1371  ;;  %v9814_v61 = vpop.permute.xlu1 %1373  ;;  %3125 = vmatpush1.bf16.msra.mxu0 %v7042_v47  ;;  %7008 = vmatpush1.bf16.msra.mxu1 %v7042_v47  ;;  %v7044_v47 = vld [vmem:[#allocation4 + $0x70] sm:$0xff]  }
 0x2c1   : > { %15335 = vst [vmem:[#allocation358_spill] sm:$0xff] %v9812_v15  ;;  %15336 = vst [vmem:[#allocation359_spill] sm:$0xff] %v9814_v61  ;;  %3126 = vmatprep.subr.bf16.mxu0 %v7615_v56  ;;  %6993 = vmatprep.subr.bf16.mxu1 %v7615_v56 }
 0x2c2   : > { %1551 = vrot.lane.b32.xlu0 %v9159_v38, %s7613_s7  ;;  %1553 = vrot.lane.b32.xlu1 %v9163_v39, %s7613_s7 }
 0x2c4   : > { %v9822_v3 = vpop.permute.xlu0 %1375  ;;  %v9824_v12 = vpop.permute.xlu1 %1377  ;;  %3127 = vmatpush1.bf16.msra.mxu0 %v7043_v63  ;;  %7009 = vmatpush1.bf16.msra.mxu1 %v7043_v63  ;;  %v7045_v63 = vld [vmem:[#allocation4 + $0x78] sm:$0xff]  }
 0x2c5   : > { %15337 = vst [vmem:[#allocation360_spill] sm:$0xff] %v9822_v3  ;;  %15338 = vst [vmem:[#allocation361_spill] sm:$0xff] %v9824_v12  ;;  %3128 = vmatprep.subr.bf16.mxu0 %v7615_v56  ;;  %6994 = vmatprep.subr.bf16.mxu1 %v7615_v56 }
 0x2c6   : > { %1555 = vrot.lane.b32.xlu0 %v9177_v40, %s7613_s7  ;;  %1557 = vrot.lane.b32.xlu1 %v9181_v41, %s7613_s7  ;;  %v9876_v40 = vld [vmem:[#allocation2 + $0x18] sm:$0xff] }
 0x2c8   : > { %v9832_v61 = vpop.permute.xlu0 %1379  ;;  %v9834_v15 = vpop.permute.xlu1 %1381  ;;  %3129 = vmatpush1.bf16.msra.mxu0 %v7044_v47  ;;  %7010 = vmatpush1.bf16.msra.mxu1 %v7044_v47  ;;  %v15343_v47 = vld [vmem:[#allocation243_spill] sm:$0xff] }
 0x2c9   : > { %15339 = vst [vmem:[#allocation362_spill] sm:$0xff] %v9832_v61  ;;  %15340 = vst [vmem:[#allocation363_spill] sm:$0xff] %v9834_v15  ;;  %3130 = vmatprep.subr.bf16.mxu0 %v7615_v56  ;;  %6995 = vmatprep.subr.bf16.mxu1 %v7615_v56 }
 0x2ca   : > { %1559 = vrot.lane.b32.xlu0 %v9195_v42, %s7613_s7  ;;  %1561 = vrot.lane.b32.xlu1 %v9199_v43, %s7613_s7  ;;  %v15342_v43 = vld [vmem:[#allocation242_spill] sm:$0xff] }
 0x2cc   : > { %v9842_v12 = vpop.permute.xlu0 %1383  ;;  %v9844_v3 = vpop.permute.xlu1 %1385  ;;  %3131 = vmatpush1.bf16.msra.mxu0 %v7045_v63  ;;  %7011 = vmatpush1.bf16.msra.mxu1 %v7045_v63  ;;  %v9872_v63 = vld [vmem:[#allocation2 + $0x10] sm:$0xff] }
 0x2ce   : > { %1563 = vrot.lane.b32.xlu0 %v9213_v44, %s7613_s7  ;;  %1565 = vrot.lane.b32.xlu1 %v9217_v45, %s7613_s7  ;;  %v15346_v45 = vld [vmem:[#allocation245_spill] sm:$0xff] }
 0x2d0   : > { %v9852_v15 = vpop.permute.xlu0 %1387  ;;  %v9854_v61 = vpop.permute.xlu1 %1389 }
 0x2d1   : > { %15341 = vst [vmem:[#allocation364_spill] sm:$0xff] %v9854_v61 }
 0x2d2   : > { %1567 = vrot.lane.b32.xlu0 %v15342_v43, %s7613_s7  ;;  %1569 = vrot.lane.b32.xlu1 %v15343_v47, %s7613_s7 }
 0x2d4   : > { %v9860_v56 = vpop.permute.xlu0 %1391  ;;  %v9862_v42 = vpop.permute.xlu1 %1393 }
 0x2d5   : > { %15344 = vst [vmem:[#allocation242_spill] sm:$0xff] %v9860_v56  ;;  %15345 = vst [vmem:[#allocation243_spill] sm:$0xff] %v9862_v42  ;;  %v9996_v42 = vld [vmem:[#allocation2 + $0x1b0] sm:$0xff]  ;;  %v10027_v56 = vld [vmem:[#allocation2 + $0x1c0] sm:$0xff] }
 0x2d6   : > { %1571 = vrot.lane.b32.xlu0 %v9249_v48, %s7613_s7  ;;  %1573 = vrot.lane.b32.xlu1 %v15346_v45, %s7613_s7  ;;  %15373 = vst [vmem:[#allocation385_spill] sm:$0xff] %v9996_v42  ;;  %15384 = vst [vmem:[#allocation395_spill] sm:$0xff] %v10027_v56 }
 0x2d8   : > { %v9868_v44 = vpop.permute.xlu0 %1395  ;;  %v9870_v41 = vpop.permute.xlu1 %1397 }
 0x2d9   : > { %15347 = vst [vmem:[#allocation245_spill] sm:$0xff] %v9868_v44  ;;  %15348 = vst [vmem:[#allocation365_spill] sm:$0xff] %v9870_v41  ;;  %v9982_v41 = vld [vmem:[#allocation2 + $0x60] sm:$0xff] }
 0x2da   : > { %1671 = vrot.lane.b32.xlu0 %v9872_v63, %s7614_s8  ;;  %1673 = vrot.lane.b32.xlu1 %v9876_v40, %s7614_s8  ;;  %15368 = vst [vmem:[#allocation380_spill] sm:$0xff] %v9982_v41 }
 0x2dc   : > { %v9880_v39 = vpop.permute.xlu0 %1399  ;;  %v9882_v38 = vpop.permute.xlu1 %1401 }
 0x2dd   : > { %15349 = vst [vmem:[#allocation366_spill] sm:$0xff] %v9880_v39  ;;  %15350 = vst [vmem:[#allocation367_spill] sm:$0xff] %v9882_v38  ;;  %v9966_v38 = vld [vmem:[#allocation2 + $0x58] sm:$0xff]  ;;  %v9970_v39 = vld [vmem:[#allocation2 + $0x1a0] sm:$0xff] }
 0x2de   : > { %1575 = vrot.lane.b32.xlu0 %v9267_v50, %s7613_s7  ;;  %1577 = vrot.lane.b32.xlu1 %v15351_v37, %s7613_s7  ;;  %15363 = vst [vmem:[#allocation375_spill] sm:$0xff] %v9966_v38  ;;  %15364 = vst [vmem:[#allocation376_spill] sm:$0xff] %v9970_v39 }
 0x2e0   : > { %v9888_v36 = vpop.permute.xlu0 %1403  ;;  %v9890_v35 = vpop.permute.xlu1 %1405 }
 0x2e1   : > { %15352 = vst [vmem:[#allocation246_spill] sm:$0xff] %v9888_v36  ;;  %15353 = vst [vmem:[#allocation368_spill] sm:$0xff] %v9890_v35  ;;  %v9954_v36 = vld [vmem:[#allocation2 + $0x198] sm:$0xff] }
 0x2e2   : > { %1675 = vrot.lane.b32.xlu0 %v9892_v34, %s7614_s8  ;;  %1677 = vrot.lane.b32.xlu1 %v9896_v33, %s7614_s8  ;;  %15361 = vst [vmem:[#allocation373_spill] sm:$0xff] %v9954_v36 }
 0x2e4   : > { %v9900_v32 = vpop.permute.xlu0 %1407  ;;  %v9902_v31 = vpop.permute.xlu1 %1409 }
 0x2e5   : > { %15354 = vst [vmem:[#allocation369_spill] sm:$0xff] %v9900_v32  ;;  %15355 = vst [vmem:[#allocation370_spill] sm:$0xff] %v9902_v31  ;;  %v15360_v32 = vld [vmem:[#allocation253_spill] sm:$0xff] }
 0x2e6   : > { %1579 = vrot.lane.b32.xlu0 %v9285_v5, %s7613_s7  ;;  %1581 = vrot.lane.b32.xlu1 %v15356_v30, %s7613_s7  ;;  %v9990_v5 = vld [vmem:[#allocation4 + $0x80] sm:$0xff]  }
 0x2e7   : > { %15371 = vst [vmem:[#allocation383_spill] sm:$0xff] %v9990_v5  ;;  %6912 = vmatprep.subr.bf16.mxu1 %v9990_v5 }
 0x2e8   : > { %v9908_v29 = vpop.permute.xlu0 %1411  ;;  %v9910_v28 = vpop.permute.xlu1 %1413 }
 0x2e9   : > { %15357 = vst [vmem:[#allocation371_spill] sm:$0xff] %v9908_v29  ;;  %15358 = vst [vmem:[#allocation372_spill] sm:$0xff] %v9910_v28  ;;  %v9932_v29 = vld [vmem:[#allocation2 + $0x40] sm:$0xff] }
 0x2ea   : > { %1679 = vrot.lane.b32.xlu0 %v9912_v27, %s7614_s8  ;;  %1681 = vrot.lane.b32.xlu1 %v9916_v26, %s7614_s8 }
 0x2ec   : > { %v9920_v25 = vpop.permute.xlu0 %1479  ;;  %v9922_v24 = vpop.permute.xlu1 %1481 }
 0x2ee   : > { %1583 = vrot.lane.b32.xlu0 %v9303_v55, %s7613_s7  ;;  %1585 = vrot.lane.b32.xlu1 %v15359_v23, %s7613_s7  ;;  %v9978_v55 = vld [vmem:[#allocation2 + $0x1a8] sm:$0xff] }
 0x2ef   : > { %15367 = vst [vmem:[#allocation379_spill] sm:$0xff] %v9978_v55 }
 0x2f0   : > { %v9928_v22 = vpop.permute.xlu0 %1483  ;;  %v9930_v28 = vpop.permute.xlu1 %1485 }
 0x2f2   : > { %1683 = vrot.lane.b32.xlu0 %v9932_v29, %s7614_s8  ;;  %1685 = vrot.lane.b32.xlu1 %v9936_v21, %s7614_s8 }
 0x2f4   : > { %v9940_v20 = vpop.permute.xlu0 %1487  ;;  %v9942_v31 = vpop.permute.xlu1 %1489 }
 0x2f6   : > { %1587 = vrot.lane.b32.xlu0 %v15360_v32, %s7613_s7  ;;  %1767 = vrot.lane.b32.xlu1 %v9946_v19, %s7614_s8 }
 0x2f8   : > { %v9950_v18 = vpop.permute.xlu0 %1491  ;;  %v9952_v35 = vpop.permute.xlu1 %1493 }
 0x2fa   : > { %1769 = vrot.lane.b32.xlu0 %v9954_v36, %s7614_s8  ;;  %1687 = vrot.lane.b32.xlu1 %v9958_v17, %s7614_s8  ;;  %v15430_v17 = vld [vmem:[#allocation28_spill] sm:$0xff] }
 0x2fc   : > { %v9962_v16 = vpop.permute.xlu0 %1495  ;;  %v9964_v32 = vpop.permute.xlu1 %1497 }
 0x2fe   : > { %1689 = vrot.lane.b32.xlu0 %v9966_v38, %s7614_s8  ;;  %1771 = vrot.lane.b32.xlu1 %v9970_v39, %s7614_s8  ;;  %v15427_v38 = vld [vmem:[#allocation29_spill] sm:$0xff] }
 0x300   : > { %v9974_v14 = vpop.permute.xlu0 %1499  ;;  %v9976_v23 = vpop.permute.xlu1 %1501 }
 0x301   : > { %15365 = vst [vmem:[#allocation377_spill] sm:$0xff] %v9974_v14  ;;  %15366 = vst [vmem:[#allocation378_spill] sm:$0xff] %v9976_v23 }
 0x302   : > { %1773 = vrot.lane.b32.xlu0 %v9978_v55, %s7614_s8  ;;  %1691 = vrot.lane.b32.xlu1 %v9982_v41, %s7614_s8 }
 0x304   : > { %v9986_v44 = vpop.permute.xlu0 %1503  ;;  %v9988_v30 = vpop.permute.xlu1 %1505 }
 0x305   : > { %15369 = vst [vmem:[#allocation381_spill] sm:$0xff] %v9986_v44  ;;  %15370 = vst [vmem:[#allocation382_spill] sm:$0xff] %v9988_v30  ;;  %v10005_v44 = vld [vmem:[#allocation2 + $0x1b8] sm:$0xff]  ;;  %v10009_v30 = vld [vmem:[#allocation2 + $0x70] sm:$0xff] }
 0x306   : > { %1693 = vrot.lane.b32.xlu0 %v9992_v13, %s7614_s8  ;;  %1775 = vrot.lane.b32.xlu1 %v9996_v42, %s7614_s8  ;;  %15376 = vst [vmem:[#allocation388_spill] sm:$0xff] %v10005_v44  ;;  %15377 = vst [vmem:[#allocation389_spill] sm:$0xff] %v10009_v30  ;;  %v10017_v42 = vld [vmem:[#allocation2 + $0x78] sm:$0xff] }
 0x307   : > { %15380 = vst [vmem:[#allocation392_spill] sm:$0xff] %v10017_v42 }
 0x308   : > { %v10001_v55 = vpop.permute.xlu0 %1507  ;;  %v10003_v41 = vpop.permute.xlu1 %1509 }
 0x309   : > { %15374 = vst [vmem:[#allocation386_spill] sm:$0xff] %v10001_v55  ;;  %15375 = vst [vmem:[#allocation387_spill] sm:$0xff] %v10003_v41  ;;  %v15381_v41 = vld [vmem:[#allocation254_spill] sm:$0xff] }
 0x30a   : > { %1777 = vrot.lane.b32.xlu0 %v10005_v44, %s7614_s8  ;;  %1695 = vrot.lane.b32.xlu1 %v10009_v30, %s7614_s8  ;;  %v10039_v30 = vld [vmem:[#allocation2 + $0x80] sm:$0xff] }
 0x30b   : > { %15388 = vst [vmem:[#allocation399_spill] sm:$0xff] %v10039_v30 }
 0x30c   : > { %v10013_v13 = vpop.permute.xlu0 %1511  ;;  %v10015_v39 = vpop.permute.xlu1 %1513 }
 0x30d   : > { %15378 = vst [vmem:[#allocation390_spill] sm:$0xff] %v10013_v13  ;;  %15379 = vst [vmem:[#allocation391_spill] sm:$0xff] %v10015_v39  ;;  %v10031_v13 = vld [vmem:[#allocation2 + $0x1c8] sm:$0xff] }
 0x30e   : > { %1697 = vrot.lane.b32.xlu0 %v10017_v42, %s7614_s8  ;;  %1589 = vrot.lane.b32.xlu1 %v15381_v41, %s7613_s7  ;;  %15385 = vst [vmem:[#allocation396_spill] sm:$0xff] %v10031_v13 }
 0x310   : > { %v10023_v55 = vpop.permute.xlu0 %1515  ;;  %v10025_v44 = vpop.permute.xlu1 %1517 }
 0x311   : > { %15382 = vst [vmem:[#allocation393_spill] sm:$0xff] %v10023_v55  ;;  %15383 = vst [vmem:[#allocation394_spill] sm:$0xff] %v10025_v44  ;;  %v10043_v44 = vld [vmem:[#allocation2 + $0x88] sm:$0xff] }
 0x312   : > { %1779 = vrot.lane.b32.xlu0 %v10027_v56, %s7614_s8  ;;  %1781 = vrot.lane.b32.xlu1 %v10031_v13, %s7614_s8  ;;  %15389 = vst [vmem:[#allocation400_spill] sm:$0xff] %v10043_v44  ;;  %v7473_v13 = vld [vmem:[#allocation2 + $0xc8] sm:$0xff] }
 0x314   : > { %v10035_v39 = vpop.permute.xlu0 %1519  ;;  %v10037_v42 = vpop.permute.xlu1 %1521 }
 0x315   : > { %15386 = vst [vmem:[#allocation397_spill] sm:$0xff] %v10035_v39  ;;  %15387 = vst [vmem:[#allocation398_spill] sm:$0xff] %v10037_v42 }
 0x316   : > { %1699 = vrot.lane.b32.xlu0 %v10039_v30, %s7614_s8  ;;  %1701 = vrot.lane.b32.xlu1 %v10043_v44, %s7614_s8  ;;  %v10059_v30 = vld [vmem:[#allocation2 + $0x1d0] sm:$0xff]  ;;  %v10063_v44 = vld [vmem:[#allocation2 + $0x1d8] sm:$0xff] }
 0x317   : > { %15394 = vst [vmem:[#allocation405_spill] sm:$0xff] %v10059_v30  ;;  %15395 = vst [vmem:[#allocation406_spill] sm:$0xff] %v10063_v44 }
 0x318   : > { %v10047_v55 = vpop.permute.xlu0 %1523  ;;  %v10049_v41 = vpop.permute.xlu1 %1525 }
 0x319   : > { %15390 = vst [vmem:[#allocation401_spill] sm:$0xff] %v10047_v55  ;;  %15391 = vst [vmem:[#allocation402_spill] sm:$0xff] %v10049_v41 }
 0x31a   : > { %1591 = vrot.lane.b32.xlu0 %v9339_v49, %s7613_s7  ;;  %1593 = vrot.lane.b32.xlu1 %v9343_v0, %s7613_s7  ;;  %v10071_v49 = vld [vmem:[#allocation2 + $0x90] sm:$0xff] }
 0x31b   : > { %15398 = vst [vmem:[#allocation409_spill] sm:$0xff] %v10071_v49 }
 0x31c   : > { %v10055_v42 = vpop.permute.xlu0 %1527  ;;  %v10057_v39 = vpop.permute.xlu1 %1529 }
 0x31d   : > { %15392 = vst [vmem:[#allocation403_spill] sm:$0xff] %v10055_v42  ;;  %15393 = vst [vmem:[#allocation404_spill] sm:$0xff] %v10057_v39  ;;  %v10075_v39 = vld [vmem:[#allocation2 + $0x98] sm:$0xff] }
 0x31e   : > { %1783 = vrot.lane.b32.xlu0 %v10059_v30, %s7614_s8  ;;  %1785 = vrot.lane.b32.xlu1 %v10063_v44, %s7614_s8  ;;  %15399 = vst [vmem:[#allocation410_spill] sm:$0xff] %v10075_v39  ;;  %v7469_v44 = vld [vmem:[#allocation2 + $0xb8] sm:$0xff] }
 0x320   : > { %v10067_v41 = vpop.permute.xlu0 %1531  ;;  %v10069_v55 = vpop.permute.xlu1 %1533 }
 0x321   : > { %15396 = vst [vmem:[#allocation407_spill] sm:$0xff] %v10067_v41  ;;  %15397 = vst [vmem:[#allocation408_spill] sm:$0xff] %v10069_v55 }
 0x322   : > { %1703 = vrot.lane.b32.xlu0 %v10071_v49, %s7614_s8  ;;  %1705 = vrot.lane.b32.xlu1 %v10075_v39, %s7614_s8  ;;  %v10091_v49 = vld [vmem:[#allocation2 + $0x1e0] sm:$0xff]  ;;  %v10095_v39 = vld [vmem:[#allocation2 + $0x1e8] sm:$0xff] }
 0x323   : > { %15404 = vst [vmem:[#allocation415_spill] sm:$0xff] %v10091_v49  ;;  %15405 = vst [vmem:[#allocation416_spill] sm:$0xff] %v10095_v39 }
 0x324   : > { %v10079_v42 = vpop.permute.xlu0 %1535  ;;  %v10081_v0 = vpop.permute.xlu1 %1537 }
 0x325   : > { %15400 = vst [vmem:[#allocation411_spill] sm:$0xff] %v10079_v42  ;;  %15401 = vst [vmem:[#allocation412_spill] sm:$0xff] %v10081_v0 }
 0x326   : > { %1595 = vrot.lane.b32.xlu0 %v9360_v58, %s7613_s7  ;;  %1597 = vrot.lane.b32.xlu1 %v9364_v53, %s7613_s7  ;;  %v7465_v58 = vld [vmem:[#allocation2 + $0xa0] sm:$0xff] }
 0x328   : > { %v10087_v55 = vpop.permute.xlu0 %1539  ;;  %v10089_v41 = vpop.permute.xlu1 %1541 }
 0x329   : > { %15402 = vst [vmem:[#allocation413_spill] sm:$0xff] %v10087_v55  ;;  %15403 = vst [vmem:[#allocation414_spill] sm:$0xff] %v10089_v41  ;;  %v7466_v55 = vld [vmem:[#allocation2 + $0xa8] sm:$0xff] }
 0x32a   : > { %1787 = vrot.lane.b32.xlu0 %v10091_v49, %s7614_s8  ;;  %1789 = vrot.lane.b32.xlu1 %v10095_v39, %s7614_s8  ;;  %v15410_v49 = vld [vmem:[#allocation263_spill] sm:$0xff] }
 0x32c   : > { %v10099_v0 = vpop.permute.xlu0 %1543  ;;  %v10101_v42 = vpop.permute.xlu1 %1545 }
 0x32d   : > { %15406 = vst [vmem:[#allocation417_spill] sm:$0xff] %v10099_v0  ;;  %15407 = vst [vmem:[#allocation418_spill] sm:$0xff] %v10101_v42  ;;  %v15413_v42 = vld [vmem:[#allocation258_spill] sm:$0xff] }
 0x32e   : > { %1707 = vrot.lane.b32.xlu0 %v7465_v58, %s7614_s8  ;;  %1709 = vrot.lane.b32.xlu1 %v7466_v55, %s7614_s8  ;;  %v7467_v58 = vld [vmem:[#allocation2 + $0x1f8] sm:$0xff] }
 0x330   : > { %v10105_v41 = vpop.permute.xlu0 %1547  ;;  %v10107_v53 = vpop.permute.xlu1 %1549 }
 0x331   : > { %15408 = vst [vmem:[#allocation419_spill] sm:$0xff] %v10105_v41  ;;  %15409 = vst [vmem:[#allocation420_spill] sm:$0xff] %v10107_v53  ;;  %v7468_v53 = vld [vmem:[#allocation2 + $0xb0] sm:$0xff] }
 0x332   : > { %1599 = vrot.lane.b32.xlu0 %v9376_v46, %s7613_s7  ;;  %1601 = vrot.lane.b32.xlu1 %v15410_v49, %s7613_s7 }
 0x334   : > { %v10113_v39 = vpop.permute.xlu0 %1551  ;;  %v10115_v0 = vpop.permute.xlu1 %1553 }
 0x335   : > { %15411 = vst [vmem:[#allocation263_spill] sm:$0xff] %v10113_v39  ;;  %15412 = vst [vmem:[#allocation421_spill] sm:$0xff] %v10115_v0  ;;  %v15418_v0 = vld [vmem:[#allocation15_spill] sm:$0xff] }
 0x336   : > { %1791 = vrot.lane.b32.xlu0 %v15413_v42, %s7614_s8  ;;  %1793 = vrot.lane.b32.xlu1 %v7467_v58, %s7614_s8  ;;  %v15419_v42 = vld [vmem:[#allocation162_spill] sm:$0xff] }
 0x338   : > { %v10120_v55 = vpop.permute.xlu0 %1555  ;;  %v10122_v41 = vpop.permute.xlu1 %1557 }
 0x339   : > { %15414 = vst [vmem:[#allocation258_spill] sm:$0xff] %v10120_v55  ;;  %15415 = vst [vmem:[#allocation422_spill] sm:$0xff] %v10122_v41  ;;  %v7470_v41 = vld [vmem:[#allocation2] sm:$0xff] }
 0x33a   : > { %1711 = vrot.lane.b32.xlu0 %v7468_v53, %s7614_s8  ;;  %1713 = vrot.lane.b32.xlu1 %v7469_v44, %s7614_s8  ;;  %v7471_v53 = vld [vmem:[#allocation2 + $0x8] sm:$0xff] }
 0x33c   : > { %v10126_v30 = vpop.permute.xlu0 %1559  ;;  %v10128_v39 = vpop.permute.xlu1 %1561 }
 0x33d   : > { %15416 = vst [vmem:[#allocation423_spill] sm:$0xff] %v10126_v30  ;;  %15417 = vst [vmem:[#allocation424_spill] sm:$0xff] %v10128_v39  ;;  %v7472_v39 = vld [vmem:[#allocation2 + $0xc0] sm:$0xff] }
 0x33e   : > { %1603 = vrot.lane.b32.xlu0 %v15418_v0, %s7613_s7  ;;  %1605 = vrot.lane.b32.xlu1 %v15419_v42, %s7613_s7 }
 0x340   : > { %v10134_v58 = vpop.permute.xlu0 %1563  ;;  %v10136_v55 = vpop.permute.xlu1 %1565 }
 0x341   : > { %15420 = vst [vmem:[#allocation15_spill] sm:$0xff] %v10134_v58  ;;  %15421 = vst [vmem:[#allocation162_spill] sm:$0xff] %v10136_v55  ;;  %v15424_v58 = vld [vmem:[#allocation26_spill] sm:$0xff] }
 0x342   : > { %1795 = vrot.lane.b32.xlu0 %v7470_v41, %s7614_s8  ;;  %1797 = vrot.lane.b32.xlu1 %v7471_v53, %s7614_s8  ;;  %v1863_v55 = vsel %vm58_vm0, %v9376_v46, %v15424_v58  ;;  %v7474_v58 = vld [vmem:[#allocation2 + $0xd0] sm:$0xff] }
 0x344   : > { %v10140_v44 = vpop.permute.xlu0 %1567  ;;  %v10142_v30 = vpop.permute.xlu1 %1569 }
 0x345   : > { %15422 = vst [vmem:[#allocation425_spill] sm:$0xff] %v10140_v44  ;;  %15423 = vst [vmem:[#allocation426_spill] sm:$0xff] %v10142_v30  ;;  %v1864_v30 = vsel %vm58_vm0, %v15410_v49, %v15427_v38  ;;  %v15428_v44 = vld [vmem:[#allocation152_spill] sm:$0xff]  ;;  %v15431_v49 = vld [vmem:[#allocation255_spill] sm:$0xff] }
 0x346   : > { %1715 = vrot.lane.b32.xlu0 %v7472_v39, %s7614_s8  ;;  %1717 = vrot.lane.b32.xlu1 %v7473_v13, %s7614_s8  ;;  %v1928_v14 = vsel %vm1927_vm3, %v1863_v55, %v15428_v44  ;;  %v15429_v39 = vld [vmem:[#allocation153_spill] sm:$0xff]  ;;  %v2252_v38 = vld [vmem:[%s14503_s2 + $0x18] sm:$0xff]  ;;  %v2057_v55 = vsel %vm58_vm0, %v7470_v41, %v9620_v59  ;;  %v2058_v44 = vsel %vm58_vm0, %v7471_v53, %v9622_v51 }
 0x347   : > { %v1929_v5 = vsel %vm1927_vm3, %v1864_v30, %v15429_v39  ;;  %v2249_v13 = vld [vmem:[%s14503_s2] sm:$0xff]  ;;  %v1993_v46 = vsel %vm1992_vm4, %v1928_v14, %v15430_v17  ;;  %v2250_v14 = vld [vmem:[%s14503_s2 + $0x8] sm:$0xff] }
 0x348   : > { %v10149_v56 = vpop.permute.xlu0 %1571  ;;  %v10151_v23 = vpop.permute.xlu1 %1573  ;;  %v1994_v30 = vsel %vm1992_vm4, %v1929_v5, %v15431_v49  ;;  %v2253_v17 = vld [vmem:[%s14503_s2 + $0x20] sm:$0xff]  ;;  %v2122_v5 = vsel %vm1927_vm3, %v2058_v44, %v9922_v24  ;;  %v2441_v41 = vmul.f32 %v2249_v13, %v1993_v46  ;;  %v15433_v44 = vld [vmem:[#allocation30_spill] sm:$0xff] }
 0x349   : > { %15425 = vst [vmem:[#allocation26_spill] sm:$0xff] %v10149_v56  ;;  %15426 = vst [vmem:[#allocation427_spill] sm:$0xff] %v10151_v23  ;;  %v7475_v23 = vld [vmem:[#allocation2 + $0xd8] sm:$0xff]  ;;  %v2444_v53 = vmul.f32 %v2252_v38, %v1994_v30  ;;  %v7476_v49 = vld [vmem:[#allocation2 + $0xe0] sm:$0xff]  ;;  %v1866_v38 = vsel %vm58_vm0, %v15419_v42, %v15433_v44 }
 0x34a   : > { %1719 = vrot.lane.b32.xlu0 %v7474_v58, %s7614_s8  ;;  %1721 = vrot.lane.b32.xlu1 %v7475_v23, %s7614_s8  ;;  %v2121_v23 = vsel %vm1927_vm3, %v2057_v55, %v9920_v25  ;;  %v7477_v56 = vld [vmem:[#allocation2 + $0xe8] sm:$0xff]  ;;  %v15432_v25 = vld [vmem:[#allocation27_spill] sm:$0xff] }
 0x34b   : > { %v1865_v24 = vsel %vm58_vm0, %v15418_v0, %v15432_v25  ;;  %v15434_v30 = vld [vmem:[#allocation157_spill] sm:$0xff]  ;;  %v15436_v0 = vld [vmem:[#allocation32_spill] sm:$0xff]  ;;  %v2060_v25 = vsel %vm58_vm0, %v9876_v40, %v9630_v1 }
 0x34c   : > { %v1672_v39 = vpop.permute.xlu0 %1671  ;;  %v1674_v58 = vpop.permute.xlu1 %1673  ;;  %v2258_v42 = vld [vmem:[%s14503_s2 + $0x48] sm:$0xff]  ;;  %v2124_v44 = vsel %vm1927_vm3, %v2060_v25, %v9930_v28 }
 0x34d   : > { %v2185_v59 = vsel %vm1992_vm4, %v2121_v23, %v1672_v39  ;;  %v2186_v51 = vsel %vm1992_vm4, %v2122_v5, %v1674_v58  ;;  %v1930_v23 = vsel %vm1927_vm3, %v1865_v24, %v15434_v30  ;;  %v15435_v5 = vld [vmem:[#allocation156_spill] sm:$0xff]  ;;  %v7478_v39 = vld [vmem:[#allocation2 + $0xf0] sm:$0xff] }
 0x34e   : > { %1723 = vrot.lane.b32.xlu0 %v7476_v49, %s7614_s8  ;;  %1725 = vrot.lane.b32.xlu1 %v7477_v56, %s7614_s8  ;;  %v2442_v36 = vmul.f32 %v2250_v14, %v2185_v59  ;;  %v2445_v61 = vmul.f32 %v2253_v17, %v2186_v51  ;;  %v1931_v56 = vsel %vm1927_vm3, %v1866_v38, %v15435_v5  ;;  %v2255_v14 = vld [vmem:[%s14503_s2 + $0x30] sm:$0xff] }
 0x34f   : > { %v1995_v17 = vsel %vm1992_vm4, %v1930_v23, %v15436_v0  ;;  %v15437_v58 = vld [vmem:[#allocation35_spill] sm:$0xff]  ;;  %v15438_v51 = vld [vmem:[#allocation322_spill] sm:$0xff] }
 0x350   : > { %v10193_v55 = vpop.permute.xlu0 %1575  ;;  %v10195_v13 = vpop.permute.xlu1 %1577  ;;  %v2634_v46 = vpack.c.bf16 %v2445_v61, %v2442_v36  ;;  %v7479_v61 = vld [vmem:[#allocation2 + $0xf8] sm:$0xff]  ;;  %v2633_v36 = vpack.c.bf16 %v2444_v53, %v2441_v41  ;;  %v1996_v59 = vsel %vm1992_vm4, %v1931_v56, %v15437_v58  ;;  %v2059_v49 = vsel %vm58_vm0, %v9872_v63, %v15438_v51  ;;  %v2259_v53 = vld [vmem:[%s14503_s2 + $0x50] sm:$0xff]  ;;  %v7480_v56 = vld [vmem:[#allocation2 + $0x100] sm:$0xff] }
 0x351   : > { %v2256_v41 = vld [vmem:[%s14503_s2 + $0x38] sm:$0xff]  ;;  %v2123_v24 = vsel %vm1927_vm3, %v2059_v49, %v9928_v22  ;;  %v2447_v30 = vmul.f32 %v2255_v14, %v1995_v17  ;;  %v7481_v0 = vld [vmem:[#allocation2 + $0x108] sm:$0xff]  ;;  %v2261_v49 = vld [vmem:[%s14503_s2 + $0x60] sm:$0xff] }
 0x352   : > { %1727 = vrot.lane.b32.xlu0 %v7478_v39, %s7614_s8  ;;  %1729 = vrot.lane.b32.xlu1 %v7479_v61, %s7614_s8  ;;  %v15439_v22 = vld [vmem:[#allocation33_spill] sm:$0xff]  ;;  %v15440_v61 = vld [vmem:[#allocation34_spill] sm:$0xff] }
 0x353   : > { %3132 = vmatprep.mubr.bf16.mxu0 %v2634_v46  ;;  %v2450_v46 = vmul.f32 %v2258_v42, %v1996_v59  ;;  %v1867_v28 = vsel %vm58_vm0, %v8835_v54, %v15439_v22  ;;  %v15441_v42 = vld [vmem:[#allocation161_spill] sm:$0xff]  ;;  %v15442_v59 = vld [vmem:[#allocation160_spill] sm:$0xff] }
 0x354   : > { %3133 = vmatmul.mubr.bf16.vlgmr.msra.gmra.mrb[0].mxu0 %v2633_v36  ;;  %v1676_v63 = vpop.permute.xlu0 %1675  ;;  %v1678_v38 = vpop.permute.xlu1 %1677  ;;  %v1868_v36 = vsel %vm58_vm0, %v8839_v2, %v15440_v61  ;;  %v1932_v58 = vsel %vm1927_vm3, %v1867_v28, %v15441_v42  ;;  %v15443_v54 = vld [vmem:[#allocation261_spill] sm:$0xff]  ;;  %v15446_v61 = vld [vmem:[#allocation39_spill] sm:$0xff]  ;;  %v15447_v42 = vld [vmem:[#allocation42_spill] sm:$0xff] }
 0x355   : > { %v2187_v40 = vsel %vm1992_vm4, %v2123_v24, %v1676_v63  ;;  %v2188_v1 = vsel %vm1992_vm4, %v2124_v44, %v1678_v38  ;;  %v1933_v51 = vsel %vm1927_vm3, %v1868_v36, %v15442_v59  ;;  %v1997_v25 = vsel %vm1992_vm4, %v1932_v58, %v15443_v54  ;;  %v2264_v24 = vld [vmem:[%s14503_s2 + $0x78] sm:$0xff]  ;;  %v15444_v44 = vld [vmem:[#allocation262_spill] sm:$0xff]  ;;  %v7484_v28 = vld [vmem:[#allocation2 + $0x120] sm:$0xff] }
 0x356   : > { %v2448_v23 = vmul.f32 %v2256_v41, %v2187_v40  ;;  %v2451_v5 = vmul.f32 %v2259_v53, %v2188_v1  ;;  %1731 = vrot.lane.b32.xlu0 %v7480_v56, %s7614_s8  ;;  %1733 = vrot.lane.b32.xlu1 %v7481_v0, %s7614_s8  ;;  %v7482_v41 = vld [vmem:[#allocation2 + $0x110] sm:$0xff]  ;;  %v7483_v53 = vld [vmem:[#allocation2 + $0x118] sm:$0xff]  ;;  %v2636_v2 = vpack.c.bf16 %v2450_v46, %v2447_v30  ;;  %v2262_v30 = vld [vmem:[%s14503_s2 + $0x68] sm:$0xff] }
 0x357   : > { %v1998_v63 = vsel %vm1992_vm4, %v1933_v51, %v15444_v44  ;;  %v2061_v38 = vsel %vm58_vm0, %v9892_v34, %v9636_v52  ;;  %v2062_v40 = vsel %vm58_vm0, %v9896_v33, %v9638_v57  ;;  %v2265_v1 = vld [vmem:[%s14503_s2 + $0x80] sm:$0xff]  ;;  %v1870_v36 = vsel %vm58_vm0, %v8857_v60, %v15446_v61  ;;  %v15448_v54 = vld [vmem:[#allocation43_spill] sm:$0xff] }
 0x358   : > { %v10239_v39 = vpop.permute.xlu0 %1579  ;;  %v10241_v14 = vpop.permute.xlu1 %1581  ;;  %v2637_v17 = vpack.c.bf16 %v2451_v5, %v2448_v23  ;;  %v2125_v46 = vsel %vm1927_vm3, %v2061_v38, %v9940_v20  ;;  %v2126_v23 = vsel %vm1927_vm3, %v2062_v40, %v9942_v31  ;;  %v2453_v5 = vmul.f32 %v2261_v49, %v1997_v25  ;;  %v15445_v20 = vld [vmem:[#allocation38_spill] sm:$0xff] }
 0x359   : > { %v2456_v56 = vmul.f32 %v2264_v24, %v1998_v63  ;;  %v1869_v31 = vsel %vm58_vm0, %v8853_v7, %v15445_v20  ;;  %v1871_v58 = vsel %vm58_vm0, %v8871_v62, %v15447_v42  ;;  %v1872_v25 = vsel %vm58_vm0, %v8875_v8, %v15448_v54  ;;  %v15452_v24 = vld [vmem:[#allocation14_spill] sm:$0xff]  ;;  %v15453_v8 = vld [vmem:[#allocation264_spill] sm:$0xff] }
 0x35a   : > { %1735 = vrot.lane.b32.xlu0 %v7482_v41, %s7614_s8  ;;  %1737 = vrot.lane.b32.xlu1 %v7483_v53, %s7614_s8  ;;  %v15449_v41 = vld [vmem:[#allocation46_spill] sm:$0xff]  ;;  %v15450_v53 = vld [vmem:[#allocation47_spill] sm:$0xff]  ;;  %v1935_v44 = vsel %vm1927_vm3, %v1870_v36, %v15452_v24 }
 0x35b   : > { %3140 = vmatprep.mubr.bf16.mxu0 %v2637_v17  ;;  %v7485_v17 = vld [vmem:[#allocation2 + $0x128] sm:$0xff]  ;;  %v10301_v7 = vsel %vm58_vm0, %v8889_v4, %v15449_v41  ;;  %v1874_v60 = vsel %vm58_vm0, %v8893_v9, %v15450_v53  ;;  %v2267_v63 = vld [vmem:[%s14503_s2 + $0x90] sm:$0xff]  ;;  %v7487_v4 = vld [vmem:[#allocation2 + $0x138] sm:$0xff]  ;;  %v2639_v9 = vpack.c.bf16 %v2456_v56, %v2453_v5 }
 0x35c   : > { %3141 = vmatmul.mubr.bf16.gmra.mrb[4].mxu0 %v2636_v2  ;;  %v1680_v34 = vpop.permute.xlu0 %1679  ;;  %v1682_v52 = vpop.permute.xlu1 %1681  ;;  %v15451_v2 = vld [vmem:[#allocation13_spill] sm:$0xff]  ;;  %v7486_v40 = vld [vmem:[#allocation2 + $0x130] sm:$0xff] }
 0x35d   : > { %v2189_v57 = vsel %vm1992_vm4, %v2125_v46, %v1680_v34  ;;  %v2190_v33 = vsel %vm1992_vm4, %v2126_v23, %v1682_v52  ;;  %v1934_v62 = vsel %vm1927_vm3, %v1869_v31, %v15451_v2  ;;  %v2270_v46 = vld [vmem:[%s14503_s2 + $0xa8] sm:$0xff]  ;;  %v2063_v52 = vsel %vm58_vm0, %v9912_v27, %v9644_v6  ;;  %v15457_v56 = vld [vmem:[#allocation51_spill] sm:$0xff]  ;;  %v7488_v53 = vld [vmem:[#allocation2 + $0x140] sm:$0xff] }
 0x35e   : > { %v2454_v0 = vmul.f32 %v2262_v30, %v2189_v57  ;;  %v2457_v22 = vmul.f32 %v2265_v1, %v2190_v33  ;;  %1739 = vrot.lane.b32.xlu0 %v7484_v28, %s7614_s8  ;;  %1741 = vrot.lane.b32.xlu1 %v7485_v17, %s7614_s8  ;;  %v1999_v38 = vsel %vm1992_vm4, %v1934_v62, %v15453_v8  ;;  %v15454_v30 = vld [vmem:[#allocation50_spill] sm:$0xff]  ;;  %v15455_v23 = vld [vmem:[#allocation265_spill] sm:$0xff]  ;;  %v15456_v57 = vld [vmem:[#allocation323_spill] sm:$0xff] }
 0x35f   : > { %v10320_v1 = vsel %vm58_vm0, %v8907_v10, %v15454_v30  ;;  %v2000_v34 = vsel %vm1992_vm4, %v1935_v44, %v15455_v23  ;;  %v2064_v5 = vsel %vm58_vm0, %v9916_v26, %v15456_v57  ;;  %v2268_v10 = vld [vmem:[%s14503_s2 + $0x98] sm:$0xff]  ;;  %v2271_v33 = vld [vmem:[%s14503_s2 + $0xb0] sm:$0xff]  ;;  %v2127_v26 = vsel %vm1927_vm3, %v2063_v52, %v9950_v18  ;;  %v7489_v18 = vld [vmem:[#allocation2 + $0x148] sm:$0xff] }
 0x360   : > { %v10291_v59 = vpop.permute.xlu0 %1583  ;;  %v10293_v51 = vpop.permute.xlu1 %1585  ;;  %v2640_v49 = vpack.c.bf16 %v2457_v22, %v2454_v0  ;;  %v10342_v0 = vsel %vm58_vm0, %v8911_v11, %v15457_v56  ;;  %v15458_v22 = vld [vmem:[#allocation54_spill] sm:$0xff]  ;;  %v2128_v28 = vsel %vm1927_vm3, %v2064_v5, %v9952_v35  ;;  %v2459_v11 = vmul.f32 %v2267_v63, %v1999_v38  ;;  %v15461_v35 = vld [vmem:[#allocation123_spill] sm:$0xff]  ;;  %v15468_v23 = vld [vmem:[#allocation16_spill] sm:$0xff] }
 0x361   : > { %v15459_v6 = vld [vmem:[#allocation174_spill] sm:$0xff]  ;;  %v1912_v2 = vsel %vm58_vm0, %v15343_v47, %v15461_v35  ;;  %v15463_v24 = vld [vmem:[#allocation127_spill] sm:$0xff] }
 0x362   : > { %1743 = vrot.lane.b32.xlu0 %v7486_v40, %s7614_s8  ;;  %1745 = vrot.lane.b32.xlu1 %v7487_v4, %s7614_s8  ;;  %v10347_v27 = vsel %vm58_vm0, %v15459_v6, %v15458_v22  ;;  %v15460_v31 = vld [vmem:[#allocation122_spill] sm:$0xff]  ;;  %v1914_v44 = vsel %vm58_vm0, %v15346_v45, %v15463_v24  ;;  %v15465_v38 = vld [vmem:[#allocation131_spill] sm:$0xff]  ;;  %v15466_v4 = vld [vmem:[#allocation232_spill] sm:$0xff] }
 0x363   : > { %3148 = vmatprep.mubr.bf16.mxu0 %v2640_v49  ;;  %v1911_v61 = vsel %vm58_vm0, %v15342_v43, %v15460_v31  ;;  %v2462_v49 = vmul.f32 %v2270_v46, %v2000_v34  ;;  %v15462_v62 = vld [vmem:[#allocation126_spill] sm:$0xff]  ;;  %v10377_v40 = vsel %vm58_vm0, %v15351_v37, %v15465_v38  ;;  %v1977_v47 = vsel %vm1927_vm3, %v1912_v2, %v15466_v4  ;;  %v2396_v57 = vld [vmem:[%s14503_s2 + $0x498] sm:$0xff] }
 0x364   : > { %3149 = vmatmul.mubr.bf16.gmra.mrb[8].mxu0 %v2639_v9  ;;  %v1684_v17 = vpop.permute.xlu0 %1683  ;;  %v1686_v20 = vpop.permute.xlu1 %1685  ;;  %v1913_v43 = vsel %vm58_vm0, %v9249_v48, %v15462_v62  ;;  %v15464_v63 = vld [vmem:[#allocation130_spill] sm:$0xff]  ;;  %v15467_v9 = vld [vmem:[#allocation233_spill] sm:$0xff]  ;;  %v1937_v34 = vsel %vm1927_vm3, %v1872_v25, %v15468_v23  ;;  %v15470_v5 = vld [vmem:[#allocation307_spill] sm:$0xff] }
 0x365   : > { %v2191_v36 = vsel %vm1992_vm4, %v2127_v26, %v1684_v17  ;;  %v2192_v42 = vsel %vm1992_vm4, %v2128_v28, %v1686_v20  ;;  %v10372_v8 = vsel %vm58_vm0, %v9267_v50, %v15464_v63  ;;  %v1976_v48 = vsel %vm1927_vm3, %v1911_v61, %v15467_v9  ;;  %v2393_v50 = vld [vmem:[%s14503_s2 + $0x480] sm:$0xff]  ;;  %v15469_v52 = vld [vmem:[#allocation306_spill] sm:$0xff]  ;;  %v15471_v56 = vld [vmem:[#allocation163_spill] sm:$0xff] }
 0x366   : > { %v2460_v54 = vmul.f32 %v2268_v10, %v2191_v36  ;;  %v2463_v41 = vmul.f32 %v2271_v33, %v2192_v42  ;;  %1747 = vrot.lane.b32.xlu0 %v7488_v53, %s7614_s8  ;;  %1749 = vrot.lane.b32.xlu1 %v7489_v18, %s7614_s8  ;;  %v2041_v37 = vsel %vm1992_vm4, %v1976_v48, %v15469_v52  ;;  %v10397_v33 = vld [vmem:[#allocation2 + $0x180] sm:$0xff]  ;;  %v7491_v26 = vld [vmem:[#allocation2 + $0x150] sm:$0xff]  ;;  %v7492_v28 = vld [vmem:[#allocation2 + $0x158] sm:$0xff] }
 0x367   : > { %v2042_v10 = vsel %vm1992_vm4, %v1977_v47, %v15470_v5  ;;  %v2105_v25 = vsel %vm58_vm0, %v10397_v33, %v9842_v12  ;;  %v1936_v22 = vsel %vm1927_vm3, %v1871_v58, %v15471_v56  ;;  %v2642_v17 = vpack.c.bf16 %v2462_v49, %v2459_v11  ;;  %v15472_v20 = vld [vmem:[#allocation164_spill] sm:$0xff]  ;;  %v15473_v61 = vld [vmem:[#allocation266_spill] sm:$0xff]  ;;  %v15475_v62 = vld [vmem:[#allocation165_spill] sm:$0xff] }
 0x368   : > { %v10383_v30 = vpop.permute.xlu0 %1587  ;;  %v1768_v46 = vpop.permute.xlu1 %1767  ;;  %v2643_v45 = vpack.c.bf16 %v2463_v41, %v2460_v54  ;;  %v2169_v6 = vsel %vm1927_vm3, %v2105_v25, %v10193_v55  ;;  %v10410_v31 = vsel %vm1927_vm3, %v1874_v60, %v15472_v20  ;;  %v2001_v12 = vsel %vm1992_vm4, %v1936_v22, %v15473_v61  ;;  %v10414_v36 = vld [vmem:[#allocation2 + $0x188] sm:$0xff]  ;;  %v2397_v60 = vld [vmem:[%s14503_s2 + $0x4a0] sm:$0xff]  ;;  %v2276_v49 = vld [vmem:[%s14503_s2 + $0xd8] sm:$0xff] }
 0x369   : > { %v2106_v55 = vsel %vm58_vm0, %v10414_v36, %v9844_v3  ;;  %v2233_v58 = vsel %vm1992_vm4, %v2169_v6, %v1768_v46  ;;  %v2394_v11 = vld [vmem:[%s14503_s2 + $0x488] sm:$0xff]  ;;  %v2273_v42 = vld [vmem:[%s14503_s2 + $0xc0] sm:$0xff]  ;;  %v15474_v3 = vld [vmem:[#allocation267_spill] sm:$0xff]  ;;  %v2585_v41 = vmul.f32 %v2393_v50, %v2041_v37  ;;  %v2588_v53 = vmul.f32 %v2396_v57, %v2042_v10 }
 0x36a   : > { %1751 = vrot.lane.b32.xlu0 %v7491_v26, %s7614_s8  ;;  %1753 = vrot.lane.b32.xlu1 %v7492_v28, %s7614_s8  ;;  %v2002_v54 = vsel %vm1992_vm4, %v1937_v34, %v15474_v3  ;;  %v2170_v18 = vsel %vm1927_vm3, %v2106_v55, %v10195_v13  ;;  %v1938_v24 = vsel %vm1927_vm3, %v10301_v7, %v15475_v62  ;;  %v15476_v63 = vld [vmem:[#allocation236_spill] sm:$0xff]  ;;  %v7495_v46 = vld [vmem:[#allocation2 + $0x168] sm:$0xff] }
 0x36b   : > { %3156 = vmatprep.mubr.bf16.mxu0 %v2643_v45  ;;  %v1979_v38 = vsel %vm1927_vm3, %v1914_v44, %v15476_v63  ;;  %v15477_v4 = vld [vmem:[#allocation324_spill] sm:$0xff]  ;;  %v2586_v45 = vmul.f32 %v2394_v11, %v2233_v58  ;;  %v10449_v23 = vmul.f32 %v2273_v42, %v2001_v12  ;;  %v2468_v44 = vmul.f32 %v2276_v49, %v2002_v54  ;;  %v15478_v34 = vld [vmem:[#allocation325_spill] sm:$0xff]  ;;  %v7496_v58 = vld [vmem:[#allocation2 + $0x170] sm:$0xff] }
 0x36c   : > { %3157 = vmatmul.mubr.bf16.gmra.mrb[12].mxu0 %v2642_v17  ;;  %v1770_v35 = vpop.permute.xlu0 %1769  ;;  %v1688_v2 = vpop.permute.xlu1 %1687  ;;  %v2065_v47 = vsel %vm58_vm0, %v9932_v29, %v15477_v4  ;;  %v7494_v13 = vld [vmem:[#allocation2 + $0x160] sm:$0xff]  ;;  %v2066_v29 = vsel %vm58_vm0, %v9936_v21, %v15478_v34  ;;  %v2274_v50 = vld [vmem:[%s14503_s2 + $0xc8] sm:$0xff]  ;;  %v2705_v21 = vpack.c.bf16 %v2588_v53, %v2585_v41  ;;  %v2107_v17 = vsel %vm58_vm0, %v9946_v19, %v9852_v15  ;;  %v7497_v11 = vld [vmem:[#allocation2 + $0x178] sm:$0xff] }
 0x36d   : > { %v2234_v9 = vsel %vm1992_vm4, %v2170_v18, %v1770_v35  ;;  %v2129_v48 = vsel %vm1927_vm3, %v2065_v47, %v9962_v16  ;;  %v2277_v52 = vld [vmem:[%s14503_s2 + $0xe0] sm:$0xff]  ;;  %v2130_v5 = vsel %vm1927_vm3, %v2066_v29, %v9964_v32  ;;  %v2399_v32 = vld [vmem:[%s14503_s2 + $0x4b0] sm:$0xff]  ;;  %v2171_v61 = vsel %vm1927_vm3, %v2107_v17, %v10239_v39  ;;  %v2400_v39 = vld [vmem:[%s14503_s2 + $0x4b8] sm:$0xff] }
 0x36e   : > { %1755 = vrot.lane.b32.xlu0 %v7494_v13, %s7614_s8  ;;  %1757 = vrot.lane.b32.xlu1 %v7495_v46, %s7614_s8  ;;  %v2589_v7 = vmul.f32 %v2397_v60, %v2234_v9  ;;  %v2193_v16 = vsel %vm1992_vm4, %v2129_v48, %v1688_v2  ;;  %v15479_v37 = vld [vmem:[#allocation237_spill] sm:$0xff]  ;;  %v15480_v22 = vld [vmem:[#allocation308_spill] sm:$0xff]  ;;  %v15482_v15 = vld [vmem:[#allocation166_spill] sm:$0xff]  ;;  %v2645_v41 = vpack.c.bf16 %v2468_v44, %v10449_v23 }
 0x36f   : > { %v1978_v57 = vsel %vm1927_vm3, %v1913_v43, %v15479_v37  ;;  %v15481_v26 = vld [vmem:[#allocation309_spill] sm:$0xff]  ;;  %v2466_v12 = vmul.f32 %v2274_v50, %v2193_v16  ;;  %v10486_v19 = vsel %vm1927_vm3, %v10342_v0, %v15482_v15  ;;  %v15483_v60 = vld [vmem:[#allocation364_spill] sm:$0xff]  ;;  %v2403_v54 = vld [vmem:[%s14503_s2 + $0x4d0] sm:$0xff] }
 0x370   : > { %v1690_v10 = vpop.permute.xlu0 %1689  ;;  %v1772_v25 = vpop.permute.xlu1 %1771  ;;  %v2706_v56 = vpack.c.bf16 %v2589_v7, %v2586_v45  ;;  %v2043_v6 = vsel %vm1992_vm4, %v1978_v57, %v15480_v22  ;;  %v2044_v28 = vsel %vm1992_vm4, %v1979_v38, %v15481_v26  ;;  %v2402_v43 = vld [vmem:[%s14503_s2 + $0x4c8] sm:$0xff]  ;;  %v15485_v0 = vld [vmem:[#allocation268_spill] sm:$0xff]  ;;  %v2279_v47 = vld [vmem:[%s14503_s2 + $0xf0] sm:$0xff] }
 0x371   : > { %v2194_v20 = vsel %vm1992_vm4, %v2130_v5, %v1690_v10  ;;  %v15484_v42 = vld [vmem:[#allocation373_spill] sm:$0xff]  ;;  %v2235_v3 = vsel %vm1992_vm4, %v2171_v61, %v1772_v25  ;;  %v2003_v18 = vsel %vm1992_vm4, %v1938_v24, %v15485_v0  ;;  %v2591_v24 = vmul.f32 %v2399_v32, %v2043_v6  ;;  %v15487_v13 = vld [vmem:[#allocation326_spill] sm:$0xff]  ;;  %v15489_v45 = vld [vmem:[#allocation383_spill] sm:$0xff] }
 0x372   : > { %v2469_v55 = vmul.f32 %v2277_v52, %v2194_v20  ;;  %1759 = vrot.lane.b32.xlu0 %v7496_v58, %s7614_s8  ;;  %1761 = vrot.lane.b32.xlu1 %v7497_v11, %s7614_s8  ;;  %v2108_v49 = vsel %vm58_vm0, %v15484_v42, %v15483_v60  ;;  %v7047_v53 = vld [vmem:[#allocation4 + $0x88] sm:$0xff]   ;;  %v2594_v48 = vmul.f32 %v2402_v43, %v2044_v28  ;;  %v15491_v29 = vld [vmem:[#allocation240_spill] sm:$0xff]  ;;  %v15492_v16 = vld [vmem:[#allocation327_spill] sm:$0xff] }
 0x373   : > { %3324 = vmatprep.mubr.bf16.mxu1 %v2706_v56  ;;  %v15486_v35 = vld [vmem:[#allocation269_spill] sm:$0xff]  ;;  %v2172_v62 = vsel %vm1927_vm3, %v2108_v49, %v10241_v14  ;;  %v15488_v46 = vld [vmem:[#allocation374_spill] sm:$0xff]  ;;  %v2592_v44 = vmul.f32 %v2400_v39, %v2235_v3  ;;  %v1981_v50 = vsel %vm1927_vm3, %v10377_v40, %v15491_v29  ;;  %v15493_v52 = vld [vmem:[#allocation375_spill] sm:$0xff] }
 0x374   : > { %v2004_v2 = vsel %vm1992_vm4, %v10410_v31, %v15486_v35  ;;  %3325 = vmatmul.mubr.bf16.vlgmr.msra.gmra.mrb[0].mxu1 %v2705_v21  ;;  %v1774_v63 = vpop.permute.xlu0 %1773  ;;  %v1692_v38 = vpop.permute.xlu1 %1691  ;;  %v2646_v4 = vpack.c.bf16 %v2469_v55, %v2466_v12  ;;  %v2282_v9 = vld [vmem:[%s14503_s2 + $0x108] sm:$0xff]  ;;  %v2067_v31 = vsel %vm58_vm0, %v15488_v46, %v15487_v13  ;;  %v2068_v37 = vsel %vm58_vm0, %v15493_v52, %v15492_v16  ;;  %v2280_v57 = vld [vmem:[%s14503_s2 + $0xf8] sm:$0xff]  ;;  %v2405_v61 = vld [vmem:[%s14503_s2 + $0x4e0] sm:$0xff] }
 0x375   : > { %v2236_v14 = vsel %vm1992_vm4, %v2172_v62, %v1774_v63  ;;  %6913 = vmatpush3.bf16.msra.mxu1 %v15489_v45  ;;  %v15490_v7 = vld [vmem:[#allocation377_spill] sm:$0xff]  ;;  %v2474_v10 = vmul.f32 %v2282_v9, %v2004_v2  ;;  %v15494_v25 = vld [vmem:[#allocation378_spill] sm:$0xff]  ;;  %v15497_v17 = vld [vmem:[#allocation376_spill] sm:$0xff]  ;;  %v2708_v43 = vpack.c.bf16 %v2594_v48, %v2591_v24 }
 0x376   : > { %v2131_v23 = vsel %vm1927_vm3, %v2067_v31, %v15490_v7  ;;  %v2595_v34 = vmul.f32 %v2403_v54, %v2236_v14  ;;  %1763 = vrot.lane.b32.xlu0 %v10397_v33, %s7614_s8  ;;  %1765 = vrot.lane.b32.xlu1 %v10414_v36, %s7614_s8  ;;  %v2283_v33 = vld [vmem:[%s14503_s2 + $0x110] sm:$0xff]  ;;  %v2471_v36 = vmul.f32 %v2279_v47, %v2003_v18  ;;  %v15495_v6 = vld [vmem:[#allocation241_spill] sm:$0xff]  ;;  %v2408_v42 = vld [vmem:[%s14503_s2 + $0x4f8] sm:$0xff] }
 0x377   : > { %v2195_v5 = vsel %vm1992_vm4, %v2131_v23, %v1692_v38  ;;  %3164 = vmatprep.mubr.bf16.mxu0 %v2646_v4  ;;  %6914 = vmatprep.subr.bf16.mxu1 %v7047_v53  ;;  %v2132_v40 = vsel %vm1927_vm3, %v2068_v37, %v15494_v25  ;;  %v1980_v26 = vsel %vm1927_vm3, %v10372_v8, %v15495_v6  ;;  %v15496_v28 = vld [vmem:[#allocation242_spill] sm:$0xff]  ;;  %v15499_v15 = vld [vmem:[#allocation167_spill] sm:$0xff]  ;;  %v15505_v24 = vld [vmem:[#allocation328_spill] sm:$0xff] }
 0x378   : > { %3165 = vmatmul.mubr.bf16.gmra.mrb[16].mxu0 %v2645_v41  ;;  %v1694_v56 = vpop.permute.xlu0 %1693  ;;  %v1776_v21 = vpop.permute.xlu1 %1775  ;;  %v2709_v22 = vpack.c.bf16 %v2595_v34, %v2592_v44  ;;  %v2109_v20 = vsel %vm58_vm0, %v15497_v17, %v15496_v28  ;;  %v15498_v12 = vld [vmem:[#allocation310_spill] sm:$0xff]  ;;  %v2472_v11 = vmul.f32 %v2280_v57, %v2195_v5  ;;  %v1940_v60 = vsel %vm1927_vm3, %v10320_v1, %v15499_v15  ;;  %v15500_v49 = vld [vmem:[#allocation311_spill] sm:$0xff]  ;;  %v2409_v1 = vld [vmem:[%s14503_s2 + $0x500] sm:$0xff] }
 0x379   : > { %v2196_v32 = vsel %vm1992_vm4, %v2132_v40, %v1694_v56  ;;  %6915 = vmatpush3.bf16.msra.mxu1 %v7047_v53  ;;  %v2045_v55 = vsel %vm1992_vm4, %v1980_v26, %v15498_v12  ;;  %v2173_v58 = vsel %vm1927_vm3, %v2109_v20, %v10291_v59  ;;  %v2046_v39 = vsel %vm1992_vm4, %v1981_v50, %v15500_v49  ;;  %v15501_v3 = vld [vmem:[#allocation243_spill] sm:$0xff]  ;;  %v2406_v59 = vld [vmem:[%s14503_s2 + $0x4e8] sm:$0xff]  ;;  %v15506_v48 = vld [vmem:[#allocation380_spill] sm:$0xff] }
 0x37a   : > { %v2475_v8 = vmul.f32 %v2283_v33, %v2196_v32  ;;  %3332 = vmatprep.mubr.bf16.mxu1 %v2709_v22  ;;  %v15502_v54 = vld [vmem:[#allocation379_spill] sm:$0xff]  ;;  %v2237_v53 = vsel %vm1992_vm4, %v2173_v58, %v1776_v21  ;;  %v15503_v0 = vld [vmem:[#allocation270_spill] sm:$0xff]  ;;  %v2648_v38 = vpack.c.bf16 %v2474_v10, %v2471_v36  ;;  %v2597_v9 = vmul.f32 %v2405_v61, %v2045_v55  ;;  %v15507_v45 = vld [vmem:[#allocation381_spill] sm:$0xff] }
 0x37b   : > { %v2110_v41 = vsel %vm58_vm0, %v15502_v54, %v15501_v3  ;;  %v2005_v18 = vsel %vm1992_vm4, %v1940_v60, %v15503_v0  ;;  %v15504_v4 = vld [vmem:[#allocation271_spill] sm:$0xff]  ;;  %v2069_v13 = vsel %vm58_vm0, %v15506_v48, %v15505_v24  ;;  %v2600_v14 = vmul.f32 %v2408_v42, %v2046_v39  ;;  %v15510_v50 = vld [vmem:[#allocation134_spill] sm:$0xff]  ;;  %v15512_v37 = vld [vmem:[#allocation329_spill] sm:$0xff] }
 0x37c   : > { %v2174_v35 = vsel %vm1927_vm3, %v2110_v41, %v10293_v51  ;;  %3333 = vmatmul.mubr.bf16.gmra.mrb[4].mxu1 %v2708_v43  ;;  %v1778_v2 = vpop.permute.xlu0 %1777  ;;  %v1696_v62 = vpop.permute.xlu1 %1695  ;;  %v2649_v63 = vpack.c.bf16 %v2475_v8, %v2472_v11  ;;  %v2006_v47 = vsel %vm1992_vm4, %v10486_v19, %v15504_v4  ;;  %v2285_v51 = vld [vmem:[%s14503_s2 + $0x120] sm:$0xff]  ;;  %v2288_v31 = vld [vmem:[%s14503_s2 + $0x138] sm:$0xff]  ;;  %v2133_v7 = vsel %vm1927_vm3, %v2069_v13, %v15507_v45  ;;  %v2286_v33 = vld [vmem:[%s14503_s2 + $0x128] sm:$0xff] }
 0x37d   : > { %v2238_v46 = vsel %vm1992_vm4, %v2174_v35, %v1778_v2  ;;  %v2598_v19 = vmul.f32 %v2406_v59, %v2237_v53  ;;  %v15508_v44 = vld [vmem:[#allocation55_spill] sm:$0xff]  ;;  %v15513_v57 = vld [vmem:[#allocation384_spill] sm:$0xff]  ;;  %v2197_v36 = vsel %vm1992_vm4, %v2133_v7, %v1696_v62  ;;  %v15517_v6 = vld [vmem:[#allocation382_spill] sm:$0xff]  ;;  %v2477_v61 = vmul.f32 %v2285_v51, %v2005_v18 }
 0x37e   : > { %v2601_v23 = vmul.f32 %v2409_v1, %v2238_v46  ;;  %3172 = vmatprep.mubr.bf16.mxu0 %v2649_v63  ;;  %v15509_v34 = vld [vmem:[#allocation175_spill] sm:$0xff]  ;;  %v2070_v5 = vsel %vm58_vm0, %v15513_v57, %v15512_v37  ;;  %v2289_v10 = vld [vmem:[%s14503_s2 + $0x140] sm:$0xff]  ;;  %v2480_v12 = vmul.f32 %v2288_v31, %v2006_v47  ;;  %v2478_v15 = vmul.f32 %v2286_v33, %v2197_v36  ;;  %v2414_v3 = vld [vmem:[%s14503_s2 + $0x528] sm:$0xff] }
 0x37f   : > { %v1878_v29 = vsel %vm58_vm0, %v15509_v34, %v15508_v44  ;;  %v15511_v16 = vld [vmem:[#allocation247_spill] sm:$0xff]  ;;  %v15515_v40 = vld [vmem:[#allocation248_spill] sm:$0xff]  ;;  %v2134_v26 = vsel %vm1927_vm3, %v2070_v5, %v15517_v6  ;;  %v15518_v32 = vld [vmem:[#allocation17_spill] sm:$0xff]  ;;  %v2711_v42 = vpack.c.bf16 %v2600_v14, %v2597_v9 }
 0x380   : > { %v1917_v52 = vsel %vm58_vm0, %v15511_v16, %v15510_v50  ;;  %v15514_v25 = vld [vmem:[#allocation135_spill] sm:$0xff]  ;;  %v15516_v21 = vld [vmem:[#allocation168_spill] sm:$0xff]  ;;  %3173 = vmatmul.mubr.bf16.gmra.mrb[20].mxu0 %v2648_v38  ;;  %v1698_v28 = vpop.permute.xlu0 %1697  ;;  %v1590_v17 = vpop.permute.xlu1 %1589  ;;  %v2712_v20 = vpack.c.bf16 %v2601_v23, %v2598_v19  ;;  %v15521_v54 = vld [vmem:[#allocation313_spill] sm:$0xff]  ;;  %v2651_v14 = vpack.c.bf16 %v2480_v12, %v2477_v61 }
 0x381   : > { %v1918_v56 = vsel %vm58_vm0, %v15515_v40, %v15514_v25  ;;  %v1943_v22 = vsel %vm1927_vm3, %v1878_v29, %v15516_v21  ;;  %v2198_v55 = vsel %vm1992_vm4, %v2134_v26, %v1698_v28  ;;  %v15519_v58 = vld [vmem:[#allocation244_spill] sm:$0xff]  ;;  %v2411_v8 = vld [vmem:[%s14503_s2 + $0x510] sm:$0xff]  ;;  %v15522_v59 = vld [vmem:[#allocation245_spill] sm:$0xff] }
 0x382   : > { %v1983_v43 = vsel %vm1927_vm3, %v1918_v56, %v15518_v32  ;;  %v1982_v11 = vsel %vm1927_vm3, %v1917_v52, %v15519_v58  ;;  %v2481_v60 = vmul.f32 %v2289_v10, %v2198_v55  ;;  %3340 = vmatprep.mubr.bf16.mxu1 %v2712_v20  ;;  %v15520_v49 = vld [vmem:[#allocation312_spill] sm:$0xff]  ;;  %v15523_v53 = vld [vmem:[#allocation385_spill] sm:$0xff]  ;;  %v2415_v62 = vld [vmem:[%s14503_s2 + $0x530] sm:$0xff] }
 0x383   : > { %v2047_v39 = vsel %vm1992_vm4, %v1982_v11, %v15520_v49  ;;  %v2048_v41 = vsel %vm1992_vm4, %v1983_v43, %v15521_v54  ;;  %v2111_v1 = vsel %vm58_vm0, %v15523_v53, %v15522_v59  ;;  %v15524_v0 = vld [vmem:[#allocation365_spill] sm:$0xff]  ;;  %v15525_v18 = vld [vmem:[#allocation388_spill] sm:$0xff]  ;;  %v15529_v29 = vld [vmem:[#allocation330_spill] sm:$0xff] }
 0x384   : > { %v2112_v35 = vsel %vm58_vm0, %v15525_v18, %v15524_v0  ;;  %v2412_v2 = vld [vmem:[%s14503_s2 + $0x518] sm:$0xff]  ;;  %v15526_v63 = vld [vmem:[#allocation169_spill] sm:$0xff]  ;;  %v2175_v4 = vsel %vm1927_vm3, %v2111_v1, %v10383_v30  ;;  %3341 = vmatmul.mubr.bf16.gmra.mrb[8].mxu1 %v2711_v42  ;;  %v1780_v9 = vpop.permute.xlu0 %1779  ;;  %v1782_v24 = vpop.permute.xlu1 %1781  ;;  %v2652_v48 = vpack.c.bf16 %v2481_v60, %v2478_v15  ;;  %v2603_v45 = vmul.f32 %v2411_v8, %v2047_v39  ;;  %v2295_v33 = vld [vmem:[%s14503_s2 + $0x170] sm:$0xff] }
 0x385   : > { %v1942_v38 = vsel %vm1927_vm3, %v10347_v27, %v15526_v63  ;;  %v2176_v47 = vsel %vm1927_vm3, %v2112_v35, %v1590_v17  ;;  %v15527_v13 = vld [vmem:[#allocation272_spill] sm:$0xff]  ;;  %v2239_v51 = vsel %vm1992_vm4, %v2175_v4, %v1780_v9  ;;  %v2291_v27 = vld [vmem:[%s14503_s2 + $0x150] sm:$0xff]  ;;  %v2606_v30 = vmul.f32 %v2414_v3, %v2048_v41  ;;  %v2294_v23 = vld [vmem:[%s14503_s2 + $0x168] sm:$0xff] }
 0x386   : > { %v2007_v46 = vsel %vm1992_vm4, %v1942_v38, %v15527_v13  ;;  %v2240_v31 = vsel %vm1992_vm4, %v2176_v47, %v1782_v24  ;;  %v2604_v7 = vmul.f32 %v2412_v2, %v2239_v51  ;;  %3180 = vmatprep.mubr.bf16.mxu0 %v2652_v48  ;;  %v15528_v44 = vld [vmem:[#allocation273_spill] sm:$0xff]  ;;  %v15531_v52 = vld [vmem:[#allocation331_spill] sm:$0xff]  ;;  %v15532_v37 = vld [vmem:[#allocation392_spill] sm:$0xff] }
 0x387   : > { %v2607_v19 = vmul.f32 %v2415_v62, %v2240_v31  ;;  %v2008_v34 = vsel %vm1992_vm4, %v1943_v22, %v15528_v44  ;;  %v15530_v50 = vld [vmem:[#allocation389_spill] sm:$0xff]  ;;  %v2072_v57 = vsel %vm58_vm0, %v15532_v37, %v15531_v52  ;;  %v2292_v5 = vld [vmem:[%s14503_s2 + $0x158] sm:$0xff]  ;;  %v15533_v36 = vld [vmem:[#allocation386_spill] sm:$0xff]  ;;  %v2483_v6 = vmul.f32 %v2291_v27, %v2007_v46 }
 0x388   : > { %v2071_v16 = vsel %vm58_vm0, %v15530_v50, %v15529_v29  ;;  %v15534_v25 = vld [vmem:[#allocation387_spill] sm:$0xff]  ;;  %3181 = vmatmul.mubr.bf16.gmra.mrb[24].mxu0 %v2651_v14  ;;  %v1700_v56 = vpop.permute.xlu0 %1699  ;;  %v1702_v21 = vpop.permute.xlu1 %1701  ;;  %v2486_v17 = vmul.f32 %v2294_v23, %v2008_v34  ;;  %v2714_v43 = vpack.c.bf16 %v2606_v30, %v2603_v45  ;;  %v15535_v61 = vld [vmem:[#allocation138_spill] sm:$0xff]  ;;  %v2417_v1 = vld [vmem:[%s14503_s2 + $0x540] sm:$0xff] }
 0x389   : > { %v2135_v10 = vsel %vm1927_vm3, %v2071_v16, %v15533_v36  ;;  %v2136_v40 = vsel %vm1927_vm3, %v2072_v57, %v15534_v25  ;;  %v2715_v22 = vpack.c.bf16 %v2607_v19, %v2604_v7  ;;  %v15536_v12 = vld [vmem:[#allocation250_spill] sm:$0xff]  ;;  %v15537_v58 = vld [vmem:[#allocation139_spill] sm:$0xff]  ;;  %v15551_v31 = vld [vmem:[#allocation396_spill] sm:$0xff] }
 0x38a   : > { %v2199_v26 = vsel %vm1992_vm4, %v2135_v10, %v1700_v56  ;;  %v2200_v28 = vsel %vm1992_vm4, %v2136_v40, %v1702_v21  ;;  %v1919_v55 = vsel %vm58_vm0, %v15536_v12, %v15535_v61  ;;  %v15538_v11 = vld [vmem:[#allocation251_spill] sm:$0xff]  ;;  %v15539_v49 = vld [vmem:[#allocation18_spill] sm:$0xff]  ;;  %v2654_v63 = vpack.c.bf16 %v2486_v17, %v2483_v6  ;;  %v2421_v45 = vld [vmem:[%s14503_s2 + $0x560] sm:$0xff] }
 0x38b   : > { %v2484_v20 = vmul.f32 %v2292_v5, %v2199_v26  ;;  %v2487_v32 = vmul.f32 %v2295_v33, %v2200_v28  ;;  %3348 = vmatprep.mubr.bf16.mxu1 %v2715_v22  ;;  %v1920_v8 = vsel %vm58_vm0, %v15538_v11, %v15537_v58  ;;  %v15540_v3 = vld [vmem:[#allocation19_spill] sm:$0xff]  ;;  %v15541_v41 = vld [vmem:[#allocation58_spill] sm:$0xff]  ;;  %v2297_v16 = vld [vmem:[%s14503_s2 + $0x180] sm:$0xff] }
 0x38c   : > { %3349 = vmatmul.mubr.bf16.gmra.mrb[12].mxu1 %v2714_v43  ;;  %v1592_v15 = vpop.permute.xlu0 %1591  ;;  %v1594_v60 = vpop.permute.xlu1 %1593  ;;  %v1985_v39 = vsel %vm1927_vm3, %v1920_v8, %v15539_v49  ;;  %v1984_v54 = vsel %vm1927_vm3, %v1919_v55, %v15540_v3  ;;  %v15542_v59 = vld [vmem:[#allocation178_spill] sm:$0xff]  ;;  %v2420_v35 = vld [vmem:[%s14503_s2 + $0x558] sm:$0xff]  ;;  %v15557_v6 = vld [vmem:[#allocation333_spill] sm:$0xff] }
 0x38d   : > { %v2655_v42 = vpack.c.bf16 %v2487_v32, %v2484_v20  ;;  %v1879_v53 = vsel %vm58_vm0, %v15542_v59, %v15541_v41  ;;  %v15543_v0 = vld [vmem:[#allocation314_spill] sm:$0xff]  ;;  %v15544_v2 = vld [vmem:[#allocation315_spill] sm:$0xff]  ;;  %v15555_v56 = vld [vmem:[#allocation332_spill] sm:$0xff] }
 0x38e   : > { %v2049_v18 = vsel %vm1992_vm4, %v1984_v54, %v15543_v0  ;;  %v2050_v62 = vsel %vm1992_vm4, %v1985_v39, %v15544_v2  ;;  %v15545_v38 = vld [vmem:[#allocation59_spill] sm:$0xff]  ;;  %v15548_v48 = vld [vmem:[#allocation366_spill] sm:$0xff]  ;;  %v15558_v26 = vld [vmem:[#allocation400_spill] sm:$0xff] }
 0x38f   : > { %3188 = vmatprep.mubr.bf16.mxu0 %v2655_v42  ;;  %v15546_v4 = vld [vmem:[#allocation179_spill] sm:$0xff]  ;;  %v2418_v27 = vld [vmem:[%s14503_s2 + $0x548] sm:$0xff]  ;;  %v2609_v52 = vmul.f32 %v2417_v1, %v2049_v18  ;;  %v2612_v37 = vmul.f32 %v2420_v35, %v2050_v62  ;;  %v2074_v28 = vsel %vm58_vm0, %v15558_v26, %v15557_v6  ;;  %v2301_v20 = vld [vmem:[%s14503_s2 + $0x1a0] sm:$0xff] }
 0x390   : > { %v1880_v47 = vsel %vm58_vm0, %v15546_v4, %v15545_v38  ;;  %v15547_v9 = vld [vmem:[#allocation171_spill] sm:$0xff]  ;;  %v15552_v30 = vld [vmem:[#allocation170_spill] sm:$0xff]  ;;  %3189 = vmatmul.mubr.bf16.gmra.mrb[28].mxu0 %v2654_v63  ;;  %v1784_v29 = vpop.permute.xlu0 %1783  ;;  %v1786_v50 = vpop.permute.xlu1 %1785  ;;  %v15562_v41 = vld [vmem:[#allocation253_spill] sm:$0xff] }
 0x391   : > { %v1944_v24 = vsel %vm1927_vm3, %v1879_v53, %v15547_v9  ;;  %v15549_v13 = vld [vmem:[#allocation395_spill] sm:$0xff]  ;;  %v1945_v7 = vsel %vm1927_vm3, %v1880_v47, %v15552_v30  ;;  %v15553_v19 = vld [vmem:[#allocation274_spill] sm:$0xff]  ;;  %v2717_v49 = vpack.c.bf16 %v2612_v37, %v2609_v52  ;;  %v15565_v62 = vld [vmem:[#allocation20_spill] sm:$0xff] }
 0x392   : > { %v2113_v46 = vsel %vm58_vm0, %v15549_v13, %v15548_v48  ;;  %v15550_v51 = vld [vmem:[#allocation367_spill] sm:$0xff]  ;;  %v2009_v23 = vsel %vm1992_vm4, %v1944_v24, %v15553_v19  ;;  %v2298_v17 = vld [vmem:[%s14503_s2 + $0x188] sm:$0xff] }
 0x393   : > { %v2114_v14 = vsel %vm58_vm0, %v15551_v31, %v15550_v51  ;;  %v2177_v44 = vsel %vm1927_vm3, %v2113_v46, %v1592_v15  ;;  %v2300_v33 = vld [vmem:[%s14503_s2 + $0x198] sm:$0xff]  ;;  %v2489_v32 = vmul.f32 %v2297_v16, %v2009_v23  ;;  %v15559_v43 = vld [vmem:[#allocation390_spill] sm:$0xff]  ;;  %v15566_v38 = vld [vmem:[#allocation21_spill] sm:$0xff] }
 0x394   : > { %v2178_v34 = vsel %vm1927_vm3, %v2114_v14, %v1594_v60  ;;  %v2241_v57 = vsel %vm1992_vm4, %v2177_v44, %v1784_v29  ;;  %v15554_v36 = vld [vmem:[#allocation275_spill] sm:$0xff]  ;;  %v1704_v58 = vpop.permute.xlu0 %1703  ;;  %v1706_v11 = vpop.permute.xlu1 %1705  ;;  %v15561_v54 = vld [vmem:[#allocation142_spill] sm:$0xff]  ;;  %v15569_v46 = vld [vmem:[#allocation316_spill] sm:$0xff] }
 0x395   : > { %v2242_v5 = vsel %vm1992_vm4, %v2178_v34, %v1786_v50  ;;  %v2010_v10 = vsel %vm1992_vm4, %v1945_v7, %v15554_v36  ;;  %v2610_v25 = vmul.f32 %v2418_v27, %v2241_v57  ;;  %v15556_v21 = vld [vmem:[#allocation399_spill] sm:$0xff]  ;;  %v1921_v59 = vsel %vm58_vm0, %v15562_v41, %v15561_v54  ;;  %v15564_v1 = vld [vmem:[#allocation254_spill] sm:$0xff]  ;;  %v15570_v14 = vld [vmem:[#allocation317_spill] sm:$0xff] }
 0x396   : > { %v2613_v40 = vmul.f32 %v2421_v45, %v2242_v5  ;;  %v2073_v22 = vsel %vm58_vm0, %v15556_v21, %v15555_v56  ;;  %v15560_v12 = vld [vmem:[#allocation391_spill] sm:$0xff]  ;;  %v2492_v15 = vmul.f32 %v2300_v33, %v2010_v10  ;;  %v1986_v4 = vsel %vm1927_vm3, %v1921_v59, %v15566_v38  ;;  %v15567_v9 = vld [vmem:[#allocation62_spill] sm:$0xff]  ;;  %v15573_v19 = vld [vmem:[#allocation173_spill] sm:$0xff] }
 0x397   : > { %v2137_v61 = vsel %vm1927_vm3, %v2073_v22, %v15559_v43  ;;  %v2138_v55 = vsel %vm1927_vm3, %v2074_v28, %v15560_v12  ;;  %v15563_v53 = vld [vmem:[#allocation143_spill] sm:$0xff]  ;;  %v15568_v24 = vld [vmem:[#allocation182_spill] sm:$0xff]  ;;  %v2051_v51 = vsel %vm1992_vm4, %v1986_v4, %v15569_v46  ;;  %v15575_v34 = vld [vmem:[#allocation405_spill] sm:$0xff] }
 0x398   : > { %v2718_v8 = vpack.c.bf16 %v2613_v40, %v2610_v25  ;;  %v2201_v60 = vsel %vm1992_vm4, %v2137_v61, %v1704_v58  ;;  %v2202_v42 = vsel %vm1992_vm4, %v2138_v55, %v1706_v11  ;;  %v1922_v0 = vsel %vm58_vm0, %v15564_v1, %v15563_v53  ;;  %v1596_v18 = vpop.permute.xlu0 %1595  ;;  %v1598_v35 = vpop.permute.xlu1 %1597  ;;  %v2423_v13 = vld [vmem:[%s14503_s2 + $0x570] sm:$0xff]  ;;  %v2426_v31 = vld [vmem:[%s14503_s2 + $0x588] sm:$0xff]  ;;  %v15576_v50 = vld [vmem:[#allocation368_spill] sm:$0xff] }
 0x399   : > { %v2490_v39 = vmul.f32 %v2298_v17, %v2201_v60  ;;  %v2493_v3 = vmul.f32 %v2301_v20, %v2202_v42  ;;  %v1987_v63 = vsel %vm1927_vm3, %v1922_v0, %v15565_v62  ;;  %v2657_v47 = vpack.c.bf16 %v2492_v15, %v2489_v32  ;;  %v15571_v45 = vld [vmem:[#allocation63_spill] sm:$0xff]  ;;  %v15574_v44 = vld [vmem:[#allocation246_spill] sm:$0xff]  ;;  %v15578_v5 = vld [vmem:[#allocation172_spill] sm:$0xff] }
 0x39a   : > { %3356 = vmatprep.mubr.bf16.mxu1 %v2718_v8  ;;  %v1881_v48 = vsel %vm58_vm0, %v15568_v24, %v15567_v9  ;;  %v2052_v27 = vsel %vm1992_vm4, %v1987_v63, %v15570_v14  ;;  %v15572_v30 = vld [vmem:[#allocation183_spill] sm:$0xff]  ;;  %v2115_v29 = vsel %vm58_vm0, %v15575_v34, %v15574_v44  ;;  %v15577_v16 = vld [vmem:[#allocation406_spill] sm:$0xff]  ;;  %v15579_v36 = vld [vmem:[#allocation276_spill] sm:$0xff]  ;;  %v2615_v6 = vmul.f32 %v2423_v13, %v2051_v51 }
 0x39b   : > { %3357 = vmatmul.mubr.bf16.gmra.mrb[16].mxu1 %v2717_v49  ;;  %v2658_v2 = vpack.c.bf16 %v2493_v3, %v2490_v39  ;;  %v1882_v7 = vsel %vm58_vm0, %v15572_v30, %v15571_v45  ;;  %v1946_v23 = vsel %vm1927_vm3, %v1881_v48, %v15573_v19  ;;  %v2116_v52 = vsel %vm58_vm0, %v15577_v16, %v15576_v50  ;;  %v2424_v37 = vld [vmem:[%s14503_s2 + $0x578] sm:$0xff]  ;;  %v2427_v57 = vld [vmem:[%s14503_s2 + $0x590] sm:$0xff]  ;;  %v2306_v20 = vld [vmem:[%s14503_s2 + $0x1c8] sm:$0xff] }
 0x39c   : > { %v1947_v33 = vsel %vm1927_vm3, %v1882_v7, %v15578_v5  ;;  %v2011_v10 = vsel %vm1992_vm4, %v1946_v23, %v15579_v36  ;;  %v2179_v25 = vsel %vm1927_vm3, %v2115_v29, %v1596_v18  ;;  %v2180_v40 = vsel %vm1927_vm3, %v2116_v52, %v1598_v35  ;;  %v1788_v56 = vpop.permute.xlu0 %1787  ;;  %v1790_v21 = vpop.permute.xlu1 %1789  ;;  %v2303_v22 = vld [vmem:[%s14503_s2 + $0x1b0] sm:$0xff]  ;;  %v15580_v32 = vld [vmem:[#allocation277_spill] sm:$0xff]  ;;  %v2304_v42 = vld [vmem:[%s14503_s2 + $0x1b8] sm:$0xff] }
 0x39d   : > { %3196 = vmatprep.mubr.bf16.mxu0 %v2658_v2  ;;  %v2618_v26 = vmul.f32 %v2426_v31, %v2052_v27  ;;  %v2243_v28 = vsel %vm1992_vm4, %v2179_v25, %v1788_v56  ;;  %v2244_v17 = vsel %vm1992_vm4, %v2180_v40, %v1790_v21  ;;  %v2012_v43 = vsel %vm1992_vm4, %v1947_v33, %v15580_v32  ;;  %v15581_v55 = vld [vmem:[#allocation334_spill] sm:$0xff]  ;;  %v15582_v58 = vld [vmem:[#allocation409_spill] sm:$0xff]  ;;  %v15583_v8 = vld [vmem:[#allocation335_spill] sm:$0xff] }
 0x39e   : > { %3197 = vmatmul.mubr.bf16.gmra.mrb[32].mxu0 %v2657_v47  ;;  %v2616_v61 = vmul.f32 %v2424_v37, %v2243_v28  ;;  %v2619_v12 = vmul.f32 %v2427_v57, %v2244_v17  ;;  %v2075_v11 = vsel %vm58_vm0, %v15582_v58, %v15581_v55  ;;  %v15584_v15 = vld [vmem:[#allocation410_spill] sm:$0xff]  ;;  %v2495_v39 = vmul.f32 %v2303_v22, %v2011_v10  ;;  %v15585_v3 = vld [vmem:[#allocation393_spill] sm:$0xff]  ;;  %v15587_v4 = vld [vmem:[#allocation23_spill] sm:$0xff] }
 0x39f   : > { %v2076_v60 = vsel %vm58_vm0, %v15584_v15, %v15583_v8  ;;  %v2307_v49 = vld [vmem:[%s14503_s2 + $0x1d0] sm:$0xff]  ;;  %v2139_v54 = vsel %vm1927_vm3, %v2075_v11, %v15585_v3  ;;  %v2498_v18 = vmul.f32 %v2306_v20, %v2012_v43  ;;  %v2720_v62 = vpack.c.bf16 %v2618_v26, %v2615_v6  ;;  %v15588_v47 = vld [vmem:[#allocation256_spill] sm:$0xff]  ;;  %v15590_v48 = vld [vmem:[#allocation257_spill] sm:$0xff] }
 0x3a0   : > { %v15586_v41 = vld [vmem:[#allocation394_spill] sm:$0xff]  ;;  %v1708_v53 = vpop.permute.xlu0 %1707  ;;  %v1710_v1 = vpop.permute.xlu1 %1709  ;;  %v2721_v0 = vpack.c.bf16 %v2619_v12, %v2616_v61  ;;  %v1923_v9 = vsel %vm58_vm0, %v15588_v47, %v15587_v4  ;;  %v15592_v45 = vld [vmem:[#allocation249_spill] sm:$0xff]  ;;  %v2432_v16 = vld [vmem:[%s14503_s2 + $0x5b8] sm:$0xff] }
 0x3a1   : > { %v2140_v59 = vsel %vm1927_vm3, %v2076_v60, %v15586_v41  ;;  %v2203_v35 = vsel %vm1992_vm4, %v2139_v54, %v1708_v53  ;;  %v15589_v24 = vld [vmem:[#allocation146_spill] sm:$0xff]  ;;  %v1988_v30 = vsel %vm1927_vm3, %v1923_v9, %v15592_v45  ;;  %v2660_v7 = vpack.c.bf16 %v2498_v18, %v2495_v39  ;;  %v2429_v34 = vld [vmem:[%s14503_s2 + $0x5a0] sm:$0xff]  ;;  %v15596_v52 = vld [vmem:[#allocation319_spill] sm:$0xff] }
 0x3a2   : > { %v2204_v2 = vsel %vm1992_vm4, %v2140_v59, %v1710_v1  ;;  %v2496_v63 = vmul.f32 %v2304_v42, %v2203_v35  ;;  %3364 = vmatprep.mubr.bf16.mxu1 %v2721_v0  ;;  %v1924_v13 = vsel %vm58_vm0, %v15590_v48, %v15589_v24  ;;  %v15591_v14 = vld [vmem:[#allocation22_spill] sm:$0xff]  ;;  %v15597_v57 = vld [vmem:[#allocation67_spill] sm:$0xff]  ;;  %v15599_v36 = vld [vmem:[#allocation177_spill] sm:$0xff] }
 0x3a3   : > { %v2499_v38 = vmul.f32 %v2307_v49, %v2204_v2  ;;  %3365 = vmatmul.mubr.bf16.gmra.mrb[20].mxu1 %v2720_v62  ;;  %v1989_v27 = vsel %vm1927_vm3, %v1924_v13, %v15591_v14  ;;  %v15593_v19 = vld [vmem:[#allocation66_spill] sm:$0xff]  ;;  %v15598_v5 = vld [vmem:[#allocation187_spill] sm:$0xff]  ;;  %v15600_v25 = vld [vmem:[#allocation369_spill] sm:$0xff] }
 0x3a4   : > { %v1600_v46 = vpop.permute.xlu0 %1599  ;;  %v1602_v51 = vpop.permute.xlu1 %1601  ;;  %v15594_v23 = vld [vmem:[#allocation186_spill] sm:$0xff]  ;;  %v2054_v37 = vsel %vm1992_vm4, %v1989_v27, %v15596_v52  ;;  %v1884_v33 = vsel %vm58_vm0, %v15598_v5, %v15597_v57  ;;  %v15601_v40 = vld [vmem:[#allocation415_spill] sm:$0xff]  ;;  %v15603_v22 = vld [vmem:[#allocation416_spill] sm:$0xff] }
 0x3a5   : > { %v2661_v31 = vpack.c.bf16 %v2499_v38, %v2496_v63  ;;  %v1883_v44 = vsel %vm58_vm0, %v15594_v23, %v15593_v19  ;;  %v15595_v29 = vld [vmem:[#allocation318_spill] sm:$0xff]  ;;  %v2117_v56 = vsel %vm58_vm0, %v15601_v40, %v15600_v25  ;;  %v2433_v28 = vld [vmem:[%s14503_s2 + $0x5c0] sm:$0xff]  ;;  %v2624_v15 = vmul.f32 %v2432_v16, %v2054_v37  ;;  %v2312_v49 = vld [vmem:[%s14503_s2 + $0x1f8] sm:$0xff] }
 0x3a6   : > { %v2053_v50 = vsel %vm1992_vm4, %v1988_v30, %v15595_v29  ;;  %v1948_v10 = vsel %vm1927_vm3, %v1883_v44, %v15599_v36  ;;  %v15602_v21 = vld [vmem:[#allocation370_spill] sm:$0xff]  ;;  %v15604_v17 = vld [vmem:[#allocation176_spill] sm:$0xff]  ;;  %v2181_v61 = vsel %vm1927_vm3, %v2117_v56, %v1600_v46  ;;  %v15606_v39 = vld [vmem:[#allocation279_spill] sm:$0xff] }
 0x3a7   : > { %3204 = vmatprep.mubr.bf16.mxu0 %v2661_v31  ;;  %v2118_v6 = vsel %vm58_vm0, %v15603_v22, %v15602_v21  ;;  %v2430_v26 = vld [vmem:[%s14503_s2 + $0x5a8] sm:$0xff]  ;;  %v1949_v20 = vsel %vm1927_vm3, %v1884_v33, %v15604_v17  ;;  %v2309_v11 = vld [vmem:[%s14503_s2 + $0x1e0] sm:$0xff]  ;;  %v2621_v8 = vmul.f32 %v2429_v34, %v2053_v50  ;;  %v15612_v23 = vld [vmem:[#allocation259_spill] sm:$0xff] }
 0x3a8   : > { %3205 = vmatmul.mubr.bf16.gmra.mrb[36].mxu0 %v2660_v7  ;;  %v15605_v32 = vld [vmem:[#allocation278_spill] sm:$0xff]  ;;  %v2182_v12 = vsel %vm1927_vm3, %v2118_v6, %v1602_v51  ;;  %v1792_v55 = vpop.permute.xlu0 %1791  ;;  %v1794_v58 = vpop.permute.xlu1 %1793  ;;  %v2014_v3 = vsel %vm1992_vm4, %v1949_v20, %v15606_v39  ;;  %v7498_v59 = vld [vmem:[#allocation2 + $0xa0] sm:$0xff]  ;;  %v7501_v39 = vld [vmem:[#allocation2 + $0x1f8] sm:$0xff] }
 0x3a9   : > { %v2013_v43 = vsel %vm1992_vm4, %v1948_v10, %v15605_v32  ;;  %v2245_v60 = vsel %vm1992_vm4, %v2181_v61, %v1792_v55  ;;  %v2246_v42 = vsel %vm1992_vm4, %v2182_v12, %v1794_v58  ;;  %v15607_v53 = vld [vmem:[#allocation336_spill] sm:$0xff]  ;;  %v7499_v0 = vld [vmem:[#allocation2 + $0xa8] sm:$0xff]  ;;  %v2504_v46 = vmul.f32 %v2312_v49, %v2014_v3  ;;  %v2251_v7 = vld [vmem:[%s14503_s2 + $0x10] sm:$0xff] }
 0x3aa   : > { %v2622_v54 = vmul.f32 %v2430_v26, %v2245_v60  ;;  %v2625_v41 = vmul.f32 %v2433_v28, %v2246_v42  ;;  %v2077_v1 = vsel %vm58_vm0, %v7498_v59, %v15607_v53  ;;  %v15608_v18 = vld [vmem:[#allocation337_spill] sm:$0xff]  ;;  %v2501_v63 = vmul.f32 %v2309_v11, %v2013_v43  ;;  %v15610_v47 = vld [vmem:[#allocation398_spill] sm:$0xff]  ;;  %v15614_v29 = vld [vmem:[#allocation260_spill] sm:$0xff] }
 0x3ab   : > { %v2078_v35 = vsel %vm58_vm0, %v7499_v0, %v15608_v18  ;;  %v2310_v2 = vld [vmem:[%s14503_s2 + $0x1e8] sm:$0xff]  ;;  %v2313_v62 = vld [vmem:[%s14503_s2 + $0x200] sm:$0xff]  ;;  %v2723_v14 = vpack.c.bf16 %v2624_v15, %v2621_v8  ;;  %v2435_v28 = vld [vmem:[%s14503_s2 + $0x5d0] sm:$0xff] }
 0x3ac   : > { %v15609_v38 = vld [vmem:[#allocation397_spill] sm:$0xff]  ;;  %v2142_v9 = vsel %vm1927_vm3, %v2078_v35, %v15610_v47  ;;  %v1712_v24 = vpop.permute.xlu0 %1711  ;;  %v1714_v48 = vpop.permute.xlu1 %1713  ;;  %v2724_v13 = vpack.c.bf16 %v2625_v41, %v2622_v54  ;;  %v15615_v57 = vld [vmem:[#allocation44_spill] sm:$0xff]  ;;  %v2663_v40 = vpack.c.bf16 %v2504_v46, %v2501_v63  ;;  %v15619_v22 = vld [vmem:[#allocation70_spill] sm:$0xff] }
 0x3ad   : > { %v2141_v4 = vsel %vm1927_vm3, %v2077_v1, %v15609_v38  ;;  %v2206_v31 = vsel %vm1992_vm4, %v2142_v9, %v1714_v48  ;;  %v2254_v27 = vld [vmem:[%s14503_s2 + $0x28] sm:$0xff]  ;;  %v15616_v33 = vld [vmem:[#allocation24_spill] sm:$0xff]  ;;  %v15623_v55 = vld [vmem:[#allocation71_spill] sm:$0xff] }
 0x3ae   : > { %v2205_v51 = vsel %vm1992_vm4, %v2141_v4, %v1712_v24  ;;  %v2505_v30 = vmul.f32 %v2313_v62, %v2206_v31  ;;  %3372 = vmatprep.mubr.bf16.mxu1 %v2724_v13  ;;  %v15611_v19 = vld [vmem:[#allocation25_spill] sm:$0xff]  ;;  %v10908_v5 = vmul.f32 %v2254_v27, %v15615_v57  ;;  %v15617_v10 = vld [vmem:[#allocation252_spill] sm:$0xff]  ;;  %v15620_v6 = vld [vmem:[#allocation190_spill] sm:$0xff] }
 0x3af   : > { %v2502_v45 = vmul.f32 %v2310_v2, %v2205_v51  ;;  %3373 = vmatmul.mubr.bf16.gmra.mrb[24].mxu1 %v2723_v14  ;;  %v1925_v44 = vsel %vm58_vm0, %v15612_v23, %v15611_v19  ;;  %v15613_v34 = vld [vmem:[#allocation149_spill] sm:$0xff]  ;;  %v1885_v26 = vsel %vm58_vm0, %v15620_v6, %v15619_v22  ;;  %v15621_v17 = vld [vmem:[#allocation320_spill] sm:$0xff]  ;;  %v15624_v58 = vld [vmem:[#allocation191_spill] sm:$0xff] }
 0x3b0   : > { %v1926_v50 = vsel %vm58_vm0, %v15614_v29, %v15613_v34  ;;  %v1604_v16 = vpop.permute.xlu0 %1603  ;;  %v1606_v52 = vpop.permute.xlu1 %1605  ;;  %v1990_v25 = vsel %vm1927_vm3, %v1925_v44, %v15617_v10  ;;  %v15618_v56 = vld [vmem:[#allocation45_spill] sm:$0xff]  ;;  %v2260_v12 = vld [vmem:[%s14503_s2 + $0x58] sm:$0xff]  ;;  %v1886_v11 = vsel %vm58_vm0, %v15624_v58, %v15623_v55  ;;  %v7500_v60 = vld [vmem:[#allocation2 + $0x1f0] sm:$0xff] }
 0x3b1   : > { %v2664_v37 = vpack.c.bf16 %v2505_v30, %v2502_v45  ;;  %v1991_v36 = vsel %vm1927_vm3, %v1926_v50, %v15616_v33  ;;  %v10915_v21 = vmul.f32 %v2251_v7, %v15618_v56  ;;  %v2055_v20 = vsel %vm1992_vm4, %v1990_v25, %v15621_v17  ;;  %v2438_v32 = vld [vmem:[%s14503_s2 + $0x5e8] sm:$0xff]  ;;  %v15626_v42 = vld [vmem:[#allocation371_spill] sm:$0xff]  ;;  %v15627_v3 = vld [vmem:[#allocation372_spill] sm:$0xff] }
 0x3b2   : > { %v15622_v43 = vld [vmem:[#allocation321_spill] sm:$0xff]  ;;  %v2119_v49 = vsel %vm58_vm0, %v7500_v60, %v15626_v42  ;;  %v2120_v54 = vsel %vm58_vm0, %v7501_v39, %v15627_v3  ;;  %v2436_v41 = vld [vmem:[%s14503_s2 + $0x5d8] sm:$0xff]  ;;  %v2439_v59 = vld [vmem:[%s14503_s2 + $0x5f0] sm:$0xff]  ;;  %v2627_v47 = vmul.f32 %v2435_v28, %v2055_v20 }
 0x3b3   : > { %v2056_v61 = vsel %vm1992_vm4, %v1991_v36, %v15622_v43  ;;  %3212 = vmatprep.mubr.bf16.mxu0 %v2664_v37  ;;  %v15625_v8 = vld [vmem:[#allocation181_spill] sm:$0xff]  ;;  %v15628_v1 = vld [vmem:[#allocation180_spill] sm:$0xff]  ;;  %v2315_v18 = vld [vmem:[%s14503_s2 + $0x210] sm:$0xff]  ;;  %v2183_v62 = vsel %vm1927_vm3, %v2119_v49, %v1604_v16  ;;  %v2184_v63 = vsel %vm1927_vm3, %v2120_v54, %v1606_v52 }
 0x3b4   : > { %v1950_v15 = vsel %vm1927_vm3, %v1885_v26, %v15625_v8  ;;  %3213 = vmatmul.mubr.bf16.gmra.mrb[40].mxu0 %v2663_v40  ;;  %v2257_v53 = vld [vmem:[%s14503_s2 + $0x40] sm:$0xff]  ;;  %v1951_v0 = vsel %vm1927_vm3, %v1886_v11, %v15628_v1  ;;  %v1796_v38 = vpop.permute.xlu0 %1795  ;;  %v1798_v4 = vpop.permute.xlu1 %1797  ;;  %v2630_v9 = vmul.f32 %v2438_v32, %v2056_v61  ;;  %v2266_v51 = vld [vmem:[%s14503_s2 + $0x88] sm:$0xff]  ;;  %v2263_v23 = vld [vmem:[%s14503_s2 + $0x70] sm:$0xff]  ;;  %v2635_v26 = vpack.c.bf16 %v10908_v5, %v10915_v21 }
 0x3b5   : > { %v15629_v35 = vld [vmem:[#allocation280_spill] sm:$0xff]  ;;  %v2247_v24 = vsel %vm1992_vm4, %v2183_v62, %v1796_v38  ;;  %v2248_v48 = vsel %vm1992_vm4, %v2184_v63, %v1798_v4  ;;  %v2318_v31 = vld [vmem:[%s14503_s2 + $0x228] sm:$0xff]  ;;  %v7502_v34 = vld [vmem:[#allocation2 + $0xb0] sm:$0xff] }
 0x3b6   : > { %v2015_v2 = vsel %vm1992_vm4, %v1950_v15, %v15629_v35  ;;  %v15630_v13 = vld [vmem:[#allocation48_spill] sm:$0xff]  ;;  %v15631_v14 = vld [vmem:[#allocation281_spill] sm:$0xff]  ;;  %v2628_v45 = vmul.f32 %v2436_v41, %v2247_v24  ;;  %v2631_v30 = vmul.f32 %v2439_v59, %v2248_v48  ;;  %v15633_v29 = vld [vmem:[#allocation338_spill] sm:$0xff]  ;;  %v2726_v32 = vpack.c.bf16 %v2630_v9, %v2627_v47 }
 0x3b7   : > { %v10963_v46 = vmul.f32 %v2260_v12, %v15630_v13  ;;  %v2016_v27 = vsel %vm1992_vm4, %v1951_v0, %v15631_v14  ;;  %v15632_v7 = vld [vmem:[#allocation49_spill] sm:$0xff]  ;;  %v2507_v44 = vmul.f32 %v2315_v18, %v2015_v2  ;;  %v2079_v50 = vsel %vm58_vm0, %v7502_v34, %v15633_v29  ;;  %v7503_v16 = vld [vmem:[#allocation2 + $0xb8] sm:$0xff]  ;;  %v2319_v33 = vld [vmem:[%s14503_s2 + $0x230] sm:$0xff] }
 0x3b8   : > { %v10974_v19 = vmul.f32 %v2257_v53, %v15632_v7  ;;  %v15634_v52 = vld [vmem:[#allocation339_spill] sm:$0xff]  ;;  %v15635_v36 = vld [vmem:[#allocation401_spill] sm:$0xff]  ;;  %v15636_v25 = vld [vmem:[#allocation402_spill] sm:$0xff]  ;;  %v1716_v56 = vpop.permute.xlu0 %1715  ;;  %v1718_v22 = vpop.permute.xlu1 %1717  ;;  %v2727_v6 = vpack.c.bf16 %v2631_v30, %v2628_v45  ;;  %v2510_v28 = vmul.f32 %v2318_v31, %v2016_v27 }
 0x3b9   : > { %v2080_v37 = vsel %vm58_vm0, %v7503_v16, %v15634_v52  ;;  %v2316_v57 = vld [vmem:[%s14503_s2 + $0x218] sm:$0xff]  ;;  %v2143_v10 = vsel %vm1927_vm3, %v2079_v50, %v15635_v36  ;;  %v15638_v12 = vld [vmem:[#allocation53_spill] sm:$0xff]  ;;  %v15639_v8 = vld [vmem:[#allocation74_spill] sm:$0xff] }
 0x3ba   : > { %v2144_v40 = vsel %vm1927_vm3, %v2080_v37, %v15636_v25  ;;  %v2207_v17 = vsel %vm1992_vm4, %v2143_v10, %v1716_v56  ;;  %v15637_v43 = vld [vmem:[#allocation52_spill] sm:$0xff]  ;;  %v11001_v55 = vmul.f32 %v2263_v23, %v15638_v12  ;;  %3380 = vmatprep.mubr.bf16.mxu1 %v2727_v6  ;;  %v15640_v15 = vld [vmem:[#allocation194_spill] sm:$0xff]  ;;  %v15641_v5 = vld [vmem:[#allocation75_spill] sm:$0xff] }
 0x3bb   : > { %v2208_v20 = vsel %vm1992_vm4, %v2144_v40, %v1718_v22  ;;  %v10998_v61 = vmul.f32 %v2266_v51, %v15637_v43  ;;  %v2508_v58 = vmul.f32 %v2316_v57, %v2207_v17  ;;  %v1887_v60 = vsel %vm58_vm0, %v15640_v15, %v15639_v8  ;;  %v15642_v21 = vld [vmem:[#allocation195_spill] sm:$0xff]  ;;  %v7504_v49 = vld [vmem:[#allocation2 + $0xc0] sm:$0xff]  ;;  %v7505_v54 = vld [vmem:[#allocation2 + $0xc8] sm:$0xff]  ;;  %3381 = vmatmul.mubr.bf16.gmra.mrb[28].mxu1 %v2726_v32 }
 0x3bc   : > { %v2511_v11 = vmul.f32 %v2319_v33, %v2208_v20  ;;  %v1888_v42 = vsel %vm58_vm0, %v15642_v21, %v15641_v5  ;;  %v15643_v39 = vld [vmem:[#allocation340_spill] sm:$0xff]  ;;  %v15644_v41 = vld [vmem:[#allocation341_spill] sm:$0xff]  ;;  %v15646_v35 = vld [vmem:[#allocation403_spill] sm:$0xff]  ;;  %v1720_v38 = vpop.permute.xlu0 %1719  ;;  %v1722_v4 = vpop.permute.xlu1 %1721  ;;  %6916 = vmatprep.mubr.msk.bf16.mxu1 %vm58_vm0, %v2635_v26  ;;  %v2666_v51 = vpack.c.bf16 %v2510_v28, %v2507_v44  ;;  %v2638_v44 = vpack.c.bf16 %v10963_v46, %v10974_v19 }
 0x3bd   : > { %v2081_v3 = vsel %vm58_vm0, %v7504_v49, %v15643_v39  ;;  %v2082_v59 = vsel %vm58_vm0, %v7505_v54, %v15644_v41  ;;  %v2322_v53 = vld [vmem:[%s14503_s2 + $0x248] sm:$0xff]  ;;  %v2325_v1 = vld [vmem:[%s14503_s2 + $0x260] sm:$0xff]  ;;  %v2324_v45 = vld [vmem:[%s14503_s2 + $0x258] sm:$0xff]  ;;  %v2641_v28 = vpack.c.bf16 %v10998_v61, %v11001_v55 }
 0x3be   : > { %v15645_v0 = vld [vmem:[#allocation184_spill] sm:$0xff]  ;;  %v2145_v2 = vsel %vm1927_vm3, %v2081_v3, %v15646_v35  ;;  %v2667_v47 = vpack.c.bf16 %v2511_v11, %v2508_v58  ;;  %v15648_v9 = vld [vmem:[#allocation185_spill] sm:$0xff]  ;;  %v15649_v14 = vld [vmem:[#allocation282_spill] sm:$0xff] }
 0x3bf   : > { %v1953_v18 = vsel %vm1927_vm3, %v1888_v42, %v15645_v0  ;;  %v15647_v62 = vld [vmem:[#allocation404_spill] sm:$0xff]  ;;  %v1952_v24 = vsel %vm1927_vm3, %v1887_v60, %v15648_v9  ;;  %v2209_v48 = vsel %vm1992_vm4, %v2145_v2, %v1720_v38  ;;  %v15650_v30 = vld [vmem:[#allocation283_spill] sm:$0xff]  ;;  %v15651_v50 = vld [vmem:[#allocation342_spill] sm:$0xff] }
 0x3c0   : > { %v2146_v63 = vsel %vm1927_vm3, %v2082_v59, %v15647_v62  ;;  %v2321_v31 = vld [vmem:[%s14503_s2 + $0x240] sm:$0xff]  ;;  %v2017_v27 = vsel %vm1992_vm4, %v1952_v24, %v15649_v14  ;;  %v2018_v7 = vsel %vm1992_vm4, %v1953_v18, %v15650_v30  ;;  %v2514_v23 = vmul.f32 %v2322_v53, %v2209_v48  ;;  %3220 = vmatprep.mubr.bf16.mxu0 %v2667_v47  ;;  %v7506_v29 = vld [vmem:[#allocation2 + $0xd0] sm:$0xff]  ;;  %v7507_v52 = vld [vmem:[#allocation2 + $0xd8] sm:$0xff]  ;;  %v1724_v22 = vpop.permute.xlu0 %1723  ;;  %v1726_v6 = vpop.permute.xlu1 %1725 }
 0x3c1   : > { %v2210_v13 = vsel %vm1992_vm4, %v2146_v63, %v1722_v4  ;;  %v2083_v16 = vsel %vm58_vm0, %v7506_v29, %v15651_v50  ;;  %v15652_v37 = vld [vmem:[#allocation343_spill] sm:$0xff]  ;;  %3221 = vmatmul.mubr.bf16.gmra.mrb[44].mxu0 %v2666_v51  ;;  %v2269_v19 = vld [vmem:[%s14503_s2 + $0xa0] sm:$0xff]  ;;  %v2278_v17 = vld [vmem:[%s14503_s2 + $0xe8] sm:$0xff]  ;;  %v2513_v32 = vmul.f32 %v2321_v31, %v2017_v27  ;;  %v2516_v43 = vmul.f32 %v2324_v45, %v2018_v7 }
 0x3c2   : > { %v2517_v34 = vmul.f32 %v2325_v1, %v2210_v13  ;;  %v2084_v57 = vsel %vm58_vm0, %v7507_v52, %v15652_v37  ;;  %v2328_v33 = vld [vmem:[%s14503_s2 + $0x278] sm:$0xff]  ;;  %v2331_v36 = vld [vmem:[%s14503_s2 + $0x290] sm:$0xff]  ;;  %v15656_v61 = vld [vmem:[#allocation57_spill] sm:$0xff] }
 0x3c3   : > { %v2272_v46 = vld [vmem:[%s14503_s2 + $0xb8] sm:$0xff]  ;;  %v2275_v20 = vld [vmem:[%s14503_s2 + $0xd0] sm:$0xff]  ;;  %v2461_v55 = vmul.f32 %v2269_v19, %v15656_v61  ;;  %6917 = vmatmul.mubr.msk.bf16.vlgmr.msra.gmra.mrb[32].mxu1 %vm58_vm0, %v2638_v44  ;;  %v15662_v59 = vld [vmem:[#allocation61_spill] sm:$0xff]  ;;  %v2669_v51 = vpack.c.bf16 %v2516_v43, %v2513_v32 }
 0x3c4   : > { %v15653_v10 = vld [vmem:[#allocation407_spill] sm:$0xff]  ;;  %v15654_v40 = vld [vmem:[#allocation408_spill] sm:$0xff]  ;;  %v2670_v26 = vpack.c.bf16 %v2517_v34, %v2514_v23  ;;  %v15657_v5 = vld [vmem:[#allocation78_spill] sm:$0xff]  ;;  %v2467_v53 = vmul.f32 %v2275_v20, %v15662_v59  ;;  %v1728_v2 = vpop.permute.xlu0 %1727  ;;  %v1730_v62 = vpop.permute.xlu1 %1729  ;;  %6920 = vmatprep.mubr.msk.bf16.mxu1 %vm58_vm0, %v2641_v28 }
 0x3c5   : > { %v2147_v25 = vsel %vm1927_vm3, %v2083_v16, %v15653_v10  ;;  %v2148_v56 = vsel %vm1927_vm3, %v2084_v57, %v15654_v40  ;;  %v15655_v15 = vld [vmem:[#allocation56_spill] sm:$0xff]  ;;  %v15658_v21 = vld [vmem:[#allocation198_spill] sm:$0xff]  ;;  %v15659_v49 = vld [vmem:[#allocation79_spill] sm:$0xff] }
 0x3c6   : > { %v2211_v12 = vsel %vm1992_vm4, %v2147_v25, %v1724_v22  ;;  %v2212_v58 = vsel %vm1992_vm4, %v2148_v56, %v1726_v6  ;;  %3228 = vmatprep.mubr.bf16.mxu0 %v2670_v26  ;;  %v2464_v60 = vmul.f32 %v2272_v46, %v15655_v15  ;;  %v1889_v42 = vsel %vm58_vm0, %v15658_v21, %v15657_v5  ;;  %v15660_v39 = vld [vmem:[#allocation199_spill] sm:$0xff]  ;;  %v15661_v54 = vld [vmem:[#allocation60_spill] sm:$0xff]  ;;  %v15664_v18 = vld [vmem:[#allocation189_spill] sm:$0xff] }
 0x3c7   : > { %v2520_v11 = vmul.f32 %v2328_v33, %v2211_v12  ;;  %v2523_v8 = vmul.f32 %v2331_v36, %v2212_v58  ;;  %v1890_v3 = vsel %vm58_vm0, %v15660_v39, %v15659_v49  ;;  %v2470_v41 = vmul.f32 %v2278_v17, %v15661_v54  ;;  %v15663_v1 = vld [vmem:[#allocation188_spill] sm:$0xff]  ;;  %v7509_v24 = vld [vmem:[#allocation2 + $0xe8] sm:$0xff]  ;;  %v2327_v31 = vld [vmem:[%s14503_s2 + $0x270] sm:$0xff] }
 0x3c8   : > { %v1955_v0 = vsel %vm1927_vm3, %v1890_v3, %v15663_v1  ;;  %v1954_v35 = vsel %vm1927_vm3, %v1889_v42, %v15664_v18  ;;  %v15665_v63 = vld [vmem:[#allocation284_spill] sm:$0xff]  ;;  %v15667_v48 = vld [vmem:[#allocation345_spill] sm:$0xff]  ;;  %v15669_v30 = vld [vmem:[#allocation411_spill] sm:$0xff]  ;;  %v2644_v37 = vpack.c.bf16 %v2464_v60, %v2461_v55  ;;  %v1732_v42 = vpop.permute.xlu0 %1731  ;;  %v1734_v49 = vpop.permute.xlu1 %1733 }
 0x3c9   : > { %v2019_v38 = vsel %vm1992_vm4, %v1954_v35, %v15665_v63  ;;  %v7508_v4 = vld [vmem:[#allocation2 + $0xe0] sm:$0xff]  ;;  %v2086_v13 = vsel %vm58_vm0, %v7509_v24, %v15667_v48  ;;  %v2330_v14 = vld [vmem:[%s14503_s2 + $0x288] sm:$0xff]  ;;  %v2673_v44 = vpack.c.bf16 %v2523_v8, %v2520_v11  ;;  %3229 = vmatmul.mubr.bf16.gmra.mrb[48].mxu0 %v2669_v51  ;;  %v2284_v57 = vld [vmem:[%s14503_s2 + $0x118] sm:$0xff]  ;;  %v2647_v36 = vpack.c.bf16 %v2470_v41, %v2467_v53 }
 0x3ca   : > { %v15666_v47 = vld [vmem:[#allocation344_spill] sm:$0xff]  ;;  %v15668_v27 = vld [vmem:[#allocation285_spill] sm:$0xff]  ;;  %v2287_v19 = vld [vmem:[%s14503_s2 + $0x130] sm:$0xff]  ;;  %v2519_v10 = vmul.f32 %v2327_v31, %v2019_v38 }
 0x3cb   : > { %v2085_v9 = vsel %vm58_vm0, %v7508_v4, %v15666_v47  ;;  %v2020_v45 = vsel %vm1992_vm4, %v1955_v0, %v15668_v27  ;;  %v15670_v23 = vld [vmem:[#allocation412_spill] sm:$0xff]  ;;  %v2334_v29 = vld [vmem:[%s14503_s2 + $0x2a8] sm:$0xff]  ;;  %3236 = vmatprep.mubr.bf16.mxu0 %v2673_v44  ;;  %v15675_v43 = vld [vmem:[#allocation83_spill] sm:$0xff]  ;;  %6921 = vmatmul.mubr.msk.bf16.gmra.mrb[36].mxu1 %vm58_vm0, %v2644_v37 }
 0x3cc   : > { %v2149_v7 = vsel %vm1927_vm3, %v2085_v9, %v15669_v30  ;;  %v2150_v34 = vsel %vm1927_vm3, %v2086_v13, %v15670_v23  ;;  %v2337_v16 = vld [vmem:[%s14503_s2 + $0x2c0] sm:$0xff]  ;;  %v2290_v46 = vld [vmem:[%s14503_s2 + $0x148] sm:$0xff]  ;;  %v2522_v25 = vmul.f32 %v2330_v14, %v2020_v45  ;;  %v15676_v12 = vld [vmem:[#allocation203_spill] sm:$0xff]  ;;  %6924 = vmatprep.mubr.msk.bf16.mxu1 %vm58_vm0, %v2647_v36 }
 0x3cd   : > { %v2213_v50 = vsel %vm1992_vm4, %v2149_v7, %v1728_v2  ;;  %v2214_v52 = vsel %vm1992_vm4, %v2150_v34, %v1730_v62  ;;  %v2281_v33 = vld [vmem:[%s14503_s2 + $0x100] sm:$0xff]  ;;  %v15673_v17 = vld [vmem:[#allocation82_spill] sm:$0xff]  ;;  %v1892_v58 = vsel %vm58_vm0, %v15676_v12, %v15675_v43  ;;  %v7511_v53 = vld [vmem:[#allocation2 + $0xf8] sm:$0xff]  ;;  %v1738_v43 = vpop.permute.xlu1 %1737 }
 0x3ce   : > { %v2526_v40 = vmul.f32 %v2334_v29, %v2213_v50  ;;  %v2529_v56 = vmul.f32 %v2337_v16, %v2214_v52  ;;  %v15671_v22 = vld [vmem:[#allocation64_spill] sm:$0xff]  ;;  %v15672_v26 = vld [vmem:[#allocation65_spill] sm:$0xff]  ;;  %v15674_v20 = vld [vmem:[#allocation202_spill] sm:$0xff]  ;;  %v2672_v18 = vpack.c.bf16 %v2522_v25, %v2519_v10 }
 0x3cf   : > { %v2476_v6 = vmul.f32 %v2284_v57, %v15671_v22  ;;  %v2473_v28 = vmul.f32 %v2281_v33, %v15672_v26  ;;  %v1891_v32 = vsel %vm58_vm0, %v15674_v20, %v15673_v17  ;;  %v15677_v11 = vld [vmem:[#allocation68_spill] sm:$0xff]  ;;  %v15678_v15 = vld [vmem:[#allocation69_spill] sm:$0xff]  ;;  %v15681_v39 = vld [vmem:[#allocation286_spill] sm:$0xff] }
 0x3d0   : > { %v2482_v8 = vmul.f32 %v2290_v46, %v15677_v11  ;;  %v2479_v60 = vmul.f32 %v2287_v19, %v15678_v15  ;;  %v15679_v61 = vld [vmem:[#allocation192_spill] sm:$0xff]  ;;  %v15680_v5 = vld [vmem:[#allocation193_spill] sm:$0xff]  ;;  %v7510_v54 = vld [vmem:[#allocation2 + $0xf0] sm:$0xff]  ;;  %v2676_v24 = vpack.c.bf16 %v2529_v56, %v2526_v40 }
 0x3d1   : > { %v1957_v55 = vsel %vm1927_vm3, %v1892_v58, %v15679_v61  ;;  %v1956_v21 = vsel %vm1927_vm3, %v1891_v32, %v15680_v5  ;;  %v15682_v41 = vld [vmem:[#allocation346_spill] sm:$0xff]  ;;  %v15683_v1 = vld [vmem:[#allocation347_spill] sm:$0xff]  ;;  %v2333_v35 = vld [vmem:[%s14503_s2 + $0x2a0] sm:$0xff]  ;;  %3237 = vmatmul.mubr.bf16.gmra.mrb[52].mxu0 %v2672_v18  ;;  %v2650_v14 = vpack.c.bf16 %v2476_v6, %v2473_v28  ;;  %v1736_v32 = vpop.permute.xlu0 %1735 }
 0x3d2   : > { %v2021_v3 = vsel %vm1992_vm4, %v1956_v21, %v15681_v39  ;;  %v2087_v59 = vsel %vm58_vm0, %v7510_v54, %v15682_v41  ;;  %v2088_v0 = vsel %vm58_vm0, %v7511_v53, %v15683_v1  ;;  %v2336_v2 = vld [vmem:[%s14503_s2 + $0x2b8] sm:$0xff]  ;;  %v15685_v38 = vld [vmem:[#allocation413_spill] sm:$0xff]  ;;  %v15686_v47 = vld [vmem:[#allocation414_spill] sm:$0xff]  ;;  %3244 = vmatprep.mubr.bf16.mxu0 %v2676_v24  ;;  %v2653_v30 = vpack.c.bf16 %v2482_v8, %v2479_v60 }
 0x3d3   : > { %v15684_v62 = vld [vmem:[#allocation287_spill] sm:$0xff]  ;;  %v2151_v4 = vsel %vm1927_vm3, %v2087_v59, %v15685_v38  ;;  %v2152_v9 = vsel %vm1927_vm3, %v2088_v0, %v15686_v47  ;;  %v2293_v45 = vld [vmem:[%s14503_s2 + $0x160] sm:$0xff]  ;;  %v2302_v7 = vld [vmem:[%s14503_s2 + $0x1a8] sm:$0xff]  ;;  %v2525_v34 = vmul.f32 %v2333_v35, %v2021_v3  ;;  %6925 = vmatmul.mubr.msk.bf16.gmra.mrb[40].mxu1 %vm58_vm0, %v2650_v14 }
 0x3d4   : > { %v2022_v63 = vsel %vm1992_vm4, %v1957_v55, %v15684_v62  ;;  %v2340_v48 = vld [vmem:[%s14503_s2 + $0x2d8] sm:$0xff]  ;;  %v2215_v13 = vsel %vm1992_vm4, %v2151_v4, %v1732_v42  ;;  %v2343_v51 = vld [vmem:[%s14503_s2 + $0x2f0] sm:$0xff]  ;;  %v2216_v31 = vsel %vm1992_vm4, %v2152_v9, %v1734_v49  ;;  %v15688_v37 = vld [vmem:[#allocation73_spill] sm:$0xff]  ;;  %6928 = vmatprep.mubr.msk.bf16.mxu1 %vm58_vm0, %v2653_v30 }
 0x3d5   : > { %v2296_v27 = vld [vmem:[%s14503_s2 + $0x178] sm:$0xff]  ;;  %v2299_v23 = vld [vmem:[%s14503_s2 + $0x190] sm:$0xff]  ;;  %v2528_v44 = vmul.f32 %v2336_v2, %v2022_v63  ;;  %v2532_v29 = vmul.f32 %v2340_v48, %v2215_v13  ;;  %v2535_v50 = vmul.f32 %v2343_v51, %v2216_v31  ;;  %v2485_v57 = vmul.f32 %v2293_v45, %v15688_v37  ;;  %v15694_v22 = vld [vmem:[#allocation77_spill] sm:$0xff] }
 0x3d6   : > { %v15687_v16 = vld [vmem:[#allocation72_spill] sm:$0xff]  ;;  %v15689_v33 = vld [vmem:[#allocation86_spill] sm:$0xff]  ;;  %v15691_v19 = vld [vmem:[#allocation87_spill] sm:$0xff]  ;;  %v2491_v6 = vmul.f32 %v2299_v23, %v15694_v22 }
 0x3d7   : > { %v2488_v52 = vmul.f32 %v2296_v27, %v15687_v16  ;;  %v15690_v36 = vld [vmem:[#allocation206_spill] sm:$0xff]  ;;  %v15692_v10 = vld [vmem:[#allocation207_spill] sm:$0xff]  ;;  %v15693_v40 = vld [vmem:[#allocation76_spill] sm:$0xff]  ;;  %v2675_v5 = vpack.c.bf16 %v2528_v44, %v2525_v34  ;;  %v2679_v53 = vpack.c.bf16 %v2535_v50, %v2532_v29 }
 0x3d8   : > { %v1893_v46 = vsel %vm58_vm0, %v15690_v36, %v15689_v33  ;;  %v1894_v25 = vsel %vm58_vm0, %v15692_v10, %v15691_v19  ;;  %v2494_v56 = vmul.f32 %v2302_v7, %v15693_v40  ;;  %v15695_v26 = vld [vmem:[#allocation196_spill] sm:$0xff]  ;;  %v15696_v17 = vld [vmem:[#allocation197_spill] sm:$0xff]  ;;  %v2339_v21 = vld [vmem:[%s14503_s2 + $0x2d0] sm:$0xff]  ;;  %v1742_v19 = vpop.permute.xlu1 %1741 }
 0x3d9   : > { %v1959_v28 = vsel %vm1927_vm3, %v1894_v25, %v15695_v26  ;;  %v1958_v20 = vsel %vm1927_vm3, %v1893_v46, %v15696_v17  ;;  %v15697_v12 = vld [vmem:[#allocation288_spill] sm:$0xff]  ;;  %v7513_v60 = vld [vmem:[#allocation2 + $0x108] sm:$0xff]  ;;  %3245 = vmatmul.mubr.bf16.gmra.mrb[56].mxu0 %v2675_v5  ;;  %v2656_v2 = vpack.c.bf16 %v2488_v52, %v2485_v57  ;;  %v2311_v47 = vld [vmem:[%s14503_s2 + $0x1f0] sm:$0xff]  ;;  %v1740_v46 = vpop.permute.xlu0 %1739 }
 0x3da   : > { %v2023_v58 = vsel %vm1992_vm4, %v1958_v20, %v15697_v12  ;;  %v7512_v11 = vld [vmem:[#allocation2 + $0x100] sm:$0xff]  ;;  %v2342_v42 = vld [vmem:[%s14503_s2 + $0x2e8] sm:$0xff]  ;;  %v2308_v62 = vld [vmem:[%s14503_s2 + $0x1d8] sm:$0xff]  ;;  %3252 = vmatprep.mubr.bf16.mxu0 %v2679_v53  ;;  %v2659_v38 = vpack.c.bf16 %v2494_v56, %v2491_v6 }
 0x3db   : > { %v15698_v8 = vld [vmem:[#allocation348_spill] sm:$0xff]  ;;  %v15699_v61 = vld [vmem:[#allocation349_spill] sm:$0xff]  ;;  %v15702_v41 = vld [vmem:[#allocation418_spill] sm:$0xff]  ;;  %v2531_v9 = vmul.f32 %v2339_v21, %v2023_v58  ;;  %6929 = vmatmul.mubr.msk.bf16.gmra.mrb[44].mxu1 %vm58_vm0, %v2656_v2 }
 0x3dc   : > { %v2089_v15 = vsel %vm58_vm0, %v7512_v11, %v15698_v8  ;;  %v2090_v55 = vsel %vm58_vm0, %v7513_v60, %v15699_v61  ;;  %v15700_v49 = vld [vmem:[#allocation289_spill] sm:$0xff]  ;;  %v15703_v51 = vld [vmem:[#allocation80_spill] sm:$0xff]  ;;  %v15705_v45 = vld [vmem:[#allocation90_spill] sm:$0xff]  ;;  %6932 = vmatprep.mubr.msk.bf16.mxu1 %vm58_vm0, %v2659_v38 }
 0x3dd   : > { %v2024_v39 = vsel %vm1992_vm4, %v1959_v28, %v15700_v49  ;;  %v15701_v3 = vld [vmem:[#allocation417_spill] sm:$0xff]  ;;  %v2154_v59 = vsel %vm1927_vm3, %v2090_v55, %v15702_v41  ;;  %v2500_v31 = vmul.f32 %v2308_v62, %v15703_v51  ;;  %v15706_v30 = vld [vmem:[#allocation210_spill] sm:$0xff]  ;;  %v15707_v23 = vld [vmem:[#allocation91_spill] sm:$0xff] }
 0x3de   : > { %v2153_v54 = vsel %vm1927_vm3, %v2089_v15, %v15701_v3  ;;  %v2346_v1 = vld [vmem:[%s14503_s2 + $0x308] sm:$0xff]  ;;  %v2349_v18 = vld [vmem:[%s14503_s2 + $0x320] sm:$0xff]  ;;  %v2218_v35 = vsel %vm1992_vm4, %v2154_v59, %v1738_v43  ;;  %v2534_v24 = vmul.f32 %v2342_v42, %v2024_v39  ;;  %v1895_v7 = vsel %vm58_vm0, %v15706_v30, %v15705_v45  ;;  %v15708_v34 = vld [vmem:[#allocation211_spill] sm:$0xff] }
 0x3df   : > { %v2217_v0 = vsel %vm1992_vm4, %v2153_v54, %v1736_v32  ;;  %v2305_v63 = vld [vmem:[%s14503_s2 + $0x1c0] sm:$0xff]  ;;  %v2314_v4 = vld [vmem:[%s14503_s2 + $0x208] sm:$0xff]  ;;  %v2541_v13 = vmul.f32 %v2349_v18, %v2218_v35  ;;  %v1896_v44 = vsel %vm58_vm0, %v15708_v34, %v15707_v23  ;;  %v7514_v40 = vld [vmem:[#allocation2 + $0x110] sm:$0xff]  ;;  %v1746_v23 = vpop.permute.xlu1 %1745 }
 0x3e0   : > { %v2538_v48 = vmul.f32 %v2346_v1, %v2217_v0  ;;  %v15704_v14 = vld [vmem:[#allocation81_spill] sm:$0xff]  ;;  %v15709_v29 = vld [vmem:[#allocation84_spill] sm:$0xff]  ;;  %v15713_v10 = vld [vmem:[#allocation290_spill] sm:$0xff]  ;;  %v2678_v17 = vpack.c.bf16 %v2534_v24, %v2531_v9 }
 0x3e1   : > { %v2497_v27 = vmul.f32 %v2305_v63, %v15704_v14  ;;  %v2506_v50 = vmul.f32 %v2314_v4, %v15709_v29  ;;  %v15710_v16 = vld [vmem:[#allocation85_spill] sm:$0xff]  ;;  %v15711_v37 = vld [vmem:[#allocation200_spill] sm:$0xff]  ;;  %v15714_v56 = vld [vmem:[#allocation350_spill] sm:$0xff] }
 0x3e2   : > { %v2503_v52 = vmul.f32 %v2311_v47, %v15710_v16  ;;  %v1961_v57 = vsel %vm1927_vm3, %v1896_v44, %v15711_v37  ;;  %v15712_v33 = vld [vmem:[#allocation201_spill] sm:$0xff]  ;;  %v2091_v22 = vsel %vm58_vm0, %v7514_v40, %v15714_v56  ;;  %v7515_v6 = vld [vmem:[#allocation2 + $0x118] sm:$0xff]  ;;  %v2682_v60 = vpack.c.bf16 %v2541_v13, %v2538_v48  ;;  %v2355_v5 = vld [vmem:[%s14503_s2 + $0x350] sm:$0xff]  ;;  %3253 = vmatmul.mubr.bf16.gmra.mrb[60].mxu0 %v2678_v17 }
 0x3e3   : > { %v1960_v36 = vsel %vm1927_vm3, %v1895_v7, %v15712_v33  ;;  %v15715_v26 = vld [vmem:[#allocation351_spill] sm:$0xff]  ;;  %v2345_v20 = vld [vmem:[%s14503_s2 + $0x300] sm:$0xff]  ;;  %v2662_v42 = vpack.c.bf16 %v2500_v31, %v2497_v27  ;;  %v2326_v54 = vld [vmem:[%s14503_s2 + $0x268] sm:$0xff]  ;;  %v1744_v7 = vpop.permute.xlu0 %1743 }
 0x3e4   : > { %v2025_v25 = vsel %vm1992_vm4, %v1960_v36, %v15713_v10  ;;  %v2092_v28 = vsel %vm58_vm0, %v7515_v6, %v15715_v26  ;;  %v2348_v32 = vld [vmem:[%s14503_s2 + $0x318] sm:$0xff]  ;;  %v2317_v39 = vld [vmem:[%s14503_s2 + $0x220] sm:$0xff]  ;;  %3260 = vmatprep.mubr.bf16.mxu0 %v2682_v60  ;;  %v2665_v3 = vpack.c.bf16 %v2506_v50, %v2503_v52  ;;  %v2323_v41 = vld [vmem:[%s14503_s2 + $0x250] sm:$0xff] }
 0x3e5   : > { %v15716_v43 = vld [vmem:[#allocation291_spill] sm:$0xff]  ;;  %v15718_v8 = vld [vmem:[#allocation420_spill] sm:$0xff]  ;;  %v2537_v59 = vmul.f32 %v2345_v20, %v2025_v25  ;;  %v15720_v2 = vld [vmem:[#allocation89_spill] sm:$0xff]  ;;  %6933 = vmatmul.mubr.msk.bf16.gmra.mrb[48].mxu1 %vm58_vm0, %v2662_v42 }
 0x3e6   : > { %v2026_v12 = vsel %vm1992_vm4, %v1961_v57, %v15716_v43  ;;  %v15717_v58 = vld [vmem:[#allocation419_spill] sm:$0xff]  ;;  %v2156_v15 = vsel %vm1927_vm3, %v2092_v28, %v15718_v8  ;;  %v15719_v18 = vld [vmem:[#allocation88_spill] sm:$0xff]  ;;  %v2509_v62 = vmul.f32 %v2317_v39, %v15720_v2  ;;  %v15721_v63 = vld [vmem:[#allocation94_spill] sm:$0xff]  ;;  %6936 = vmatprep.mubr.msk.bf16.mxu1 %vm58_vm0, %v2665_v3 }
 0x3e7   : > { %v2155_v11 = vsel %vm1927_vm3, %v2091_v22, %v15717_v58  ;;  %v2352_v61 = vld [vmem:[%s14503_s2 + $0x338] sm:$0xff]  ;;  %v2220_v21 = vsel %vm1992_vm4, %v2156_v15, %v1742_v19  ;;  %v2540_v53 = vmul.f32 %v2348_v32, %v2026_v12  ;;  %v15722_v38 = vld [vmem:[#allocation214_spill] sm:$0xff]  ;;  %v15726_v51 = vld [vmem:[#allocation93_spill] sm:$0xff] }
 0x3e8   : > { %v2219_v55 = vsel %vm1992_vm4, %v2155_v11, %v1740_v46  ;;  %v2320_v49 = vld [vmem:[%s14503_s2 + $0x238] sm:$0xff]  ;;  %v2547_v0 = vmul.f32 %v2355_v5, %v2220_v21  ;;  %v1897_v4 = vsel %vm58_vm0, %v15722_v38, %v15721_v63  ;;  %v2515_v31 = vmul.f32 %v2323_v41, %v15726_v51  ;;  %v15728_v45 = vld [vmem:[#allocation205_spill] sm:$0xff]  ;;  %v2351_v36 = vld [vmem:[%s14503_s2 + $0x330] sm:$0xff] }
 0x3e9   : > { %v2544_v1 = vmul.f32 %v2352_v61, %v2219_v55  ;;  %v2512_v35 = vmul.f32 %v2320_v49, %v15719_v18  ;;  %v15723_v47 = vld [vmem:[#allocation95_spill] sm:$0xff]  ;;  %v15725_v48 = vld [vmem:[#allocation92_spill] sm:$0xff]  ;;  %v1962_v30 = vsel %vm1927_vm3, %v1897_v4, %v15728_v45  ;;  %v7517_v52 = vld [vmem:[#allocation2 + $0x128] sm:$0xff]  ;;  %v2681_v33 = vpack.c.bf16 %v2540_v53, %v2537_v59  ;;  %v1748_v4 = vpop.permute.xlu0 %1747 }
 0x3ea   : > { %v15724_v9 = vld [vmem:[#allocation215_spill] sm:$0xff]  ;;  %v2518_v13 = vmul.f32 %v2326_v54, %v15725_v48  ;;  %v15727_v14 = vld [vmem:[#allocation204_spill] sm:$0xff]  ;;  %v15731_v37 = vld [vmem:[#allocation353_spill] sm:$0xff] }
 0x3eb   : > { %v1898_v24 = vsel %vm58_vm0, %v15724_v9, %v15723_v47  ;;  %v15729_v34 = vld [vmem:[#allocation292_spill] sm:$0xff]  ;;  %v2094_v57 = vsel %vm58_vm0, %v7517_v52, %v15731_v37  ;;  %v2354_v46 = vld [vmem:[%s14503_s2 + $0x348] sm:$0xff]  ;;  %v15733_v25 = vld [vmem:[#allocation263_spill] sm:$0xff]  ;;  %v2685_v6 = vpack.c.bf16 %v2547_v0, %v2544_v1  ;;  %3261 = vmatmul.mubr.bf16.gmra.mrb[64].mxu0 %v2681_v33  ;;  %v2668_v32 = vpack.c.bf16 %v2512_v35, %v2509_v62  ;;  %v1750_v47 = vpop.permute.xlu1 %1749 }
 0x3ec   : > { %v1963_v27 = vsel %vm1927_vm3, %v1898_v24, %v15727_v14  ;;  %v2027_v44 = vsel %vm1992_vm4, %v1962_v30, %v15729_v34  ;;  %v7516_v29 = vld [vmem:[#allocation2 + $0x120] sm:$0xff]  ;;  %v2358_v26 = vld [vmem:[%s14503_s2 + $0x368] sm:$0xff]  ;;  %v2332_v43 = vld [vmem:[%s14503_s2 + $0x298] sm:$0xff]  ;;  %v2671_v58 = vpack.c.bf16 %v2518_v13, %v2515_v31 }
 0x3ed   : > { %v15730_v50 = vld [vmem:[#allocation352_spill] sm:$0xff]  ;;  %v15732_v19 = vld [vmem:[#allocation293_spill] sm:$0xff]  ;;  %3268 = vmatprep.mubr.bf16.mxu0 %v2685_v6  ;;  %v2335_v8 = vld [vmem:[%s14503_s2 + $0x2b0] sm:$0xff]  ;;  %v2543_v15 = vmul.f32 %v2351_v36, %v2027_v44  ;;  %6937 = vmatmul.mubr.msk.bf16.gmra.mrb[52].mxu1 %vm58_vm0, %v2668_v32 }
 0x3ee   : > { %v2093_v16 = vsel %vm58_vm0, %v7516_v29, %v15730_v50  ;;  %v2028_v10 = vsel %vm1992_vm4, %v1963_v27, %v15732_v19  ;;  %v15734_v56 = vld [vmem:[#allocation421_spill] sm:$0xff]  ;;  %v15735_v5 = vld [vmem:[#allocation98_spill] sm:$0xff]  ;;  %v15737_v49 = vld [vmem:[#allocation99_spill] sm:$0xff]  ;;  %6940 = vmatprep.mubr.msk.bf16.mxu1 %vm58_vm0, %v2671_v58 }
 0x3ef   : > { %v2157_v40 = vsel %vm1927_vm3, %v2093_v16, %v15733_v25  ;;  %v2158_v22 = vsel %vm1927_vm3, %v2094_v57, %v15734_v56  ;;  %v2361_v17 = vld [vmem:[%s14503_s2 + $0x380] sm:$0xff]  ;;  %v2338_v11 = vld [vmem:[%s14503_s2 + $0x2c8] sm:$0xff]  ;;  %v2546_v60 = vmul.f32 %v2354_v46, %v2028_v10  ;;  %v15738_v39 = vld [vmem:[#allocation219_spill] sm:$0xff] }
 0x3f0   : > { %v2221_v28 = vsel %vm1992_vm4, %v2157_v40, %v1744_v7  ;;  %v2222_v20 = vsel %vm1992_vm4, %v2158_v22, %v1746_v23  ;;  %v2329_v12 = vld [vmem:[%s14503_s2 + $0x280] sm:$0xff]  ;;  %v15736_v21 = vld [vmem:[#allocation218_spill] sm:$0xff]  ;;  %v1900_v3 = vsel %vm58_vm0, %v15738_v39, %v15737_v49  ;;  %v7519_v31 = vld [vmem:[#allocation2 + $0x138] sm:$0xff] }
 0x3f1   : > { %v2550_v61 = vmul.f32 %v2358_v26, %v2221_v28  ;;  %v2553_v55 = vmul.f32 %v2361_v17, %v2222_v20  ;;  %v1899_v42 = vsel %vm58_vm0, %v15736_v21, %v15735_v5  ;;  %v15739_v54 = vld [vmem:[#allocation96_spill] sm:$0xff]  ;;  %v15740_v59 = vld [vmem:[#allocation97_spill] sm:$0xff]  ;;  %v15745_v9 = vld [vmem:[#allocation294_spill] sm:$0xff]  ;;  %v2684_v45 = vpack.c.bf16 %v2546_v60, %v2543_v15 }
 0x3f2   : > { %v2524_v41 = vmul.f32 %v2332_v43, %v15739_v54  ;;  %v2521_v53 = vmul.f32 %v2329_v12, %v15740_v59  ;;  %v15741_v1 = vld [vmem:[#allocation100_spill] sm:$0xff]  ;;  %v15742_v18 = vld [vmem:[#allocation101_spill] sm:$0xff]  ;;  %v7518_v48 = vld [vmem:[#allocation2 + $0x130] sm:$0xff]  ;;  %v1752_v54 = vpop.permute.xlu0 %1751 }
 0x3f3   : > { %v2530_v0 = vmul.f32 %v2338_v11, %v15741_v1  ;;  %v2527_v35 = vmul.f32 %v2335_v8, %v15742_v18  ;;  %v15743_v2 = vld [vmem:[#allocation208_spill] sm:$0xff]  ;;  %v15744_v63 = vld [vmem:[#allocation209_spill] sm:$0xff]  ;;  %v15746_v13 = vld [vmem:[#allocation354_spill] sm:$0xff]  ;;  %v2688_v52 = vpack.c.bf16 %v2553_v55, %v2550_v61  ;;  %3269 = vmatmul.mubr.bf16.gmra.mrb[68].mxu0 %v2684_v45 }
 0x3f4   : > { %v1965_v62 = vsel %vm1927_vm3, %v1900_v3, %v15743_v2  ;;  %v1964_v38 = vsel %vm1927_vm3, %v1899_v42, %v15744_v63  ;;  %v2095_v51 = vsel %vm58_vm0, %v7518_v48, %v15746_v13  ;;  %v15747_v14 = vld [vmem:[#allocation355_spill] sm:$0xff]  ;;  %v2357_v30 = vld [vmem:[%s14503_s2 + $0x360] sm:$0xff]  ;;  %v15749_v44 = vld [vmem:[#allocation258_spill] sm:$0xff]  ;;  %v2674_v46 = vpack.c.bf16 %v2524_v41, %v2521_v53  ;;  %v1754_v41 = vpop.permute.xlu1 %1753 }
 0x3f5   : > { %v2029_v24 = vsel %vm1992_vm4, %v1964_v38, %v15745_v9  ;;  %v2096_v27 = vsel %vm58_vm0, %v7519_v31, %v15747_v14  ;;  %v2360_v7 = vld [vmem:[%s14503_s2 + $0x378] sm:$0xff]  ;;  %v2159_v29 = vsel %vm1927_vm3, %v2095_v51, %v15749_v44  ;;  %v15750_v50 = vld [vmem:[#allocation422_spill] sm:$0xff]  ;;  %v2341_v10 = vld [vmem:[%s14503_s2 + $0x2e0] sm:$0xff]  ;;  %3276 = vmatprep.mubr.bf16.mxu0 %v2688_v52  ;;  %v2677_v25 = vpack.c.bf16 %v2530_v0, %v2527_v35 }
 0x3f6   : > { %v15748_v23 = vld [vmem:[#allocation295_spill] sm:$0xff]  ;;  %v2160_v16 = vsel %vm1927_vm3, %v2096_v27, %v15750_v50  ;;  %v2223_v57 = vsel %vm1992_vm4, %v2159_v29, %v1748_v4  ;;  %v2350_v40 = vld [vmem:[%s14503_s2 + $0x328] sm:$0xff]  ;;  %v2549_v22 = vmul.f32 %v2357_v30, %v2029_v24  ;;  %v15755_v11 = vld [vmem:[#allocation104_spill] sm:$0xff]  ;;  %6941 = vmatmul.mubr.msk.bf16.gmra.mrb[56].mxu1 %vm58_vm0, %v2674_v46 }
 0x3f7   : > { %v2030_v34 = vsel %vm1992_vm4, %v1965_v62, %v15748_v23  ;;  %v2364_v37 = vld [vmem:[%s14503_s2 + $0x398] sm:$0xff]  ;;  %v2367_v33 = vld [vmem:[%s14503_s2 + $0x3b0] sm:$0xff]  ;;  %v2224_v36 = vsel %vm1992_vm4, %v2160_v16, %v1750_v47  ;;  %v15756_v15 = vld [vmem:[#allocation105_spill] sm:$0xff]  ;;  %6944 = vmatprep.mubr.msk.bf16.mxu1 %vm58_vm0, %v2677_v25 }
 0x3f8   : > { %v2344_v19 = vld [vmem:[%s14503_s2 + $0x2f8] sm:$0xff]  ;;  %v2347_v56 = vld [vmem:[%s14503_s2 + $0x310] sm:$0xff]  ;;  %v2552_v6 = vmul.f32 %v2360_v7, %v2030_v34  ;;  %v2556_v26 = vmul.f32 %v2364_v37, %v2223_v57  ;;  %v2559_v28 = vmul.f32 %v2367_v33, %v2224_v36  ;;  %v2533_v60 = vmul.f32 %v2341_v10, %v15756_v15  ;;  %v15758_v5 = vld [vmem:[#allocation109_spill] sm:$0xff] }
 0x3f9   : > { %v15751_v17 = vld [vmem:[#allocation102_spill] sm:$0xff]  ;;  %v15753_v43 = vld [vmem:[#allocation103_spill] sm:$0xff]  ;;  %v2536_v8 = vmul.f32 %v2344_v19, %v15755_v11  ;;  %v15757_v61 = vld [vmem:[#allocation108_spill] sm:$0xff]  ;;  %v2539_v21 = vmul.f32 %v2347_v56, %v15758_v5  ;;  %v1756_v11 = vpop.permute.xlu0 %1755 }
 0x3fa   : > { %v15752_v20 = vld [vmem:[#allocation222_spill] sm:$0xff]  ;;  %v15754_v12 = vld [vmem:[#allocation223_spill] sm:$0xff]  ;;  %v2542_v55 = vmul.f32 %v2350_v40, %v15757_v61  ;;  %v15759_v42 = vld [vmem:[#allocation212_spill] sm:$0xff]  ;;  %v2687_v63 = vpack.c.bf16 %v2552_v6, %v2549_v22  ;;  %v2691_v31 = vpack.c.bf16 %v2559_v28, %v2556_v26 }
 0x3fb   : > { %v1901_v32 = vsel %vm58_vm0, %v15752_v20, %v15751_v17  ;;  %v1902_v58 = vsel %vm58_vm0, %v15754_v12, %v15753_v43  ;;  %v15760_v39 = vld [vmem:[#allocation213_spill] sm:$0xff]  ;;  %v15761_v59 = vld [vmem:[#allocation296_spill] sm:$0xff]  ;;  %v2363_v38 = vld [vmem:[%s14503_s2 + $0x390] sm:$0xff]  ;;  %v2680_v7 = vpack.c.bf16 %v2536_v8, %v2533_v60  ;;  %v1758_v8 = vpop.permute.xlu1 %1757 }
 0x3fc   : > { %v1967_v49 = vsel %vm1927_vm3, %v1902_v58, %v15759_v42  ;;  %v1966_v3 = vsel %vm1927_vm3, %v1901_v32, %v15760_v39  ;;  %v7520_v1 = vld [vmem:[#allocation2 + $0x140] sm:$0xff]  ;;  %v7521_v35 = vld [vmem:[#allocation2 + $0x148] sm:$0xff]  ;;  %v15765_v24 = vld [vmem:[#allocation423_spill] sm:$0xff]  ;;  %3277 = vmatmul.mubr.bf16.gmra.mrb[72].mxu0 %v2687_v63  ;;  %v2683_v44 = vpack.c.bf16 %v2542_v55, %v2539_v21 }
 0x3fd   : > { %v2031_v53 = vsel %vm1992_vm4, %v1966_v3, %v15761_v59  ;;  %v15762_v0 = vld [vmem:[#allocation356_spill] sm:$0xff]  ;;  %v15763_v2 = vld [vmem:[#allocation357_spill] sm:$0xff]  ;;  %3284 = vmatprep.mubr.bf16.mxu0 %v2691_v31  ;;  %v2359_v50 = vld [vmem:[%s14503_s2 + $0x370] sm:$0xff] }
 0x3fe   : > { %v2097_v18 = vsel %vm58_vm0, %v7520_v1, %v15762_v0  ;;  %v2098_v62 = vsel %vm58_vm0, %v7521_v35, %v15763_v2  ;;  %v2366_v4 = vld [vmem:[%s14503_s2 + $0x3a8] sm:$0xff]  ;;  %v15766_v13 = vld [vmem:[#allocation424_spill] sm:$0xff]  ;;  %v2555_v16 = vmul.f32 %v2363_v38, %v2031_v53  ;;  %v15769_v19 = vld [vmem:[#allocation107_spill] sm:$0xff]  ;;  %6945 = vmatmul.mubr.msk.bf16.gmra.mrb[60].mxu1 %vm58_vm0, %v2680_v7 }
 0x3ff   : > { %v15764_v47 = vld [vmem:[#allocation297_spill] sm:$0xff]  ;;  %v2161_v48 = vsel %vm1927_vm3, %v2097_v18, %v15765_v24  ;;  %v2162_v51 = vsel %vm1927_vm3, %v2098_v62, %v15766_v13  ;;  %v2356_v23 = vld [vmem:[%s14503_s2 + $0x358] sm:$0xff]  ;;  %v15767_v33 = vld [vmem:[#allocation106_spill] sm:$0xff]  ;;  %6948 = vmatprep.mubr.msk.bf16.mxu1 %vm58_vm0, %v2683_v44 }
 0x400   : > { %v2032_v9 = vsel %vm1992_vm4, %v1967_v49, %v15764_v47  ;;  %v2370_v14 = vld [vmem:[%s14503_s2 + $0x3c8] sm:$0xff]  ;;  %v2225_v27 = vsel %vm1992_vm4, %v2161_v48, %v1752_v54  ;;  %v2373_v45 = vld [vmem:[%s14503_s2 + $0x3e0] sm:$0xff]  ;;  %v2226_v30 = vsel %vm1992_vm4, %v2162_v51, %v1754_v41  ;;  %v15770_v10 = vld [vmem:[#allocation227_spill] sm:$0xff] }
 0x401   : > { %v2353_v34 = vld [vmem:[%s14503_s2 + $0x340] sm:$0xff]  ;;  %v2362_v29 = vld [vmem:[%s14503_s2 + $0x388] sm:$0xff]  ;;  %v2558_v52 = vmul.f32 %v2366_v4, %v2032_v9  ;;  %v2562_v37 = vmul.f32 %v2370_v14, %v2225_v27  ;;  %v2565_v57 = vmul.f32 %v2373_v45, %v2226_v30  ;;  %v1904_v25 = vsel %vm58_vm0, %v15770_v10, %v15769_v19  ;;  %v7522_v61 = vld [vmem:[#allocation2 + $0x150] sm:$0xff] }
 0x402   : > { %v15768_v36 = vld [vmem:[#allocation226_spill] sm:$0xff]  ;;  %v15771_v40 = vld [vmem:[#allocation112_spill] sm:$0xff]  ;;  %v15772_v22 = vld [vmem:[#allocation113_spill] sm:$0xff] }
 0x403   : > { %v1903_v46 = vsel %vm58_vm0, %v15768_v36, %v15767_v33  ;;  %v2548_v56 = vmul.f32 %v2356_v23, %v15771_v40  ;;  %v2545_v6 = vmul.f32 %v2353_v34, %v15772_v22  ;;  %v15773_v26 = vld [vmem:[#allocation116_spill] sm:$0xff]  ;;  %v15774_v17 = vld [vmem:[#allocation117_spill] sm:$0xff]  ;;  %v15777_v15 = vld [vmem:[#allocation298_spill] sm:$0xff]  ;;  %v2690_v39 = vpack.c.bf16 %v2558_v52, %v2555_v16  ;;  %v1760_v40 = vpop.permute.xlu0 %1759 }
 0x404   : > { %v2554_v28 = vmul.f32 %v2362_v29, %v15773_v26  ;;  %v2551_v20 = vmul.f32 %v2359_v50, %v15774_v17  ;;  %v15775_v32 = vld [vmem:[#allocation216_spill] sm:$0xff]  ;;  %v15776_v12 = vld [vmem:[#allocation217_spill] sm:$0xff]  ;;  %v15778_v55 = vld [vmem:[#allocation358_spill] sm:$0xff]  ;;  %v2694_v35 = vpack.c.bf16 %v2565_v57, %v2562_v37 }
 0x405   : > { %v1969_v43 = vsel %vm1927_vm3, %v1904_v25, %v15775_v32  ;;  %v1968_v58 = vsel %vm1927_vm3, %v1903_v46, %v15776_v12  ;;  %v2099_v5 = vsel %vm58_vm0, %v7522_v61, %v15778_v55  ;;  %v7523_v21 = vld [vmem:[#allocation2 + $0x158] sm:$0xff]  ;;  %v2369_v3 = vld [vmem:[%s14503_s2 + $0x3c0] sm:$0xff]  ;;  %v15782_v0 = vld [vmem:[#allocation162_spill] sm:$0xff]  ;;  %3285 = vmatmul.mubr.bf16.gmra.mrb[76].mxu0 %v2690_v39  ;;  %v2686_v4 = vpack.c.bf16 %v2548_v56, %v2545_v6  ;;  %v1762_v56 = vpop.permute.xlu1 %1761 }
 0x406   : > { %v2033_v60 = vsel %vm1992_vm4, %v1968_v58, %v15777_v15  ;;  %v15779_v42 = vld [vmem:[#allocation359_spill] sm:$0xff]  ;;  %v2365_v9 = vld [vmem:[%s14503_s2 + $0x3a0] sm:$0xff]  ;;  %3292 = vmatprep.mubr.bf16.mxu0 %v2694_v35  ;;  %v2689_v24 = vpack.c.bf16 %v2554_v28, %v2551_v20  ;;  %v2374_v48 = vld [vmem:[%s14503_s2 + $0x3e8] sm:$0xff] }
 0x407   : > { %v2100_v49 = vsel %vm58_vm0, %v7523_v21, %v15779_v42  ;;  %v2372_v54 = vld [vmem:[%s14503_s2 + $0x3d8] sm:$0xff]  ;;  %v2379_v63 = vld [vmem:[%s14503_s2 + $0x410] sm:$0xff]  ;;  %v2561_v51 = vmul.f32 %v2369_v3, %v2033_v60  ;;  %v15788_v16 = vld [vmem:[#allocation121_spill] sm:$0xff]  ;;  %6949 = vmatmul.mubr.msk.bf16.gmra.mrb[64].mxu1 %vm58_vm0, %v2686_v4 }
 0x408   : > { %v15780_v41 = vld [vmem:[#allocation299_spill] sm:$0xff]  ;;  %v2164_v18 = vsel %vm1927_vm3, %v2100_v49, %v15782_v0  ;;  %v15783_v45 = vld [vmem:[#allocation110_spill] sm:$0xff]  ;;  %v15787_v29 = vld [vmem:[#allocation120_spill] sm:$0xff]  ;;  %v2557_v52 = vmul.f32 %v2365_v9, %v15788_v16  ;;  %6952 = vmatprep.mubr.msk.bf16.mxu1 %vm58_vm0, %v2689_v24 }
 0x409   : > { %v2034_v59 = vsel %vm1992_vm4, %v1969_v43, %v15780_v41  ;;  %v15781_v53 = vld [vmem:[#allocation15_spill] sm:$0xff]  ;;  %v2228_v38 = vsel %vm1992_vm4, %v2164_v18, %v1758_v8  ;;  %v15784_v30 = vld [vmem:[#allocation230_spill] sm:$0xff]  ;;  %v15789_v37 = vld [vmem:[#allocation124_spill] sm:$0xff] }
 0x40a   : > { %v2163_v1 = vsel %vm1927_vm3, %v2099_v5, %v15781_v53  ;;  %v2376_v2 = vld [vmem:[%s14503_s2 + $0x3f8] sm:$0xff]  ;;  %v2371_v13 = vld [vmem:[%s14503_s2 + $0x3d0] sm:$0xff]  ;;  %v2564_v31 = vmul.f32 %v2372_v54, %v2034_v59  ;;  %v2571_v27 = vmul.f32 %v2379_v63, %v2228_v38  ;;  %v1905_v7 = vsel %vm58_vm0, %v15784_v30, %v15783_v45  ;;  %v15790_v33 = vld [vmem:[#allocation125_spill] sm:$0xff] }
 0x40b   : > { %v2227_v62 = vsel %vm1992_vm4, %v2163_v1, %v1756_v11  ;;  %v2368_v47 = vld [vmem:[%s14503_s2 + $0x3b8] sm:$0xff]  ;;  %v2566_v57 = vmul.f32 %v2374_v48, %v15789_v37  ;;  %v2563_v36 = vmul.f32 %v2371_v13, %v15790_v33  ;;  %v15792_v10 = vld [vmem:[#allocation221_spill] sm:$0xff]  ;;  %v2375_v58 = vld [vmem:[%s14503_s2 + $0x3f0] sm:$0xff] }
 0x40c   : > { %v2568_v14 = vmul.f32 %v2376_v2, %v2227_v62  ;;  %v15785_v23 = vld [vmem:[#allocation111_spill] sm:$0xff]  ;;  %v2560_v50 = vmul.f32 %v2368_v47, %v15787_v29  ;;  %v15791_v46 = vld [vmem:[#allocation220_spill] sm:$0xff]  ;;  %v1970_v25 = vsel %vm1927_vm3, %v1905_v7, %v15792_v10  ;;  %v7525_v20 = vld [vmem:[#allocation2 + $0x168] sm:$0xff]  ;;  %v2693_v12 = vpack.c.bf16 %v2564_v31, %v2561_v51  ;;  %v1764_v29 = vpop.permute.xlu0 %1763 }
 0x40d   : > { %v15786_v34 = vld [vmem:[#allocation231_spill] sm:$0xff]  ;;  %v15793_v22 = vld [vmem:[#allocation300_spill] sm:$0xff]  ;;  %v15795_v32 = vld [vmem:[#allocation361_spill] sm:$0xff]  ;;  %v2695_v53 = vpack.c.bf16 %v2566_v57, %v2563_v36 }
 0x40e   : > { %v1906_v44 = vsel %vm58_vm0, %v15786_v34, %v15785_v23  ;;  %v2035_v6 = vsel %vm1992_vm4, %v1970_v25, %v15793_v22  ;;  %v7524_v26 = vld [vmem:[#allocation2 + $0x160] sm:$0xff]  ;;  %v2102_v43 = vsel %vm58_vm0, %v7525_v20, %v15795_v32  ;;  %v2378_v11 = vld [vmem:[%s14503_s2 + $0x408] sm:$0xff]  ;;  %v2697_v21 = vpack.c.bf16 %v2571_v27, %v2568_v14  ;;  %3293 = vmatmul.mubr.bf16.gmra.mrb[80].mxu0 %v2693_v12  ;;  %v2380_v41 = vld [vmem:[%s14503_s2 + $0x418] sm:$0xff] }
 0x40f   : > { %v1971_v19 = vsel %vm1927_vm3, %v1906_v44, %v15791_v46  ;;  %v15794_v28 = vld [vmem:[#allocation360_spill] sm:$0xff]  ;;  %v15796_v8 = vld [vmem:[#allocation301_spill] sm:$0xff]  ;;  %v15798_v55 = vld [vmem:[#allocation426_spill] sm:$0xff]  ;;  %v2692_v54 = vpack.c.bf16 %v2560_v50, %v2557_v52  ;;  %v2567_v18 = vmul.f32 %v2375_v58, %v2035_v6  ;;  %v1766_v50 = vpop.permute.xlu1 %1765 }
 0x410   : > { %v2101_v17 = vsel %vm58_vm0, %v7524_v26, %v15794_v28  ;;  %v2036_v15 = vsel %vm1992_vm4, %v1971_v19, %v15796_v8  ;;  %v15797_v60 = vld [vmem:[#allocation425_spill] sm:$0xff]  ;;  %v2166_v5 = vsel %vm1927_vm3, %v2102_v43, %v15798_v55  ;;  %3300 = vmatprep.mubr.bf16.mxu0 %v2697_v21  ;;  %v2383_v0 = vld [vmem:[%s14503_s2 + $0x430] sm:$0xff]  ;;  %v15803_v48 = vld [vmem:[#allocation128_spill] sm:$0xff] }
 0x411   : > { %v2165_v61 = vsel %vm1927_vm3, %v2101_v17, %v15797_v60  ;;  %v2382_v42 = vld [vmem:[%s14503_s2 + $0x428] sm:$0xff]  ;;  %v2385_v39 = vld [vmem:[%s14503_s2 + $0x440] sm:$0xff]  ;;  %v2230_v3 = vsel %vm1992_vm4, %v2166_v5, %v1762_v56  ;;  %v2570_v35 = vmul.f32 %v2378_v11, %v2036_v15  ;;  %v15801_v47 = vld [vmem:[#allocation115_spill] sm:$0xff]  ;;  %v2572_v13 = vmul.f32 %v2380_v41, %v15803_v48  ;;  %6953 = vmatmul.mubr.msk.bf16.gmra.mrb[68].mxu1 %vm58_vm0, %v2692_v54 }
 0x412   : > { %v2229_v49 = vsel %vm1992_vm4, %v2165_v61, %v1760_v40  ;;  %v2377_v59 = vld [vmem:[%s14503_s2 + $0x400] sm:$0xff]  ;;  %v2386_v1 = vld [vmem:[%s14503_s2 + $0x448] sm:$0xff]  ;;  %v2577_v62 = vmul.f32 %v2385_v39, %v2230_v3  ;;  %v15802_v9 = vld [vmem:[#allocation235_spill] sm:$0xff]  ;;  %6956 = vmatprep.mubr.msk.bf16.mxu1 %vm58_vm0, %v2695_v53 }
 0x413   : > { %v2574_v2 = vmul.f32 %v2382_v42, %v2229_v49  ;;  %v15799_v63 = vld [vmem:[#allocation114_spill] sm:$0xff]  ;;  %v1908_v24 = vsel %vm58_vm0, %v15802_v9, %v15801_v47  ;;  %v15804_v51 = vld [vmem:[#allocation129_spill] sm:$0xff]  ;;  %v15805_v14 = vld [vmem:[#allocation132_spill] sm:$0xff]  ;;  %v2696_v10 = vpack.c.bf16 %v2570_v35, %v2567_v18 }
 0x414   : > { %v15800_v38 = vld [vmem:[#allocation234_spill] sm:$0xff]  ;;  %v2569_v31 = vmul.f32 %v2377_v59, %v15804_v51  ;;  %v2578_v27 = vmul.f32 %v2386_v1, %v15805_v14  ;;  %v15806_v45 = vld [vmem:[#allocation133_spill] sm:$0xff]  ;;  %v15807_v7 = vld [vmem:[#allocation224_spill] sm:$0xff] }
 0x415   : > { %v1907_v4 = vsel %vm58_vm0, %v15800_v38, %v15799_v63  ;;  %v2575_v30 = vmul.f32 %v2383_v0, %v15806_v45  ;;  %v1973_v23 = vsel %vm1927_vm3, %v1908_v24, %v15807_v7  ;;  %v15808_v34 = vld [vmem:[#allocation225_spill] sm:$0xff]  ;;  %v15809_v16 = vld [vmem:[#allocation302_spill] sm:$0xff]  ;;  %v7527_v36 = vld [vmem:[#allocation2 + $0x178] sm:$0xff]  ;;  %v2700_v20 = vpack.c.bf16 %v2577_v62, %v2574_v2 }
 0x416   : > { %v1972_v44 = vsel %vm1927_vm3, %v1907_v4, %v15808_v34  ;;  %v7526_v37 = vld [vmem:[#allocation2 + $0x170] sm:$0xff]  ;;  %v2381_v25 = vld [vmem:[%s14503_s2 + $0x420] sm:$0xff]  ;;  %v2384_v40 = vld [vmem:[%s14503_s2 + $0x438] sm:$0xff]  ;;  %3301 = vmatmul.mubr.bf16.gmra.mrb[84].mxu0 %v2696_v10  ;;  %v2698_v11 = vpack.c.bf16 %v2572_v13, %v2569_v31 }
 0x417   : > { %v2037_v52 = vsel %vm1992_vm4, %v1972_v44, %v15809_v16  ;;  %v15810_v57 = vld [vmem:[#allocation362_spill] sm:$0xff]  ;;  %v15811_v46 = vld [vmem:[#allocation363_spill] sm:$0xff]  ;;  %v2389_v15 = vld [vmem:[%s14503_s2 + $0x460] sm:$0xff]  ;;  %3308 = vmatprep.mubr.bf16.mxu0 %v2700_v20  ;;  %v2701_v60 = vpack.c.bf16 %v2578_v27, %v2575_v30 }
 0x418   : > { %v2103_v33 = vsel %vm58_vm0, %v7526_v37, %v15810_v57  ;;  %v2104_v19 = vsel %vm58_vm0, %v7527_v36, %v15811_v46  ;;  %v15812_v56 = vld [vmem:[#allocation303_spill] sm:$0xff]  ;;  %v15813_v6 = vld [vmem:[#allocation26_spill] sm:$0xff]  ;;  %v2573_v5 = vmul.f32 %v2381_v25, %v2037_v52  ;;  %v15815_v39 = vld [vmem:[#allocation136_spill] sm:$0xff] }
 0x419   : > { %v2038_v22 = vsel %vm1992_vm4, %v1973_v23, %v15812_v56  ;;  %v2167_v26 = vsel %vm1927_vm3, %v2103_v33, %v15813_v6  ;;  %v15814_v28 = vld [vmem:[#allocation427_spill] sm:$0xff]  ;;  %v2398_v61 = vld [vmem:[%s14503_s2 + $0x4a8] sm:$0xff]  ;;  %6957 = vmatmul.mubr.msk.bf16.gmra.mrb[72].mxu1 %vm58_vm0, %v2698_v11  ;;  %v15821_v2 = vld [vmem:[#allocation140_spill] sm:$0xff] }
 0x41a   : > { %v2168_v17 = vsel %vm1927_vm3, %v2104_v19, %v15814_v28  ;;  %v2388_v32 = vld [vmem:[%s14503_s2 + $0x458] sm:$0xff]  ;;  %v2231_v43 = vsel %vm1992_vm4, %v2167_v26, %v1764_v29  ;;  %v2391_v12 = vld [vmem:[%s14503_s2 + $0x470] sm:$0xff]  ;;  %v2576_v21 = vmul.f32 %v2384_v40, %v2038_v22  ;;  %v15816_v54 = vld [vmem:[#allocation137_spill] sm:$0xff]  ;;  %v2590_v62 = vmul.f32 %v2398_v61, %v15821_v2  ;;  %6960 = vmatprep.mubr.msk.bf16.mxu1 %vm58_vm0, %v2701_v60 }
 0x41b   : > { %v2232_v58 = vsel %vm1992_vm4, %v2168_v17, %v1766_v50  ;;  %v2392_v8 = vld [vmem:[%s14503_s2 + $0x478] sm:$0xff]  ;;  %v2395_v55 = vld [vmem:[%s14503_s2 + $0x490] sm:$0xff]  ;;  %v2580_v42 = vmul.f32 %v2388_v32, %v2231_v43  ;;  %v2581_v41 = vmul.f32 %v2389_v15, %v15816_v54  ;;  %v15822_v63 = vld [vmem:[#allocation141_spill] sm:$0xff] }
 0x41c   : > { %v2583_v49 = vmul.f32 %v2391_v12, %v2232_v58  ;;  %v2584_v3 = vmul.f32 %v2392_v8, %v15815_v39  ;;  %v15817_v59 = vld [vmem:[#allocation118_spill] sm:$0xff]  ;;  %v15819_v0 = vld [vmem:[#allocation119_spill] sm:$0xff]  ;;  %v2587_v38 = vmul.f32 %v2395_v55, %v15822_v63  ;;  %v15823_v4 = vld [vmem:[#allocation228_spill] sm:$0xff]  ;;  %v2699_v48 = vpack.c.bf16 %v2576_v21, %v2573_v5 }
 0x41d   : > { %v15818_v53 = vld [vmem:[#allocation238_spill] sm:$0xff]  ;;  %v15820_v18 = vld [vmem:[#allocation239_spill] sm:$0xff]  ;;  %v15824_v9 = vld [vmem:[#allocation229_spill] sm:$0xff] }
 0x41e   : > { %v1909_v1 = vsel %vm58_vm0, %v15818_v53, %v15817_v59  ;;  %v1910_v35 = vsel %vm58_vm0, %v15820_v18, %v15819_v0  ;;  %v2387_v13 = vld [vmem:[%s14503_s2 + $0x450] sm:$0xff]  ;;  %v15825_v51 = vld [vmem:[#allocation304_spill] sm:$0xff]  ;;  %v2390_v14 = vld [vmem:[%s14503_s2 + $0x468] sm:$0xff]  ;;  %v2703_v30 = vpack.c.bf16 %v2583_v49, %v2580_v42  ;;  %3309 = vmatmul.mubr.bf16.gmra.mrb[88].mxu0 %v2699_v48  ;;  %v2704_v7 = vpack.c.bf16 %v2584_v3, %v2581_v41 }
 0x41f   : > { %v1975_v47 = vsel %vm1927_vm3, %v1910_v35, %v15823_v4  ;;  %v1974_v24 = vsel %vm1927_vm3, %v1909_v1, %v15824_v9  ;;  %v15826_v27 = vld [vmem:[#allocation305_spill] sm:$0xff]  ;;  %v2404_v23 = vld [vmem:[%s14503_s2 + $0x4d8] sm:$0xff]  ;;  %v2707_v44 = vpack.c.bf16 %v2590_v62, %v2587_v38  ;;  %v2407_v50 = vld [vmem:[%s14503_s2 + $0x4f0] sm:$0xff] }
 0x420   : > { %v2039_v31 = vsel %vm1992_vm4, %v1974_v24, %v15825_v51  ;;  %v2040_v45 = vsel %vm1992_vm4, %v1975_v47, %v15826_v27  ;;  %v2401_v34 = vld [vmem:[%s14503_s2 + $0x4c0] sm:$0xff]  ;;  %3316 = vmatprep.mubr.bf16.mxu0 %v2703_v30  ;;  %v2410_v29 = vld [vmem:[%s14503_s2 + $0x508] sm:$0xff]  ;;  %v15829_v46 = vld [vmem:[#allocation147_spill] sm:$0xff] }
 0x421   : > { %v2579_v16 = vmul.f32 %v2387_v13, %v2039_v31  ;;  %v2582_v52 = vmul.f32 %v2390_v14, %v2040_v45  ;;  %v15827_v37 = vld [vmem:[#allocation144_spill] sm:$0xff]  ;;  %v15828_v33 = vld [vmem:[#allocation145_spill] sm:$0xff]  ;;  %6961 = vmatmul.mubr.msk.bf16.gmra.mrb[76].mxu1 %vm58_vm0, %v2704_v7  ;;  %v2602_v19 = vmul.f32 %v2410_v29, %v15829_v46  ;;  %v2419_v17 = vld [vmem:[%s14503_s2 + $0x550] sm:$0xff] }
 0x422   : > { %v2596_v57 = vmul.f32 %v2404_v23, %v15827_v37  ;;  %v2593_v36 = vmul.f32 %v2401_v34, %v15828_v33  ;;  %v15830_v10 = vld [vmem:[#allocation148_spill] sm:$0xff]  ;;  %6964 = vmatprep.mubr.msk.bf16.mxu1 %vm58_vm0, %v2707_v44  ;;  %v2422_v28 = vld [vmem:[%s14503_s2 + $0x568] sm:$0xff]  ;;  %v15832_v43 = vld [vmem:[#allocation151_spill] sm:$0xff] }
 0x423   : > { %v2599_v25 = vmul.f32 %v2407_v50, %v15830_v10  ;;  %v2702_v40 = vpack.c.bf16 %v2582_v52, %v2579_v16  ;;  %v2416_v22 = vld [vmem:[%s14503_s2 + $0x538] sm:$0xff]  ;;  %v2413_v6 = vld [vmem:[%s14503_s2 + $0x520] sm:$0xff]  ;;  %v15831_v20 = vld [vmem:[#allocation150_spill] sm:$0xff] }
 0x424   : > { %v2710_v56 = vpack.c.bf16 %v2596_v57, %v2593_v36  ;;  %v2608_v32 = vmul.f32 %v2416_v22, %v15831_v20  ;;  %v2605_v12 = vmul.f32 %v2413_v6, %v15832_v43  ;;  %v15833_v58 = vld [vmem:[#allocation154_spill] sm:$0xff]  ;;  %v15834_v8 = vld [vmem:[#allocation155_spill] sm:$0xff]  ;;  %v2425_v5 = vld [vmem:[%s14503_s2 + $0x580] sm:$0xff] }
 0x425   : > { %v2713_v26 = vpack.c.bf16 %v2602_v19, %v2599_v25  ;;  %v2614_v11 = vmul.f32 %v2422_v28, %v15833_v58  ;;  %v2611_v15 = vmul.f32 %v2419_v17, %v15834_v8  ;;  %v2428_v55 = vld [vmem:[%s14503_s2 + $0x598] sm:$0xff]  ;;  %v2431_v49 = vld [vmem:[%s14503_s2 + $0x5b0] sm:$0xff]  ;;  %v2434_v39 = vld [vmem:[%s14503_s2 + $0x5c8] sm:$0xff] }
 0x426   : > { %3317 = vmatmul.mubr.bf16.gmra.mrb[92].mxu0 %v2702_v40  ;;  %v2716_v61 = vpack.c.bf16 %v2608_v32, %v2605_v12  ;;  %v15835_v41 = vld [vmem:[#allocation158_spill] sm:$0xff]  ;;  %v15836_v53 = vld [vmem:[#allocation159_spill] sm:$0xff]  ;;  %v15837_v0 = vld [vmem:[#allocation36_spill] sm:$0xff] }
 0x427   : > { %v11674_v60 = vpop.f32.mrb[0].mxu0  ;;  %v2719_v42 = vpack.c.bf16 %v2614_v11, %v2611_v15  ;;  %v2620_v59 = vmul.f32 %v2428_v55, %v15835_v41  ;;  %v2617_v1 = vmul.f32 %v2425_v5, %v15836_v53  ;;  %v2623_v18 = vmul.f32 %v2431_v49, %v15837_v0  ;;  %v15838_v35 = vld [vmem:[#allocation37_spill] sm:$0xff]  ;;  %v2440_v38 = vld [vmem:[%s14503_s2 + $0x5f8] sm:$0xff] }
 0x428   : > { %v3136_v21 = vpop.f32.mrb[1].mxu0  ;;  %v2626_v2 = vmul.f32 %v2434_v39, %v15838_v35  ;;  %v2437_v4 = vld [vmem:[%s14503_s2 + $0x5e0] sm:$0xff] }
 0x429   : > { %6965 = vmatmul.mubr.msk.bf16.gmra.mrb[80].mxu1 %vm58_vm0, %v2710_v56  ;;  %v11688_v3 = vpop.f32.mrb[2].mxu0  ;;  %v2722_v63 = vpack.c.bf16 %v2620_v59, %v2617_v1  ;;  %v15839_v13 = vld [vmem:[#allocation40_spill] sm:$0xff]  ;;  %v15840_v31 = vld [vmem:[#allocation41_spill] sm:$0xff] }
 0x42a   : > { %6968 = vmatprep.mubr.msk.bf16.mxu1 %vm58_vm0, %v2713_v26  ;;  %v3139_v54 = vpop.f32.mrb[3].mxu0  ;;  %v2725_v9 = vpack.c.bf16 %v2626_v2, %v2623_v18  ;;  %v2632_v51 = vmul.f32 %v2440_v38, %v15839_v13  ;;  %v2629_v14 = vmul.f32 %v2437_v4, %v15840_v31 }
 0x42c   : > { %v2728_v45 = vpack.c.bf16 %v2632_v51, %v2629_v14  ;;  %v4473_v14 = vld [vmem:[#allocation3 + $0x10] sm:$0xff] }
 0x42f   : > { %v11696_v62 = vpop.f32.mrb[4].mxu0 }
 0x430   : > { %v3144_v47 = vpop.f32.mrb[5].mxu0 }
 0x431   : > { %6969 = vmatmul.mubr.msk.bf16.gmra.mrb[84].mxu1 %vm58_vm0, %v2716_v61  ;;  %v11704_v24 = vpop.f32.mrb[6].mxu0  ;;  %v4471_v47 = vld [vmem:[#allocation3] sm:$0xff] }
 0x432   : > { %6972 = vmatprep.mubr.msk.bf16.mxu1 %vm58_vm0, %v2719_v42  ;;  %v3147_v48 = vpop.f32.mrb[7].mxu0  ;;  %4599 = vrot.lane.b32.xlu0 %v4471_v47, %s7612_s6 }
 0x436   : > { %4603 = vrot.lane.b32.xlu0 %v4473_v14, %s7612_s6 }
 0x437   : > { %v11710_v27 = vpop.f32.mrb[8].mxu0 }
 0x438   : > { %v3152_v30 = vpop.f32.mrb[9].mxu0 }
 0x439   : > { %6973 = vmatmul.mubr.msk.bf16.gmra.mrb[88].mxu1 %vm58_vm0, %v2722_v63  ;;  %v11712_v7 = vpop.f32.mrb[10].mxu0  ;;  %v4475_v30 = vld [vmem:[#allocation3 + $0x20] sm:$0xff] }
 0x43a   : > { %6976 = vmatprep.mubr.msk.bf16.mxu1 %vm58_vm0, %v2725_v9  ;;  %v3155_v23 = vpop.f32.mrb[11].mxu0  ;;  %v4472_v9 = vld [vmem:[#allocation3 + $0x8] sm:$0xff]  ;;  %4607 = vrot.lane.b32.xlu0 %v4475_v30, %s7612_s6 }
 0x43b   : > { %4601 = vrot.lane.b32.xlu1 %v4472_v9, %s7612_s6  ;;  %v4476_v23 = vld [vmem:[#allocation3 + $0x28] sm:$0xff] }
 0x43f   : > { %v11715_v34 = vpop.f32.mrb[12].mxu0 }
 0x440   : > { %v3160_v44 = vpop.f32.mrb[13].mxu0 }
 0x441   : > { %6977 = vmatmul.mubr.msk.bf16.gmra.mrb[92].mxu1 %vm58_vm0, %v2728_v45  ;;  %v11717_v29 = vpop.f32.mrb[14].mxu0  ;;  %v4474_v45 = vld [vmem:[#allocation3 + $0x18] sm:$0xff] }
 0x442   : > { %v3163_v50 = vpop.f32.mrb[15].mxu0  ;;  %4605 = vrot.lane.b32.xlu1 %v4474_v45, %s7612_s6 }
 0x446   : > { %4609 = vrot.lane.b32.xlu1 %v4476_v23, %s7612_s6 }
 0x447   : > { %v11719_v16 = vpop.f32.mrb[0].mxu1 }
 0x448   : > { %v3328_v52 = vpop.f32.mrb[1].mxu1 }
 0x449   : > { %v11721_v37 = vpop.f32.mrb[2].mxu1 }
 0x44a   : > { %v3331_v57 = vpop.f32.mrb[3].mxu1 }
 0x44b   : > { %v11723_v33 = vpop.f32.mrb[16].mxu0 }
 0x44c   : > { %v3168_v36 = vpop.f32.mrb[17].mxu0 }
 0x44d   : > { %v11725_v46 = vpop.f32.mrb[18].mxu0  ;;  %v4477_v36 = vld [vmem:[#allocation3 + $0x30] sm:$0xff] }
 0x44e   : > { %v3171_v19 = vpop.f32.mrb[19].mxu0  ;;  %4611 = vrot.lane.b32.xlu0 %v4477_v36, %s7612_s6 }
 0x44f   : > { %v11727_v10 = vpop.f32.mrb[4].mxu1  ;;  %v4478_v19 = vld [vmem:[#allocation3 + $0x38] sm:$0xff] }
 0x450   : > { %v3336_v25 = vpop.f32.mrb[5].mxu1  ;;  %4613 = vrot.lane.b32.xlu1 %v4478_v19, %s7612_s6  ;;  %v6848_v19 = vld [vmem:[%s11789_s12 + $0x10] sm:$0xff]  }
 0x451   : > { %v11729_v40 = vpop.f32.mrb[6].mxu1 }
 0x452   : > { %v3339_v56 = vpop.f32.mrb[7].mxu1 }
 0x453   : > { %v11731_v22 = vpop.f32.mrb[20].mxu0 }
 0x454   : > { %v3176_v6 = vpop.f32.mrb[21].mxu0 }
 0x455   : > { %v11733_v26 = vpop.f32.mrb[22].mxu0 }
 0x456   : > { %v3179_v28 = vpop.f32.mrb[23].mxu0 }
 0x457   : > { %v11735_v17 = vpop.f32.mrb[8].mxu1 }
 0x458   : > { %v3344_v20 = vpop.f32.mrb[9].mxu1 }
 0x459   : > { %v11737_v32 = vpop.f32.mrb[10].mxu1  ;;  %v4479_v20 = vld [vmem:[#allocation3 + $0x40] sm:$0xff] }
 0x45a   : > { %v3347_v43 = vpop.f32.mrb[11].mxu1  ;;  %4615 = vrot.lane.b32.xlu0 %v4479_v20, %s7612_s6 }
 0x45b   : > { %v11739_v12 = vpop.f32.mrb[24].mxu0  ;;  %v4480_v43 = vld [vmem:[#allocation3 + $0x48] sm:$0xff] }
 0x45c   : > { %v3184_v58 = vpop.f32.mrb[25].mxu0  ;;  %4617 = vrot.lane.b32.xlu1 %v4480_v43, %s7612_s6 }
 0x45d   : > { %v11741_v11 = vpop.f32.mrb[26].mxu0  ;;  %v4481_v58 = vld [vmem:[#allocation3 + $0x50] sm:$0xff] }
 0x45e   : > { %v3187_v8 = vpop.f32.mrb[27].mxu0  ;;  %4619 = vrot.lane.b32.xlu0 %v4481_v58, %s7612_s6 }
 0x45f   : > { %v11743_v15 = vpop.f32.mrb[12].mxu1  ;;  %v4482_v8 = vld [vmem:[#allocation3 + $0x58] sm:$0xff] }
 0x460   : > { %v3352_v61 = vpop.f32.mrb[13].mxu1  ;;  %4621 = vrot.lane.b32.xlu1 %v4482_v8, %s7612_s6 }
 0x461   : > { %v11745_v55 = vpop.f32.mrb[14].mxu1  ;;  %v6847_v61 = vld [vmem:[%s11789_s12 + $0x8] sm:$0xff]  }
 0x462   : > { %v3355_v5 = vpop.f32.mrb[15].mxu1  ;;  %v6726_v9 = vunpack.c.h.bf16 %v6847_v61 }
 0x463   : > { %v11747_v21 = vpop.f32.mrb[28].mxu0 }
 0x464   : > { %v3192_v42 = vpop.f32.mrb[29].mxu0  ;;  %v3146_v36 = vadd.f32 %v6726_v9, %v11704_v24 }
 0x465   : > { %v11749_v49 = vpop.f32.mrb[30].mxu0  ;;  %v6720_v42 = vld [vmem:[%s11789_s12] sm:$0xff]  }
 0x466   : > { %v3195_v39 = vpop.f32.mrb[31].mxu0 }
 0x46e   : > { %v11751_v54 = vpop.f32.mrb[16].mxu1 }
 0x46f   : > { %v3360_v41 = vpop.f32.mrb[17].mxu1 }
 0x470   : > { %v11753_v59 = vpop.f32.mrb[18].mxu1 }
 0x471   : > { %v3363_v53 = vpop.f32.mrb[19].mxu1  ;;  %v11755_v1 = vpop.f32.mrb[32].mxu0 }
 0x472   : > { %v3200_v0 = vpop.f32.mrb[33].mxu0  ;;  %v6725_v53 = vunpack.c.l.bf16 %v6847_v61 }
 0x473   : > { %v11757_v18 = vpop.f32.mrb[34].mxu0 }
 0x474   : > { %v3203_v35 = vpop.f32.mrb[35].mxu0  ;;  %v3143_v45 = vadd.f32 %v6725_v53, %v11696_v62 }
 0x475   : > { %v4483_v35 = vld [vmem:[#allocation3 + $0x60] sm:$0xff] }
 0x476   : > { %v11759_v2 = vpop.f32.mrb[20].mxu1  ;;  %4623 = vrot.lane.b32.xlu0 %v4483_v35, %s7612_s6 }
 0x477   : > { %v3368_v63 = vpop.f32.mrb[21].mxu1 }
 0x478   : > { %v11761_v38 = vpop.f32.mrb[22].mxu1  ;;  %v4484_v63 = vld [vmem:[#allocation3 + $0x68] sm:$0xff] }
 0x479   : > { %v3371_v4 = vpop.f32.mrb[23].mxu1  ;;  %4625 = vrot.lane.b32.xlu1 %v4484_v63, %s7612_s6 }
 0x47a   : > { %v6721_v4 = vunpack.c.l.bf16 %v6720_v42 }
 0x47b   : > { %v11763_v48 = vpop.f32.mrb[36].mxu0 }
 0x47c   : > { %v3208_v13 = vpop.f32.mrb[37].mxu0  ;;  %v3135_v23 = vadd.f32 %v6721_v4, %v11674_v60  ;;  %v6729_v60 = vunpack.c.l.bf16 %v6848_v19 }
 0x47d   : > { %v11767_v51 = vpop.f32.mrb[38].mxu0 }
 0x47e   : > { %v3211_v31 = vpop.f32.mrb[39].mxu0  ;;  %v3151_v9 = vadd.f32 %v6729_v60, %v11710_v27 }
 0x47f   : > { %v6722_v31 = vunpack.c.h.bf16 %v6720_v42 }
 0x481   : > { %v3138_v20 = vadd.f32 %v6722_v31, %v11688_v3 }
 0x482   : > { %v11771_v44 = vpop.f32.mrb[24].mxu1 }
 0x483   : > { %v3376_v50 = vpop.f32.mrb[25].mxu1 }
 0x484   : > { %v11775_v52 = vpop.f32.mrb[26].mxu1  ;;  %v6849_v50 = vld [vmem:[%s11789_s12 + $0x18] sm:$0xff]  }
 0x485   : > { %v3379_v57 = vpop.f32.mrb[27].mxu1  ;;  %v6733_v8 = vunpack.c.l.bf16 %v6849_v50  ;;  %v6734_v24 = vunpack.c.h.bf16 %v6849_v50 }
 0x487   : > { %v11777_v25 = vpop.f32.mrb[40].mxu0  ;;  %v3159_v63 = vadd.f32 %v6733_v8, %v11715_v34 }
 0x488   : > { %v3216_v56 = vpop.f32.mrb[41].mxu0 }
 0x489   : > { %v11781_v6 = vpop.f32.mrb[42].mxu0 }
 0x48a   : > { %v3219_v28 = vpop.f32.mrb[43].mxu0 }
 0x48e   : > { %v11792_v5 = vpop.f32.mrb[28].mxu1 }
 0x48f   : > { %v3384_v39 = vpop.f32.mrb[29].mxu1 }
 0x490   : > { %v11797_v41 = vpop.f32.mrb[30].mxu1 }
 0x491   : > { %v3387_v0 = vpop.f32.mrb[31].mxu1 }
 0x492   : > { %v6730_v0 = vunpack.c.h.bf16 %v6848_v19 }
 0x494   : > { %v11799_v47 = vpop.f32.mrb[44].mxu0 }
 0x495   : > { %v3224_v13 = vpop.f32.mrb[45].mxu0 }
 0x496   : > { %v11803_v14 = vpop.f32.mrb[46].mxu0  ;;  %v6918_v57 = vpop.f32.mrb[32].mxu1  ;;  %v6851_v13 = vld [vmem:[%s11789_s12 + $0x28] sm:$0xff]  }
 0x497   : > { %v3227_v30 = vpop.f32.mrb[47].mxu0  ;;  %v11810_v56 = vadd.f32 %v6918_v57, %v3143_v45  ;;  %v3423_v28 = vpop.f32.mrb[33].mxu1 }
 0x498   : > { %v11813_v43 = vadd.f32 %v3423_v28, %v3135_v23  ;;  %v6919_v58 = vpop.f32.mrb[34].mxu1  ;;  %v3162_v30 = vadd.f32 %v6734_v24, %v11717_v29  ;;  %v6850_v23 = vld [vmem:[%s11789_s12 + $0x20] sm:$0xff]   ;;  %v6742_v24 = vunpack.c.h.bf16 %v6851_v13 }
 0x499   : > { %v11815_v61 = vadd.f32 %v6919_v58, %v3146_v36  ;;  %v3426_v62 = vpop.f32.mrb[35].mxu1  ;;  %v3154_v36 = vadd.f32 %v6730_v0, %v11712_v7  ;;  %v6737_v8 = vunpack.c.l.bf16 %v6850_v23 }
 0x49a   : > { %v11817_v42 = vadd.f32 %v3426_v62, %v3138_v20  ;;  %v6741_v20 = vunpack.c.l.bf16 %v6851_v13 }
 0x49c   : > { %v11819_v39 = vpop.f32.mrb[48].mxu0  ;;  %v3678_v3 = vadd.f32 %v11817_v42, %v11813_v43 }
 0x49d   : > { %v3232_v53 = vpop.f32.mrb[49].mxu0 }
 0x49e   : > { %v11823_v35 = vpop.f32.mrb[50].mxu0  ;;  %v3679_v31 = vadd.f32 %v3678_v3, %v11810_v56  ;;  %v6922_v45 = vpop.f32.mrb[36].mxu1  ;;  %v6738_v53 = vunpack.c.h.bf16 %v6850_v23 }
 0x49f   : > { %v3235_v4 = vpop.f32.mrb[51].mxu0  ;;  %v11831_v50 = vadd.f32 %v6922_v45, %v3159_v63  ;;  %v3439_v57 = vpop.f32.mrb[37].mxu1  ;;  %v3175_v63 = vadd.f32 %v6741_v20, %v11731_v22 }
 0x4a0   : > { %v11834_v19 = vadd.f32 %v3439_v57, %v3151_v9  ;;  %v3680_v28 = vadd.f32 %v3679_v31, %v11815_v61  ;;  %v6923_v34 = vpop.f32.mrb[38].mxu1  ;;  %v3167_v9 = vadd.f32 %v6737_v8, %v11723_v33  ;;  %v6853_v31 = vld [vmem:[%s11789_s12 + $0x38] sm:$0xff]   ;;  %v3178_v57 = vadd.f32 %v6742_v24, %v11733_v26 }
 0x4a1   : > { %v11837_v27 = vadd.f32 %v6923_v34, %v3162_v30  ;;  %v3442_v58 = vpop.f32.mrb[39].mxu1  ;;  %v3170_v23 = vadd.f32 %v6738_v53, %v11725_v46  ;;  %v6749_v20 = vunpack.c.l.bf16 %v6853_v31 }
 0x4a2   : > { %v3681_v29 = vadd.f32 %v3680_v28, %v11834_v19  ;;  %v11840_v62 = vadd.f32 %v3442_v58, %v3154_v36  ;;  %v6852_v36 = vld [vmem:[%s11789_s12 + $0x30] sm:$0xff]  }
 0x4a3   : > { %v6746_v53 = vunpack.c.h.bf16 %v6852_v36 }
 0x4a4   : > { %v11842_v60 = vpop.f32.mrb[52].mxu0  ;;  %v3682_v0 = vadd.f32 %v3681_v29, %v11840_v62  ;;  %v6745_v29 = vunpack.c.l.bf16 %v6852_v36 }
 0x4a5   : > { %v3240_v7 = vpop.f32.mrb[53].mxu0  ;;  %v3186_v36 = vadd.f32 %v6746_v53, %v11741_v11 }
 0x4a6   : > { %v11845_v3 = vpop.f32.mrb[54].mxu0  ;;  %v3683_v45 = vadd.f32 %v3682_v0, %v11831_v50  ;;  %v6926_v30 = vpop.f32.mrb[40].mxu1  ;;  %v6750_v0 = vunpack.c.h.bf16 %v6853_v31 }
 0x4a7   : > { %v3243_v4 = vpop.f32.mrb[55].mxu0  ;;  %v11853_v28 = vadd.f32 %v6926_v30, %v3175_v63  ;;  %v3455_v13 = vpop.f32.mrb[41].mxu1  ;;  %v3183_v30 = vadd.f32 %v6745_v29, %v11739_v12 }
 0x4a8   : > { %v11856_v34 = vadd.f32 %v3455_v13, %v3167_v9  ;;  %v3684_v58 = vadd.f32 %v3683_v45, %v11837_v27  ;;  %v6927_v22 = vpop.f32.mrb[42].mxu1  ;;  %v3191_v9 = vadd.f32 %v6749_v20, %v11747_v21 }
 0x4a9   : > { %v11859_v33 = vadd.f32 %v6927_v22, %v3178_v57  ;;  %v3458_v8 = vpop.f32.mrb[43].mxu1  ;;  %v6855_v57 = vld [vmem:[%s11789_s12 + $0x48] sm:$0xff]   ;;  %v6854_v22 = vld [vmem:[%s11789_s12 + $0x40] sm:$0xff]  }
 0x4aa   : > { %v3685_v26 = vadd.f32 %v3684_v58, %v11856_v34  ;;  %v11862_v24 = vadd.f32 %v3458_v8, %v3170_v23  ;;  %v3194_v23 = vadd.f32 %v6750_v0, %v11749_v49  ;;  %v6757_v20 = vunpack.c.l.bf16 %v6855_v57 }
 0x4ab   : > { %15841 = vst [vmem:[#allocation29_spill] sm:$0xff] %v11859_v33  ;;  %v6754_v53 = vunpack.c.h.bf16 %v6854_v22 }
 0x4ac   : > { %v11864_v7 = vpop.f32.mrb[56].mxu0  ;;  %v3686_v63 = vadd.f32 %v3685_v26, %v11862_v24 }
 0x4ad   : > { %v3248_v46 = vpop.f32.mrb[57].mxu0 }
 0x4ae   : > { %v11867_v4 = vpop.f32.mrb[58].mxu0  ;;  %v3687_v13 = vadd.f32 %v3686_v63, %v11853_v28  ;;  %v6930_v58 = vpop.f32.mrb[44].mxu1  ;;  %v6753_v63 = vunpack.c.l.bf16 %v6854_v22  ;;  %v3202_v22 = vadd.f32 %v6754_v53, %v11757_v18 }
 0x4af   : > { %v3251_v45 = vpop.f32.mrb[59].mxu0  ;;  %v11875_v8 = vadd.f32 %v6930_v58, %v3191_v9  ;;  %v3471_v31 = vpop.f32.mrb[45].mxu1  ;;  %v3207_v58 = vadd.f32 %v6757_v20, %v11763_v48 }
 0x4b0   : > { %v11878_v26 = vadd.f32 %v3471_v31, %v3183_v30  ;;  %v3688_v46 = vadd.f32 %v3687_v13, %v11859_v33  ;;  %v6931_v21 = vpop.f32.mrb[46].mxu1  ;;  %v6758_v45 = vunpack.c.h.bf16 %v6855_v57  ;;  %v3199_v31 = vadd.f32 %v6753_v63, %v11755_v1 }
 0x4b1   : > { %v11881_v12 = vadd.f32 %v6931_v21, %v3194_v23  ;;  %v3474_v29 = vpop.f32.mrb[47].mxu1  ;;  %v6857_v21 = vld [vmem:[%s11789_s12 + $0x58] sm:$0xff]  }
 0x4b2   : > { %15842 = vst [vmem:[#allocation152_spill] sm:$0xff] %v11878_v26  ;;  %v3689_v49 = vadd.f32 %v3688_v46, %v11878_v26  ;;  %v11884_v0 = vadd.f32 %v3474_v29, %v3186_v36  ;;  %v3210_v36 = vadd.f32 %v6758_v45, %v11767_v51  ;;  %v6856_v29 = vld [vmem:[%s11789_s12 + $0x50] sm:$0xff]   ;;  %v6765_v20 = vunpack.c.l.bf16 %v6857_v21 }
 0x4b3   : > { %15843 = vst [vmem:[#allocation153_spill] sm:$0xff] %v11881_v12  ;;  %v6762_v53 = vunpack.c.h.bf16 %v6856_v29 }
 0x4b4   : > { %v3690_v30 = vadd.f32 %v3689_v49, %v11884_v0 }
 0x4b5   : > { %v11886_v9 = vpop.f32.mrb[60].mxu0 }
 0x4b6   : > { %v3256_v11 = vpop.f32.mrb[61].mxu0  ;;  %v3691_v33 = vadd.f32 %v3690_v30, %v11875_v8  ;;  %v6761_v30 = vunpack.c.l.bf16 %v6856_v29  ;;  %v3218_v29 = vadd.f32 %v6762_v53, %v11781_v6 }
 0x4b7   : > { %v11889_v13 = vpop.f32.mrb[62].mxu0 }
 0x4b8   : > { %v3259_v23 = vpop.f32.mrb[63].mxu0  ;;  %v6934_v46 = vpop.f32.mrb[48].mxu1  ;;  %v3692_v11 = vadd.f32 %v3691_v33, %v11881_v12 }
 0x4b9   : > { %v11897_v26 = vadd.f32 %v6934_v46, %v3207_v58  ;;  %v3487_v57 = vpop.f32.mrb[49].mxu1  ;;  %v6766_v23 = vunpack.c.h.bf16 %v6857_v21  ;;  %v3223_v46 = vadd.f32 %v6765_v20, %v11799_v47  ;;  %v4485_v20 = vld [vmem:[#allocation3 + $0x70] sm:$0xff] }
 0x4ba   : > { %v11900_v49 = vadd.f32 %v3487_v57, %v3199_v31  ;;  %v6935_v48 = vpop.f32.mrb[50].mxu1  ;;  %v3215_v57 = vadd.f32 %v6761_v30, %v11777_v25  ;;  %4627 = vrot.lane.b32.xlu0 %v4485_v20, %s7612_s6 }
 0x4bb   : > { %15844 = vst [vmem:[#allocation28_spill] sm:$0xff] %v11897_v26  ;;  %v11903_v1 = vadd.f32 %v6935_v48, %v3210_v36  ;;  %v3490_v63 = vpop.f32.mrb[51].mxu1  ;;  %v6859_v48 = vld [vmem:[%s11789_s12 + $0x68] sm:$0xff]  }
 0x4bc   : > { %15845 = vst [vmem:[#allocation255_spill] sm:$0xff] %v11900_v49  ;;  %v3693_v51 = vadd.f32 %v3692_v11, %v11900_v49  ;;  %v11906_v45 = vadd.f32 %v3490_v63, %v3202_v22  ;;  %v3226_v22 = vadd.f32 %v6766_v23, %v11803_v14  ;;  %v6858_v63 = vld [vmem:[%s11789_s12 + $0x60] sm:$0xff]   ;;  %v6774_v53 = vunpack.c.h.bf16 %v6859_v48 }
 0x4bd   : > { %15846 = vst [vmem:[#allocation27_spill] sm:$0xff] %v11903_v1  ;;  %v6769_v14 = vunpack.c.l.bf16 %v6858_v63 }
 0x4be   : > { %v11908_v58 = vpop.f32.mrb[64].mxu0  ;;  %v3694_v31 = vadd.f32 %v3693_v51, %v11906_v45 }
 0x4bf   : > { %v3264_v18 = vpop.f32.mrb[65].mxu0 }
 0x4c0   : > { %v11911_v33 = vpop.f32.mrb[66].mxu0  ;;  %v3695_v12 = vadd.f32 %v3694_v31, %v11897_v26  ;;  %v6938_v11 = vpop.f32.mrb[52].mxu1 }
 0x4c1   : > { %v3267_v36 = vpop.f32.mrb[67].mxu0  ;;  %v11919_v49 = vadd.f32 %v6938_v11, %v3223_v46  ;;  %v3503_v21 = vpop.f32.mrb[53].mxu1 }
 0x4c2   : > { %v11922_v51 = vadd.f32 %v3503_v21, %v3215_v57  ;;  %v3696_v18 = vadd.f32 %v3695_v12, %v11903_v1  ;;  %v6939_v47 = vpop.f32.mrb[54].mxu1  ;;  %v6773_v36 = vunpack.c.l.bf16 %v6859_v48  ;;  %v6770_v57 = vunpack.c.h.bf16 %v6858_v63  ;;  %v6861_v1 = vld [vmem:[%s11789_s12 + $0x78] sm:$0xff]  }
 0x4c3   : > { %15847 = vst [vmem:[#allocation30_spill] sm:$0xff] %v11919_v49  ;;  %v11925_v25 = vadd.f32 %v6939_v47, %v3226_v22  ;;  %v3506_v30 = vpop.f32.mrb[55].mxu1  ;;  %v3231_v47 = vadd.f32 %v6769_v14, %v11819_v39 }
 0x4c4   : > { %v3697_v23 = vadd.f32 %v3696_v18, %v11922_v51  ;;  %v11929_v31 = vadd.f32 %v3506_v30, %v3218_v29  ;;  %v3239_v21 = vadd.f32 %v6773_v36, %v11842_v60  ;;  %v3242_v18 = vadd.f32 %v6774_v53, %v11845_v3  ;;  %v6860_v29 = vld [vmem:[%s11789_s12 + $0x70] sm:$0xff]  }
 0x4c5   : > { %15848 = vst [vmem:[#allocation157_spill] sm:$0xff] %v11925_v25  ;;  %v3234_v63 = vadd.f32 %v6770_v57, %v11823_v35  ;;  %v6781_v36 = vunpack.c.l.bf16 %v6861_v1  ;;  %v6782_v53 = vunpack.c.h.bf16 %v6861_v1  ;;  %v6778_v35 = vunpack.c.h.bf16 %v6860_v29 }
 0x4c6   : > { %v3270_v6 = vpop.f32.mrb[68].mxu0  ;;  %v3698_v12 = vadd.f32 %v3697_v23, %v11929_v31 }
 0x4c7   : > { %v3272_v46 = vpop.f32.mrb[69].mxu0 }
 0x4c8   : > { %v3273_v11 = vpop.f32.mrb[70].mxu0  ;;  %v3699_v20 = vadd.f32 %v3698_v12, %v11919_v49  ;;  %v6777_v12 = vunpack.c.l.bf16 %v6860_v29  ;;  %v6864_v49 = vld [vmem:[%s11789_s12 + $0x90] sm:$0xff]  }
 0x4c9   : > { %v3275_v22 = vpop.f32.mrb[71].mxu0  ;;  %v6942_v26 = vpop.f32.mrb[56].mxu1 }
 0x4ca   : > { %v11938_v30 = vadd.f32 %v6942_v26, %v3239_v21  ;;  %v3519_v48 = vpop.f32.mrb[57].mxu1  ;;  %v3700_v23 = vadd.f32 %v3699_v20, %v11925_v25  ;;  %v3255_v20 = vadd.f32 %v6781_v36, %v11886_v9 }
 0x4cb   : > { %v11941_v46 = vadd.f32 %v3519_v48, %v3231_v47  ;;  %v6943_v60 = vpop.f32.mrb[58].mxu1 }
 0x4cc   : > { %15849 = vst [vmem:[#allocation156_spill] sm:$0xff] %v11938_v30  ;;  %v11944_v39 = vadd.f32 %v6943_v60, %v3242_v18  ;;  %v3522_v14 = vpop.f32.mrb[59].mxu1  ;;  %v3247_v18 = vadd.f32 %v6777_v12, %v11864_v7  ;;  %v6863_v60 = vld [vmem:[%s11789_s12 + $0x88] sm:$0xff]  }
 0x4cd   : > { %15850 = vst [vmem:[#allocation32_spill] sm:$0xff] %v11941_v46  ;;  %v3701_v22 = vadd.f32 %v3700_v23, %v11941_v46  ;;  %v11947_v3 = vadd.f32 %v3522_v14, %v3234_v63  ;;  %v4486_v46 = vld [vmem:[#allocation3 + $0x78] sm:$0xff]  ;;  %v3258_v63 = vadd.f32 %v6782_v53, %v11889_v13  ;;  %v6862_v14 = vld [vmem:[%s11789_s12 + $0x80] sm:$0xff]   ;;  %v6789_v36 = vunpack.c.l.bf16 %v6863_v60 }
 0x4ce   : > { %15851 = vst [vmem:[#allocation35_spill] sm:$0xff] %v11944_v39  ;;  %4629 = vrot.lane.b32.xlu1 %v4486_v46, %s7612_s6  ;;  %v6790_v46 = vunpack.c.h.bf16 %v6863_v60 }
 0x4cf   : > { %15852 = vst [vmem:[#allocation322_spill] sm:$0xff] %v11947_v3  ;;  %v3278_v26 = vpop.f32.mrb[72].mxu0  ;;  %v3702_v57 = vadd.f32 %v3701_v22, %v11947_v3  ;;  %v3250_v22 = vadd.f32 %v6778_v35, %v11867_v4  ;;  %v6786_v4 = vunpack.c.h.bf16 %v6862_v14 }
 0x4d0   : > { %v3280_v21 = vpop.f32.mrb[73].mxu0  ;;  %v3274_v3 = vadd.f32 %v6790_v46, %v3273_v11 }
 0x4d1   : > { %v11950_v47 = vpop.f32.mrb[74].mxu0  ;;  %v3703_v25 = vadd.f32 %v3702_v57, %v11938_v30  ;;  %v6946_v23 = vpop.f32.mrb[60].mxu1  ;;  %v3266_v60 = vadd.f32 %v6786_v4, %v11911_v33  ;;  %v6794_v33 = vunpack.c.h.bf16 %v6864_v49 }
 0x4d2   : > { %v3283_v48 = vpop.f32.mrb[75].mxu0  ;;  %v11958_v1 = vadd.f32 %v6946_v23, %v3255_v20  ;;  %v3535_v29 = vpop.f32.mrb[61].mxu1 }
 0x4d3   : > { %v11962_v21 = vadd.f32 %v3535_v29, %v3247_v18  ;;  %v3704_v9 = vadd.f32 %v3703_v25, %v11944_v39  ;;  %v6947_v7 = vpop.f32.mrb[62].mxu1  ;;  %v6785_v48 = vunpack.c.l.bf16 %v6862_v14  ;;  %v3271_v25 = vadd.f32 %v6789_v36, %v3270_v6 }
 0x4d4   : > { %15853 = vst [vmem:[#allocation33_spill] sm:$0xff] %v11958_v1  ;;  %v11965_v12 = vadd.f32 %v6947_v7, %v3258_v63  ;;  %v3538_v57 = vpop.f32.mrb[63].mxu1  ;;  %v6865_v7 = vld [vmem:[%s11789_s12 + $0x98] sm:$0xff]  }
 0x4d5   : > { %v3705_v13 = vadd.f32 %v3704_v9, %v11962_v21  ;;  %v11968_v53 = vadd.f32 %v3538_v57, %v3250_v22  ;;  %v3263_v39 = vadd.f32 %v6785_v48, %v11908_v58  ;;  %v6797_v6 = vunpack.c.l.bf16 %v6865_v7 }
 0x4d6   : > { %15854 = vst [vmem:[#allocation34_spill] sm:$0xff] %v11965_v12  ;;  %v6793_v48 = vunpack.c.l.bf16 %v6864_v49 }
 0x4d7   : > { %15855 = vst [vmem:[#allocation161_spill] sm:$0xff] %v11968_v53  ;;  %v3706_v35 = vadd.f32 %v3705_v13, %v11968_v53 }
 0x4d8   : > { %v3286_v20 = vpop.f32.mrb[76].mxu0 }
 0x4d9   : > { %v3288_v23 = vpop.f32.mrb[77].mxu0  ;;  %v3707_v63 = vadd.f32 %v3706_v35, %v11958_v1  ;;  %v6866_v1 = vld [vmem:[%s11789_s12 + $0xa0] sm:$0xff]  }
 0x4da   : > { %v3289_v18 = vpop.f32.mrb[78].mxu0  ;;  %v6950_v30 = vpop.f32.mrb[64].mxu1  ;;  %v6798_v23 = vunpack.c.h.bf16 %v6865_v7 }
 0x4db   : > { %v3291_v29 = vpop.f32.mrb[79].mxu0  ;;  %v11975_v9 = vadd.f32 %v6950_v30, %v3271_v25  ;;  %v3551_v22 = vpop.f32.mrb[65].mxu1  ;;  %v3708_v14 = vadd.f32 %v3707_v63, %v11965_v12  ;;  %v3287_v25 = vadd.f32 %v6797_v6, %v3286_v20  ;;  %v3279_v63 = vadd.f32 %v6793_v48, %v3278_v26 }
 0x4dc   : > { %v11978_v57 = vadd.f32 %v3551_v22, %v3263_v39  ;;  %v6951_v13 = vpop.f32.mrb[66].mxu1  ;;  %v3290_v12 = vadd.f32 %v6798_v23, %v3289_v18  ;;  %v6801_v6 = vunpack.c.l.bf16 %v6866_v1 }
 0x4dd   : > { %v11981_v36 = vadd.f32 %v6951_v13, %v3274_v3  ;;  %v3554_v58 = vpop.f32.mrb[67].mxu1  ;;  %v6867_v13 = vld [vmem:[%s11789_s12 + $0xa8] sm:$0xff]  }
 0x4de   : > { %v3709_v11 = vadd.f32 %v3708_v14, %v11978_v57  ;;  %v11984_v46 = vadd.f32 %v3554_v58, %v3266_v60  ;;  %v3282_v14 = vadd.f32 %v6794_v33, %v11950_v47  ;;  %v6805_v26 = vunpack.c.l.bf16 %v6867_v13 }
 0x4e0   : > { %v3710_v39 = vadd.f32 %v3709_v11, %v11984_v46 }
 0x4e1   : > { %v3294_v30 = vpop.f32.mrb[80].mxu0 }
 0x4e2   : > { %v3296_v35 = vpop.f32.mrb[81].mxu0  ;;  %v3711_v3 = vadd.f32 %v3710_v39, %v11975_v9  ;;  %v6806_v39 = vunpack.c.h.bf16 %v6867_v13 }
 0x4e3   : > { %v3297_v4 = vpop.f32.mrb[82].mxu0 }
 0x4e4   : > { %v3299_v29 = vpop.f32.mrb[83].mxu0  ;;  %v6954_v22 = vpop.f32.mrb[68].mxu1  ;;  %v3712_v49 = vadd.f32 %v3711_v3, %v11981_v36  ;;  %v4487_v3 = vld [vmem:[#allocation3 + $0x80] sm:$0xff] }
 0x4e5   : > { %v11990_v53 = vadd.f32 %v6954_v22, %v3287_v25  ;;  %v3567_v60 = vpop.f32.mrb[69].mxu1  ;;  %v6802_v25 = vunpack.c.h.bf16 %v6866_v1  ;;  %4631 = vrot.lane.b32.xlu0 %v4487_v3, %s7612_s6 }
 0x4e6   : > { %v11993_v7 = vadd.f32 %v3567_v60, %v3279_v63  ;;  %v6955_v58 = vpop.f32.mrb[70].mxu1 }
 0x4e7   : > { %15856 = vst [vmem:[#allocation160_spill] sm:$0xff] %v11990_v53  ;;  %v11996_v11 = vadd.f32 %v6955_v58, %v3290_v12  ;;  %v3570_v20 = vpop.f32.mrb[71].mxu1  ;;  %v3295_v12 = vadd.f32 %v6801_v6, %v3294_v30  ;;  %v3298_v13 = vadd.f32 %v6802_v25, %v3297_v4 }
 0x4e8   : > { %v3713_v48 = vadd.f32 %v3712_v49, %v11993_v7  ;;  %v11999_v35 = vadd.f32 %v3570_v20, %v3282_v14  ;;  %v6868_v20 = vld [vmem:[%s11789_s12 + $0xb0] sm:$0xff]  }
 0x4e9   : > { %15857 = vst [vmem:[#allocation261_spill] sm:$0xff] %v11996_v11  ;;  %v3302_v18 = vpop.f32.mrb[84].mxu0  ;;  %v6810_v4 = vunpack.c.h.bf16 %v6868_v20 }
 0x4ea   : > { %15858 = vst [vmem:[#allocation262_spill] sm:$0xff] %v11999_v35  ;;  %v3304_v23 = vpop.f32.mrb[85].mxu0  ;;  %v3714_v47 = vadd.f32 %v3713_v48, %v11999_v35  ;;  %v3303_v29 = vadd.f32 %v6805_v26, %v3302_v18 }
 0x4eb   : > { %v3305_v33 = vpop.f32.mrb[86].mxu0 }
 0x4ec   : > { %v3307_v63 = vpop.f32.mrb[87].mxu0  ;;  %v3715_v22 = vadd.f32 %v3714_v47, %v11990_v53  ;;  %v6958_v60 = vpop.f32.mrb[72].mxu1  ;;  %v3306_v49 = vadd.f32 %v6806_v39, %v3305_v33  ;;  %v6809_v39 = vunpack.c.l.bf16 %v6868_v20 }
 0x4ed   : > { %v12004_v14 = vadd.f32 %v6958_v60, %v3303_v29  ;;  %v3583_v58 = vpop.f32.mrb[73].mxu1  ;;  %v6869_v63 = vld [vmem:[%s11789_s12 + $0xb8] sm:$0xff]  }
 0x4ee   : > { %v12007_v1 = vadd.f32 %v3583_v58, %v3295_v12  ;;  %v3716_v26 = vadd.f32 %v3715_v22, %v11996_v11  ;;  %v6959_v48 = vpop.f32.mrb[74].mxu1  ;;  %v6871_v12 = vld [vmem:[%s11789_s12 + $0xc8] sm:$0xff]   ;;  %v6870_v58 = vld [vmem:[%s11789_s12 + $0xc0] sm:$0xff]   ;;  %v6813_v11 = vunpack.c.l.bf16 %v6869_v63  ;;  %v6814_v20 = vunpack.c.h.bf16 %v6869_v63 }
 0x4ef   : > { %15859 = vst [vmem:[#allocation38_spill] sm:$0xff] %v12004_v14  ;;  %v12010_v18 = vadd.f32 %v6959_v48, %v3306_v49  ;;  %v3586_v30 = vpop.f32.mrb[75].mxu1 }
 0x4f0   : > { %15860 = vst [vmem:[#allocation39_spill] sm:$0xff] %v12007_v1  ;;  %v3717_v6 = vadd.f32 %v3716_v26, %v12007_v1  ;;  %v12013_v23 = vadd.f32 %v3586_v30, %v3298_v13  ;;  %v6821_v1 = vunpack.c.l.bf16 %v6871_v12 }
 0x4f1   : > { %15861 = vst [vmem:[#allocation42_spill] sm:$0xff] %v12010_v18  ;;  %v3310_v47 = vpop.f32.mrb[88].mxu0 }
 0x4f2   : > { %15862 = vst [vmem:[#allocation43_spill] sm:$0xff] %v12013_v23  ;;  %v3312_v33 = vpop.f32.mrb[89].mxu0  ;;  %v3718_v29 = vadd.f32 %v3717_v6, %v12013_v23  ;;  %v3311_v60 = vadd.f32 %v6809_v39, %v3310_v47  ;;  %v6817_v23 = vunpack.c.l.bf16 %v6870_v58  ;;  %v6822_v47 = vunpack.c.h.bf16 %v6871_v12 }
 0x4f3   : > { %v3313_v25 = vpop.f32.mrb[90].mxu0 }
 0x4f4   : > { %v3315_v3 = vpop.f32.mrb[91].mxu0  ;;  %v3719_v22 = vadd.f32 %v3718_v29, %v12004_v14  ;;  %v6962_v49 = vpop.f32.mrb[76].mxu1  ;;  %v3314_v26 = vadd.f32 %v6810_v4, %v3313_v25  ;;  %v6818_v4 = vunpack.c.h.bf16 %v6870_v58  ;;  %v3327_v35 = vadd.f32 %v6817_v23, %v11719_v16 }
 0x4f5   : > { %v3599_v48 = vpop.f32.mrb[77].mxu1 }
 0x4f6   : > { %v12020_v13 = vadd.f32 %v3599_v48, %v3311_v60  ;;  %v3720_v30 = vadd.f32 %v3719_v22, %v12010_v18  ;;  %v6963_v33 = vpop.f32.mrb[78].mxu1  ;;  %v3335_v22 = vadd.f32 %v6821_v1, %v11727_v10  ;;  %v3330_v10 = vadd.f32 %v6818_v4, %v11721_v37  ;;  %v6875_v4 = vld [vmem:[%s11789_s12 + $0xe8] sm:$0xff]  }
 0x4f7   : > { %v3602_v6 = vpop.f32.mrb[79].mxu1 }
 0x4f8   : > { %15863 = vst [vmem:[#allocation46_spill] sm:$0xff] %v12020_v13  ;;  %v3721_v3 = vadd.f32 %v3720_v30, %v12020_v13  ;;  %v12024_v53 = vadd.f32 %v3602_v6, %v3314_v26  ;;  %v6873_v30 = vld [vmem:[%s11789_s12 + $0xd8] sm:$0xff]   ;;  %v3338_v6 = vadd.f32 %v6822_v47, %v11729_v40  ;;  %v6872_v13 = vld [vmem:[%s11789_s12 + $0xd0] sm:$0xff]  }
 0x4f9   : > { %v3318_v39 = vpop.f32.mrb[92].mxu0  ;;  %v6829_v16 = vunpack.c.l.bf16 %v6873_v30  ;;  %v6826_v47 = vunpack.c.h.bf16 %v6872_v13 }
 0x4fa   : > { %v3319_v29 = vadd.f32 %v6813_v11, %v3318_v39  ;;  %v3320_v14 = vpop.f32.mrb[93].mxu0  ;;  %v3722_v25 = vadd.f32 %v3721_v3, %v12024_v53 }
 0x4fb   : > { %v3321_v60 = vpop.f32.mrb[94].mxu0 }
 0x4fc   : > { %v12028_v48 = vadd.f32 %v6962_v49, %v3319_v29  ;;  %v3322_v63 = vadd.f32 %v6814_v20, %v3321_v60  ;;  %v3323_v18 = vpop.f32.mrb[95].mxu0  ;;  %v6966_v26 = vpop.f32.mrb[80].mxu1  ;;  %v6825_v20 = vunpack.c.l.bf16 %v6872_v13  ;;  %v3351_v29 = vadd.f32 %v6829_v16, %v11743_v15 }
 0x4fd   : > { %v12037_v12 = vadd.f32 %v6966_v26, %v3335_v22  ;;  %v3615_v58 = vpop.f32.mrb[81].mxu1  ;;  %v6874_v22 = vld [vmem:[%s11789_s12 + $0xe0] sm:$0xff]   ;;  %v6838_v16 = vunpack.c.h.bf16 %v6875_v4 }
 0x4fe   : > { %v3723_v11 = vadd.f32 %v3722_v25, %v12028_v48  ;;  %v12035_v14 = vadd.f32 %v6963_v33, %v3322_v63  ;;  %v12040_v1 = vadd.f32 %v3615_v58, %v3327_v35  ;;  %v6967_v18 = vpop.f32.mrb[82].mxu1  ;;  %v6830_v33 = vunpack.c.h.bf16 %v6873_v30 }
 0x4ff   : > { %v12043_v49 = vadd.f32 %v6967_v18, %v3338_v6  ;;  %v3618_v40 = vpop.f32.mrb[83].mxu1  ;;  %v3343_v35 = vadd.f32 %v6825_v20, %v11735_v17  ;;  %v3346_v30 = vadd.f32 %v6826_v47, %v11737_v32 }
 0x500   : > { %v3724_v23 = vadd.f32 %v3723_v11, %v12035_v14  ;;  %v12045_v3 = vadd.f32 %v3618_v40, %v3330_v10  ;;  %v3354_v60 = vadd.f32 %v6830_v33, %v11745_v55  ;;  %v6837_v11 = vunpack.c.l.bf16 %v6875_v4 }
 0x501   : > { %v6833_v55 = vunpack.c.l.bf16 %v6874_v22  ;;  %v6834_v40 = vunpack.c.h.bf16 %v6874_v22 }
 0x502   : > { %v3725_v39 = vadd.f32 %v3724_v23, %v12040_v1  ;;  %v3367_v20 = vadd.f32 %v6837_v11, %v11759_v2 }
 0x503   : > { %v3359_v33 = vadd.f32 %v6833_v55, %v11751_v54  ;;  %v3362_v4 = vadd.f32 %v6834_v40, %v11753_v59 }
 0x504   : > { %v3726_v37 = vadd.f32 %v3725_v39, %v12045_v3  ;;  %v6970_v25 = vpop.f32.mrb[84].mxu1  ;;  %v6877_v39 = vld [vmem:[%s11789_s12 + $0xf8] sm:$0xff]  }
 0x505   : > { %v12055_v26 = vadd.f32 %v6970_v25, %v3351_v29  ;;  %v3631_v6 = vpop.f32.mrb[85].mxu1  ;;  %v3370_v29 = vadd.f32 %v6838_v16, %v11761_v38  ;;  %v6845_v22 = vunpack.c.l.bf16 %v6877_v39 }
 0x506   : > { %v3727_v63 = vadd.f32 %v3726_v37, %v12037_v12  ;;  %v12058_v13 = vadd.f32 %v3631_v6, %v3343_v35  ;;  %v6971_v15 = vpop.f32.mrb[86].mxu1  ;;  %v6876_v37 = vld [vmem:[%s11789_s12 + $0xf0] sm:$0xff]  }
 0x507   : > { %v12061_v58 = vadd.f32 %v6971_v15, %v3354_v60  ;;  %v3634_v10 = vpop.f32.mrb[87].mxu1  ;;  %v6841_v11 = vunpack.c.l.bf16 %v6876_v37  ;;  %v6842_v55 = vunpack.c.h.bf16 %v6876_v37  ;;  %v3383_v38 = vadd.f32 %v6845_v22, %v11792_v5  ;;  %v4489_v22 = vld [vmem:[#allocation3 + $0x90] sm:$0xff] }
 0x508   : > { %v3728_v17 = vadd.f32 %v3727_v63, %v12043_v49  ;;  %v12063_v18 = vadd.f32 %v3634_v10, %v3346_v30  ;;  %4635 = vrot.lane.b32.xlu0 %v4489_v22, %s7612_s6 }
 0x50a   : > { %v3729_v23 = vadd.f32 %v3728_v17, %v12058_v13  ;;  %v6846_v17 = vunpack.c.h.bf16 %v6877_v39 }
 0x50c   : > { %v3730_v32 = vadd.f32 %v3729_v23, %v12063_v18  ;;  %v6974_v47 = vpop.f32.mrb[88].mxu1  ;;  %v3375_v23 = vadd.f32 %v6841_v11, %v11771_v44  ;;  %v3386_v59 = vadd.f32 %v6846_v17, %v11797_v41 }
 0x50d   : > { %v3656_v25 = vadd.f32 %v6974_v47, %v3367_v20  ;;  %v3647_v60 = vpop.f32.mrb[89].mxu1  ;;  %v4488_v47 = vld [vmem:[#allocation3 + $0x88] sm:$0xff] }
 0x50e   : > { %v3731_v35 = vadd.f32 %v3730_v32, %v12055_v26  ;;  %v3648_v63 = vadd.f32 %v3647_v60, %v3359_v33  ;;  %v6975_v6 = vpop.f32.mrb[90].mxu1  ;;  %4633 = vrot.lane.b32.xlu1 %v4488_v47, %s7612_s6 }
 0x50f   : > { %v3659_v30 = vadd.f32 %v6975_v6, %v3370_v29  ;;  %v3650_v15 = vpop.f32.mrb[91].mxu1  ;;  %v3378_v29 = vadd.f32 %v6842_v55, %v11775_v52 }
 0x510   : > { %v3732_v2 = vadd.f32 %v3731_v35, %v12061_v58  ;;  %v3651_v54 = vadd.f32 %v3650_v15, %v3362_v4 }
 0x512   : > { %v3733_v10 = vadd.f32 %v3732_v2, %v3648_v63 }
 0x514   : > { %v3734_v16 = vadd.f32 %v3733_v10, %v3651_v54  ;;  %v6978_v20 = vpop.f32.mrb[92].mxu1 }
 0x515   : > { %v3672_v32 = vadd.f32 %v6978_v20, %v3383_v38  ;;  %v3663_v33 = vpop.f32.mrb[93].mxu1 }
 0x516   : > { %v3735_v40 = vadd.f32 %v3734_v16, %v3656_v25  ;;  %v3664_v35 = vadd.f32 %v3663_v33, %v3375_v23  ;;  %v6979_v60 = vpop.f32.mrb[94].mxu1 }
 0x517   : > { %v3675_v37 = vadd.f32 %v6979_v60, %v3386_v59  ;;  %v3666_v4 = vpop.f32.mrb[95].mxu1 }
 0x518   : > { %v3736_v39 = vadd.f32 %v3735_v40, %v3659_v30  ;;  %v3667_v5 = vadd.f32 %v3666_v4, %v3378_v29 }
 0x51a   : > { %v3737_v6 = vadd.f32 %v3736_v39, %v3664_v35  ;;  %v4491_v39 = vld [vmem:[#allocation3 + $0xa0] sm:$0xff] }
 0x51b   : > { %4639 = vrot.lane.b32.xlu0 %v4491_v39, %s7612_s6 }
 0x51c   : > { %v3738_v44 = vadd.f32 %v3737_v6, %v3667_v5 }
 0x51e   : > { %v3739_v41 = vadd.f32 %v3738_v44, %v3672_v32  ;;  %v4493_v44 = vld [vmem:[#allocation3 + $0xb0] sm:$0xff] }
 0x51f   : > { %4643 = vrot.lane.b32.xlu0 %v4493_v44, %s7612_s6  ;;  %v4499_v44 = vld [vmem:[#allocation3 + $0xe0] sm:$0xff] }
 0x520   : > { %v3740_v2 = vadd.f32 %v3739_v41, %v3675_v37  ;;  %v4494_v41 = vld [vmem:[#allocation3 + $0xb8] sm:$0xff] }
 0x522   : > { %v3741_v15 = vrot.slane %v3740_v2, 4 }
 0x524   : > { %v3742_v11 = vadd.f32 %v3741_v15, %v3740_v2 }
 0x526   : > { %v3743_v17 = vrot.slane %v3742_v11, 2 }
 0x528   : > { %v3744_v10 = vadd.f32 %v3743_v17, %v3742_v11 }
 0x52a   : > { %v3745_v52 = vrot.slane %v3744_v10, 1 }
 0x52c   : > { %v3746_v55 = vadd.f32 %v3745_v52, %v3744_v10  ;;  %v4495_v10 = vld [vmem:[#allocation3 + $0xc0] sm:$0xff]  ;;  %v4496_v52 = vld [vmem:[#allocation3 + $0xc8] sm:$0xff] }
 0x52d   : > { %4647 = vrot.lane.b32.xlu0 %v4495_v10, %s7612_s6 }
 0x52e   : > { %v12081_v38 = vmul.f32 0.001953125, %v3746_v55 }
 0x530   : > { %v12085_v16 = vsub.f32 %v12024_v53, %v12081_v38  ;;  %v12089_v23 = vsub.f32 %v12028_v48, %v12081_v38  ;;  %v12093_v20 = vsub.f32 %v12035_v14, %v12081_v38  ;;  %v12097_v59 = vsub.f32 %v12040_v1, %v12081_v38 }
 0x531   : > { %v12101_v40 = vsub.f32 %v12045_v3, %v12081_v38  ;;  %v12105_v53 = vsub.f32 %v12037_v12, %v12081_v38  ;;  %v12109_v48 = vsub.f32 %v12043_v49, %v12081_v38  ;;  %v12113_v14 = vsub.f32 %v12058_v13, %v12081_v38 }
 0x532   : > { %15864 = vst [vmem:[#allocation47_spill] sm:$0xff] %v12085_v16  ;;  %15865 = vst [vmem:[#allocation13_spill] sm:$0xff] %v12097_v59  ;;  %v12117_v1 = vsub.f32 %v12063_v18, %v12081_v38  ;;  %v12121_v3 = vsub.f32 %v12055_v26, %v12081_v38  ;;  %v12125_v12 = vsub.f32 %v12061_v58, %v12081_v38 }
 0x533   : > { %v12128_v33 = vsub.f32 %v3648_v63, %v12081_v38  ;;  %v12131_v49 = vsub.f32 %v3651_v54, %v12081_v38  ;;  %v12134_v13 = vsub.f32 %v3656_v25, %v12081_v38  ;;  %v12137_v18 = vsub.f32 %v3659_v30, %v12081_v38 }
 0x534   : > { %v12140_v47 = vsub.f32 %v3664_v35, %v12081_v38  ;;  %v12143_v26 = vsub.f32 %v3667_v5, %v12081_v38  ;;  %v12146_v58 = vsub.f32 %v3672_v32, %v12081_v38  ;;  %v12149_v63 = vsub.f32 %v3675_v37, %v12081_v38  ;;  %v4490_v35 = vld [vmem:[#allocation3 + $0x98] sm:$0xff]  ;;  %v4492_v37 = vld [vmem:[#allocation3 + $0xa8] sm:$0xff] }
 0x535   : > { %v12153_v54 = vsub.f32 %v11813_v43, %v12081_v38  ;;  %v12157_v25 = vsub.f32 %v11817_v42, %v12081_v38  ;;  %v12161_v30 = vsub.f32 %v11810_v56, %v12081_v38  ;;  %4637 = vrot.lane.b32.xlu1 %v4490_v35, %s7612_s6  ;;  %v12170_v43 = vsub.f32 %v11815_v61, %v12081_v38 }
 0x536   : > { %15866 = vst [vmem:[#allocation14_spill] sm:$0xff] %v12140_v47  ;;  %15867 = vst [vmem:[#allocation264_spill] sm:$0xff] %v12143_v26  ;;  %v12174_v42 = vsub.f32 %v11834_v19, %v12081_v38  ;;  %v12182_v4 = vsub.f32 %v11840_v62, %v12081_v38  ;;  %v12188_v19 = vsub.f32 %v11831_v50, %v12081_v38 }
 0x537   : > { %15868 = vst [vmem:[#allocation50_spill] sm:$0xff] %v12146_v58  ;;  %v3812_v29 = vmul.f32 %v12153_v54, %v12153_v54  ;;  %v3813_v32 = vmul.f32 %v12157_v25, %v12157_v25  ;;  %v3814_v56 = vmul.f32 %v12161_v30, %v12161_v30  ;;  %v3815_v61 = vmul.f32 %v12170_v43, %v12170_v43 }
 0x538   : > { %v3816_v6 = vmul.f32 %v12174_v42, %v12174_v42  ;;  %v12196_v62 = vsub.f32 %v11837_v27, %v12081_v38  ;;  %v3817_v2 = vmul.f32 %v12182_v4, %v12182_v4  ;;  %v12202_v50 = vsub.f32 %v11856_v34, %v12081_v38 }
 0x539   : > { %v3876_v60 = vadd.f32 %v3813_v32, %v3812_v29  ;;  %4641 = vrot.lane.b32.xlu1 %v4492_v37, %s7612_s6  ;;  %v3818_v11 = vmul.f32 %v12188_v19, %v12188_v19  ;;  %v12210_v27 = vsub.f32 %v11862_v24, %v12081_v38  ;;  %v12216_v34 = vsub.f32 %v11853_v28, %v12081_v38  ;;  %v15869_v24 = vld [vmem:[#allocation29_spill] sm:$0xff]  ;;  %v15870_v28 = vld [vmem:[#allocation152_spill] sm:$0xff] }
 0x53a   : > { %v3819_v55 = vmul.f32 %v12196_v62, %v12196_v62  ;;  %v3820_v32 = vmul.f32 %v12202_v50, %v12202_v50  ;;  %v12224_v39 = vsub.f32 %v15869_v24, %v12081_v38 }
 0x53b   : > { %v3877_v5 = vadd.f32 %v3876_v60, %v3814_v56  ;;  %v4497_v56 = vld [vmem:[#allocation3 + $0xd0] sm:$0xff]  ;;  %v4498_v60 = vld [vmem:[#allocation3 + $0xd8] sm:$0xff]  ;;  %v3821_v37 = vmul.f32 %v12210_v27, %v12210_v27 }
 0x53c   : > { %4651 = vrot.lane.b32.xlu0 %v4497_v56, %s7612_s6 }
 0x53d   : > { %v3878_v22 = vadd.f32 %v3877_v5, %v3815_v61  ;;  %4645 = vrot.lane.b32.xlu1 %v4494_v41, %s7612_s6  ;;  %v12230_v5 = vsub.f32 %v15870_v28, %v12081_v38  ;;  %v4500_v41 = vld [vmem:[#allocation3 + $0xe8] sm:$0xff] }
 0x53e   : > { %v4504_v28 = vld [vmem:[#allocation3 + $0x108] sm:$0xff] }
 0x53f   : > { %v3879_v15 = vadd.f32 %v3878_v22, %v3816_v6  ;;  %v3822_v6 = vmul.f32 %v12216_v34, %v12216_v34  ;;  %v3824_v10 = vmul.f32 %v12230_v5, %v12230_v5 }
 0x540   : > { %4655 = vrot.lane.b32.xlu0 %v4499_v44, %s7612_s6 }
 0x541   : > { %v3880_v17 = vadd.f32 %v3879_v15, %v3817_v2  ;;  %4649 = vrot.lane.b32.xlu1 %v4496_v52, %s7612_s6  ;;  %v12238_v2 = vsub.f32 %v11884_v0, %v12081_v38  ;;  %v3823_v15 = vmul.f32 %v12224_v39, %v12224_v39  ;;  %v15871_v0 = vld [vmem:[#allocation153_spill] sm:$0xff] }
 0x543   : > { %v3881_v29 = vadd.f32 %v3880_v17, %v3818_v11  ;;  %v12244_v17 = vsub.f32 %v11875_v8, %v12081_v38  ;;  %v15872_v8 = vld [vmem:[#allocation255_spill] sm:$0xff] }
 0x545   : > { %v3882_v35 = vadd.f32 %v3881_v29, %v3819_v55  ;;  %4653 = vrot.lane.b32.xlu1 %v4498_v60, %s7612_s6  ;;  %v4501_v55 = vld [vmem:[#allocation3 + $0xf0] sm:$0xff]  ;;  %v4502_v29 = vld [vmem:[#allocation3 + $0xf8] sm:$0xff]  ;;  %v12258_v60 = vsub.f32 %v15872_v8, %v12081_v38  ;;  %v3826_v24 = vmul.f32 %v12244_v17, %v12244_v17 }
 0x546   : > { %4659 = vrot.lane.b32.xlu0 %v4501_v55, %s7612_s6  ;;  %v4506_v55 = vld [vmem:[#allocation3 + $0x118] sm:$0xff] }
 0x547   : > { %v3883_v61 = vadd.f32 %v3882_v35, %v3820_v32  ;;  %v12252_v32 = vsub.f32 %v15871_v0, %v12081_v38  ;;  %v3825_v35 = vmul.f32 %v12238_v2, %v12238_v2 }
 0x549   : > { %v3884_v22 = vadd.f32 %v3883_v61, %v3821_v37  ;;  %4657 = vrot.lane.b32.xlu1 %v4500_v41, %s7612_s6  ;;  %v4503_v61 = vld [vmem:[#allocation3 + $0x100] sm:$0xff] }
 0x54a   : > { %4663 = vrot.lane.b32.xlu0 %v4503_v61, %s7612_s6  ;;  %v15873_v41 = vld [vmem:[#allocation28_spill] sm:$0xff]  ;;  %v4508_v61 = vld [vmem:[#allocation3 + $0x128] sm:$0xff] }
 0x54b   : > { %v3885_v11 = vadd.f32 %v3884_v22, %v3822_v6  ;;  %v12266_v6 = vsub.f32 %v11906_v45, %v12081_v38  ;;  %v3827_v22 = vmul.f32 %v12252_v32, %v12252_v32  ;;  %v15874_v45 = vld [vmem:[#allocation27_spill] sm:$0xff] }
 0x54d   : > { %v3886_v52 = vadd.f32 %v3885_v11, %v3823_v15  ;;  %4661 = vrot.lane.b32.xlu1 %v4502_v29, %s7612_s6  ;;  %v12272_v15 = vsub.f32 %v15873_v41, %v12081_v38  ;;  %v3828_v11 = vmul.f32 %v12258_v60, %v12258_v60  ;;  %v12280_v29 = vsub.f32 %v15874_v45, %v12081_v38 }
 0x54e   : > { %v3829_v0 = vmul.f32 %v12266_v6, %v12266_v6 }
 0x54f   : > { %v3887_v56 = vadd.f32 %v3886_v52, %v3824_v10  ;;  %v4505_v52 = vld [vmem:[#allocation3 + $0x110] sm:$0xff]  ;;  %v3830_v8 = vmul.f32 %v12272_v15, %v12272_v15 }
 0x550   : > { %4667 = vrot.lane.b32.xlu0 %v4505_v52, %s7612_s6  ;;  %v4509_v52 = vld [vmem:[#allocation3 + $0x130] sm:$0xff] }
 0x551   : > { %v3888_v37 = vadd.f32 %v3887_v56, %v3825_v35  ;;  %4665 = vrot.lane.b32.xlu1 %v4504_v28, %s7612_s6  ;;  %v12286_v56 = vsub.f32 %v11922_v51, %v12081_v38  ;;  %v12294_v28 = vsub.f32 %v11929_v31, %v12081_v38  ;;  %v15875_v51 = vld [vmem:[#allocation30_spill] sm:$0xff]  ;;  %v15876_v31 = vld [vmem:[#allocation157_spill] sm:$0xff] }
 0x552   : > { %v12300_v41 = vsub.f32 %v15875_v51, %v12081_v38  ;;  %v12308_v45 = vsub.f32 %v15876_v31, %v12081_v38  ;;  %v15879_v51 = vld [vmem:[#allocation322_spill] sm:$0xff] }
 0x553   : > { %v3889_v44 = vadd.f32 %v3888_v37, %v3826_v24  ;;  %v4507_v37 = vld [vmem:[#allocation3 + $0x120] sm:$0xff] }
 0x554   : > { %4671 = vrot.lane.b32.xlu0 %v4507_v37, %s7612_s6  ;;  %v3834_v37 = vmul.f32 %v12300_v41, %v12300_v41 }
 0x555   : > { %v3890_v10 = vadd.f32 %v3889_v44, %v3827_v22  ;;  %4669 = vrot.lane.b32.xlu1 %v4506_v55, %s7612_s6  ;;  %v3831_v22 = vmul.f32 %v12280_v29, %v12280_v29  ;;  %v4510_v55 = vld [vmem:[#allocation3 + $0x138] sm:$0xff] }
 0x557   : > { %v3891_v35 = vadd.f32 %v3890_v10, %v3828_v11  ;;  %v3832_v11 = vmul.f32 %v12286_v56, %v12286_v56 }
 0x558   : > { %4675 = vrot.lane.b32.xlu0 %v4509_v52, %s7612_s6  ;;  %v12322_v52 = vsub.f32 %v15879_v51, %v12081_v38 }
 0x559   : > { %v3892_v24 = vadd.f32 %v3891_v35, %v3829_v0  ;;  %4673 = vrot.lane.b32.xlu1 %v4508_v61, %s7612_s6  ;;  %v3833_v0 = vmul.f32 %v12294_v28, %v12294_v28 }
 0x55a   : > { %15880 = vst [vmem:[#allocation323_spill] sm:$0xff] %v12322_v52 }
 0x55b   : > { %v3893_v44 = vadd.f32 %v3892_v24, %v3830_v8  ;;  %v15877_v8 = vld [vmem:[#allocation32_spill] sm:$0xff] }
 0x55c   : > { %v12314_v24 = vsub.f32 %v15877_v8, %v12081_v38  ;;  %v4513_v8 = vld [vmem:[#allocation3 + $0x150] sm:$0xff] }
 0x55d   : > { %v3894_v10 = vadd.f32 %v3893_v44, %v3831_v22  ;;  %4677 = vrot.lane.b32.xlu1 %v4510_v55, %s7612_s6  ;;  %v4511_v22 = vld [vmem:[#allocation3 + $0x140] sm:$0xff]  ;;  %v4512_v44 = vld [vmem:[#allocation3 + $0x148] sm:$0xff] }
 0x55e   : > { %15878 = vst [vmem:[#allocation265_spill] sm:$0xff] %v12314_v24  ;;  %4679 = vrot.lane.b32.xlu0 %v4511_v22, %s7612_s6  ;;  %v15881_v55 = vld [vmem:[#allocation156_spill] sm:$0xff] }
 0x55f   : > { %v3895_v35 = vadd.f32 %v3894_v10, %v3832_v11  ;;  %v3835_v11 = vmul.f32 %v12308_v45, %v12308_v45  ;;  %v12328_v31 = vsub.f32 %v15881_v55, %v12081_v38  ;;  %v4514_v22 = vld [vmem:[#allocation3 + $0x158] sm:$0xff]  ;;  %v12342_v55 = vsub.f32 %v11962_v21, %v12081_v38  ;;  %v15886_v21 = vld [vmem:[#allocation33_spill] sm:$0xff] }
 0x561   : > { %v3896_v61 = vadd.f32 %v3895_v35, %v3833_v0  ;;  %4681 = vrot.lane.b32.xlu1 %v4512_v44, %s7612_s6  ;;  %15882 = vst [vmem:[#allocation51_spill] sm:$0xff] %v12328_v31  ;;  %v3836_v0 = vmul.f32 %v12314_v24, %v12314_v24  ;;  %v15883_v44 = vld [vmem:[#allocation35_spill] sm:$0xff]  ;;  %15884 = vst [vmem:[#allocation54_spill] sm:$0xff] %v12342_v55  ;;  %v4515_v24 = vld [vmem:[#allocation3 + $0x160] sm:$0xff] }
 0x562   : > { %4683 = vrot.lane.b32.xlu0 %v4513_v8, %s7612_s6  ;;  %v12336_v51 = vsub.f32 %v15883_v44, %v12081_v38  ;;  %v4516_v8 = vld [vmem:[#allocation3 + $0x168] sm:$0xff] }
 0x563   : > { %v3897_v10 = vadd.f32 %v3896_v61, %v3834_v37  ;;  %v3837_v37 = vmul.f32 %v12322_v52, %v12322_v52  ;;  %v12356_v52 = vsub.f32 %v15886_v21, %v12081_v38  ;;  %v12370_v21 = vsub.f32 %v11978_v57, %v12081_v38 }
 0x564   : > { %v12384_v57 = vsub.f32 %v11975_v9, %v12081_v38  ;;  %v12398_v9 = vsub.f32 %v11993_v7, %v12081_v38  ;;  %v15894_v7 = vld [vmem:[#allocation160_spill] sm:$0xff] }
 0x565   : > { %v3898_v35 = vadd.f32 %v3897_v10, %v3835_v11  ;;  %4685 = vrot.lane.b32.xlu1 %v4514_v22, %s7612_s6  ;;  %v3838_v11 = vmul.f32 %v12328_v31, %v12328_v31  ;;  %v15885_v22 = vld [vmem:[#allocation161_spill] sm:$0xff]  ;;  %v4517_v31 = vld [vmem:[#allocation3 + $0x170] sm:$0xff] }
 0x566   : > { %4687 = vrot.lane.b32.xlu0 %v4515_v24, %s7612_s6  ;;  %v12350_v44 = vsub.f32 %v15885_v22, %v12081_v38  ;;  %v4518_v24 = vld [vmem:[#allocation3 + $0x178] sm:$0xff]  ;;  %15889 = vst [vmem:[#allocation122_spill] sm:$0xff] %v12384_v57  ;;  %15891 = vst [vmem:[#allocation126_spill] sm:$0xff] %v12398_v9 }
 0x567   : > { %v3899_v61 = vadd.f32 %v3898_v35, %v3836_v0  ;;  %v3839_v0 = vmul.f32 %v12336_v51, %v12336_v51 }
 0x569   : > { %v3900_v10 = vadd.f32 %v3899_v61, %v3837_v37  ;;  %4689 = vrot.lane.b32.xlu1 %v4516_v8, %s7612_s6  ;;  %v3840_v37 = vmul.f32 %v12342_v55, %v12342_v55  ;;  %v15887_v8 = vld [vmem:[#allocation34_spill] sm:$0xff]  ;;  %v4519_v55 = vld [vmem:[#allocation3 + $0x180] sm:$0xff] }
 0x56a   : > { %4691 = vrot.lane.b32.xlu0 %v4517_v31, %s7612_s6  ;;  %v12364_v22 = vsub.f32 %v15887_v8, %v12081_v38  ;;  %v4520_v31 = vld [vmem:[#allocation3 + $0x188] sm:$0xff]  ;;  %v3844_v8 = vmul.f32 %v12370_v21, %v12370_v21 }
 0x56b   : > { %v3901_v35 = vadd.f32 %v3900_v10, %v3838_v11  ;;  %v3841_v11 = vmul.f32 %v12350_v44, %v12350_v44 }
 0x56d   : > { %v3902_v61 = vadd.f32 %v3901_v35, %v3839_v0  ;;  %4693 = vrot.lane.b32.xlu1 %v4518_v24, %s7612_s6  ;;  %v3842_v0 = vmul.f32 %v12356_v52, %v12356_v52  ;;  %v12378_v24 = vsub.f32 %v11984_v46, %v12081_v38  ;;  %v12392_v46 = vsub.f32 %v11981_v36, %v12081_v38  ;;  %v15892_v36 = vld [vmem:[#allocation262_spill] sm:$0xff] }
 0x56e   : > { %4695 = vrot.lane.b32.xlu0 %v4519_v55, %s7612_s6  ;;  %v4522_v55 = vld [vmem:[#allocation3 + $0x198] sm:$0xff] }
 0x56f   : > { %v3903_v10 = vadd.f32 %v3902_v61, %v3840_v37  ;;  %15888 = vst [vmem:[#allocation174_spill] sm:$0xff] %v12378_v24  ;;  %v3843_v37 = vmul.f32 %v12364_v22, %v12364_v22  ;;  %15890 = vst [vmem:[#allocation123_spill] sm:$0xff] %v12392_v46 }
 0x571   : > { %v3904_v35 = vadd.f32 %v3903_v10, %v3841_v11  ;;  %4697 = vrot.lane.b32.xlu1 %v4520_v31, %s7612_s6  ;;  %v4521_v10 = vld [vmem:[#allocation3 + $0x190] sm:$0xff]  ;;  %v3846_v31 = vmul.f32 %v12384_v57, %v12384_v57 }
 0x572   : > { %4699 = vrot.lane.b32.xlu0 %v4521_v10, %s7612_s6  ;;  %v4524_v10 = vld [vmem:[#allocation3 + $0x1a8] sm:$0xff]  ;;  %v4525_v57 = vld [vmem:[#allocation3 + $0x1b0] sm:$0xff] }
 0x573   : > { %v3905_v61 = vadd.f32 %v3904_v35, %v3842_v0  ;;  %v3845_v0 = vmul.f32 %v12378_v24, %v12378_v24  ;;  %v12412_v24 = vsub.f32 %v15894_v7, %v12081_v38  ;;  %v15898_v7 = vld [vmem:[#allocation39_spill] sm:$0xff] }
 0x575   : > { %v3906_v11 = vadd.f32 %v3905_v61, %v3843_v37  ;;  %4701 = vrot.lane.b32.xlu1 %v4522_v55, %s7612_s6  ;;  %v4523_v61 = vld [vmem:[#allocation3 + $0x1a0] sm:$0xff]  ;;  %v12406_v55 = vsub.f32 %v15892_v36, %v12081_v38  ;;  %15895 = vst [vmem:[#allocation130_spill] sm:$0xff] %v12412_v24 }
 0x576   : > { %4703 = vrot.lane.b32.xlu0 %v4523_v61, %s7612_s6  ;;  %v4526_v61 = vld [vmem:[#allocation3 + $0x1b8] sm:$0xff] }
 0x577   : > { %v3907_v35 = vadd.f32 %v3906_v11, %v3844_v8  ;;  %15893 = vst [vmem:[#allocation127_spill] sm:$0xff] %v12406_v55  ;;  %v3847_v8 = vmul.f32 %v12392_v46, %v12392_v46  ;;  %v12426_v46 = vsub.f32 %v15898_v7, %v12081_v38  ;;  %v15901_v7 = vld [vmem:[#allocation38_spill] sm:$0xff] }
 0x579   : > { %v3908_v37 = vadd.f32 %v3907_v35, %v3845_v0  ;;  %4705 = vrot.lane.b32.xlu1 %v4524_v10, %s7612_s6  ;;  %v3848_v0 = vmul.f32 %v12398_v9, %v12398_v9  ;;  %v15896_v10 = vld [vmem:[#allocation261_spill] sm:$0xff]  ;;  %15899 = vst [vmem:[#allocation232_spill] sm:$0xff] %v12426_v46 }
 0x57a   : > { %4707 = vrot.lane.b32.xlu0 %v4525_v57, %s7612_s6  ;;  %v12420_v36 = vsub.f32 %v15896_v10, %v12081_v38  ;;  %v4527_v9 = vld [vmem:[#allocation3 + $0x1c0] sm:$0xff]  ;;  %v4528_v57 = vld [vmem:[#allocation3 + $0x1c8] sm:$0xff] }
 0x57b   : > { %v3909_v11 = vadd.f32 %v3908_v37, %v3846_v31  ;;  %v3849_v31 = vmul.f32 %v12406_v55, %v12406_v55  ;;  %v12440_v55 = vsub.f32 %v15901_v7, %v12081_v38  ;;  %v15903_v7 = vld [vmem:[#allocation46_spill] sm:$0xff] }
 0x57c   : > { %15897 = vst [vmem:[#allocation131_spill] sm:$0xff] %v12420_v36 }
 0x57d   : > { %v3910_v35 = vadd.f32 %v3909_v11, %v3847_v8  ;;  %4709 = vrot.lane.b32.xlu1 %v4526_v61, %s7612_s6  ;;  %v3850_v8 = vmul.f32 %v12412_v24, %v12412_v24  ;;  %v15900_v61 = vld [vmem:[#allocation43_spill] sm:$0xff] }
 0x57e   : > { %4711 = vrot.lane.b32.xlu0 %v4527_v9, %s7612_s6  ;;  %v12434_v10 = vsub.f32 %v15900_v61, %v12081_v38  ;;  %v4529_v24 = vld [vmem:[#allocation3 + $0x1d0] sm:$0xff]  ;;  %v4530_v9 = vld [vmem:[#allocation3 + $0x1d8] sm:$0xff] }
 0x57f   : > { %v3911_v37 = vadd.f32 %v3910_v35, %v3848_v0  ;;  %v3851_v0 = vmul.f32 %v12420_v36, %v12420_v36  ;;  %v12454_v36 = vsub.f32 %v15903_v7, %v12081_v38  ;;  %v4534_v7 = vld [vmem:[#allocation3 + $0x1f8] sm:$0xff] }
 0x581   : > { %v3912_v11 = vadd.f32 %v3911_v37, %v3849_v31  ;;  %4713 = vrot.lane.b32.xlu1 %v4528_v57, %s7612_s6  ;;  %v3852_v31 = vmul.f32 %v12426_v46, %v12426_v46  ;;  %v15902_v57 = vld [vmem:[#allocation42_spill] sm:$0xff]  ;;  %v4531_v46 = vld [vmem:[#allocation3 + $0x1e0] sm:$0xff] }
 0x582   : > { %4715 = vrot.lane.b32.xlu0 %v4529_v24, %s7612_s6  ;;  %v12448_v61 = vsub.f32 %v15902_v57, %v12081_v38  ;;  %v4532_v24 = vld [vmem:[#allocation3 + $0x1e8] sm:$0xff]  ;;  %v4533_v38 = vld [vmem:[#allocation3 + $0x1f0] sm:$0xff] }
 0x583   : > { %v3913_v35 = vadd.f32 %v3912_v11, %v3850_v8  ;;  %v3853_v8 = vmul.f32 %v12434_v10, %v12434_v10 }
 0x585   : > { %v3914_v37 = vadd.f32 %v3913_v35, %v3851_v0  ;;  %4717 = vrot.lane.b32.xlu1 %v4530_v9, %s7612_s6  ;;  %v3854_v0 = vmul.f32 %v12440_v55, %v12440_v55  ;;  %v3855_v9 = vmul.f32 %v12448_v61, %v12448_v61 }
 0x586   : > { %4719 = vrot.lane.b32.xlu0 %v4531_v46, %s7612_s6 }
 0x587   : > { %v3915_v11 = vadd.f32 %v3914_v37, %v3852_v31  ;;  %v3856_v31 = vmul.f32 %v12454_v36, %v12454_v36 }
 0x589   : > { %v3916_v35 = vadd.f32 %v3915_v11, %v3853_v8  ;;  %4721 = vrot.lane.b32.xlu1 %v4532_v24, %s7612_s6  ;;  %v3857_v8 = vmul.f32 %v12085_v16, %v12085_v16  ;;  %v3858_v11 = vmul.f32 %v12089_v23, %v12089_v23  ;;  %v3862_v16 = vmul.f32 %v12105_v53, %v12105_v53 }
 0x58a   : > { %4723 = vrot.lane.b32.xlu0 %v4533_v38, %s7612_s6  ;;  %v3861_v38 = vmul.f32 %v12101_v40, %v12101_v40 }
 0x58b   : > { %v3917_v57 = vadd.f32 %v3916_v35, %v3854_v0  ;;  %v3859_v0 = vmul.f32 %v12093_v20, %v12093_v20 }
 0x58d   : > { %v3918_v37 = vadd.f32 %v3917_v57, %v3855_v9  ;;  %4725 = vrot.lane.b32.xlu1 %v4534_v7, %s7612_s6  ;;  %v3860_v9 = vmul.f32 %v12097_v59, %v12097_v59  ;;  %v12484_v59 = vpop.permute.xlu1 %4601 }
 0x58e   : > { %15905 = vst [vmem:[#allocation16_spill] sm:$0xff] %v12484_v59  ;;  %v3869_v59 = vmul.f32 %v12131_v49, %v12131_v49 }
 0x58f   : > { %v3919_v46 = vadd.f32 %v3918_v37, %v3856_v31  ;;  %v3863_v37 = vmul.f32 %v12109_v48, %v12109_v48 }
 0x591   : > { %v3920_v24 = vadd.f32 %v3919_v46, %v3857_v8  ;;  %v12480_v46 = vpop.permute.xlu0 %4599 }
 0x592   : > { %15904 = vst [vmem:[#allocation233_spill] sm:$0xff] %v12480_v46 }
 0x593   : > { %v3921_v35 = vadd.f32 %v3920_v24, %v3858_v11  ;;  %v3864_v11 = vmul.f32 %v12113_v14, %v12113_v14 }
 0x595   : > { %v3922_v57 = vadd.f32 %v3921_v35, %v3859_v0  ;;  %v3865_v0 = vmul.f32 %v12117_v1, %v12117_v1 }
 0x597   : > { %v3923_v7 = vadd.f32 %v3922_v57, %v3860_v9  ;;  %v3866_v9 = vmul.f32 %v12121_v3, %v12121_v3 }
 0x599   : > { %v3924_v31 = vadd.f32 %v3923_v7, %v3861_v38  ;;  %v12490_v38 = vpop.permute.xlu0 %4603 }
 0x59a   : > { %15906 = vst [vmem:[#allocation306_spill] sm:$0xff] %v12490_v38 }
 0x59b   : > { %v3925_v8 = vadd.f32 %v3924_v31, %v3862_v16  ;;  %v3867_v16 = vmul.f32 %v12125_v12, %v12125_v12  ;;  %v12494_v31 = vpop.permute.xlu1 %4605 }
 0x59c   : > { %15907 = vst [vmem:[#allocation307_spill] sm:$0xff] %v12494_v31  ;;  %v3872_v31 = vmul.f32 %v12140_v47, %v12140_v47 }
 0x59d   : > { %v3926_v24 = vadd.f32 %v3925_v8, %v3863_v37  ;;  %v3868_v37 = vmul.f32 %v12128_v33, %v12128_v33 }
 0x59f   : > { %v3927_v35 = vadd.f32 %v3926_v24, %v3864_v11  ;;  %v12500_v24 = vpop.permute.xlu0 %4607  ;;  %v12504_v38 = vpop.permute.xlu1 %4609 }
 0x5a0   : > { %15908 = vst [vmem:[#allocation163_spill] sm:$0xff] %v12500_v24  ;;  %15909 = vst [vmem:[#allocation164_spill] sm:$0xff] %v12504_v38  ;;  %v3875_v38 = vmul.f32 %v12149_v63, %v12149_v63 }
 0x5a1   : > { %v3928_v57 = vadd.f32 %v3927_v35, %v3865_v0  ;;  %v3870_v0 = vmul.f32 %v12134_v13, %v12134_v13 }
 0x5a3   : > { %v3929_v7 = vadd.f32 %v3928_v57, %v3866_v9  ;;  %v3871_v9 = vmul.f32 %v12137_v18, %v12137_v18  ;;  %v12514_v24 = vpop.permute.xlu1 %4613 }
 0x5a4   : > { %15911 = vst [vmem:[#allocation267_spill] sm:$0xff] %v12514_v24 }
 0x5a5   : > { %v3930_v8 = vadd.f32 %v3929_v7, %v3867_v16  ;;  %v12510_v7 = vpop.permute.xlu0 %4611 }
 0x5a6   : > { %15910 = vst [vmem:[#allocation266_spill] sm:$0xff] %v12510_v7 }
 0x5a7   : > { %v3931_v11 = vadd.f32 %v3930_v8, %v3868_v37  ;;  %v3873_v37 = vmul.f32 %v12143_v26, %v12143_v26 }
 0x5a9   : > { %v3932_v35 = vadd.f32 %v3931_v11, %v3869_v59  ;;  %v3874_v59 = vmul.f32 %v12146_v58, %v12146_v58 }
 0x5ab   : > { %v3933_v57 = vadd.f32 %v3932_v35, %v3870_v0  ;;  %v12520_v35 = vpop.permute.xlu0 %4615 }
 0x5ac   : > { %15912 = vst [vmem:[#allocation165_spill] sm:$0xff] %v12520_v35 }
 0x5ad   : > { %v3934_v16 = vadd.f32 %v3933_v57, %v3871_v9  ;;  %v12522_v9 = vpop.permute.xlu1 %4617 }
 0x5ae   : > { %15913 = vst [vmem:[#allocation236_spill] sm:$0xff] %v12522_v9 }
 0x5af   : > { %v3935_v8 = vadd.f32 %v3934_v16, %v3872_v31  ;;  %v12524_v47 = vpop.permute.xlu0 %4619 }
 0x5b0   : > { %15914 = vst [vmem:[#allocation324_spill] sm:$0xff] %v12524_v47 }
 0x5b1   : > { %v3936_v11 = vadd.f32 %v3935_v8, %v3873_v37  ;;  %v12526_v16 = vpop.permute.xlu1 %4621 }
 0x5b2   : > { %15915 = vst [vmem:[#allocation325_spill] sm:$0xff] %v12526_v16 }
 0x5b3   : > { %v3937_v0 = vadd.f32 %v3936_v11, %v3874_v59  ;;  %v12528_v58 = vpop.permute.xlu0 %4623 }
 0x5b4   : > { %15916 = vst [vmem:[#allocation237_spill] sm:$0xff] %v12528_v58 }
 0x5b5   : > { %v3938_v46 = vadd.f32 %v3937_v0, %v3875_v38  ;;  %v12530_v8 = vpop.permute.xlu1 %4625 }
 0x5b6   : > { %15917 = vst [vmem:[#allocation308_spill] sm:$0xff] %v12530_v8 }
 0x5b7   : > { %v3939_v57 = vrot.slane %v3938_v46, 4  ;;  %v12532_v11 = vpop.permute.xlu0 %4627 }
 0x5b8   : > { %15918 = vst [vmem:[#allocation309_spill] sm:$0xff] %v12532_v11  ;;  %v15927_v11 = vld [vmem:[#allocation11_spill] sm:$0xff] }
 0x5b9   : > { %v3940_v7 = vadd.f32 %v3939_v57, %v3938_v46  ;;  %v12534_v38 = vpop.permute.xlu1 %4629 }
 0x5ba   : > { %15919 = vst [vmem:[#allocation166_spill] sm:$0xff] %v12534_v38 }
 0x5bb   : > { %v3941_v31 = vrot.slane %v3940_v7, 2  ;;  %v12536_v9 = vpop.permute.xlu0 %4631 }
 0x5bc   : > { %15920 = vst [vmem:[#allocation364_spill] sm:$0xff] %v12536_v9  ;;  %v15961_v9 = vld [vmem:[#allocation123_spill] sm:$0xff] }
 0x5bd   : > { %v3942_v24 = vadd.f32 %v3941_v31, %v3940_v7  ;;  %v12538_v46 = vpop.permute.xlu1 %4633 }
 0x5be   : > { %15921 = vst [vmem:[#allocation373_spill] sm:$0xff] %v12538_v46 }
 0x5bf   : > { %v3943_v26 = vrot.slane %v3942_v24, 1  ;;  %v12540_v57 = vpop.permute.xlu0 %4635 }
 0x5c0   : > { %15922 = vst [vmem:[#allocation268_spill] sm:$0xff] %v12540_v57 }
 0x5c1   : > { %v3944_v37 = vadd.f32 %v3943_v26, %v3942_v24  ;;  %v12542_v7 = vpop.permute.xlu1 %4637  ;;  %v15926_v24 = vld [vmem:[#allocation31_spill] sm:$0xff] }
 0x5c2   : > { %15923 = vst [vmem:[#allocation269_spill] sm:$0xff] %v12542_v7 }
 0x5c3   : > { %v3945_v59 = vmul.f32 0.001953125, %v3944_v37  ;;  %v12544_v58 = vpop.permute.xlu0 %4639  ;;  %v3951_v37 = vsub.s32 0, %v15926_v24 }
 0x5c4   : > { %15924 = vst [vmem:[#allocation326_spill] sm:$0xff] %v12544_v58 }
 0x5c5   : > { %v3946_v0 = vadd.f32 1e-05, %v3945_v59  ;;  %v12546_v26 = vpop.permute.xlu1 %4641 }
 0x5c6   : > { %15925 = vst [vmem:[#allocation374_spill] sm:$0xff] %v12546_v26 }
 0x5c7   : > { %7048 = vrsqrt.f32 %v3946_v0  ;;  %v12552_v59 = vpop.permute.xlu0 %4643 }
 0x5c8   : > { %15928 = vst [vmem:[#allocation383_spill] sm:$0xff] %v12552_v59 }
 0x5c9   : > { %v12554_v0 = vpop.permute.xlu1 %4645 }
 0x5ca   : > { %15929 = vst [vmem:[#allocation377_spill] sm:$0xff] %v12554_v0 }
 0x5cb   : > { %v12560_v46 = vpop.permute.xlu0 %4647 }
 0x5cc   : > { %15930 = vst [vmem:[#allocation240_spill] sm:$0xff] %v12560_v46 }
 0x5cd   : > { %v12562_v58 = vpop.permute.xlu1 %4649 }
 0x5ce   : > { %15931 = vst [vmem:[#allocation327_spill] sm:$0xff] %v12562_v58 }
 0x5d1   : > { %v7049_v31 = vpop.eup %7048 }
 0x5d2   : > { %v3948_v8 = vmul.f32 %v7049_v31, %v15927_v11  ;;  %v15932_v11 = vld [vmem:[#allocation12_spill] sm:$0xff] }
 0x5d4   : > { %v12550_v38 = vrot.slane %v3948_v8, %v3951_v37 }
 0x5d6   : > { %v3953_v57 = vmul.f32 %v12550_v38, %v12153_v54  ;;  %v3954_v7 = vmul.f32 %v12550_v38, %v12157_v25  ;;  %v3955_v24 = vmul.f32 %v12550_v38, %v12161_v30  ;;  %v3956_v31 = vmul.f32 %v12550_v38, %v12170_v43  ;;  %v12583_v30 = vpop.permute.xlu0 %4651 }
 0x5d7   : > { %v3957_v54 = vmul.f32 %v12550_v38, %v12174_v42  ;;  %15933 = vst [vmem:[#allocation375_spill] sm:$0xff] %v12583_v30  ;;  %v3958_v43 = vmul.f32 %v12550_v38, %v12182_v4  ;;  %v3959_v42 = vmul.f32 %v12550_v38, %v12188_v19  ;;  %v3960_v4 = vmul.f32 %v12550_v38, %v12196_v62 }
 0x5d8   : > { %v12567_v8 = vadd.f32 %v15932_v11, %v3953_v57  ;;  %v12572_v37 = vadd.f32 %v15932_v11, %v3954_v7  ;;  %v12581_v25 = vadd.f32 %v15932_v11, %v3955_v24  ;;  %v12588_v57 = vadd.f32 %v15932_v11, %v3956_v31  ;;  %v12590_v7 = vpop.permute.xlu1 %4653 }
 0x5d9   : > { %15934 = vst [vmem:[#allocation378_spill] sm:$0xff] %v12590_v7  ;;  %v12599_v24 = vadd.f32 %v15932_v11, %v3957_v54  ;;  %v12604_v31 = vadd.f32 %v15932_v11, %v3958_v43  ;;  %v3961_v19 = vmul.f32 %v12550_v38, %v12202_v50  ;;  %v12617_v54 = vadd.f32 %v15932_v11, %v3959_v42 }
 0x5da   : > { %4919 = vrot.lane.b32.xlu0 %v12567_v8, %s7613_s7  ;;  %4921 = vrot.lane.b32.xlu1 %v12572_v37, %s7613_s7  ;;  %v12606_v30 = vpop.permute.xlu0 %4655  ;;  %v3962_v62 = vmul.f32 %v12550_v38, %v12210_v27  ;;  %v12622_v43 = vadd.f32 %v15932_v11, %v3960_v4  ;;  %v3964_v27 = vmul.f32 %v12550_v38, %v12224_v39 }
 0x5db   : > { %15935 = vst [vmem:[#allocation241_spill] sm:$0xff] %v12606_v30  ;;  %v12631_v50 = vadd.f32 %v15932_v11, %v3961_v19  ;;  %v3966_v39 = vmul.f32 %v12550_v38, %v12238_v2  ;;  %v3968_v2 = vmul.f32 %v12550_v38, %v12252_v32  ;;  %v3970_v32 = vmul.f32 %v12550_v38, %v12266_v6 }
 0x5dc   : > { %v12610_v7 = vpop.permute.xlu1 %4657  ;;  %v12638_v4 = vadd.f32 %v15932_v11, %v3962_v62  ;;  %v12654_v62 = vadd.f32 %v15932_v11, %v3964_v27  ;;  %v3972_v6 = vmul.f32 %v12550_v38, %v12280_v29  ;;  %v3974_v29 = vmul.f32 %v12550_v38, %v12294_v28 }
 0x5dd   : > { %15936 = vst [vmem:[#allocation242_spill] sm:$0xff] %v12610_v7  ;;  %v3963_v7 = vmul.f32 %v12550_v38, %v12216_v34  ;;  %v3965_v34 = vmul.f32 %v12550_v38, %v12230_v5  ;;  %v3967_v5 = vmul.f32 %v12550_v38, %v12244_v17  ;;  %v12672_v27 = vadd.f32 %v15932_v11, %v3966_v39 }
 0x5de   : > { %4923 = vrot.lane.b32.xlu0 %v12581_v25, %s7613_s7  ;;  %4925 = vrot.lane.b32.xlu1 %v12588_v57, %s7613_s7  ;;  %v12633_v42 = vpop.permute.xlu0 %4659  ;;  %v12688_v39 = vadd.f32 %v15932_v11, %v3968_v2  ;;  %v12704_v2 = vadd.f32 %v15932_v11, %v3970_v32  ;;  %v12722_v32 = vadd.f32 %v15932_v11, %v3972_v6 }
 0x5df   : > { %15937 = vst [vmem:[#allocation376_spill] sm:$0xff] %v12633_v42  ;;  %v12649_v19 = vadd.f32 %v15932_v11, %v3963_v7  ;;  %v12667_v7 = vadd.f32 %v15932_v11, %v3965_v34  ;;  %v12681_v17 = vadd.f32 %v15932_v11, %v3967_v5  ;;  %v3976_v28 = vmul.f32 %v12550_v38, %v12308_v45 }
 0x5e0   : > { %v12640_v30 = vpop.permute.xlu1 %4661  ;;  %v12738_v6 = vadd.f32 %v15932_v11, %v3974_v29 }
 0x5e1   : > { %15938 = vst [vmem:[#allocation310_spill] sm:$0xff] %v12640_v30  ;;  %v12754_v29 = vadd.f32 %v15932_v11, %v3976_v28 }
 0x5e2   : > { %4927 = vrot.lane.b32.xlu0 %v12599_v24, %s7613_s7  ;;  %4929 = vrot.lane.b32.xlu1 %v12604_v31, %s7613_s7  ;;  %v12656_v42 = vpop.permute.xlu0 %4663 }
 0x5e3   : > { %15939 = vst [vmem:[#allocation167_spill] sm:$0xff] %v12656_v42 }
 0x5e4   : > { %v12660_v30 = vpop.permute.xlu1 %4665 }
 0x5e5   : > { %15940 = vst [vmem:[#allocation311_spill] sm:$0xff] %v12660_v30  ;;  %v3969_v30 = vmul.f32 %v12550_v38, %v12258_v60  ;;  %v3971_v60 = vmul.f32 %v12550_v38, %v12272_v15  ;;  %v3973_v15 = vmul.f32 %v12550_v38, %v12286_v56 }
 0x5e6   : > { %4931 = vrot.lane.b32.xlu0 %v12617_v54, %s7613_s7  ;;  %4933 = vrot.lane.b32.xlu1 %v12622_v43, %s7613_s7  ;;  %v12683_v34 = vpop.permute.xlu0 %4667 }
 0x5e7   : > { %15941 = vst [vmem:[#allocation243_spill] sm:$0xff] %v12683_v34  ;;  %v12699_v5 = vadd.f32 %v15932_v11, %v3969_v30  ;;  %v12717_v30 = vadd.f32 %v15932_v11, %v3971_v60  ;;  %v12731_v56 = vadd.f32 %v15932_v11, %v3973_v15 }
 0x5e8   : > { %v12690_v42 = vpop.permute.xlu1 %4669 }
 0x5e9   : > { %15942 = vst [vmem:[#allocation379_spill] sm:$0xff] %v12690_v42 }
 0x5ea   : > { %4935 = vrot.lane.b32.xlu0 %v12631_v50, %s7613_s7  ;;  %4937 = vrot.lane.b32.xlu1 %v12638_v4, %s7613_s7  ;;  %v12706_v34 = vpop.permute.xlu0 %4671 }
 0x5eb   : > { %15943 = vst [vmem:[#allocation270_spill] sm:$0xff] %v12706_v34 }
 0x5ec   : > { %v12710_v42 = vpop.permute.xlu1 %4673 }
 0x5ed   : > { %15944 = vst [vmem:[#allocation271_spill] sm:$0xff] %v12710_v42  ;;  %v3975_v42 = vmul.f32 %v12550_v38, %v12300_v41  ;;  %v15947_v41 = vld [vmem:[#allocation265_spill] sm:$0xff] }
 0x5ee   : > { %4939 = vrot.lane.b32.xlu0 %v12649_v19, %s7613_s7  ;;  %4941 = vrot.lane.b32.xlu1 %v12654_v62, %s7613_s7  ;;  %v12733_v60 = vpop.permute.xlu0 %4675  ;;  %v3977_v15 = vmul.f32 %v12550_v38, %v15947_v41  ;;  %v15951_v41 = vld [vmem:[#allocation51_spill] sm:$0xff] }
 0x5ef   : > { %15945 = vst [vmem:[#allocation328_spill] sm:$0xff] %v12733_v60  ;;  %v12749_v58 = vadd.f32 %v15932_v11, %v3975_v42  ;;  %v15948_v60 = vld [vmem:[#allocation323_spill] sm:$0xff]  ;;  %v3979_v42 = vmul.f32 %v12550_v38, %v15951_v41 }
 0x5f0   : > { %v12740_v34 = vpop.permute.xlu1 %4677  ;;  %v3978_v45 = vmul.f32 %v12550_v38, %v15948_v60  ;;  %v12767_v0 = vadd.f32 %v15932_v11, %v3977_v15  ;;  %v3980_v60 = vmul.f32 %v12550_v38, %v12336_v51  ;;  %v3982_v51 = vmul.f32 %v12550_v38, %v12350_v44 }
 0x5f1   : > { %15946 = vst [vmem:[#allocation380_spill] sm:$0xff] %v12740_v34  ;;  %v12781_v41 = vadd.f32 %v15932_v11, %v3979_v42  ;;  %v3984_v44 = vmul.f32 %v12550_v38, %v12364_v22  ;;  %v15957_v22 = vld [vmem:[#allocation174_spill] sm:$0xff] }
 0x5f2   : > { %4943 = vrot.lane.b32.xlu0 %v12667_v7, %s7613_s7  ;;  %4945 = vrot.lane.b32.xlu1 %v12672_v27, %s7613_s7  ;;  %v12756_v46 = vpop.permute.xlu0 %4679  ;;  %v12772_v28 = vadd.f32 %v15932_v11, %v3978_v45  ;;  %v12788_v45 = vadd.f32 %v15932_v11, %v3980_v60  ;;  %v12804_v60 = vadd.f32 %v15932_v11, %v3982_v51 }
 0x5f3   : > { %15949 = vst [vmem:[#allocation381_spill] sm:$0xff] %v12756_v46  ;;  %v3986_v51 = vmul.f32 %v12550_v38, %v15957_v22  ;;  %v12822_v26 = vadd.f32 %v15932_v11, %v3984_v44  ;;  %v3988_v22 = vmul.f32 %v12550_v38, %v15961_v9 }
 0x5f4   : > { %v12760_v34 = vpop.permute.xlu1 %4681 }
 0x5f5   : > { %15950 = vst [vmem:[#allocation55_spill] sm:$0xff] %v12760_v34  ;;  %v15952_v34 = vld [vmem:[#allocation54_spill] sm:$0xff]  ;;  %v12838_v44 = vadd.f32 %v15932_v11, %v3986_v51  ;;  %v12854_v51 = vadd.f32 %v15932_v11, %v3988_v22 }
 0x5f6   : > { %4947 = vrot.lane.b32.xlu0 %v12681_v17, %s7613_s7  ;;  %4949 = vrot.lane.b32.xlu1 %v12688_v39, %s7613_s7  ;;  %v3981_v46 = vmul.f32 %v12550_v38, %v15952_v34  ;;  %v12783_v15 = vpop.permute.xlu0 %4683  ;;  %v3983_v34 = vmul.f32 %v12550_v38, %v12356_v52  ;;  %v3985_v52 = vmul.f32 %v12550_v38, %v12370_v21 }
 0x5f7   : > { %15953 = vst [vmem:[#allocation175_spill] sm:$0xff] %v12783_v15  ;;  %15962 = vst [vmem:[#allocation248_spill] sm:$0xff] %v12838_v44 }
 0x5f8   : > { %v12790_v59 = vpop.permute.xlu1 %4685  ;;  %v12799_v42 = vadd.f32 %v15932_v11, %v3981_v46  ;;  %v12817_v46 = vadd.f32 %v15932_v11, %v3983_v34  ;;  %v12831_v21 = vadd.f32 %v15932_v11, %v3985_v52  ;;  %15966 = vst [vmem:[#allocation382_spill] sm:$0xff] %v12854_v51 }
 0x5f9   : > { %15954 = vst [vmem:[#allocation134_spill] sm:$0xff] %v12790_v59 }
 0x5fa   : > { %4951 = vrot.lane.b32.xlu0 %v12699_v5, %s7613_s7  ;;  %4953 = vrot.lane.b32.xlu1 %v12704_v2, %s7613_s7  ;;  %v12806_v15 = vpop.permute.xlu0 %4687  ;;  %15959 = vst [vmem:[#allocation384_spill] sm:$0xff] %v12831_v21 }
 0x5fb   : > { %15955 = vst [vmem:[#allocation247_spill] sm:$0xff] %v12806_v15 }
 0x5fc   : > { %v12810_v59 = vpop.permute.xlu1 %4689 }
 0x5fd   : > { %15956 = vst [vmem:[#allocation329_spill] sm:$0xff] %v12810_v59  ;;  %v15958_v59 = vld [vmem:[#allocation122_spill] sm:$0xff] }
 0x5fe   : > { %4955 = vrot.lane.b32.xlu0 %v12717_v30, %s7613_s7  ;;  %4957 = vrot.lane.b32.xlu1 %v12722_v32, %s7613_s7  ;;  %v3987_v15 = vmul.f32 %v12550_v38, %v15958_v59  ;;  %v12833_v34 = vpop.permute.xlu0 %4691  ;;  %v15964_v59 = vld [vmem:[#allocation126_spill] sm:$0xff] }
 0x5ff   : > { %15960 = vst [vmem:[#allocation135_spill] sm:$0xff] %v12833_v34  ;;  %v3989_v52 = vmul.f32 %v12550_v38, %v15964_v59  ;;  %v15965_v34 = vld [vmem:[#allocation127_spill] sm:$0xff]  ;;  %v15969_v59 = vld [vmem:[#allocation130_spill] sm:$0xff] }
 0x600   : > { %v12840_v16 = vpop.permute.xlu1 %4693  ;;  %v12849_v47 = vadd.f32 %v15932_v11, %v3987_v15  ;;  %v3990_v9 = vmul.f32 %v12550_v38, %v15965_v34  ;;  %v3991_v15 = vmul.f32 %v12550_v38, %v15969_v59  ;;  %v15970_v34 = vld [vmem:[#allocation131_spill] sm:$0xff] }
 0x601   : > { %15963 = vst [vmem:[#allocation168_spill] sm:$0xff] %v12840_v16  ;;  %v3992_v22 = vmul.f32 %v12550_v38, %v15970_v34  ;;  %v3994_v34 = vmul.f32 %v12550_v38, %v12434_v10  ;;  %v3996_v10 = vmul.f32 %v12550_v38, %v12448_v61  ;;  %v15977_v61 = vld [vmem:[#allocation47_spill] sm:$0xff] }
 0x602   : > { %4959 = vrot.lane.b32.xlu0 %v12731_v56, %s7613_s7  ;;  %4961 = vrot.lane.b32.xlu1 %v12738_v6, %s7613_s7  ;;  %v12856_v35 = vpop.permute.xlu0 %4695  ;;  %v12881_v59 = vadd.f32 %v15932_v11, %v3991_v15 }
 0x603   : > { %15967 = vst [vmem:[#allocation17_spill] sm:$0xff] %v12856_v35 }
 0x604   : > { %v12860_v16 = vpop.permute.xlu1 %4697 }
 0x605   : > { %15968 = vst [vmem:[#allocation244_spill] sm:$0xff] %v12860_v16  ;;  %v15971_v16 = vld [vmem:[#allocation232_spill] sm:$0xff] }
 0x606   : > { %4963 = vrot.lane.b32.xlu0 %v12749_v58, %s7613_s7  ;;  %4965 = vrot.lane.b32.xlu1 %v12754_v29, %s7613_s7  ;;  %v3993_v35 = vmul.f32 %v12550_v38, %v15971_v16  ;;  %v3995_v16 = vmul.f32 %v12550_v38, %v12440_v55  ;;  %v3997_v55 = vmul.f32 %v12550_v38, %v12454_v36 }
 0x608   : > { %v12899_v15 = vadd.f32 %v15932_v11, %v3993_v35  ;;  %v12917_v35 = vadd.f32 %v15932_v11, %v3995_v16  ;;  %v12931_v36 = vadd.f32 %v15932_v11, %v3997_v55 }
 0x60a   : > { %4967 = vrot.lane.b32.xlu0 %v12767_v0, %s7613_s7  ;;  %4969 = vrot.lane.b32.xlu1 %v12772_v28, %s7613_s7 }
 0x60e   : > { %4971 = vrot.lane.b32.xlu0 %v12781_v41, %s7613_s7  ;;  %4973 = vrot.lane.b32.xlu1 %v12788_v45, %s7613_s7 }
 0x612   : > { %4975 = vrot.lane.b32.xlu0 %v12799_v42, %s7613_s7  ;;  %4977 = vrot.lane.b32.xlu1 %v12804_v60, %s7613_s7 }
 0x616   : > { %4979 = vrot.lane.b32.xlu0 %v12817_v46, %s7613_s7  ;;  %4981 = vrot.lane.b32.xlu1 %v12822_v26, %s7613_s7 }
 0x61a   : > { %4983 = vrot.lane.b32.xlu0 %v12831_v21, %s7613_s7  ;;  %4985 = vrot.lane.b32.xlu1 %v12838_v44, %s7613_s7  ;;  %v12867_v44 = vadd.f32 %v15932_v11, %v3989_v52  ;;  %v12872_v21 = vadd.f32 %v15932_v11, %v3990_v9  ;;  %v12883_v52 = vpop.permute.xlu0 %4699  ;;  %v12888_v9 = vadd.f32 %v15932_v11, %v3992_v22 }
 0x61b   : > { %15972 = vst [vmem:[#allocation312_spill] sm:$0xff] %v12883_v52  ;;  %v12904_v22 = vadd.f32 %v15932_v11, %v3994_v34  ;;  %v3998_v34 = vmul.f32 %v12550_v38, %v15977_v61  ;;  %v4000_v61 = vmul.f32 %v12550_v38, %v12093_v20  ;;  %v4002_v20 = vmul.f32 %v12550_v38, %v12101_v40 }
 0x61c   : > { %15973 = vst [vmem:[#allocation313_spill] sm:$0xff] %v12888_v9  ;;  %v6653_v40 = vmul.f32 -1.442695, %v12567_v8  ;;  %v6655_v8 = vmul.f32 -1.442695, %v12581_v25 }
 0x61e   : > { %4987 = vrot.lane.b32.xlu0 %v12849_v47, %s7613_s7  ;;  %4989 = vrot.lane.b32.xlu1 %v12854_v51, %s7613_s7  ;;  %v12890_v51 = vpop.permute.xlu1 %4701  ;;  %v12906_v52 = vpop.permute.xlu0 %4703  ;;  %7050 = vpow2.f32 %v6653_v40 }
 0x61f   : > { %15974 = vst [vmem:[#allocation245_spill] sm:$0xff] %v12890_v51  ;;  %15975 = vst [vmem:[#allocation385_spill] sm:$0xff] %v12906_v52 }
 0x622   : > { %4991 = vrot.lane.b32.xlu0 %v12867_v44, %s7613_s7  ;;  %4993 = vrot.lane.b32.xlu1 %v12872_v21, %s7613_s7  ;;  %v12910_v51 = vpop.permute.xlu1 %4705  ;;  %v12933_v16 = vpop.permute.xlu0 %4707 }
 0x623   : > { %15976 = vst [vmem:[#allocation365_spill] sm:$0xff] %v12910_v51  ;;  %v3999_v51 = vmul.f32 %v12550_v38, %v12089_v23  ;;  %15979 = vst [vmem:[#allocation169_spill] sm:$0xff] %v12933_v16  ;;  %v15981_v23 = vld [vmem:[#allocation13_spill] sm:$0xff] }
 0x624   : > { %v4001_v55 = vmul.f32 %v12550_v38, %v15981_v23 }
 0x626   : > { %4995 = vrot.lane.b32.xlu0 %v12881_v59, %s7613_s7  ;;  %4997 = vrot.lane.b32.xlu1 %v12888_v9, %s7613_s7  ;;  %v12922_v9 = vadd.f32 %v15932_v11, %v3996_v10  ;;  %v12938_v10 = vadd.f32 %v15932_v11, %v3998_v34  ;;  %v12940_v52 = vpop.permute.xlu1 %4709  ;;  %v12954_v34 = vadd.f32 %v15932_v11, %v4000_v61  ;;  %v12956_v16 = vpop.permute.xlu0 %4711 }
 0x627   : > { %15980 = vst [vmem:[#allocation272_spill] sm:$0xff] %v12940_v52  ;;  %15983 = vst [vmem:[#allocation330_spill] sm:$0xff] %v12956_v16  ;;  %v12967_v23 = vadd.f32 %v15932_v11, %v4001_v55  ;;  %v4004_v61 = vmul.f32 %v12550_v38, %v12109_v48  ;;  %v12973_v16 = vadd.f32 %v15932_v11, %v4002_v20 }
 0x628   : > { %15978 = vst [vmem:[#allocation388_spill] sm:$0xff] %v12922_v9 }
 0x629   : > { %15985 = vst [vmem:[#allocation331_spill] sm:$0xff] %v12973_v16  ;;  %v12991_v20 = vadd.f32 %v15932_v11, %v4004_v61  ;;  %v6659_v61 = vmul.f32 -1.442695, %v12617_v54  ;;  %v4011_v54 = vmul.f32 %v12550_v38, %v12134_v13 }
 0x62a   : > { %4999 = vrot.lane.b32.xlu0 %v12899_v15, %s7613_s7  ;;  %5001 = vrot.lane.b32.xlu1 %v12904_v22, %s7613_s7  ;;  %v12960_v52 = vpop.permute.xlu1 %4713  ;;  %v12986_v48 = vpop.permute.xlu0 %4715 }
 0x62b   : > { %15984 = vst [vmem:[#allocation389_spill] sm:$0xff] %v12960_v52  ;;  %15986 = vst [vmem:[#allocation392_spill] sm:$0xff] %v12986_v48  ;;  %v6656_v52 = vmul.f32 -1.442695, %v12588_v57  ;;  %v4008_v57 = vmul.f32 %v12550_v38, %v12125_v12 }
 0x62e   : > { %5003 = vrot.lane.b32.xlu0 %v12917_v35, %s7613_s7  ;;  %5005 = vrot.lane.b32.xlu1 %v12922_v9, %s7613_s7  ;;  %v12949_v9 = vadd.f32 %v15932_v11, %v3999_v51  ;;  %v4003_v51 = vmul.f32 %v12550_v38, %v12105_v53  ;;  %v4005_v53 = vmul.f32 %v12550_v38, %v12113_v14  ;;  %v13012_v40 = vpop.permute.xlu0 %4719 }
 0x62f   : > { %v4007_v14 = vmul.f32 %v12550_v38, %v12121_v3  ;;  %15988 = vst [vmem:[#allocation387_spill] sm:$0xff] %v13012_v40 }
 0x630   : > { %15982 = vst [vmem:[#allocation273_spill] sm:$0xff] %v12949_v9  ;;  %v12983_v55 = vadd.f32 %v15932_v11, %v4003_v51  ;;  %v13003_v25 = vadd.f32 %v15932_v11, %v4005_v53  ;;  %v6658_v51 = vmul.f32 -1.442695, %v12604_v31  ;;  %v4010_v31 = vmul.f32 %v12550_v38, %v12131_v49 }
 0x631   : > { %v13023_v12 = vadd.f32 %v15932_v11, %v4007_v14  ;;  %v6660_v53 = vmul.f32 -1.442695, %v12622_v43  ;;  %v6662_v14 = vmul.f32 -1.442695, %v12638_v4  ;;  %v6663_v4 = vmul.f32 -1.442695, %v12649_v19 }
 0x632   : > { %5007 = vrot.lane.b32.xlu0 %v12931_v36, %s7613_s7  ;;  %5009 = vrot.lane.b32.xlu1 %v12938_v10, %s7613_s7  ;;  %v13043_v43 = vpop.permute.xlu0 %4723 }
 0x633   : > { %15990 = vst [vmem:[#allocation250_spill] sm:$0xff] %v13043_v43 }
 0x636   : > { %5011 = vrot.lane.b32.xlu0 %v12949_v9, %s7613_s7  ;;  %5013 = vrot.lane.b32.xlu1 %v12954_v34, %s7613_s7  ;;  %v6654_v9 = vmul.f32 -1.442695, %v12572_v37  ;;  %v4006_v37 = vmul.f32 %v12550_v38, %v12117_v1  ;;  %v6657_v1 = vmul.f32 -1.442695, %v12599_v24  ;;  %v4009_v24 = vmul.f32 %v12550_v38, %v12128_v33 }
 0x638   : > { %7052 = vpow2.f32 %v6654_v9  ;;  %v13009_v9 = vadd.f32 %v15932_v11, %v4006_v37  ;;  %v6661_v37 = vmul.f32 -1.442695, %v12631_v50  ;;  %v13040_v49 = vadd.f32 %v15932_v11, %v4009_v24 }
 0x639   : > { %7054 = vpow2.f32 %v6655_v8  ;;  %v7051_v8 = vpop.eup %7050 }
 0x63a   : > { %5015 = vrot.lane.b32.xlu0 %v12967_v23, %s7613_s7  ;;  %5017 = vrot.lane.b32.xlu1 %v12973_v16, %s7613_s7  ;;  %v12994_v16 = vpop.permute.xlu1 %4717  ;;  %7056 = vpow2.f32 %v6656_v52  ;;  %v13029_v52 = vadd.f32 %v15932_v11, %v4008_v57  ;;  %v13048_v57 = vadd.f32 %v15932_v11, %v4010_v31  ;;  %v4279_v50 = vadd.f32 1.0, %v7051_v8 }
 0x63b   : > { %15987 = vst [vmem:[#allocation386_spill] sm:$0xff] %v12994_v16  ;;  %7058 = vpow2.f32 %v6657_v1  ;;  %v4012_v1 = vmul.f32 %v12550_v38, %v12137_v18  ;;  %v15992_v18 = vld [vmem:[#allocation14_spill] sm:$0xff]  ;;  %v13060_v31 = vadd.f32 %v15932_v11, %v4011_v54 }
 0x63c   : > { %7060 = vpow2.f32 %v6658_v51 }
 0x63d   : > { %7062 = vpow2.f32 %v6659_v61  ;;  %v4013_v61 = vmul.f32 %v12550_v38, %v15992_v18  ;;  %v13066_v43 = vadd.f32 %v15932_v11, %v4012_v1 }
 0x63e   : > { %5019 = vrot.lane.b32.xlu0 %v12983_v55, %s7613_s7  ;;  %5021 = vrot.lane.b32.xlu1 %v12991_v20, %s7613_s7  ;;  %v13016_v3 = vpop.permute.xlu1 %4721  ;;  %7064 = vpow2.f32 %v6660_v53  ;;  %v6664_v53 = vmul.f32 -1.442695, %v12654_v62  ;;  %v6665_v62 = vmul.f32 -1.442695, %v12667_v7  ;;  %v4016_v7 = vmul.f32 %v12550_v38, %v12149_v63 }
 0x63f   : > { %15989 = vst [vmem:[#allocation138_spill] sm:$0xff] %v13016_v3  ;;  %7066 = vpow2.f32 %v6661_v37  ;;  %v6668_v63 = vmul.f32 -1.442695, %v12688_v39 }
 0x640   : > { %7068 = vpow2.f32 %v6662_v14  ;;  %v15994_v14 = vld [vmem:[#allocation50_spill] sm:$0xff] }
 0x641   : > { %7070 = vrcp.f32 %v4279_v50  ;;  %v4015_v1 = vmul.f32 %v12550_v38, %v15994_v14  ;;  %v6666_v50 = vmul.f32 -1.442695, %v12672_v27  ;;  %v6667_v27 = vmul.f32 -1.442695, %v12681_v17 }
 0x642   : > { %5023 = vrot.lane.b32.xlu0 %v13003_v25, %s7613_s7  ;;  %5025 = vrot.lane.b32.xlu1 %v13009_v9, %s7613_s7  ;;  %v7053_v33 = vpop.eup %7052  ;;  %v13050_v51 = vpop.permute.xlu1 %4725  ;;  %v6669_v14 = vmul.f32 -1.442695, %v12699_v5 }
 0x643   : > { %15991 = vst [vmem:[#allocation139_spill] sm:$0xff] %v13050_v51  ;;  %v7055_v3 = vpop.eup %7054  ;;  %v4280_v13 = vadd.f32 1.0, %v7053_v33  ;;  %v15993_v33 = vld [vmem:[#allocation264_spill] sm:$0xff] }
 0x644   : > { %v7057_v24 = vpop.eup %7056  ;;  %v4014_v51 = vmul.f32 %v12550_v38, %v15993_v33  ;;  %v4281_v19 = vadd.f32 1.0, %v7055_v3  ;;  %v13076_v3 = vadd.f32 %v15932_v11, %v4013_v61 }
 0x645   : > { %v7059_v40 = vpop.eup %7058  ;;  %v4282_v16 = vadd.f32 1.0, %v7057_v24  ;;  %7072 = vrcp.f32 %v4280_v13 }
 0x646   : > { %5027 = vrot.lane.b32.xlu0 %v13023_v12, %s7613_s7  ;;  %5029 = vrot.lane.b32.xlu1 %v13029_v52, %s7613_s7  ;;  %v7061_v54 = vpop.eup %7060  ;;  %7074 = vpow2.f32 %v6663_v4  ;;  %v13080_v24 = vadd.f32 %v15932_v11, %v4014_v51  ;;  %v4283_v4 = vadd.f32 1.0, %v7059_v40  ;;  %v13090_v51 = vadd.f32 %v15932_v11, %v4015_v1 }
 0x647   : > { %7076 = vpow2.f32 %v6664_v53  ;;  %v7063_v33 = vpop.eup %7062  ;;  %v4284_v48 = vadd.f32 1.0, %v7061_v54  ;;  %v6670_v1 = vmul.f32 -1.442695, %v12704_v2 }
 0x648   : > { %7078 = vrcp.f32 %v4281_v19  ;;  %v7065_v61 = vpop.eup %7064  ;;  %v4285_v53 = vadd.f32 1.0, %v7063_v33 }
 0x649   : > { %7080 = vrcp.f32 %v4282_v16  ;;  %v7067_v40 = vpop.eup %7066  ;;  %v13094_v16 = vadd.f32 %v15932_v11, %v4016_v7  ;;  %v4286_v17 = vadd.f32 1.0, %v7065_v61 }
 0x64a   : > { %5031 = vrot.lane.b32.xlu0 %v13040_v49, %s7613_s7  ;;  %5033 = vrot.lane.b32.xlu1 %v13048_v57, %s7613_s7  ;;  %7082 = vpow2.f32 %v6665_v62  ;;  %v7069_v54 = vpop.eup %7068 }
 0x64b   : > { %7084 = vpow2.f32 %v6666_v50  ;;  %15995 = vst [vmem:[#allocation251_spill] sm:$0xff] %v13094_v16  ;;  %v13098_v62 = vpop.eup %7070  ;;  %v4288_v5 = vadd.f32 1.0, %v7069_v54 }
 0x64c   : > { %v4920_v8 = vpop.permute.xlu0 %4919  ;;  %v4922_v37 = vpop.permute.xlu1 %4921  ;;  %7086 = vrcp.f32 %v4283_v4  ;;  %15996 = vst [vmem:[#allocation18_spill] sm:$0xff] %v13098_v62  ;;  %v4287_v4 = vadd.f32 1.0, %v7067_v40 }
 0x64d   : > { %7088 = vrcp.f32 %v4284_v48  ;;  %v5111_v50 = vmul.f32 %v13098_v62, %v4920_v8  ;;  %v6672_v8 = vmul.f32 -1.442695, %v12722_v32 }
 0x64e   : > { %5035 = vrot.lane.b32.xlu0 %v13060_v31, %s7613_s7  ;;  %5037 = vrot.lane.b32.xlu1 %v13066_v43, %s7613_s7  ;;  %7090 = vpow2.f32 %v6667_v27 }
 0x64f   : > { %v13103_v39 = vpop.eup %7072  ;;  %7092 = vpow2.f32 %v6668_v63 }
 0x650   : > { %v4924_v13 = vpop.permute.xlu0 %4923  ;;  %v4926_v18 = vpop.permute.xlu1 %4925  ;;  %15997 = vst [vmem:[#allocation19_spill] sm:$0xff] %v13103_v39  ;;  %7094 = vrcp.f32 %v4285_v53  ;;  %v5112_v33 = vmul.f32 %v13103_v39, %v4922_v37 }
 0x651   : > { %v7075_v48 = vpop.eup %7074  ;;  %7096 = vrcp.f32 %v4286_v17 }
 0x652   : > { %5039 = vrot.lane.b32.xlu0 %v13076_v3, %s7613_s7  ;;  %5041 = vrot.lane.b32.xlu1 %v13080_v24, %s7613_s7  ;;  %v7077_v11 = vpop.eup %7076  ;;  %7098 = vpow2.f32 %v6669_v14  ;;  %v4289_v53 = vadd.f32 1.0, %v7075_v48  ;;  %v6673_v14 = vmul.f32 -1.442695, %v12731_v56 }
 0x653   : > { %v13109_v27 = vpop.eup %7078  ;;  %7100 = vpow2.f32 %v6670_v1  ;;  %v4290_v39 = vadd.f32 1.0, %v7077_v11 }
 0x654   : > { %v4928_v38 = vpop.permute.xlu0 %4927  ;;  %v4930_v19 = vpop.permute.xlu1 %4929  ;;  %15998 = vst [vmem:[#allocation58_spill] sm:$0xff] %v13109_v27  ;;  %v5113_v37 = vmul.f32 %v13109_v27, %v4924_v13  ;;  %7102 = vrcp.f32 %v4287_v4  ;;  %v6674_v13 = vmul.f32 -1.442695, %v12738_v6 }
 0x655   : > { %v13113_v2 = vpop.eup %7080  ;;  %7104 = vrcp.f32 %v4288_v5 }
 0x656   : > { %5043 = vrot.lane.b32.xlu0 %v13090_v51, %s7613_s7  ;;  %5045 = vrot.lane.b32.xlu1 %v13094_v16, %s7613_s7  ;;  %v6671_v16 = vmul.f32 -1.442695, %v12717_v30  ;;  %15999 = vst [vmem:[#allocation178_spill] sm:$0xff] %v13113_v2  ;;  %v7083_v40 = vpop.eup %7082  ;;  %v5114_v54 = vmul.f32 %v13113_v2, %v4926_v18 }
 0x657   : > { %v4291_v11 = vadd.f32 1.0, %v7083_v40 }
 0x658   : > { %v4932_v7 = vpop.permute.xlu0 %4931  ;;  %v4934_v61 = vpop.permute.xlu1 %4933  ;;  %7106 = vpow2.f32 %v6671_v16  ;;  %v6675_v16 = vmul.f32 -1.442695, %v12749_v58 }
 0x659   : > { %7108 = vpow2.f32 %v6672_v8 }
 0x65a   : > { %5239 = vrot.lane.b32.xlu0 %v5111_v50, %s7612_s6  ;;  %5241 = vrot.lane.b32.xlu1 %v5112_v33, %s7612_s6  ;;  %v7085_v50 = vpop.eup %7084  ;;  %7110 = vrcp.f32 %v4289_v53 }
 0x65b   : > { %v13119_v30 = vpop.eup %7086  ;;  %7112 = vrcp.f32 %v4290_v39 }
 0x65c   : > { %v4936_v63 = vpop.permute.xlu0 %4935  ;;  %v4938_v17 = vpop.permute.xlu1 %4937  ;;  %16000 = vst [vmem:[#allocation314_spill] sm:$0xff] %v13119_v30  ;;  %v5115_v18 = vmul.f32 %v13119_v30, %v4928_v38  ;;  %7114 = vpow2.f32 %v6673_v14  ;;  %v6676_v38 = vmul.f32 -1.442695, %v12754_v29  ;;  %v6677_v14 = vmul.f32 -1.442695, %v12767_v0 }
 0x65d   : > { %v13123_v32 = vpop.eup %7088  ;;  %7116 = vpow2.f32 %v6674_v13 }
 0x65e   : > { %5243 = vrot.lane.b32.xlu0 %v5113_v37, %s7612_s6  ;;  %5245 = vrot.lane.b32.xlu1 %v5114_v54, %s7612_s6  ;;  %16001 = vst [vmem:[#allocation315_spill] sm:$0xff] %v13123_v32  ;;  %v7091_v48 = vpop.eup %7090  ;;  %v5116_v4 = vmul.f32 %v13123_v32, %v4930_v19  ;;  %v4292_v37 = vadd.f32 1.0, %v7085_v50  ;;  %7118 = vrcp.f32 %v4291_v11 }
 0x65f   : > { %v7093_v5 = vpop.eup %7092  ;;  %v4293_v53 = vadd.f32 1.0, %v7091_v48 }
 0x660   : > { %v4940_v1 = vpop.permute.xlu0 %4939  ;;  %v4942_v33 = vpop.permute.xlu1 %4941  ;;  %7120 = vrcp.f32 %v4292_v37 }
 0x661   : > { %v13129_v56 = vpop.eup %7094  ;;  %7122 = vpow2.f32 %v6675_v16  ;;  %v6679_v16 = vmul.f32 -1.442695, %v12781_v41 }
 0x662   : > { %5247 = vrot.lane.b32.xlu0 %v5115_v18, %s7612_s6  ;;  %16002 = vst [vmem:[#allocation59_spill] sm:$0xff] %v13129_v56  ;;  %5249 = vrot.lane.b32.xlu1 %v5116_v4, %s7612_s6  ;;  %v13133_v6 = vpop.eup %7096  ;;  %v5117_v19 = vmul.f32 %v13129_v56, %v4932_v7  ;;  %v4294_v18 = vadd.f32 1.0, %v7093_v5  ;;  %v6678_v7 = vmul.f32 -1.442695, %v12772_v28  ;;  %7124 = vpow2.f32 %v6676_v38 }
 0x663   : > { %16003 = vst [vmem:[#allocation179_spill] sm:$0xff] %v13133_v6  ;;  %v7099_v40 = vpop.eup %7098  ;;  %v5118_v39 = vmul.f32 %v13133_v6, %v4934_v61  ;;  %7126 = vrcp.f32 %v4293_v53 }
 0x664   : > { %v4944_v8 = vpop.permute.xlu0 %4943  ;;  %v4946_v54 = vpop.permute.xlu1 %4945  ;;  %v4295_v11 = vadd.f32 1.0, %v7099_v40  ;;  %7128 = vrcp.f32 %v4294_v18 }
 0x665   : > { %v7101_v50 = vpop.eup %7100  ;;  %7130 = vpow2.f32 %v6677_v14  ;;  %v6681_v14 = vmul.f32 -1.442695, %v12799_v42 }
 0x666   : > { %5251 = vrot.lane.b32.xlu0 %v5117_v19, %s7612_s6  ;;  %v13139_v58 = vpop.eup %7102  ;;  %5253 = vrot.lane.b32.xlu1 %v5118_v39, %s7612_s6  ;;  %v4296_v19 = vadd.f32 1.0, %v7101_v50  ;;  %7132 = vpow2.f32 %v6678_v7 }
 0x667   : > { %16004 = vst [vmem:[#allocation171_spill] sm:$0xff] %v13139_v58  ;;  %v13143_v29 = vpop.eup %7104  ;;  %v5119_v61 = vmul.f32 %v13139_v58, %v4936_v63  ;;  %v6680_v63 = vmul.f32 -1.442695, %v12788_v45  ;;  %7134 = vrcp.f32 %v4295_v11 }
 0x668   : > { %16005 = vst [vmem:[#allocation366_spill] sm:$0xff] %v13143_v29  ;;  %v4948_v13 = vpop.permute.xlu0 %4947  ;;  %v7107_v48 = vpop.eup %7106  ;;  %v5120_v4 = vmul.f32 %v13143_v29, %v4938_v17  ;;  %7136 = vrcp.f32 %v4296_v19 }
 0x669   : > { %v4950_v5 = vpop.permute.xlu1 %4949  ;;  %v7109_v37 = vpop.eup %7108  ;;  %v4297_v53 = vadd.f32 1.0, %v7107_v48  ;;  %7138 = vpow2.f32 %v6679_v16  ;;  %v6683_v16 = vmul.f32 -1.442695, %v12817_v46 }
 0x66a   : > { %5255 = vrot.lane.b32.xlu0 %v5119_v61, %s7612_s6  ;;  %v13149_v0 = vpop.eup %7110  ;;  %5257 = vrot.lane.b32.xlu1 %v5120_v4, %s7612_s6  ;;  %v4298_v61 = vadd.f32 1.0, %v7109_v37  ;;  %7140 = vpow2.f32 %v6680_v63 }
 0x66b   : > { %16006 = vst [vmem:[#allocation395_spill] sm:$0xff] %v13149_v0  ;;  %v13153_v28 = vpop.eup %7112  ;;  %v5121_v17 = vmul.f32 %v13149_v0, %v4940_v1  ;;  %v6682_v1 = vmul.f32 -1.442695, %v12804_v60  ;;  %7142 = vrcp.f32 %v4297_v53 }
 0x66c   : > { %16007 = vst [vmem:[#allocation367_spill] sm:$0xff] %v13153_v28  ;;  %v4952_v38 = vpop.permute.xlu0 %4951  ;;  %v7115_v40 = vpop.eup %7114  ;;  %v5122_v39 = vmul.f32 %v13153_v28, %v4942_v33  ;;  %7144 = vrcp.f32 %v4298_v61 }
 0x66d   : > { %v4954_v50 = vpop.permute.xlu1 %4953  ;;  %v7117_v18 = vpop.eup %7116  ;;  %v4299_v11 = vadd.f32 1.0, %v7115_v40  ;;  %7146 = vpow2.f32 %v6681_v14  ;;  %v16013_v14 = vld [vmem:[#allocation384_spill] sm:$0xff] }
 0x66e   : > { %5259 = vrot.lane.b32.xlu0 %v5121_v17, %s7612_s6  ;;  %v13159_v41 = vpop.eup %7118  ;;  %5261 = vrot.lane.b32.xlu1 %v5122_v39, %s7612_s6  ;;  %v4300_v17 = vadd.f32 1.0, %v7117_v18  ;;  %7148 = vpow2.f32 %v6682_v1 }
 0x66f   : > { %16008 = vst [vmem:[#allocation396_spill] sm:$0xff] %v13159_v41  ;;  %v13163_v45 = vpop.eup %7120  ;;  %v5123_v33 = vmul.f32 %v13159_v41, %v4944_v8  ;;  %v6684_v8 = vmul.f32 -1.442695, %v12822_v26  ;;  %7150 = vrcp.f32 %v4299_v11 }
 0x670   : > { %16009 = vst [vmem:[#allocation170_spill] sm:$0xff] %v13163_v45  ;;  %v4956_v7 = vpop.permute.xlu0 %4955  ;;  %v7123_v48 = vpop.eup %7122  ;;  %v5124_v4 = vmul.f32 %v13163_v45, %v4946_v54  ;;  %7152 = vrcp.f32 %v4300_v17 }
 0x671   : > { %v4958_v37 = vpop.permute.xlu1 %4957  ;;  %v7125_v19 = vpop.eup %7124  ;;  %v4301_v53 = vadd.f32 1.0, %v7123_v48  ;;  %7154 = vpow2.f32 %v6683_v16 }
 0x672   : > { %5263 = vrot.lane.b32.xlu0 %v5123_v33, %s7612_s6  ;;  %v13169_v42 = vpop.eup %7126  ;;  %5265 = vrot.lane.b32.xlu1 %v5124_v4, %s7612_s6  ;;  %v4302_v33 = vadd.f32 1.0, %v7125_v19  ;;  %v6685_v4 = vmul.f32 -1.442695, %v16013_v14  ;;  %7156 = vpow2.f32 %v6684_v8  ;;  %v16018_v8 = vld [vmem:[#allocation382_spill] sm:$0xff] }
 0x673   : > { %16010 = vst [vmem:[#allocation274_spill] sm:$0xff] %v13169_v42  ;;  %v13173_v60 = vpop.eup %7128  ;;  %v5125_v54 = vmul.f32 %v13169_v42, %v4948_v13  ;;  %v16015_v13 = vld [vmem:[#allocation248_spill] sm:$0xff]  ;;  %7158 = vrcp.f32 %v4301_v53 }
 0x674   : > { %16011 = vst [vmem:[#allocation275_spill] sm:$0xff] %v13173_v60  ;;  %v4960_v63 = vpop.permute.xlu0 %4959  ;;  %v7131_v40 = vpop.eup %7130  ;;  %v5126_v39 = vmul.f32 %v13173_v60, %v4950_v5  ;;  %v6686_v1 = vmul.f32 -1.442695, %v16015_v13  ;;  %7160 = vrcp.f32 %v4302_v33 }
 0x675   : > { %v4962_v18 = vpop.permute.xlu1 %4961  ;;  %v7133_v61 = vpop.eup %7132  ;;  %v4303_v19 = vadd.f32 1.0, %v7131_v40  ;;  %7162 = vpow2.f32 %v6685_v4  ;;  %v6688_v40 = vmul.f32 -1.442695, %v16018_v8  ;;  %v6689_v4 = vmul.f32 -1.442695, %v12867_v44 }
 0x676   : > { %5267 = vrot.lane.b32.xlu0 %v5125_v54, %s7612_s6  ;;  %v13179_v46 = vpop.eup %7134  ;;  %5269 = vrot.lane.b32.xlu1 %v5126_v39, %s7612_s6  ;;  %v4304_v42 = vadd.f32 1.0, %v7133_v61  ;;  %v6687_v39 = vmul.f32 -1.442695, %v12849_v47  ;;  %7164 = vpow2.f32 %v6686_v1  ;;  %v6690_v1 = vmul.f32 -1.442695, %v12872_v21 }
 0x677   : > { %16012 = vst [vmem:[#allocation332_spill] sm:$0xff] %v13179_v46  ;;  %v13183_v26 = vpop.eup %7136  ;;  %v5127_v5 = vmul.f32 %v13179_v46, %v4952_v38  ;;  %7166 = vrcp.f32 %v4303_v19 }
 0x678   : > { %16014 = vst [vmem:[#allocation399_spill] sm:$0xff] %v13183_v26  ;;  %v4964_v48 = vpop.permute.xlu0 %4963  ;;  %v7139_v11 = vpop.eup %7138  ;;  %v5128_v17 = vmul.f32 %v13183_v26, %v4954_v50  ;;  %7168 = vrcp.f32 %v4304_v42 }
 0x679   : > { %v4966_v54 = vpop.permute.xlu1 %4965  ;;  %v7141_v60 = vpop.eup %7140  ;;  %v4305_v61 = vadd.f32 1.0, %v7139_v11  ;;  %7170 = vpow2.f32 %v6687_v39  ;;  %v6691_v39 = vmul.f32 -1.442695, %v12881_v59 }
 0x67a   : > { %5271 = vrot.lane.b32.xlu0 %v5127_v5, %s7612_s6  ;;  %v13189_v16 = vpop.eup %7142  ;;  %5273 = vrot.lane.b32.xlu1 %v5128_v17, %s7612_s6  ;;  %v4306_v26 = vadd.f32 1.0, %v7141_v60  ;;  %7172 = vpow2.f32 %v6688_v40 }
 0x67b   : > { %16016 = vst [vmem:[#allocation333_spill] sm:$0xff] %v13189_v16  ;;  %v13193_v38 = vpop.eup %7144  ;;  %v5129_v50 = vmul.f32 %v13189_v16, %v4956_v7  ;;  %7174 = vrcp.f32 %v4305_v61 }
 0x67c   : > { %16017 = vst [vmem:[#allocation400_spill] sm:$0xff] %v13193_v38  ;;  %v4968_v53 = vpop.permute.xlu0 %4967  ;;  %v7147_v14 = vpop.eup %7146  ;;  %v5130_v33 = vmul.f32 %v13193_v38, %v4958_v37  ;;  %7176 = vrcp.f32 %v4306_v26 }
 0x67d   : > { %v4970_v13 = vpop.permute.xlu1 %4969  ;;  %v7149_v5 = vpop.eup %7148  ;;  %v4307_v60 = vadd.f32 1.0, %v7147_v14  ;;  %7178 = vpow2.f32 %v6689_v4  ;;  %v6693_v4 = vmul.f32 -1.442695, %v12899_v15 }
 0x67e   : > { %5275 = vrot.lane.b32.xlu0 %v5129_v50, %s7612_s6  ;;  %v13199_v47 = vpop.eup %7150  ;;  %5277 = vrot.lane.b32.xlu1 %v5130_v33, %s7612_s6  ;;  %v4308_v50 = vadd.f32 1.0, %v7149_v5  ;;  %7180 = vpow2.f32 %v6690_v1  ;;  %v6694_v1 = vmul.f32 -1.442695, %v12904_v22 }
 0x67f   : > { %16019 = vst [vmem:[#allocation390_spill] sm:$0xff] %v13199_v47  ;;  %v13203_v7 = vpop.eup %7152  ;;  %v5131_v37 = vmul.f32 %v13199_v47, %v4960_v63  ;;  %v16023_v63 = vld [vmem:[#allocation313_spill] sm:$0xff]  ;;  %7182 = vrcp.f32 %v4307_v60 }
 0x680   : > { %16020 = vst [vmem:[#allocation391_spill] sm:$0xff] %v13203_v7  ;;  %v4972_v11 = vpop.permute.xlu0 %4971  ;;  %v7155_v19 = vpop.eup %7154  ;;  %v5132_v42 = vmul.f32 %v13203_v7, %v4962_v18  ;;  %v6692_v40 = vmul.f32 -1.442695, %v16023_v63  ;;  %7184 = vrcp.f32 %v4308_v50 }
 0x681   : > { %v4974_v17 = vpop.permute.xlu1 %4973  ;;  %v7157_v8 = vpop.eup %7156  ;;  %v4309_v33 = vadd.f32 1.0, %v7155_v19  ;;  %7186 = vpow2.f32 %v6691_v39  ;;  %v6695_v39 = vmul.f32 -1.442695, %v12917_v35 }
 0x682   : > { %5279 = vrot.lane.b32.xlu0 %v5131_v37, %s7612_s6  ;;  %v13209_v44 = vpop.eup %7158  ;;  %5281 = vrot.lane.b32.xlu1 %v5132_v42, %s7612_s6  ;;  %v4310_v7 = vadd.f32 1.0, %v7157_v8  ;;  %7188 = vpow2.f32 %v6692_v40 }
 0x683   : > { %16021 = vst [vmem:[#allocation142_spill] sm:$0xff] %v13209_v44  ;;  %v13213_v21 = vpop.eup %7160  ;;  %v5133_v18 = vmul.f32 %v13209_v44, %v4964_v48  ;;  %7190 = vrcp.f32 %v4309_v33 }
 0x684   : > { %16022 = vst [vmem:[#allocation253_spill] sm:$0xff] %v13213_v21  ;;  %v4976_v14 = vpop.permute.xlu0 %4975  ;;  %v7163_v61 = vpop.eup %7162  ;;  %v5134_v26 = vmul.f32 %v13213_v21, %v4966_v54  ;;  %7192 = vrcp.f32 %v4310_v7 }
 0x685   : > { %v4978_v5 = vpop.permute.xlu1 %4977  ;;  %v7165_v37 = vpop.eup %7164  ;;  %v4311_v42 = vadd.f32 1.0, %v7163_v61  ;;  %7194 = vpow2.f32 %v6693_v4  ;;  %v6697_v4 = vmul.f32 -1.442695, %v12931_v36 }
 0x686   : > { %5283 = vrot.lane.b32.xlu0 %v5133_v18, %s7612_s6  ;;  %v13219_v59 = vpop.eup %7166  ;;  %5285 = vrot.lane.b32.xlu1 %v5134_v26, %s7612_s6  ;;  %v4312_v18 = vadd.f32 1.0, %v7165_v37  ;;  %7196 = vpow2.f32 %v6694_v1  ;;  %v6698_v1 = vmul.f32 -1.442695, %v12938_v10 }
 0x687   : > { %16024 = vst [vmem:[#allocation143_spill] sm:$0xff] %v13219_v59  ;;  %v13223_v48 = vpop.eup %7168  ;;  %v5135_v54 = vmul.f32 %v13219_v59, %v4968_v53  ;;  %v16028_v53 = vld [vmem:[#allocation388_spill] sm:$0xff]  ;;  %7198 = vrcp.f32 %v4311_v42 }
 0x688   : > { %16025 = vst [vmem:[#allocation254_spill] sm:$0xff] %v13223_v48  ;;  %v4980_v19 = vpop.permute.xlu0 %4979  ;;  %v7171_v60 = vpop.eup %7170  ;;  %v5136_v8 = vmul.f32 %v13223_v48, %v4970_v13  ;;  %v6696_v40 = vmul.f32 -1.442695, %v16028_v53  ;;  %7200 = vrcp.f32 %v4312_v18 }
 0x689   : > { %v4982_v50 = vpop.permute.xlu1 %4981  ;;  %v7173_v63 = vpop.eup %7172  ;;  %v4313_v26 = vadd.f32 1.0, %v7171_v60  ;;  %7202 = vpow2.f32 %v6695_v39  ;;  %v16032_v39 = vld [vmem:[#allocation273_spill] sm:$0xff] }
 0x68a   : > { %5287 = vrot.lane.b32.xlu0 %v5135_v54, %s7612_s6  ;;  %v13229_v15 = vpop.eup %7174  ;;  %5289 = vrot.lane.b32.xlu1 %v5136_v8, %s7612_s6  ;;  %v4314_v48 = vadd.f32 1.0, %v7173_v63  ;;  %7204 = vpow2.f32 %v6696_v40 }
 0x68b   : > { %16026 = vst [vmem:[#allocation20_spill] sm:$0xff] %v13229_v15  ;;  %v13233_v22 = vpop.eup %7176  ;;  %v5137_v13 = vmul.f32 %v13229_v15, %v4972_v11  ;;  %7206 = vrcp.f32 %v4313_v26 }
 0x68c   : > { %16027 = vst [vmem:[#allocation21_spill] sm:$0xff] %v13233_v22  ;;  %v4984_v61 = vpop.permute.xlu0 %4983  ;;  %v7179_v33 = vpop.eup %7178  ;;  %v5138_v7 = vmul.f32 %v13233_v22, %v4974_v17  ;;  %7208 = vrcp.f32 %v4314_v48 }
 0x68d   : > { %v4986_v37 = vpop.permute.xlu1 %4985  ;;  %v7181_v54 = vpop.eup %7180  ;;  %v4315_v8 = vadd.f32 1.0, %v7179_v33  ;;  %7210 = vpow2.f32 %v6697_v4 }
 0x68e   : > { %5291 = vrot.lane.b32.xlu0 %v5137_v13, %s7612_s6  ;;  %v13239_v35 = vpop.eup %7182  ;;  %5293 = vrot.lane.b32.xlu1 %v5138_v7, %s7612_s6  ;;  %v4316_v13 = vadd.f32 1.0, %v7181_v54  ;;  %v6699_v7 = vmul.f32 -1.442695, %v16032_v39  ;;  %7212 = vpow2.f32 %v6698_v1 }
 0x68f   : > { %16029 = vst [vmem:[#allocation62_spill] sm:$0xff] %v13239_v35  ;;  %v13243_v11 = vpop.eup %7184  ;;  %v5139_v17 = vmul.f32 %v13239_v35, %v4976_v14  ;;  %v6700_v14 = vmul.f32 -1.442695, %v12954_v34  ;;  %7214 = vrcp.f32 %v4315_v8 }
 0x690   : > { %16030 = vst [vmem:[#allocation182_spill] sm:$0xff] %v13243_v11  ;;  %v4988_v60 = vpop.permute.xlu0 %4987  ;;  %v7187_v42 = vpop.eup %7186  ;;  %v5140_v63 = vmul.f32 %v13243_v11, %v4978_v5  ;;  %7216 = vrcp.f32 %v4316_v13 }
 0x691   : > { %v4990_v18 = vpop.permute.xlu1 %4989  ;;  %v7189_v53 = vpop.eup %7188  ;;  %v4317_v26 = vadd.f32 1.0, %v7187_v42  ;;  %7218 = vpow2.f32 %v6699_v7  ;;  %v6703_v7 = vmul.f32 -1.442695, %v12983_v55 }
 0x692   : > { %5295 = vrot.lane.b32.xlu0 %v5139_v17, %s7612_s6  ;;  %v13249_v36 = vpop.eup %7190  ;;  %5297 = vrot.lane.b32.xlu1 %v5140_v63, %s7612_s6  ;;  %v4318_v11 = vadd.f32 1.0, %v7189_v53  ;;  %v6701_v63 = vmul.f32 -1.442695, %v12967_v23  ;;  %7220 = vpow2.f32 %v6700_v14  ;;  %v6704_v14 = vmul.f32 -1.442695, %v12991_v20 }
 0x693   : > { %16031 = vst [vmem:[#allocation316_spill] sm:$0xff] %v13249_v36  ;;  %v13253_v10 = vpop.eup %7192  ;;  %v5141_v5 = vmul.f32 %v13249_v36, %v4980_v19  ;;  %v16036_v19 = vld [vmem:[#allocation331_spill] sm:$0xff]  ;;  %7222 = vrcp.f32 %v4317_v26 }
 0x694   : > { %16033 = vst [vmem:[#allocation317_spill] sm:$0xff] %v13253_v10  ;;  %v4992_v40 = vpop.permute.xlu0 %4991  ;;  %v7195_v33 = vpop.eup %7194  ;;  %v5142_v48 = vmul.f32 %v13253_v10, %v4982_v50  ;;  %v6702_v1 = vmul.f32 -1.442695, %v16036_v19  ;;  %7224 = vrcp.f32 %v4318_v11 }
 0x695   : > { %v4994_v54 = vpop.permute.xlu1 %4993  ;;  %v7197_v17 = vpop.eup %7196  ;;  %v4319_v53 = vadd.f32 1.0, %v7195_v33  ;;  %7226 = vpow2.f32 %v6701_v63  ;;  %v6705_v63 = vmul.f32 -1.442695, %v13003_v25 }
 0x696   : > { %5299 = vrot.lane.b32.xlu0 %v5141_v5, %s7612_s6  ;;  %v13259_v4 = vpop.eup %7198  ;;  %5301 = vrot.lane.b32.xlu1 %v5142_v48, %s7612_s6  ;;  %v4320_v10 = vadd.f32 1.0, %v7197_v17  ;;  %7228 = vpow2.f32 %v6702_v1 }
 0x697   : > { %16034 = vst [vmem:[#allocation63_spill] sm:$0xff] %v13259_v4  ;;  %v13263_v34 = vpop.eup %7200  ;;  %v5143_v50 = vmul.f32 %v13259_v4, %v4984_v61  ;;  %7230 = vrcp.f32 %v4319_v53 }
 0x698   : > { %16035 = vst [vmem:[#allocation183_spill] sm:$0xff] %v13263_v34  ;;  %v4996_v42 = vpop.permute.xlu0 %4995  ;;  %v7203_v8 = vpop.eup %7202  ;;  %v5144_v13 = vmul.f32 %v13263_v34, %v4986_v37  ;;  %7232 = vrcp.f32 %v4320_v10 }
 0x699   : > { %v4998_v39 = vpop.permute.xlu1 %4997  ;;  %v7205_v5 = vpop.eup %7204  ;;  %v4321_v48 = vadd.f32 1.0, %v7203_v8  ;;  %7234 = vpow2.f32 %v6703_v7  ;;  %v6707_v7 = vmul.f32 -1.442695, %v13023_v12 }
 0x69a   : > { %5303 = vrot.lane.b32.xlu0 %v5143_v50, %s7612_s6  ;;  %v13269_v23 = vpop.eup %7206  ;;  %5305 = vrot.lane.b32.xlu1 %v5144_v13, %s7612_s6  ;;  %v4322_v50 = vadd.f32 1.0, %v7205_v5  ;;  %7236 = vpow2.f32 %v6704_v14 }
 0x69b   : > { %16037 = vst [vmem:[#allocation173_spill] sm:$0xff] %v13269_v23  ;;  %v13273_v61 = vpop.eup %7208  ;;  %v5145_v37 = vmul.f32 %v13269_v23, %v4988_v60  ;;  %v6706_v60 = vmul.f32 -1.442695, %v13009_v9  ;;  %7238 = vrcp.f32 %v4321_v48 }
 0x69c   : > { %16038 = vst [vmem:[#allocation246_spill] sm:$0xff] %v13273_v61  ;;  %v5000_v33 = vpop.permute.xlu0 %4999  ;;  %v7211_v26 = vpop.eup %7210  ;;  %v5146_v11 = vmul.f32 %v13273_v61, %v4990_v18  ;;  %7240 = vrcp.f32 %v4322_v50 }
 0x69d   : > { %v5002_v17 = vpop.permute.xlu1 %5001  ;;  %v7213_v19 = vpop.eup %7212  ;;  %v4323_v53 = vadd.f32 1.0, %v7211_v26  ;;  %7242 = vpow2.f32 %v6705_v63  ;;  %v6709_v63 = vmul.f32 -1.442695, %v13040_v49 }
 0x69e   : > { %5307 = vrot.lane.b32.xlu0 %v5145_v37, %s7612_s6  ;;  %v13279_v55 = vpop.eup %7214  ;;  %5309 = vrot.lane.b32.xlu1 %v5146_v11, %s7612_s6  ;;  %v4324_v37 = vadd.f32 1.0, %v7213_v19  ;;  %7244 = vpow2.f32 %v6706_v60 }
 0x69f   : > { %16039 = vst [vmem:[#allocation405_spill] sm:$0xff] %v13279_v55  ;;  %v13283_v20 = vpop.eup %7216  ;;  %v5147_v18 = vmul.f32 %v13279_v55, %v4992_v40  ;;  %v6708_v40 = vmul.f32 -1.442695, %v13029_v52  ;;  %7246 = vrcp.f32 %v4323_v53 }
 0x6a0   : > { %16040 = vst [vmem:[#allocation368_spill] sm:$0xff] %v13283_v20  ;;  %v5004_v1 = vpop.permute.xlu0 %5003  ;;  %v7219_v8 = vpop.eup %7218  ;;  %v5148_v10 = vmul.f32 %v13283_v20, %v4994_v54  ;;  %7248 = vrcp.f32 %v4324_v37 }
 0x6a1   : > { %v5006_v13 = vpop.permute.xlu1 %5005  ;;  %v7221_v5 = vpop.eup %7220  ;;  %v4325_v48 = vadd.f32 1.0, %v7219_v8  ;;  %7250 = vpow2.f32 %v6707_v7  ;;  %v6711_v7 = vmul.f32 -1.442695, %v13060_v31 }
 0x6a2   : > { %5311 = vrot.lane.b32.xlu0 %v5147_v18, %s7612_s6  ;;  %v13289_v25 = vpop.eup %7222  ;;  %5313 = vrot.lane.b32.xlu1 %v5148_v10, %s7612_s6  ;;  %v4326_v18 = vadd.f32 1.0, %v7221_v5  ;;  %7252 = vpow2.f32 %v6708_v40 }
 0x6a3   : > { %16041 = vst [vmem:[#allocation406_spill] sm:$0xff] %v13289_v25  ;;  %v13293_v9 = vpop.eup %7224  ;;  %v5149_v54 = vmul.f32 %v13289_v25, %v4996_v42  ;;  %v6710_v42 = vmul.f32 -1.442695, %v13048_v57  ;;  %7254 = vrcp.f32 %v4325_v48 }
 0x6a4   : > { %16042 = vst [vmem:[#allocation172_spill] sm:$0xff] %v13293_v9  ;;  %v5008_v14 = vpop.permute.xlu0 %5007  ;;  %v7227_v26 = vpop.eup %7226  ;;  %v5150_v11 = vmul.f32 %v13293_v9, %v4998_v39  ;;  %7256 = vrcp.f32 %v4326_v18 }
 0x6a5   : > { %v5010_v19 = vpop.permute.xlu1 %5009  ;;  %v7229_v50 = vpop.eup %7228  ;;  %v4327_v53 = vadd.f32 1.0, %v7227_v26  ;;  %7258 = vpow2.f32 %v6709_v63  ;;  %v6714_v63 = vmul.f32 -1.442695, %v13080_v24 }
 0x6a6   : > { %5315 = vrot.lane.b32.xlu0 %v5149_v54, %s7612_s6  ;;  %v13299_v12 = vpop.eup %7230  ;;  %5317 = vrot.lane.b32.xlu1 %v5150_v11, %s7612_s6  ;;  %v4328_v54 = vadd.f32 1.0, %v7229_v50  ;;  %7260 = vpow2.f32 %v6710_v42 }
 0x6a7   : > { %16043 = vst [vmem:[#allocation276_spill] sm:$0xff] %v13299_v12  ;;  %v13303_v52 = vpop.eup %7232  ;;  %v5151_v39 = vmul.f32 %v13299_v12, %v5000_v33  ;;  %v6712_v33 = vmul.f32 -1.442695, %v13066_v43  ;;  %7262 = vrcp.f32 %v4327_v53 }
 0x6a8   : > { %16044 = vst [vmem:[#allocation277_spill] sm:$0xff] %v13303_v52  ;;  %v5012_v60 = vpop.permute.xlu0 %5011  ;;  %v7235_v8 = vpop.eup %7234  ;;  %v5152_v10 = vmul.f32 %v13303_v52, %v5002_v17  ;;  %7264 = vrcp.f32 %v4328_v54 }
 0x6a9   : > { %v5014_v5 = vpop.permute.xlu1 %5013  ;;  %v7237_v37 = vpop.eup %7236  ;;  %v4329_v48 = vadd.f32 1.0, %v7235_v8  ;;  %7266 = vpow2.f32 %v6711_v7  ;;  %v16051_v7 = vld [vmem:[#allocation251_spill] sm:$0xff] }
 0x6aa   : > { %5319 = vrot.lane.b32.xlu0 %v5151_v39, %s7612_s6  ;;  %v13309_v49 = vpop.eup %7238  ;;  %5321 = vrot.lane.b32.xlu1 %v5152_v10, %s7612_s6  ;;  %v4330_v39 = vadd.f32 1.0, %v7237_v37  ;;  %7268 = vpow2.f32 %v6712_v33  ;;  %v6716_v33 = vmul.f32 -1.442695, %v16051_v7 }
 0x6ab   : > { %16045 = vst [vmem:[#allocation334_spill] sm:$0xff] %v13309_v49  ;;  %v13313_v57 = vpop.eup %7240  ;;  %v5153_v17 = vmul.f32 %v13309_v49, %v5004_v1  ;;  %v6713_v1 = vmul.f32 -1.442695, %v13076_v3  ;;  %7270 = vrcp.f32 %v4329_v48  ;;  %v6715_v3 = vmul.f32 -1.442695, %v13090_v51 }
 0x6ac   : > { %16046 = vst [vmem:[#allocation409_spill] sm:$0xff] %v13313_v57  ;;  %v5016_v40 = vpop.permute.xlu0 %5015  ;;  %v7243_v26 = vpop.eup %7242  ;;  %v5154_v11 = vmul.f32 %v13313_v57, %v5006_v13  ;;  %7272 = vrcp.f32 %v4330_v39 }
 0x6ad   : > { %v5018_v50 = vpop.permute.xlu1 %5017  ;;  %v7245_v18 = vpop.eup %7244  ;;  %v4331_v53 = vadd.f32 1.0, %v7243_v26  ;;  %7274 = vpow2.f32 %v6714_v63 }
 0x6ae   : > { %5323 = vrot.lane.b32.xlu0 %v5153_v17, %s7612_s6  ;;  %v13319_v31 = vpop.eup %7246  ;;  %5325 = vrot.lane.b32.xlu1 %v5154_v11, %s7612_s6  ;;  %v4332_v17 = vadd.f32 1.0, %v7245_v18  ;;  %7276 = vpow2.f32 %v6713_v1 }
 0x6af   : > { %16047 = vst [vmem:[#allocation335_spill] sm:$0xff] %v13319_v31  ;;  %v13323_v43 = vpop.eup %7248  ;;  %v5155_v13 = vmul.f32 %v13319_v31, %v5008_v14  ;;  %7278 = vrcp.f32 %v4331_v53 }
 0x6b0   : > { %16048 = vst [vmem:[#allocation410_spill] sm:$0xff] %v13323_v43  ;;  %v5020_v42 = vpop.permute.xlu0 %5019  ;;  %v7251_v8 = vpop.eup %7250  ;;  %v5156_v10 = vmul.f32 %v13323_v43, %v5010_v19  ;;  %7280 = vrcp.f32 %v4332_v17 }
 0x6b1   : > { %v5022_v37 = vpop.permute.xlu1 %5021  ;;  %v7253_v54 = vpop.eup %7252  ;;  %v4333_v11 = vadd.f32 1.0, %v7251_v8  ;;  %7282 = vpow2.f32 %v6715_v3 }
 0x6b2   : > { %5327 = vrot.lane.b32.xlu0 %v5155_v13, %s7612_s6  ;;  %v13329_v24 = vpop.eup %7254  ;;  %5329 = vrot.lane.b32.xlu1 %v5156_v10, %s7612_s6  ;;  %v4334_v63 = vadd.f32 1.0, %v7253_v54  ;;  %7284 = vpow2.f32 %v6716_v33 }
 0x6b3   : > { %16049 = vst [vmem:[#allocation393_spill] sm:$0xff] %v13329_v24  ;;  %v13333_v14 = vpop.eup %7256  ;;  %v5157_v19 = vmul.f32 %v13329_v24, %v5012_v60  ;;  %7286 = vrcp.f32 %v4333_v11 }
 0x6b4   : > { %16050 = vst [vmem:[#allocation394_spill] sm:$0xff] %v13333_v14  ;;  %v5024_v26 = vpop.permute.xlu0 %5023  ;;  %v7259_v48 = vpop.eup %7258  ;;  %v5158_v18 = vmul.f32 %v13333_v14, %v5014_v5  ;;  %7288 = vrcp.f32 %v4334_v63 }
 0x6b5   : > { %v5026_v39 = vpop.permute.xlu1 %5025  ;;  %v7261_v13 = vpop.eup %7260  ;;  %v4335_v10 = vadd.f32 1.0, %v7259_v48 }
 0x6b6   : > { %5331 = vrot.lane.b32.xlu0 %v5157_v19, %s7612_s6  ;;  %v13339_v51 = vpop.eup %7262  ;;  %5333 = vrot.lane.b32.xlu1 %v5158_v18, %s7612_s6  ;;  %v4336_v7 = vadd.f32 1.0, %v7261_v13 }
 0x6b7   : > { %16052 = vst [vmem:[#allocation23_spill] sm:$0xff] %v13339_v51  ;;  %v13342_v1 = vpop.eup %7264  ;;  %v5159_v60 = vmul.f32 %v13339_v51, %v5016_v40  ;;  %7290 = vrcp.f32 %v4335_v10 }
 0x6b8   : > { %16053 = vst [vmem:[#allocation256_spill] sm:$0xff] %v13342_v1  ;;  %v5028_v8 = vpop.permute.xlu0 %5027  ;;  %v7267_v53 = vpop.eup %7266  ;;  %v5160_v5 = vmul.f32 %v13342_v1, %v5018_v50  ;;  %7292 = vrcp.f32 %v4336_v7 }
 0x6b9   : > { %v5030_v54 = vpop.permute.xlu1 %5029  ;;  %v7269_v17 = vpop.eup %7268  ;;  %v4337_v48 = vadd.f32 1.0, %v7267_v53 }
 0x6ba   : > { %5335 = vrot.lane.b32.xlu0 %v5159_v60, %s7612_s6  ;;  %v13347_v3 = vpop.eup %7270  ;;  %5337 = vrot.lane.b32.xlu1 %v5160_v5, %s7612_s6  ;;  %v4338_v13 = vadd.f32 1.0, %v7269_v17 }
 0x6bb   : > { %16054 = vst [vmem:[#allocation146_spill] sm:$0xff] %v13347_v3  ;;  %v13350_v19 = vpop.eup %7272  ;;  %v5161_v40 = vmul.f32 %v13347_v3, %v5020_v42  ;;  %7294 = vrcp.f32 %v4337_v48 }
 0x6bc   : > { %16055 = vst [vmem:[#allocation257_spill] sm:$0xff] %v13350_v19  ;;  %v5032_v33 = vpop.permute.xlu0 %5031  ;;  %v7275_v18 = vpop.eup %7274  ;;  %v5162_v50 = vmul.f32 %v13350_v19, %v5022_v37  ;;  %7296 = vrcp.f32 %v4338_v13 }
 0x6bd   : > { %v5034_v11 = vpop.permute.xlu1 %5033  ;;  %v7277_v1 = vpop.eup %7276  ;;  %v4340_v17 = vadd.f32 1.0, %v7275_v18 }
 0x6be   : > { %5339 = vrot.lane.b32.xlu0 %v5161_v40, %s7612_s6  ;;  %v13355_v63 = vpop.eup %7278  ;;  %5341 = vrot.lane.b32.xlu1 %v5162_v50, %s7612_s6  ;;  %v4339_v53 = vadd.f32 1.0, %v7277_v1 }
 0x6bf   : > { %16056 = vst [vmem:[#allocation22_spill] sm:$0xff] %v13355_v63  ;;  %v13358_v60 = vpop.eup %7280  ;;  %v5163_v42 = vmul.f32 %v13355_v63, %v5024_v26 }
 0x6c0   : > { %16057 = vst [vmem:[#allocation249_spill] sm:$0xff] %v13358_v60  ;;  %v5036_v5 = vpop.permute.xlu0 %5035  ;;  %v7283_v3 = vpop.eup %7282  ;;  %v5164_v37 = vmul.f32 %v13358_v60, %v5026_v39  ;;  %7298 = vrcp.f32 %v4339_v53 }
 0x6c1   : > { %v5038_v10 = vpop.permute.xlu1 %5037  ;;  %v7285_v19 = vpop.eup %7284  ;;  %v4341_v63 = vadd.f32 1.0, %v7283_v3  ;;  %7300 = vrcp.f32 %v4340_v17 }
 0x6c2   : > { %5343 = vrot.lane.b32.xlu0 %v5163_v42, %s7612_s6  ;;  %v13363_v7 = vpop.eup %7286  ;;  %5345 = vrot.lane.b32.xlu1 %v5164_v37, %s7612_s6  ;;  %v4342_v48 = vadd.f32 1.0, %v7285_v19  ;;  %v16063_v19 = vld [vmem:[#allocation233_spill] sm:$0xff] }
 0x6c3   : > { %16058 = vst [vmem:[#allocation66_spill] sm:$0xff] %v13363_v7  ;;  %v13366_v40 = vpop.eup %7288  ;;  %v5165_v26 = vmul.f32 %v13363_v7, %v5028_v8  ;;  %7302 = vrcp.f32 %v4341_v63  ;;  %v4791_v53 = vmul.f32 %v13098_v62, %v16063_v19 }
 0x6c4   : > { %16059 = vst [vmem:[#allocation186_spill] sm:$0xff] %v13366_v40  ;;  %v5040_v50 = vpop.permute.xlu0 %5039  ;;  %v5166_v1 = vmul.f32 %v13366_v40, %v5030_v54  ;;  %v13371_v18 = vpop.eup %7290  ;;  %7304 = vrcp.f32 %v4342_v48 }
 0x6c5   : > { %v5042_v39 = vpop.permute.xlu1 %5041  ;;  %16060 = vst [vmem:[#allocation318_spill] sm:$0xff] %v13371_v18  ;;  %v13374_v13 = vpop.eup %7292  ;;  %v5167_v42 = vmul.f32 %v13371_v18, %v5032_v33 }
 0x6c6   : > { %5347 = vrot.lane.b32.xlu0 %v5165_v26, %s7612_s6  ;;  %5349 = vrot.lane.b32.xlu1 %v5166_v1, %s7612_s6  ;;  %16061 = vst [vmem:[#allocation319_spill] sm:$0xff] %v13374_v13  ;;  %v5168_v8 = vmul.f32 %v13374_v13, %v5034_v11  ;;  %v13379_v54 = vpop.eup %7294  ;;  %v16065_v26 = vld [vmem:[#allocation16_spill] sm:$0xff]  ;;  %v16066_v1 = vld [vmem:[#allocation19_spill] sm:$0xff] }
 0x6c7   : > { %16062 = vst [vmem:[#allocation67_spill] sm:$0xff] %v13379_v54  ;;  %v13384_v17 = vpop.eup %7296  ;;  %v4792_v33 = vmul.f32 %v16066_v1, %v16065_v26  ;;  %v5169_v63 = vmul.f32 %v13379_v54, %v5036_v5  ;;  %v16070_v26 = vld [vmem:[#allocation307_spill] sm:$0xff] }
 0x6c8   : > { %v5044_v37 = vpop.permute.xlu0 %5043  ;;  %16064 = vst [vmem:[#allocation187_spill] sm:$0xff] %v13384_v17  ;;  %v5170_v11 = vmul.f32 %v13384_v17, %v5038_v10  ;;  %v4794_v10 = vmul.f32 %v13113_v2, %v16070_v26  ;;  %v16074_v26 = vld [vmem:[#allocation164_spill] sm:$0xff] }
 0x6c9   : > { %v5046_v3 = vpop.permute.xlu1 %5045 }
 0x6ca   : > { %5351 = vrot.lane.b32.xlu0 %v5167_v42, %s7612_s6  ;;  %5353 = vrot.lane.b32.xlu1 %v5168_v8, %s7612_s6  ;;  %v13395_v19 = vpop.eup %7298  ;;  %v16068_v8 = vld [vmem:[#allocation306_spill] sm:$0xff] }
 0x6cb   : > { %16067 = vst [vmem:[#allocation177_spill] sm:$0xff] %v13395_v19  ;;  %v4793_v62 = vmul.f32 %v13109_v27, %v16068_v8  ;;  %v13401_v5 = vpop.eup %7300  ;;  %v16072_v27 = vld [vmem:[#allocation163_spill] sm:$0xff] }
 0x6cc   : > { %v5240_v18 = vpop.permute.xlu0 %5239  ;;  %16069 = vst [vmem:[#allocation369_spill] sm:$0xff] %v13401_v5  ;;  %v4795_v1 = vmul.f32 %v13119_v30, %v16072_v27 }
 0x6cd   : > { %v5242_v48 = vpop.permute.xlu1 %5241  ;;  %v13390_v13 = vadd.f32 %v5240_v18, %v4791_v53  ;;  %v5171_v18 = vmul.f32 %v13395_v19, %v5040_v50 }
 0x6ce   : > { %v13392_v42 = vadd.f32 %v5242_v48, %v4792_v33  ;;  %5355 = vrot.lane.b32.xlu0 %v5169_v63, %s7612_s6  ;;  %5357 = vrot.lane.b32.xlu1 %v5170_v11, %s7612_s6  ;;  %v5172_v33 = vmul.f32 %v13401_v5, %v5042_v39  ;;  %v13413_v11 = vpop.eup %7302  ;;  %v4796_v39 = vmul.f32 %v13123_v32, %v16074_v26 }
 0x6cf   : > { %7306 = vtanh.f32 %v13390_v13  ;;  %16071 = vst [vmem:[#allocation415_spill] sm:$0xff] %v13413_v11  ;;  %v13419_v50 = vpop.eup %7304 }
 0x6d0   : > { %7308 = vtanh.f32 %v13392_v42  ;;  %v5244_v53 = vpop.permute.xlu0 %5243  ;;  %16073 = vst [vmem:[#allocation370_spill] sm:$0xff] %v13419_v50 }
 0x6d1   : > { %v5246_v63 = vpop.permute.xlu1 %5245  ;;  %v13408_v48 = vadd.f32 %v5244_v53, %v4793_v62  ;;  %v5173_v62 = vmul.f32 %v13413_v11, %v5044_v37  ;;  %v16076_v37 = vld [vmem:[#allocation267_spill] sm:$0xff] }
 0x6d2   : > { %v13410_v8 = vadd.f32 %v5246_v63, %v4794_v10  ;;  %5359 = vrot.lane.b32.xlu0 %v5171_v18, %s7612_s6  ;;  %5361 = vrot.lane.b32.xlu1 %v5172_v33, %s7612_s6  ;;  %v5174_v18 = vmul.f32 %v13419_v50, %v5046_v3  ;;  %v16075_v33 = vld [vmem:[#allocation266_spill] sm:$0xff]  ;;  %v4798_v26 = vmul.f32 %v13133_v6, %v16076_v37 }
 0x6d3   : > { %7310 = vtanh.f32 %v13408_v48  ;;  %v4797_v30 = vmul.f32 %v13129_v56, %v16075_v33 }
 0x6d4   : > { %7312 = vtanh.f32 %v13410_v8  ;;  %v5248_v10 = vpop.permute.xlu0 %5247 }
 0x6d5   : > { %v5250_v53 = vpop.permute.xlu1 %5249  ;;  %v13426_v63 = vadd.f32 %v5248_v10, %v4795_v1 }
 0x6d6   : > { %v13428_v27 = vadd.f32 %v5250_v53, %v4796_v39  ;;  %5363 = vrot.lane.b32.xlu0 %v5173_v62, %s7612_s6  ;;  %5365 = vrot.lane.b32.xlu1 %v5174_v18, %s7612_s6  ;;  %v16077_v62 = vld [vmem:[#allocation165_spill] sm:$0xff]  ;;  %v16078_v18 = vld [vmem:[#allocation236_spill] sm:$0xff] }
 0x6d7   : > { %7314 = vtanh.f32 %v13426_v63  ;;  %v4799_v33 = vmul.f32 %v13139_v58, %v16077_v62  ;;  %v4800_v37 = vmul.f32 %v13143_v29, %v16078_v18 }
 0x6d8   : > { %7316 = vtanh.f32 %v13428_v27  ;;  %v5252_v3 = vpop.permute.xlu0 %5251 }
 0x6d9   : > { %v7307_v32 = vpop.eup %7306  ;;  %v5254_v1 = vpop.permute.xlu1 %5253  ;;  %v13438_v10 = vadd.f32 %v5252_v3, %v4797_v30 }
 0x6da   : > { %v7309_v39 = vpop.eup %7308  ;;  %v13440_v53 = vadd.f32 %v5254_v1, %v4798_v26  ;;  %5623 = vrot.lane.b32.xlu0 %v7307_v32, %s7613_s7  ;;  %v16079_v32 = vld [vmem:[#allocation324_spill] sm:$0xff] }
 0x6db   : > { %7318 = vtanh.f32 %v13438_v10  ;;  %5625 = vrot.lane.b32.xlu1 %v7309_v39, %s7613_s7  ;;  %v4801_v62 = vmul.f32 %v13149_v0, %v16079_v32  ;;  %v16080_v39 = vld [vmem:[#allocation325_spill] sm:$0xff] }
 0x6dc   : > { %7320 = vtanh.f32 %v13440_v53  ;;  %v5256_v6 = vpop.permute.xlu0 %5255  ;;  %v4802_v18 = vmul.f32 %v13153_v28, %v16080_v39 }
 0x6dd   : > { %v7311_v30 = vpop.eup %7310  ;;  %v5258_v3 = vpop.permute.xlu1 %5257  ;;  %v13450_v56 = vadd.f32 %v5256_v6, %v4799_v33 }
 0x6de   : > { %v7313_v26 = vpop.eup %7312  ;;  %v13452_v1 = vadd.f32 %v5258_v3, %v4800_v37  ;;  %5627 = vrot.lane.b32.xlu0 %v7311_v30, %s7613_s7  ;;  %v16082_v30 = vld [vmem:[#allocation237_spill] sm:$0xff] }
 0x6df   : > { %7322 = vtanh.f32 %v13450_v56  ;;  %5629 = vrot.lane.b32.xlu1 %v7313_v26, %s7613_s7  ;;  %v4803_v32 = vmul.f32 %v13159_v41, %v16082_v30  ;;  %v16083_v26 = vld [vmem:[#allocation308_spill] sm:$0xff]  ;;  %v16086_v30 = vld [vmem:[#allocation274_spill] sm:$0xff] }
 0x6e0   : > { %7324 = vtanh.f32 %v13452_v1  ;;  %v5260_v29 = vpop.permute.xlu0 %5259  ;;  %v4804_v39 = vmul.f32 %v13163_v45, %v16083_v26  ;;  %v16088_v26 = vld [vmem:[#allocation275_spill] sm:$0xff] }
 0x6e1   : > { %v7315_v6 = vpop.eup %7314  ;;  %v5262_v33 = vpop.permute.xlu1 %5261  ;;  %v13462_v58 = vadd.f32 %v5260_v29, %v4801_v62 }
 0x6e2   : > { %v7317_v37 = vpop.eup %7316  ;;  %v13464_v3 = vadd.f32 %v5262_v33, %v4802_v18  ;;  %5631 = vrot.lane.b32.xlu0 %v7315_v6, %s7613_s7  ;;  %v16085_v6 = vld [vmem:[#allocation309_spill] sm:$0xff] }
 0x6e3   : > { %7326 = vtanh.f32 %v13462_v58  ;;  %5633 = vrot.lane.b32.xlu1 %v7317_v37, %s7613_s7  ;;  %v4805_v41 = vmul.f32 %v16086_v30, %v16085_v6  ;;  %v16087_v37 = vld [vmem:[#allocation166_spill] sm:$0xff] }
 0x6e4   : > { %16081 = vst [vmem:[#allocation416_spill] sm:$0xff] %v13464_v3  ;;  %7328 = vtanh.f32 %v13464_v3  ;;  %v5264_v28 = vpop.permute.xlu0 %5263  ;;  %v4806_v45 = vmul.f32 %v16088_v26, %v16087_v37  ;;  %v16091_v37 = vld [vmem:[#allocation399_spill] sm:$0xff] }
 0x6e5   : > { %v7319_v29 = vpop.eup %7318  ;;  %v5266_v62 = vpop.permute.xlu1 %5265  ;;  %v13474_v0 = vadd.f32 %v5264_v28, %v4803_v32 }
 0x6e6   : > { %v7321_v18 = vpop.eup %7320  ;;  %v13476_v33 = vadd.f32 %v5266_v62, %v4804_v39  ;;  %5635 = vrot.lane.b32.xlu0 %v7319_v29, %s7613_s7  ;;  %v16089_v29 = vld [vmem:[#allocation364_spill] sm:$0xff] }
 0x6e7   : > { %7330 = vtanh.f32 %v13474_v0  ;;  %5637 = vrot.lane.b32.xlu1 %v7321_v18, %s7613_s7  ;;  %v4807_v6 = vmul.f32 %v13179_v46, %v16089_v29  ;;  %v16090_v18 = vld [vmem:[#allocation373_spill] sm:$0xff] }
 0x6e8   : > { %16084 = vst [vmem:[#allocation176_spill] sm:$0xff] %v13476_v33  ;;  %7332 = vtanh.f32 %v13476_v33  ;;  %v5268_v2 = vpop.permute.xlu0 %5267  ;;  %v4808_v26 = vmul.f32 %v16091_v37, %v16090_v18 }
 0x6e9   : > { %v7323_v28 = vpop.eup %7322  ;;  %v5270_v32 = vpop.permute.xlu1 %5269  ;;  %v13486_v3 = vadd.f32 %v5268_v2, %v4805_v41 }
 0x6ea   : > { %v7325_v39 = vpop.eup %7324  ;;  %v13488_v62 = vadd.f32 %v5270_v32, %v4806_v45  ;;  %5639 = vrot.lane.b32.xlu0 %v7323_v28, %s7613_s7  ;;  %v16093_v28 = vld [vmem:[#allocation268_spill] sm:$0xff] }
 0x6eb   : > { %7334 = vtanh.f32 %v13486_v3  ;;  %5641 = vrot.lane.b32.xlu1 %v7325_v39, %s7613_s7  ;;  %v4809_v29 = vmul.f32 %v13189_v16, %v16093_v28  ;;  %v16094_v39 = vld [vmem:[#allocation269_spill] sm:$0xff] }
 0x6ec   : > { %7336 = vtanh.f32 %v13488_v62  ;;  %v5272_v30 = vpop.permute.xlu0 %5271  ;;  %v4810_v18 = vmul.f32 %v13193_v38, %v16094_v39  ;;  %v16097_v39 = vld [vmem:[#allocation391_spill] sm:$0xff] }
 0x6ed   : > { %v7327_v2 = vpop.eup %7326  ;;  %v5274_v41 = vpop.permute.xlu1 %5273  ;;  %v13498_v33 = vadd.f32 %v5272_v30, %v4807_v6 }
 0x6ee   : > { %v7329_v45 = vpop.eup %7328  ;;  %v13500_v32 = vadd.f32 %v5274_v41, %v4808_v26  ;;  %5643 = vrot.lane.b32.xlu0 %v7327_v2, %s7613_s7  ;;  %v16095_v2 = vld [vmem:[#allocation326_spill] sm:$0xff] }
 0x6ef   : > { %7338 = vtanh.f32 %v13498_v33  ;;  %5645 = vrot.lane.b32.xlu1 %v7329_v45, %s7613_s7  ;;  %v4811_v28 = vmul.f32 %v13199_v47, %v16095_v2  ;;  %v16096_v45 = vld [vmem:[#allocation374_spill] sm:$0xff] }
 0x6f0   : > { %16092 = vst [vmem:[#allocation278_spill] sm:$0xff] %v13500_v32  ;;  %7340 = vtanh.f32 %v13500_v32  ;;  %v5276_v37 = vpop.permute.xlu0 %5275  ;;  %v4812_v38 = vmul.f32 %v16097_v39, %v16096_v45 }
 0x6f1   : > { %v7331_v30 = vpop.eup %7330  ;;  %v5278_v6 = vpop.permute.xlu1 %5277  ;;  %v13510_v46 = vadd.f32 %v5276_v37, %v4809_v29 }
 0x6f2   : > { %v7333_v26 = vpop.eup %7332  ;;  %v13512_v41 = vadd.f32 %v5278_v6, %v4810_v18  ;;  %5647 = vrot.lane.b32.xlu0 %v7331_v30, %s7613_s7  ;;  %v16099_v30 = vld [vmem:[#allocation383_spill] sm:$0xff] }
 0x6f3   : > { %7342 = vtanh.f32 %v13510_v46  ;;  %5649 = vrot.lane.b32.xlu1 %v7333_v26, %s7613_s7  ;;  %v4813_v2 = vmul.f32 %v13209_v44, %v16099_v30  ;;  %v16100_v26 = vld [vmem:[#allocation377_spill] sm:$0xff] }
 0x6f4   : > { %7344 = vtanh.f32 %v13512_v41  ;;  %v5280_v16 = vpop.permute.xlu0 %5279  ;;  %v4814_v45 = vmul.f32 %v13213_v21, %v16100_v26  ;;  %v16103_v26 = vld [vmem:[#allocation254_spill] sm:$0xff] }
 0x6f5   : > { %v7335_v37 = vpop.eup %7334  ;;  %v5282_v29 = vpop.permute.xlu1 %5281  ;;  %v13522_v32 = vadd.f32 %v5280_v16, %v4811_v28 }
 0x6f6   : > { %v7337_v18 = vpop.eup %7336  ;;  %v13524_v6 = vadd.f32 %v5282_v29, %v4812_v38  ;;  %5651 = vrot.lane.b32.xlu0 %v7335_v37, %s7613_s7  ;;  %v16101_v37 = vld [vmem:[#allocation240_spill] sm:$0xff] }
 0x6f7   : > { %7346 = vtanh.f32 %v13522_v32  ;;  %5653 = vrot.lane.b32.xlu1 %v7337_v18, %s7613_s7  ;;  %v4815_v30 = vmul.f32 %v13219_v59, %v16101_v37  ;;  %v16102_v18 = vld [vmem:[#allocation327_spill] sm:$0xff] }
 0x6f8   : > { %16098 = vst [vmem:[#allocation279_spill] sm:$0xff] %v13524_v6  ;;  %7348 = vtanh.f32 %v13524_v6  ;;  %v5284_v39 = vpop.permute.xlu0 %5283  ;;  %v4816_v21 = vmul.f32 %v16103_v26, %v16102_v18 }
 0x6f9   : > { %v7339_v16 = vpop.eup %7338  ;;  %v5286_v28 = vpop.permute.xlu1 %5285  ;;  %v13534_v47 = vadd.f32 %v5284_v39, %v4813_v2 }
 0x6fa   : > { %v7341_v38 = vpop.eup %7340  ;;  %v13536_v29 = vadd.f32 %v5286_v28, %v4814_v45  ;;  %5655 = vrot.lane.b32.xlu0 %v7339_v16, %s7613_s7  ;;  %v16105_v16 = vld [vmem:[#allocation375_spill] sm:$0xff] }
 0x6fb   : > { %7350 = vtanh.f32 %v13534_v47  ;;  %5657 = vrot.lane.b32.xlu1 %v7341_v38, %s7613_s7  ;;  %v4817_v37 = vmul.f32 %v13229_v15, %v16105_v16  ;;  %v16106_v38 = vld [vmem:[#allocation378_spill] sm:$0xff] }
 0x6fc   : > { %7352 = vtanh.f32 %v13536_v29  ;;  %v5288_v44 = vpop.permute.xlu0 %5287  ;;  %v4818_v18 = vmul.f32 %v13233_v22, %v16106_v38  ;;  %v16110_v38 = vld [vmem:[#allocation182_spill] sm:$0xff] }
 0x6fd   : > { %v7343_v39 = vpop.eup %7342  ;;  %v5290_v2 = vpop.permute.xlu1 %5289  ;;  %v13546_v6 = vadd.f32 %v5288_v44, %v4815_v30 }
 0x6fe   : > { %v7345_v45 = vpop.eup %7344  ;;  %v13548_v28 = vadd.f32 %v5290_v2, %v4816_v21  ;;  %5659 = vrot.lane.b32.xlu0 %v7343_v39, %s7613_s7  ;;  %v16108_v39 = vld [vmem:[#allocation241_spill] sm:$0xff] }
 0x6ff   : > { %7354 = vtanh.f32 %v13546_v6  ;;  %5661 = vrot.lane.b32.xlu1 %v7345_v45, %s7613_s7  ;;  %v4819_v16 = vmul.f32 %v13239_v35, %v16108_v39  ;;  %v16109_v45 = vld [vmem:[#allocation242_spill] sm:$0xff] }
 0x700   : > { %16104 = vst [vmem:[#allocation336_spill] sm:$0xff] %v13548_v28  ;;  %7356 = vtanh.f32 %v13548_v28  ;;  %v5292_v26 = vpop.permute.xlu0 %5291  ;;  %v4820_v22 = vmul.f32 %v16110_v38, %v16109_v45  ;;  %v16113_v45 = vld [vmem:[#allocation317_spill] sm:$0xff] }
 0x701   : > { %v7347_v44 = vpop.eup %7346  ;;  %v5294_v30 = vpop.permute.xlu1 %5293  ;;  %v13558_v59 = vadd.f32 %v5292_v26, %v4817_v37 }
 0x702   : > { %v7349_v21 = vpop.eup %7348  ;;  %v13560_v2 = vadd.f32 %v5294_v30, %v4818_v18  ;;  %5663 = vrot.lane.b32.xlu0 %v7347_v44, %s7613_s7  ;;  %v16111_v44 = vld [vmem:[#allocation376_spill] sm:$0xff] }
 0x703   : > { %7358 = vtanh.f32 %v13558_v59  ;;  %5665 = vrot.lane.b32.xlu1 %v7349_v21, %s7613_s7  ;;  %v4821_v39 = vmul.f32 %v13249_v36, %v16111_v44  ;;  %v16112_v21 = vld [vmem:[#allocation310_spill] sm:$0xff] }
 0x704   : > { %16107 = vst [vmem:[#allocation337_spill] sm:$0xff] %v13560_v2  ;;  %7360 = vtanh.f32 %v13560_v2  ;;  %v5296_v15 = vpop.permute.xlu0 %5295  ;;  %v4822_v38 = vmul.f32 %v16113_v45, %v16112_v21 }
 0x705   : > { %v7351_v26 = vpop.eup %7350  ;;  %v5298_v37 = vpop.permute.xlu1 %5297  ;;  %v13570_v28 = vadd.f32 %v5296_v15, %v4819_v16 }
 0x706   : > { %v7353_v18 = vpop.eup %7352  ;;  %v13572_v30 = vadd.f32 %v5298_v37, %v4820_v22  ;;  %5667 = vrot.lane.b32.xlu0 %v7351_v26, %s7613_s7  ;;  %v16114_v26 = vld [vmem:[#allocation167_spill] sm:$0xff] }
 0x707   : > { %7362 = vtanh.f32 %v13570_v28  ;;  %5669 = vrot.lane.b32.xlu1 %v7353_v18, %s7613_s7  ;;  %v4823_v44 = vmul.f32 %v13259_v4, %v16114_v26  ;;  %v16115_v18 = vld [vmem:[#allocation311_spill] sm:$0xff] }
 0x708   : > { %7364 = vtanh.f32 %v13572_v30  ;;  %v5300_v35 = vpop.permute.xlu0 %5299  ;;  %v4824_v21 = vmul.f32 %v13263_v34, %v16115_v18 }
 0x709   : > { %v7355_v15 = vpop.eup %7354  ;;  %v5302_v16 = vpop.permute.xlu1 %5301  ;;  %v13582_v2 = vadd.f32 %v5300_v35, %v4821_v39 }
 0x70a   : > { %v7357_v22 = vpop.eup %7356  ;;  %v13584_v37 = vadd.f32 %v5302_v16, %v4822_v38  ;;  %5671 = vrot.lane.b32.xlu0 %v7355_v15, %s7613_s7  ;;  %v16116_v15 = vld [vmem:[#allocation243_spill] sm:$0xff] }
 0x70b   : > { %7366 = vtanh.f32 %v13582_v2  ;;  %5673 = vrot.lane.b32.xlu1 %v7357_v22, %s7613_s7  ;;  %v4825_v26 = vmul.f32 %v13269_v23, %v16116_v15  ;;  %v16117_v22 = vld [vmem:[#allocation379_spill] sm:$0xff] }
 0x70c   : > { %7368 = vtanh.f32 %v13584_v37  ;;  %v5304_v45 = vpop.permute.xlu0 %5303  ;;  %v4826_v18 = vmul.f32 %v13273_v61, %v16117_v22 }
 0x70d   : > { %v7359_v35 = vpop.eup %7358  ;;  %v5306_v39 = vpop.permute.xlu1 %5305  ;;  %v13594_v36 = vadd.f32 %v5304_v45, %v4823_v44 }
 0x70e   : > { %v7361_v38 = vpop.eup %7360  ;;  %v13596_v16 = vadd.f32 %v5306_v39, %v4824_v21  ;;  %5675 = vrot.lane.b32.xlu0 %v7359_v35, %s7613_s7  ;;  %v16118_v35 = vld [vmem:[#allocation270_spill] sm:$0xff] }
 0x70f   : > { %7370 = vtanh.f32 %v13594_v36  ;;  %5677 = vrot.lane.b32.xlu1 %v7361_v38, %s7613_s7  ;;  %v4827_v15 = vmul.f32 %v13279_v55, %v16118_v35  ;;  %v16119_v38 = vld [vmem:[#allocation271_spill] sm:$0xff] }
 0x710   : > { %7372 = vtanh.f32 %v13596_v16  ;;  %v5308_v34 = vpop.permute.xlu0 %5307  ;;  %v4828_v22 = vmul.f32 %v13283_v20, %v16119_v38 }
 0x711   : > { %v7363_v45 = vpop.eup %7362  ;;  %v5310_v44 = vpop.permute.xlu1 %5309  ;;  %v13606_v4 = vadd.f32 %v5308_v34, %v4825_v26 }
 0x712   : > { %v7365_v21 = vpop.eup %7364  ;;  %v13608_v39 = vadd.f32 %v5310_v44, %v4826_v18  ;;  %5679 = vrot.lane.b32.xlu0 %v7363_v45, %s7613_s7  ;;  %v16120_v45 = vld [vmem:[#allocation328_spill] sm:$0xff] }
 0x713   : > { %7374 = vtanh.f32 %v13606_v4  ;;  %5681 = vrot.lane.b32.xlu1 %v7365_v21, %s7613_s7  ;;  %v4829_v35 = vmul.f32 %v13289_v25, %v16120_v45  ;;  %v16121_v21 = vld [vmem:[#allocation380_spill] sm:$0xff] }
 0x714   : > { %7376 = vtanh.f32 %v13608_v39  ;;  %v5312_v61 = vpop.permute.xlu0 %5311  ;;  %v4830_v38 = vmul.f32 %v13293_v9, %v16121_v21 }
 0x715   : > { %v7367_v34 = vpop.eup %7366  ;;  %v5314_v26 = vpop.permute.xlu1 %5313  ;;  %v13618_v23 = vadd.f32 %v5312_v61, %v4827_v15 }
 0x716   : > { %v7369_v18 = vpop.eup %7368  ;;  %v13620_v44 = vadd.f32 %v5314_v26, %v4828_v22  ;;  %5683 = vrot.lane.b32.xlu0 %v7367_v34, %s7613_s7  ;;  %v16122_v34 = vld [vmem:[#allocation381_spill] sm:$0xff] }
 0x717   : > { %7378 = vtanh.f32 %v13618_v23  ;;  %5685 = vrot.lane.b32.xlu1 %v7369_v18, %s7613_s7  ;;  %v4831_v45 = vmul.f32 %v13299_v12, %v16122_v34  ;;  %v16123_v18 = vld [vmem:[#allocation55_spill] sm:$0xff] }
 0x718   : > { %7380 = vtanh.f32 %v13620_v44  ;;  %v5316_v20 = vpop.permute.xlu0 %5315  ;;  %v4832_v21 = vmul.f32 %v13303_v52, %v16123_v18 }
 0x719   : > { %v7371_v61 = vpop.eup %7370  ;;  %v5318_v15 = vpop.permute.xlu1 %5317  ;;  %v13630_v55 = vadd.f32 %v5316_v20, %v4829_v35 }
 0x71a   : > { %v7373_v22 = vpop.eup %7372  ;;  %v13632_v26 = vadd.f32 %v5318_v15, %v4830_v38  ;;  %5687 = vrot.lane.b32.xlu0 %v7371_v61, %s7613_s7  ;;  %v16124_v61 = vld [vmem:[#allocation175_spill] sm:$0xff] }
 0x71b   : > { %7382 = vtanh.f32 %v13630_v55  ;;  %5689 = vrot.lane.b32.xlu1 %v7373_v22, %s7613_s7  ;;  %v4833_v34 = vmul.f32 %v13309_v49, %v16124_v61  ;;  %v16125_v22 = vld [vmem:[#allocation134_spill] sm:$0xff] }
 0x71c   : > { %7384 = vtanh.f32 %v13632_v26  ;;  %v5320_v9 = vpop.permute.xlu0 %5319  ;;  %v4834_v18 = vmul.f32 %v13313_v57, %v16125_v22 }
 0x71d   : > { %v7375_v20 = vpop.eup %7374  ;;  %v5322_v35 = vpop.permute.xlu1 %5321  ;;  %v13642_v25 = vadd.f32 %v5320_v9, %v4831_v45 }
 0x71e   : > { %v7377_v38 = vpop.eup %7376  ;;  %v13644_v15 = vadd.f32 %v5322_v35, %v4832_v21  ;;  %5691 = vrot.lane.b32.xlu0 %v7375_v20, %s7613_s7  ;;  %v16126_v20 = vld [vmem:[#allocation247_spill] sm:$0xff] }
 0x71f   : > { %7386 = vtanh.f32 %v13642_v25  ;;  %5693 = vrot.lane.b32.xlu1 %v7377_v38, %s7613_s7  ;;  %v4835_v61 = vmul.f32 %v13319_v31, %v16126_v20  ;;  %v16127_v38 = vld [vmem:[#allocation329_spill] sm:$0xff] }
 0x720   : > { %7388 = vtanh.f32 %v13644_v15  ;;  %v5324_v52 = vpop.permute.xlu0 %5323  ;;  %v4836_v22 = vmul.f32 %v13323_v43, %v16127_v38 }
 0x721   : > { %v7379_v9 = vpop.eup %7378  ;;  %v5326_v45 = vpop.permute.xlu1 %5325  ;;  %v13654_v12 = vadd.f32 %v5324_v52, %v4833_v34 }
 0x722   : > { %v7381_v21 = vpop.eup %7380  ;;  %v13656_v35 = vadd.f32 %v5326_v45, %v4834_v18  ;;  %5695 = vrot.lane.b32.xlu0 %v7379_v9, %s7613_s7  ;;  %v16129_v9 = vld [vmem:[#allocation135_spill] sm:$0xff] }
 0x723   : > { %7390 = vtanh.f32 %v13654_v12  ;;  %5697 = vrot.lane.b32.xlu1 %v7381_v21, %s7613_s7  ;;  %v4837_v20 = vmul.f32 %v13329_v24, %v16129_v9  ;;  %v16130_v21 = vld [vmem:[#allocation168_spill] sm:$0xff] }
 0x724   : > { %7392 = vtanh.f32 %v13656_v35  ;;  %v5328_v57 = vpop.permute.xlu0 %5327  ;;  %v4838_v38 = vmul.f32 %v13333_v14, %v16130_v21  ;;  %v16135_v21 = vld [vmem:[#allocation256_spill] sm:$0xff] }
 0x725   : > { %v7383_v52 = vpop.eup %7382  ;;  %v5330_v34 = vpop.permute.xlu1 %5329  ;;  %v13666_v49 = vadd.f32 %v5328_v57, %v4835_v61 }
 0x726   : > { %v7385_v18 = vpop.eup %7384  ;;  %v13668_v45 = vadd.f32 %v5330_v34, %v4836_v22  ;;  %5699 = vrot.lane.b32.xlu0 %v7383_v52, %s7613_s7  ;;  %v16133_v52 = vld [vmem:[#allocation17_spill] sm:$0xff] }
 0x727   : > { %7394 = vtanh.f32 %v13666_v49  ;;  %5701 = vrot.lane.b32.xlu1 %v7385_v18, %s7613_s7  ;;  %v4839_v9 = vmul.f32 %v13339_v51, %v16133_v52  ;;  %v16134_v18 = vld [vmem:[#allocation244_spill] sm:$0xff]  ;;  %v16138_v52 = vld [vmem:[#allocation146_spill] sm:$0xff] }
 0x728   : > { %16128 = vst [vmem:[#allocation397_spill] sm:$0xff] %v13668_v45  ;;  %7396 = vtanh.f32 %v13668_v45  ;;  %v5332_v43 = vpop.permute.xlu0 %5331  ;;  %v4840_v14 = vmul.f32 %v16135_v21, %v16134_v18  ;;  %v16140_v18 = vld [vmem:[#allocation257_spill] sm:$0xff] }
 0x729   : > { %v7387_v57 = vpop.eup %7386  ;;  %v5334_v61 = vpop.permute.xlu1 %5333  ;;  %v13678_v31 = vadd.f32 %v5332_v43, %v4837_v20 }
 0x72a   : > { %v7389_v22 = vpop.eup %7388  ;;  %v13680_v34 = vadd.f32 %v5334_v61, %v4838_v38  ;;  %5703 = vrot.lane.b32.xlu0 %v7387_v57, %s7613_s7  ;;  %v16137_v57 = vld [vmem:[#allocation312_spill] sm:$0xff] }
 0x72b   : > { %16131 = vst [vmem:[#allocation398_spill] sm:$0xff] %v13678_v31  ;;  %7398 = vtanh.f32 %v13678_v31  ;;  %5705 = vrot.lane.b32.xlu1 %v7389_v22, %s7613_s7  ;;  %v4841_v51 = vmul.f32 %v16138_v52, %v16137_v57  ;;  %v16139_v22 = vld [vmem:[#allocation245_spill] sm:$0xff]  ;;  %v16142_v57 = vld [vmem:[#allocation22_spill] sm:$0xff] }
 0x72c   : > { %16132 = vst [vmem:[#allocation25_spill] sm:$0xff] %v13680_v34  ;;  %7400 = vtanh.f32 %v13680_v34  ;;  %v5336_v24 = vpop.permute.xlu0 %5335  ;;  %v4842_v21 = vmul.f32 %v16140_v18, %v16139_v22 }
 0x72d   : > { %v7391_v43 = vpop.eup %7390  ;;  %v5338_v20 = vpop.permute.xlu1 %5337  ;;  %v13690_v45 = vadd.f32 %v5336_v24, %v4839_v9 }
 0x72e   : > { %v7393_v38 = vpop.eup %7392  ;;  %v13692_v61 = vadd.f32 %v5338_v20, %v4840_v14  ;;  %5707 = vrot.lane.b32.xlu0 %v7391_v43, %s7613_s7  ;;  %v16141_v43 = vld [vmem:[#allocation385_spill] sm:$0xff] }
 0x72f   : > { %7402 = vtanh.f32 %v13690_v45  ;;  %5709 = vrot.lane.b32.xlu1 %v7393_v38, %s7613_s7  ;;  %v4843_v52 = vmul.f32 %v16142_v57, %v16141_v43  ;;  %v16143_v38 = vld [vmem:[#allocation365_spill] sm:$0xff] }
 0x730   : > { %16136 = vst [vmem:[#allocation259_spill] sm:$0xff] %v13692_v61  ;;  %7404 = vtanh.f32 %v13692_v61  ;;  %v5340_v34 = vpop.permute.xlu0 %5339  ;;  %v4844_v22 = vmul.f32 %v13358_v60, %v16143_v38 }
 0x731   : > { %v7395_v24 = vpop.eup %7394  ;;  %v5342_v9 = vpop.permute.xlu1 %5341  ;;  %v13702_v31 = vadd.f32 %v5340_v34, %v4841_v51 }
 0x732   : > { %v7397_v14 = vpop.eup %7396  ;;  %v13704_v20 = vadd.f32 %v5342_v9, %v4842_v21  ;;  %5711 = vrot.lane.b32.xlu0 %v7395_v24, %s7613_s7  ;;  %v16146_v24 = vld [vmem:[#allocation169_spill] sm:$0xff] }
 0x733   : > { %7406 = vtanh.f32 %v13702_v31  ;;  %5713 = vrot.lane.b32.xlu1 %v7397_v14, %s7613_s7  ;;  %v4845_v43 = vmul.f32 %v13363_v7, %v16146_v24  ;;  %v16147_v14 = vld [vmem:[#allocation272_spill] sm:$0xff]  ;;  %v16149_v24 = vld [vmem:[#allocation318_spill] sm:$0xff] }
 0x734   : > { %7408 = vtanh.f32 %v13704_v20  ;;  %v5344_v18 = vpop.permute.xlu0 %5343  ;;  %v4846_v38 = vmul.f32 %v13366_v40, %v16147_v14  ;;  %v16151_v14 = vld [vmem:[#allocation319_spill] sm:$0xff] }
 0x735   : > { %v7399_v51 = vpop.eup %7398  ;;  %v5346_v34 = vpop.permute.xlu1 %5345  ;;  %v13714_v61 = vadd.f32 %v5344_v18, %v4843_v52 }
 0x736   : > { %v7401_v21 = vpop.eup %7400  ;;  %v13716_v9 = vadd.f32 %v5346_v34, %v4844_v22  ;;  %5715 = vrot.lane.b32.xlu0 %v7399_v51, %s7613_s7  ;;  %v16148_v51 = vld [vmem:[#allocation330_spill] sm:$0xff] }
 0x737   : > { %16144 = vst [vmem:[#allocation149_spill] sm:$0xff] %v13714_v61  ;;  %7410 = vtanh.f32 %v13714_v61  ;;  %5717 = vrot.lane.b32.xlu1 %v7401_v21, %s7613_s7  ;;  %v4847_v7 = vmul.f32 %v16149_v24, %v16148_v51  ;;  %v16150_v21 = vld [vmem:[#allocation389_spill] sm:$0xff] }
 0x738   : > { %16145 = vst [vmem:[#allocation260_spill] sm:$0xff] %v13716_v9  ;;  %7412 = vtanh.f32 %v13716_v9  ;;  %v5348_v60 = vpop.permute.xlu0 %5347  ;;  %v4848_v40 = vmul.f32 %v16151_v14, %v16150_v21 }
 0x739   : > { %v7403_v52 = vpop.eup %7402  ;;  %v5350_v18 = vpop.permute.xlu1 %5349  ;;  %v13726_v57 = vadd.f32 %v5348_v60, %v4845_v43 }
 0x73a   : > { %v7405_v22 = vpop.eup %7404  ;;  %v13728_v34 = vadd.f32 %v5350_v18, %v4846_v38  ;;  %5719 = vrot.lane.b32.xlu0 %v7403_v52, %s7613_s7  ;;  %v16152_v52 = vld [vmem:[#allocation392_spill] sm:$0xff] }
 0x73b   : > { %7414 = vtanh.f32 %v13726_v57  ;;  %5721 = vrot.lane.b32.xlu1 %v7405_v22, %s7613_s7  ;;  %v4849_v51 = vmul.f32 %v13379_v54, %v16152_v52  ;;  %v16153_v22 = vld [vmem:[#allocation386_spill] sm:$0xff] }
 0x73c   : > { %7416 = vtanh.f32 %v13728_v34  ;;  %v5352_v9 = vpop.permute.xlu0 %5351  ;;  %v4850_v21 = vmul.f32 %v13384_v17, %v16153_v22 }
 0x73d   : > { %v7407_v60 = vpop.eup %7406  ;;  %v5354_v43 = vpop.permute.xlu1 %5353  ;;  %v13738_v61 = vadd.f32 %v5352_v9, %v4847_v7 }
 0x73e   : > { %v7409_v38 = vpop.eup %7408  ;;  %v13740_v18 = vadd.f32 %v5354_v43, %v4848_v40  ;;  %5723 = vrot.lane.b32.xlu0 %v7407_v60, %s7613_s7  ;;  %v16154_v60 = vld [vmem:[#allocation387_spill] sm:$0xff] }
 0x73f   : > { %7418 = vtanh.f32 %v13738_v61  ;;  %5725 = vrot.lane.b32.xlu1 %v7409_v38, %s7613_s7  ;;  %v4851_v52 = vmul.f32 %v13395_v19, %v16154_v60  ;;  %v16155_v38 = vld [vmem:[#allocation138_spill] sm:$0xff] }
 0x740   : > { %7420 = vtanh.f32 %v13740_v18  ;;  %v5356_v14 = vpop.permute.xlu0 %5355  ;;  %v4852_v22 = vmul.f32 %v13401_v5, %v16155_v38 }
 0x741   : > { %v7411_v7 = vpop.eup %7410  ;;  %v5358_v9 = vpop.permute.xlu1 %5357  ;;  %v13750_v24 = vadd.f32 %v5356_v14, %v4849_v51 }
 0x742   : > { %v7413_v40 = vpop.eup %7412  ;;  %v13752_v43 = vadd.f32 %v5358_v9, %v4850_v21  ;;  %5727 = vrot.lane.b32.xlu0 %v7411_v7, %s7613_s7  ;;  %v16156_v7 = vld [vmem:[#allocation250_spill] sm:$0xff] }
 0x743   : > { %7422 = vtanh.f32 %v13750_v24  ;;  %5729 = vrot.lane.b32.xlu1 %v7413_v40, %s7613_s7  ;;  %v4853_v60 = vmul.f32 %v13413_v11, %v16156_v7  ;;  %v16157_v40 = vld [vmem:[#allocation139_spill] sm:$0xff] }
 0x744   : > { %7424 = vtanh.f32 %v13752_v43  ;;  %v5360_v17 = vpop.permute.xlu0 %5359  ;;  %v4854_v38 = vmul.f32 %v13419_v50, %v16157_v40 }
 0x745   : > { %v7415_v14 = vpop.eup %7414  ;;  %v5362_v51 = vpop.permute.xlu1 %5361  ;;  %v13762_v54 = vadd.f32 %v5360_v17, %v4851_v52 }
 0x746   : > { %v7417_v21 = vpop.eup %7416  ;;  %v13764_v9 = vadd.f32 %v5362_v51, %v4852_v22  ;;  %5731 = vrot.lane.b32.xlu0 %v7415_v14, %s7613_s7 }
 0x747   : > { %7426 = vtanh.f32 %v13762_v54  ;;  %5733 = vrot.lane.b32.xlu1 %v7417_v21, %s7613_s7 }
 0x748   : > { %7428 = vtanh.f32 %v13764_v9  ;;  %v5364_v5 = vpop.permute.xlu0 %5363 }
 0x749   : > { %v7419_v17 = vpop.eup %7418  ;;  %v5366_v52 = vpop.permute.xlu1 %5365  ;;  %v13774_v19 = vadd.f32 %v5364_v5, %v4853_v60 }
 0x74a   : > { %v7421_v22 = vpop.eup %7420  ;;  %v13776_v51 = vadd.f32 %v5366_v52, %v4854_v38  ;;  %5735 = vrot.lane.b32.xlu0 %v7419_v17, %s7613_s7 }
 0x74b   : > { %7430 = vtanh.f32 %v13774_v19  ;;  %5737 = vrot.lane.b32.xlu1 %v7421_v22, %s7613_s7 }
 0x74c   : > { %7432 = vtanh.f32 %v13776_v51  ;;  %v13782_v14 = vpop.permute.xlu0 %5623 }
 0x74d   : > { %v7423_v21 = vpop.eup %7422  ;;  %v13784_v7 = vpop.permute.xlu1 %5625 }
 0x74e   : > { %v7425_v40 = vpop.eup %7424  ;;  %5739 = vrot.lane.b32.xlu0 %v7423_v21, %s7613_s7 }
 0x74f   : > { %5741 = vrot.lane.b32.xlu1 %v7425_v40, %s7613_s7 }
 0x750   : > { %v13788_v5 = vpop.permute.xlu0 %5627 }
 0x751   : > { %v7427_v60 = vpop.eup %7426  ;;  %v13790_v38 = vpop.permute.xlu1 %5629 }
 0x752   : > { %v7429_v17 = vpop.eup %7428  ;;  %5743 = vrot.lane.b32.xlu0 %v7427_v60, %s7613_s7 }
 0x753   : > { %5745 = vrot.lane.b32.xlu1 %v7429_v17, %s7613_s7 }
 0x754   : > { %v13794_v52 = vpop.permute.xlu0 %5631 }
 0x755   : > { %v7431_v22 = vpop.eup %7430  ;;  %v13796_v50 = vpop.permute.xlu1 %5633 }
 0x756   : > { %v7433_v11 = vpop.eup %7432  ;;  %5747 = vrot.lane.b32.xlu0 %v7431_v22, %s7613_s7 }
 0x757   : > { %5749 = vrot.lane.b32.xlu1 %v7433_v11, %s7613_s7  ;;  %s6717_s7 = sshll.u32 %s7604_s4, 9  ;;  %s194_s4 = sadd.s32 1, %s7604_s4  }
 0x758   : > { %v13800_v21 = vpop.permute.xlu0 %5635  ;;  %s14283_s14 = scalar_lea.vmem %s14506_s5, %s6717_s7  ;;  %p191_p10 = scmp.ge.s32.totalorder %s194_s4, 8  }
 0x759   : > { %v13802_v40 = vpop.permute.xlu1 %5637 }
 0x75a   : > { %5943 = vrot.lane.b32.xlu0 %v13390_v13, %s7614_s8 }
 0x75b   : > { %5945 = vrot.lane.b32.xlu1 %v13392_v42, %s7614_s8 }
 0x75c   : > { %v13808_v60 = vpop.permute.xlu0 %5639 }
 0x75d   : > { %v13810_v17 = vpop.permute.xlu1 %5641 }
 0x75e   : > { %5947 = vrot.lane.b32.xlu0 %v13408_v48, %s7614_s8 }
 0x75f   : > { %5949 = vrot.lane.b32.xlu1 %v13410_v8, %s7614_s8 }
 0x760   : > { %v13816_v11 = vpop.permute.xlu0 %5643 }
 0x761   : > { %v13818_v22 = vpop.permute.xlu1 %5645 }
 0x762   : > { %5951 = vrot.lane.b32.xlu0 %v13426_v63, %s7614_s8 }
 0x763   : > { %5953 = vrot.lane.b32.xlu1 %v13428_v27, %s7614_s8 }
 0x764   : > { %v13824_v13 = vpop.permute.xlu0 %5647 }
 0x765   : > { %v13826_v42 = vpop.permute.xlu1 %5649 }
 0x766   : > { %5955 = vrot.lane.b32.xlu0 %v13438_v10, %s7614_s8  ;;  %v16160_v10 = vld [vmem:[#allocation416_spill] sm:$0xff] }
 0x767   : > { %5957 = vrot.lane.b32.xlu1 %v13440_v53, %s7614_s8 }
 0x768   : > { %v13832_v48 = vpop.permute.xlu0 %5651 }
 0x769   : > { %16158 = vst [vmem:[#allocation44_spill] sm:$0xff] %v13832_v48  ;;  %v13834_v8 = vpop.permute.xlu1 %5653 }
 0x76a   : > { %5959 = vrot.lane.b32.xlu0 %v13450_v56, %s7614_s8  ;;  %v16161_v56 = vld [vmem:[#allocation176_spill] sm:$0xff] }
 0x76b   : > { %5961 = vrot.lane.b32.xlu1 %v13452_v1, %s7614_s8 }
 0x76c   : > { %v13840_v63 = vpop.permute.xlu0 %5655 }
 0x76d   : > { %16159 = vst [vmem:[#allocation24_spill] sm:$0xff] %v13840_v63  ;;  %v13842_v27 = vpop.permute.xlu1 %5657 }
 0x76e   : > { %5963 = vrot.lane.b32.xlu0 %v13462_v58, %s7614_s8 }
 0x76f   : > { %5965 = vrot.lane.b32.xlu1 %v16160_v10, %s7614_s8 }
 0x770   : > { %v13848_v53 = vpop.permute.xlu0 %5659 }
 0x771   : > { %v13850_v48 = vpop.permute.xlu1 %5661 }
 0x772   : > { %5967 = vrot.lane.b32.xlu0 %v13474_v0, %s7614_s8  ;;  %v16163_v0 = vld [vmem:[#allocation278_spill] sm:$0xff] }
 0x773   : > { %5969 = vrot.lane.b32.xlu1 %v16161_v56, %s7614_s8 }
 0x774   : > { %v13856_v1 = vpop.permute.xlu0 %5663 }
 0x775   : > { %16162 = vst [vmem:[#allocation252_spill] sm:$0xff] %v13856_v1  ;;  %v13858_v63 = vpop.permute.xlu1 %5665 }
 0x776   : > { %5971 = vrot.lane.b32.xlu0 %v13486_v3, %s7614_s8 }
 0x777   : > { %5973 = vrot.lane.b32.xlu1 %v13488_v62, %s7614_s8 }
 0x778   : > { %v13864_v58 = vpop.permute.xlu0 %5667 }
 0x779   : > { %v13866_v10 = vpop.permute.xlu1 %5669 }
 0x77a   : > { %5975 = vrot.lane.b32.xlu0 %v13498_v33, %s7614_s8  ;;  %v16165_v33 = vld [vmem:[#allocation279_spill] sm:$0xff] }
 0x77b   : > { %5977 = vrot.lane.b32.xlu1 %v16163_v0, %s7614_s8 }
 0x77c   : > { %v13872_v56 = vpop.permute.xlu0 %5671 }
 0x77d   : > { %16164 = vst [vmem:[#allocation45_spill] sm:$0xff] %v13872_v56  ;;  %v13874_v1 = vpop.permute.xlu1 %5673 }
 0x77e   : > { %5979 = vrot.lane.b32.xlu0 %v13510_v46, %s7614_s8 }
 0x77f   : > { %5981 = vrot.lane.b32.xlu1 %v13512_v41, %s7614_s8 }
 0x780   : > { %v13880_v3 = vpop.permute.xlu0 %5675 }
 0x781   : > { %v13882_v62 = vpop.permute.xlu1 %5677 }
 0x782   : > { %5983 = vrot.lane.b32.xlu0 %v13522_v32, %s7614_s8  ;;  %v16168_v32 = vld [vmem:[#allocation336_spill] sm:$0xff] }
 0x783   : > { %5985 = vrot.lane.b32.xlu1 %v16165_v33, %s7614_s8 }
 0x784   : > { %v13888_v0 = vpop.permute.xlu0 %5679 }
 0x785   : > { %16166 = vst [vmem:[#allocation70_spill] sm:$0xff] %v13888_v0  ;;  %v13890_v56 = vpop.permute.xlu1 %5681 }
 0x786   : > { %5987 = vrot.lane.b32.xlu0 %v13534_v47, %s7614_s8  ;;  %v16169_v47 = vld [vmem:[#allocation337_spill] sm:$0xff] }
 0x787   : > { %5989 = vrot.lane.b32.xlu1 %v13536_v29, %s7614_s8 }
 0x788   : > { %v13896_v46 = vpop.permute.xlu0 %5683 }
 0x789   : > { %16167 = vst [vmem:[#allocation190_spill] sm:$0xff] %v13896_v46  ;;  %v13898_v41 = vpop.permute.xlu1 %5685 }
 0x78a   : > { %5991 = vrot.lane.b32.xlu0 %v13546_v6, %s7614_s8 }
 0x78b   : > { %5993 = vrot.lane.b32.xlu1 %v16168_v32, %s7614_s8 }
 0x78c   : > { %v13904_v33 = vpop.permute.xlu0 %5687 }
 0x78d   : > { %v13906_v0 = vpop.permute.xlu1 %5689 }
 0x78e   : > { %5995 = vrot.lane.b32.xlu0 %v13558_v59, %s7614_s8 }
 0x78f   : > { %5997 = vrot.lane.b32.xlu1 %v16169_v47, %s7614_s8 }
 0x790   : > { %v13912_v29 = vpop.permute.xlu0 %5691 }
 0x791   : > { %v13914_v46 = vpop.permute.xlu1 %5693 }
 0x792   : > { %5999 = vrot.lane.b32.xlu0 %v13570_v28, %s7614_s8 }
 0x793   : > { %6001 = vrot.lane.b32.xlu1 %v13572_v30, %s7614_s8 }
 0x794   : > { %v13920_v6 = vpop.permute.xlu0 %5695 }
 0x795   : > { %v13922_v32 = vpop.permute.xlu1 %5697 }
 0x796   : > { %6003 = vrot.lane.b32.xlu0 %v13582_v2, %s7614_s8 }
 0x797   : > { %6005 = vrot.lane.b32.xlu1 %v13584_v37, %s7614_s8 }
 0x798   : > { %v13928_v59 = vpop.permute.xlu0 %5699 }
 0x799   : > { %v13930_v47 = vpop.permute.xlu1 %5701 }
 0x79a   : > { %6007 = vrot.lane.b32.xlu0 %v13594_v36, %s7614_s8 }
 0x79b   : > { %6009 = vrot.lane.b32.xlu1 %v13596_v16, %s7614_s8 }
 0x79c   : > { %v13936_v28 = vpop.permute.xlu0 %5703 }
 0x79d   : > { %v13938_v30 = vpop.permute.xlu1 %5705 }
 0x79e   : > { %6011 = vrot.lane.b32.xlu0 %v13606_v4, %s7614_s8 }
 0x79f   : > { %6013 = vrot.lane.b32.xlu1 %v13608_v39, %s7614_s8 }
 0x7a0   : > { %v13944_v2 = vpop.permute.xlu0 %5707 }
 0x7a1   : > { %v13946_v37 = vpop.permute.xlu1 %5709 }
 0x7a2   : > { %6015 = vrot.lane.b32.xlu0 %v13618_v23, %s7614_s8 }
 0x7a3   : > { %6017 = vrot.lane.b32.xlu1 %v13620_v44, %s7614_s8 }
 0x7a4   : > { %v13952_v36 = vpop.permute.xlu0 %5711 }
 0x7a5   : > { %v13954_v16 = vpop.permute.xlu1 %5713 }
 0x7a6   : > { %6019 = vrot.lane.b32.xlu0 %v13630_v55, %s7614_s8 }
 0x7a7   : > { %6021 = vrot.lane.b32.xlu1 %v13632_v26, %s7614_s8 }
 0x7a8   : > { %v13960_v4 = vpop.permute.xlu0 %5715 }
 0x7a9   : > { %v13962_v39 = vpop.permute.xlu1 %5717 }
 0x7aa   : > { %6023 = vrot.lane.b32.xlu0 %v13642_v25, %s7614_s8  ;;  %v16173_v25 = vld [vmem:[#allocation397_spill] sm:$0xff] }
 0x7ab   : > { %6025 = vrot.lane.b32.xlu1 %v13644_v15, %s7614_s8 }
 0x7ac   : > { %v13968_v23 = vpop.permute.xlu0 %5719 }
 0x7ad   : > { %16170 = vst [vmem:[#allocation320_spill] sm:$0xff] %v13968_v23  ;;  %v13970_v44 = vpop.permute.xlu1 %5721 }
 0x7ae   : > { %16171 = vst [vmem:[#allocation321_spill] sm:$0xff] %v13970_v44  ;;  %6027 = vrot.lane.b32.xlu0 %v13654_v12, %s7614_s8  ;;  %v16175_v44 = vld [vmem:[#allocation398_spill] sm:$0xff]  ;;  %v16176_v12 = vld [vmem:[#allocation25_spill] sm:$0xff] }
 0x7af   : > { %6029 = vrot.lane.b32.xlu1 %v13656_v35, %s7614_s8 }
 0x7b0   : > { %v13976_v55 = vpop.permute.xlu0 %5723 }
 0x7b1   : > { %16172 = vst [vmem:[#allocation71_spill] sm:$0xff] %v13976_v55  ;;  %v13978_v26 = vpop.permute.xlu1 %5725 }
 0x7b2   : > { %6031 = vrot.lane.b32.xlu0 %v13666_v49, %s7614_s8  ;;  %v16178_v49 = vld [vmem:[#allocation259_spill] sm:$0xff] }
 0x7b3   : > { %6033 = vrot.lane.b32.xlu1 %v16173_v25, %s7614_s8 }
 0x7b4   : > { %v13984_v15 = vpop.permute.xlu0 %5727 }
 0x7b5   : > { %16174 = vst [vmem:[#allocation191_spill] sm:$0xff] %v13984_v15  ;;  %v13986_v23 = vpop.permute.xlu1 %5729 }
 0x7b6   : > { %6035 = vrot.lane.b32.xlu0 %v16175_v44, %s7614_s8 }
 0x7b7   : > { %6037 = vrot.lane.b32.xlu1 %v16176_v12, %s7614_s8 }
 0x7b8   : > { %v13992_v35 = vpop.permute.xlu0 %5731 }
 0x7b9   : > { %v13994_v55 = vpop.permute.xlu1 %5733 }
 0x7ba   : > { %16177 = vst [vmem:[#allocation181_spill] sm:$0xff] %v13994_v55  ;;  %6039 = vrot.lane.b32.xlu0 %v13690_v45, %s7614_s8  ;;  %v16180_v55 = vld [vmem:[#allocation149_spill] sm:$0xff]  ;;  %v16181_v45 = vld [vmem:[#allocation260_spill] sm:$0xff] }
 0x7bb   : > { %6041 = vrot.lane.b32.xlu1 %v16178_v49, %s7614_s8 }
 0x7bc   : > { %v14000_v25 = vpop.permute.xlu0 %5735 }
 0x7bd   : > { %16179 = vst [vmem:[#allocation371_spill] sm:$0xff] %v14000_v25  ;;  %v14002_v15 = vpop.permute.xlu1 %5737 }
 0x7be   : > { %6043 = vrot.lane.b32.xlu0 %v13702_v31, %s7614_s8 }
 0x7bf   : > { %6045 = vrot.lane.b32.xlu1 %v13704_v20, %s7614_s8 }
 0x7c0   : > { %v14008_v44 = vpop.permute.xlu0 %5739 }
 0x7c1   : > { %v14010_v12 = vpop.permute.xlu1 %5741 }
 0x7c2   : > { %6047 = vrot.lane.b32.xlu0 %v16180_v55, %s7614_s8 }
 0x7c3   : > { %6049 = vrot.lane.b32.xlu1 %v16181_v45, %s7614_s8 }
 0x7c4   : > { %v14016_v49 = vpop.permute.xlu0 %5743 }
 0x7c5   : > { %v14018_v25 = vpop.permute.xlu1 %5745 }
 0x7c6   : > { %6051 = vrot.lane.b32.xlu0 %v13726_v57, %s7614_s8 }
 0x7c7   : > { %6053 = vrot.lane.b32.xlu1 %v13728_v34, %s7614_s8 }
 0x7c8   : > { %v14024_v31 = vpop.permute.xlu0 %5747 }
 0x7c9   : > { %v14026_v20 = vpop.permute.xlu1 %5749 }
 0x7ca   : > { %6055 = vrot.lane.b32.xlu0 %v13738_v61, %s7614_s8 }
 0x7cb   : > { %6057 = vrot.lane.b32.xlu1 %v13740_v18, %s7614_s8 }
 0x7cc   : > { %v5944_v55 = vpop.permute.xlu0 %5943 }
 0x7cd   : > { %v5946_v45 = vpop.permute.xlu1 %5945  ;;  %6135 = vst.msk [vmem:[#allocation3] sm:$0xff] %vm58_vm0, %v5944_v55 }
 0x7ce   : > { %6136 = vst.msk [vmem:[#allocation3 + $0x8] sm:$0xff] %vm58_vm0, %v5946_v45  ;;  %6059 = vrot.lane.b32.xlu0 %v13750_v24, %s7614_s8  ;;  %v16182_v24 = vld [vmem:[#allocation18_spill] sm:$0xff] }
 0x7cf   : > { %6061 = vrot.lane.b32.xlu1 %v13752_v43, %s7614_s8  ;;  %v5815_v43 = vmul.f32 %v16182_v24, %v13782_v14 }
 0x7d0   : > { %v5948_v57 = vpop.permute.xlu0 %5947 }
 0x7d1   : > { %v5950_v34 = vpop.permute.xlu1 %5949  ;;  %6137 = vst.msk [vmem:[#allocation3 + $0x10] sm:$0xff] %vm58_vm0, %v5948_v57 }
 0x7d2   : > { %6138 = vst.msk [vmem:[#allocation3 + $0x18] sm:$0xff] %vm58_vm0, %v5950_v34  ;;  %6063 = vrot.lane.b32.xlu0 %v13762_v54, %s7614_s8  ;;  %v16183_v54 = vld [vmem:[#allocation19_spill] sm:$0xff]  ;;  %v16185_v34 = vld [vmem:[#allocation178_spill] sm:$0xff] }
 0x7d3   : > { %6065 = vrot.lane.b32.xlu1 %v13764_v9, %s7614_s8  ;;  %v5816_v45 = vmul.f32 %v16183_v54, %v13784_v7  ;;  %v5818_v14 = vmul.f32 %v16185_v34, %v13790_v38  ;;  %v16186_v7 = vld [vmem:[#allocation314_spill] sm:$0xff]  ;;  %v16188_v38 = vld [vmem:[#allocation59_spill] sm:$0xff] }
 0x7d4   : > { %v5952_v61 = vpop.permute.xlu0 %5951  ;;  %v5821_v54 = vmul.f32 %v16188_v38, %v13800_v21  ;;  %v16191_v34 = vld [vmem:[#allocation366_spill] sm:$0xff] }
 0x7d5   : > { %v5954_v18 = vpop.permute.xlu1 %5953  ;;  %6139 = vst.msk [vmem:[#allocation3 + $0x20] sm:$0xff] %vm58_vm0, %v5952_v61  ;;  %v5824_v21 = vmul.f32 %v16191_v34, %v13810_v17  ;;  %v16194_v17 = vld [vmem:[#allocation396_spill] sm:$0xff]  ;;  %v16201_v34 = vld [vmem:[#allocation399_spill] sm:$0xff] }
 0x7d6   : > { %6140 = vst.msk [vmem:[#allocation3 + $0x28] sm:$0xff] %vm58_vm0, %v5954_v18  ;;  %6067 = vrot.lane.b32.xlu0 %v13774_v19, %s7614_s8  ;;  %v16184_v19 = vld [vmem:[#allocation58_spill] sm:$0xff]  ;;  %v5819_v18 = vmul.f32 %v16186_v7, %v13794_v52 }
 0x7d7   : > { %6069 = vrot.lane.b32.xlu1 %v13776_v51, %s7614_s8  ;;  %v5817_v57 = vmul.f32 %v16184_v19, %v13788_v5 }
 0x7d8   : > { %v5956_v55 = vpop.permute.xlu0 %5955 }
 0x7d9   : > { %v5958_v9 = vpop.permute.xlu1 %5957  ;;  %6141 = vst.msk [vmem:[#allocation3 + $0x30] sm:$0xff] %vm58_vm0, %v5956_v55 }
 0x7da   : > { %6142 = vst.msk [vmem:[#allocation3 + $0x38] sm:$0xff] %vm58_vm0, %v5958_v9  ;;  %6263 = vrot.lane.b32.xlu0 %v5815_v43, %s7612_s6  ;;  %v16187_v43 = vld [vmem:[#allocation315_spill] sm:$0xff] }
 0x7db   : > { %6265 = vrot.lane.b32.xlu1 %v5816_v45, %s7612_s6  ;;  %v5820_v5 = vmul.f32 %v16187_v43, %v13796_v50  ;;  %v16189_v9 = vld [vmem:[#allocation179_spill] sm:$0xff]  ;;  %v5827_v43 = vmul.f32 %v16194_v17, %v13824_v13 }
 0x7dc   : > { %v5960_v51 = vpop.permute.xlu0 %5959  ;;  %v5822_v52 = vmul.f32 %v16189_v9, %v13802_v40  ;;  %v16190_v50 = vld [vmem:[#allocation171_spill] sm:$0xff] }
 0x7dd   : > { %v5962_v61 = vpop.permute.xlu1 %5961  ;;  %6143 = vst.msk [vmem:[#allocation3 + $0x40] sm:$0xff] %vm58_vm0, %v5960_v51  ;;  %v16192_v40 = vld [vmem:[#allocation395_spill] sm:$0xff] }
 0x7de   : > { %6144 = vst.msk [vmem:[#allocation3 + $0x48] sm:$0xff] %vm58_vm0, %v5962_v61  ;;  %6267 = vrot.lane.b32.xlu0 %v5817_v57, %s7612_s6  ;;  %v5823_v57 = vmul.f32 %v16190_v50, %v13808_v60  ;;  %v5825_v61 = vmul.f32 %v16192_v40, %v13816_v11  ;;  %v16200_v50 = vld [vmem:[#allocation332_spill] sm:$0xff] }
 0x7df   : > { %6269 = vrot.lane.b32.xlu1 %v5818_v14, %s7612_s6 }
 0x7e0   : > { %v5964_v24 = vpop.permute.xlu0 %5963 }
 0x7e1   : > { %v5966_v55 = vpop.permute.xlu1 %5965  ;;  %6145 = vst.msk [vmem:[#allocation3 + $0x50] sm:$0xff] %vm58_vm0, %v5964_v24 }
 0x7e2   : > { %6146 = vst.msk [vmem:[#allocation3 + $0x58] sm:$0xff] %vm58_vm0, %v5966_v55  ;;  %6271 = vrot.lane.b32.xlu0 %v5819_v18, %s7612_s6  ;;  %v16193_v18 = vld [vmem:[#allocation367_spill] sm:$0xff]  ;;  %v16195_v55 = vld [vmem:[#allocation170_spill] sm:$0xff] }
 0x7e3   : > { %6273 = vrot.lane.b32.xlu1 %v5820_v5, %s7612_s6  ;;  %v5826_v60 = vmul.f32 %v16193_v18, %v13818_v22  ;;  %v5828_v11 = vmul.f32 %v16195_v55, %v13826_v42  ;;  %v16196_v22 = vld [vmem:[#allocation44_spill] sm:$0xff] }
 0x7e4   : > { %v5968_v45 = vpop.permute.xlu0 %5967  ;;  %v16199_v42 = vld [vmem:[#allocation24_spill] sm:$0xff] }
 0x7e5   : > { %v5970_v19 = vpop.permute.xlu1 %5969  ;;  %6147 = vst.msk [vmem:[#allocation3 + $0x60] sm:$0xff] %vm58_vm0, %v5968_v45 }
 0x7e6   : > { %6148 = vst.msk [vmem:[#allocation3 + $0x68] sm:$0xff] %vm58_vm0, %v5970_v19  ;;  %6275 = vrot.lane.b32.xlu0 %v5821_v54, %s7612_s6  ;;  %v16197_v54 = vld [vmem:[#allocation274_spill] sm:$0xff] }
 0x7e7   : > { %6277 = vrot.lane.b32.xlu1 %v5822_v52, %s7612_s6  ;;  %v5829_v45 = vmul.f32 %v16197_v54, %v16196_v22  ;;  %v16198_v52 = vld [vmem:[#allocation275_spill] sm:$0xff]  ;;  %v16208_v22 = vld [vmem:[#allocation253_spill] sm:$0xff] }
 0x7e8   : > { %v5972_v51 = vpop.permute.xlu0 %5971  ;;  %v5830_v13 = vmul.f32 %v16198_v52, %v13834_v8  ;;  %v16202_v8 = vld [vmem:[#allocation333_spill] sm:$0xff]  ;;  %v5838_v54 = vmul.f32 %v16208_v22, %v13866_v10  ;;  %v16212_v10 = vld [vmem:[#allocation20_spill] sm:$0xff] }
 0x7e9   : > { %v5974_v14 = vpop.permute.xlu1 %5973  ;;  %6149 = vst.msk [vmem:[#allocation3 + $0x70] sm:$0xff] %vm58_vm0, %v5972_v51  ;;  %v5833_v40 = vmul.f32 %v16202_v8, %v13848_v53 }
 0x7ea   : > { %6150 = vst.msk [vmem:[#allocation3 + $0x78] sm:$0xff] %vm58_vm0, %v5974_v14  ;;  %6279 = vrot.lane.b32.xlu0 %v5823_v57, %s7612_s6  ;;  %v5831_v57 = vmul.f32 %v16200_v50, %v16199_v42  ;;  %v5841_v50 = vmul.f32 %v16212_v10, %v13880_v3 }
 0x7eb   : > { %6281 = vrot.lane.b32.xlu1 %v5824_v21, %s7612_s6  ;;  %v5832_v21 = vmul.f32 %v16201_v34, %v13842_v27  ;;  %v16204_v27 = vld [vmem:[#allocation252_spill] sm:$0xff] }
 0x7ec   : > { %v5976_v7 = vpop.permute.xlu0 %5975 }
 0x7ed   : > { %v5978_v24 = vpop.permute.xlu1 %5977  ;;  %6151 = vst.msk [vmem:[#allocation3 + $0x80] sm:$0xff] %vm58_vm0, %v5976_v7  ;;  %v16203_v7 = vld [vmem:[#allocation400_spill] sm:$0xff] }
 0x7ee   : > { %6152 = vst.msk [vmem:[#allocation3 + $0x88] sm:$0xff] %vm58_vm0, %v5978_v24  ;;  %6283 = vrot.lane.b32.xlu0 %v5825_v61, %s7612_s6  ;;  %v5834_v18 = vmul.f32 %v16203_v7, %v13850_v48  ;;  %v16205_v24 = vld [vmem:[#allocation390_spill] sm:$0xff] }
 0x7ef   : > { %6285 = vrot.lane.b32.xlu1 %v5826_v60, %s7612_s6  ;;  %v5835_v17 = vmul.f32 %v16205_v24, %v16204_v27  ;;  %v16207_v48 = vld [vmem:[#allocation142_spill] sm:$0xff]  ;;  %v16219_v24 = vld [vmem:[#allocation317_spill] sm:$0xff] }
 0x7f0   : > { %v5980_v5 = vpop.permute.xlu0 %5979 }
 0x7f1   : > { %v5982_v38 = vpop.permute.xlu1 %5981  ;;  %6153 = vst.msk [vmem:[#allocation3 + $0x90] sm:$0xff] %vm58_vm0, %v5980_v5  ;;  %v16206_v5 = vld [vmem:[#allocation391_spill] sm:$0xff] }
 0x7f2   : > { %6154 = vst.msk [vmem:[#allocation3 + $0x98] sm:$0xff] %vm58_vm0, %v5982_v38  ;;  %6287 = vrot.lane.b32.xlu0 %v5827_v43, %s7612_s6  ;;  %v5836_v53 = vmul.f32 %v16206_v5, %v13858_v63  ;;  %v16209_v63 = vld [vmem:[#allocation45_spill] sm:$0xff] }
 0x7f3   : > { %6289 = vrot.lane.b32.xlu1 %v5828_v11, %s7612_s6  ;;  %v5837_v11 = vmul.f32 %v16207_v48, %v13864_v58 }
 0x7f4   : > { %v5984_v9 = vpop.permute.xlu0 %5983 }
 0x7f5   : > { %v5986_v19 = vpop.permute.xlu1 %5985  ;;  %6155 = vst.msk [vmem:[#allocation3 + $0xa0] sm:$0xff] %vm58_vm0, %v5984_v9  ;;  %v16210_v9 = vld [vmem:[#allocation143_spill] sm:$0xff] }
 0x7f6   : > { %6156 = vst.msk [vmem:[#allocation3 + $0xa8] sm:$0xff] %vm58_vm0, %v5986_v19  ;;  %6291 = vrot.lane.b32.xlu0 %v5829_v45, %s7612_s6  ;;  %v5839_v52 = vmul.f32 %v16210_v9, %v16209_v63  ;;  %v16211_v19 = vld [vmem:[#allocation254_spill] sm:$0xff] }
 0x7f7   : > { %6293 = vrot.lane.b32.xlu1 %v5830_v13, %s7612_s6  ;;  %v5840_v58 = vmul.f32 %v16211_v19, %v13874_v1  ;;  %v16214_v1 = vld [vmem:[#allocation70_spill] sm:$0xff] }
 0x7f8   : > { %v5988_v51 = vpop.permute.xlu0 %5987 }
 0x7f9   : > { %v5990_v14 = vpop.permute.xlu1 %5989  ;;  %6157 = vst.msk [vmem:[#allocation3 + $0xb0] sm:$0xff] %vm58_vm0, %v5988_v51  ;;  %v16213_v51 = vld [vmem:[#allocation21_spill] sm:$0xff] }
 0x7fa   : > { %6158 = vst.msk [vmem:[#allocation3 + $0xb8] sm:$0xff] %vm58_vm0, %v5990_v14  ;;  %6295 = vrot.lane.b32.xlu0 %v5831_v57, %s7612_s6  ;;  %v5842_v34 = vmul.f32 %v16213_v51, %v13882_v62  ;;  %v16215_v14 = vld [vmem:[#allocation62_spill] sm:$0xff]  ;;  %v16229_v51 = vld [vmem:[#allocation277_spill] sm:$0xff] }
 0x7fb   : > { %6297 = vrot.lane.b32.xlu1 %v5832_v21, %s7612_s6  ;;  %v5843_v8 = vmul.f32 %v16215_v14, %v16214_v1  ;;  %v16217_v62 = vld [vmem:[#allocation190_spill] sm:$0xff]  ;;  %v16231_v14 = vld [vmem:[#allocation409_spill] sm:$0xff] }
 0x7fc   : > { %v5992_v61 = vpop.permute.xlu0 %5991 }
 0x7fd   : > { %v5994_v60 = vpop.permute.xlu1 %5993  ;;  %6159 = vst.msk [vmem:[#allocation3 + $0xc0] sm:$0xff] %vm58_vm0, %v5992_v61  ;;  %v16216_v61 = vld [vmem:[#allocation182_spill] sm:$0xff] }
 0x7fe   : > { %6160 = vst.msk [vmem:[#allocation3 + $0xc8] sm:$0xff] %vm58_vm0, %v5994_v60  ;;  %6299 = vrot.lane.b32.xlu0 %v5833_v40, %s7612_s6  ;;  %v5844_v3 = vmul.f32 %v16216_v61, %v13890_v56  ;;  %v16220_v56 = vld [vmem:[#allocation63_spill] sm:$0xff] }
 0x7ff   : > { %6301 = vrot.lane.b32.xlu1 %v5834_v18, %s7612_s6  ;;  %v16218_v18 = vld [vmem:[#allocation316_spill] sm:$0xff]  ;;  %v5847_v5 = vmul.f32 %v16220_v56, %v13904_v33  ;;  %v16238_v56 = vld [vmem:[#allocation321_spill] sm:$0xff] }
 0x800   : > { %v5996_v43 = vpop.permute.xlu0 %5995  ;;  %v5845_v60 = vmul.f32 %v16218_v18, %v16217_v62 }
 0x801   : > { %v5998_v55 = vpop.permute.xlu1 %5997  ;;  %6161 = vst.msk [vmem:[#allocation3 + $0xd0] sm:$0xff] %vm58_vm0, %v5996_v43 }
 0x802   : > { %6162 = vst.msk [vmem:[#allocation3 + $0xd8] sm:$0xff] %vm58_vm0, %v5998_v55  ;;  %6303 = vrot.lane.b32.xlu0 %v5835_v17, %s7612_s6  ;;  %v5846_v17 = vmul.f32 %v16219_v24, %v13898_v41  ;;  %v16221_v55 = vld [vmem:[#allocation183_spill] sm:$0xff]  ;;  %v16222_v41 = vld [vmem:[#allocation173_spill] sm:$0xff] }
 0x803   : > { %6305 = vrot.lane.b32.xlu1 %v5836_v53, %s7612_s6  ;;  %v5848_v48 = vmul.f32 %v16221_v55, %v13906_v0  ;;  %v16224_v0 = vld [vmem:[#allocation405_spill] sm:$0xff]  ;;  %v16237_v24 = vld [vmem:[#allocation23_spill] sm:$0xff]  ;;  %v16241_v55 = vld [vmem:[#allocation146_spill] sm:$0xff] }
 0x804   : > { %v6000_v38 = vpop.permute.xlu0 %5999  ;;  %v5851_v63 = vmul.f32 %v16224_v0, %v13920_v6 }
 0x805   : > { %v6002_v45 = vpop.permute.xlu1 %6001  ;;  %6163 = vst.msk [vmem:[#allocation3 + $0xe0] sm:$0xff] %vm58_vm0, %v6000_v38  ;;  %v5849_v38 = vmul.f32 %v16222_v41, %v13912_v29  ;;  %v16242_v41 = vld [vmem:[#allocation257_spill] sm:$0xff] }
 0x806   : > { %6164 = vst.msk [vmem:[#allocation3 + $0xe8] sm:$0xff] %vm58_vm0, %v6002_v45  ;;  %6307 = vrot.lane.b32.xlu0 %v5837_v11, %s7612_s6 }
 0x807   : > { %6309 = vrot.lane.b32.xlu1 %v5838_v54, %s7612_s6  ;;  %v16223_v54 = vld [vmem:[#allocation246_spill] sm:$0xff] }
 0x808   : > { %v6004_v13 = vpop.permute.xlu0 %6003  ;;  %v5850_v33 = vmul.f32 %v16223_v54, %v13914_v46  ;;  %v16226_v46 = vld [vmem:[#allocation406_spill] sm:$0xff]  ;;  %v16243_v54 = vld [vmem:[#allocation191_spill] sm:$0xff] }
 0x809   : > { %v6006_v42 = vpop.permute.xlu1 %6005  ;;  %6165 = vst.msk [vmem:[#allocation3 + $0xf0] sm:$0xff] %vm58_vm0, %v6004_v13  ;;  %v5853_v19 = vmul.f32 %v16226_v46, %v13928_v59  ;;  %v5856_v59 = vmul.f32 %v16229_v51, %v13938_v30  ;;  %v16232_v30 = vld [vmem:[#allocation335_spill] sm:$0xff]  ;;  %v16247_v46 = vld [vmem:[#allocation181_spill] sm:$0xff] }
 0x80a   : > { %6166 = vst.msk [vmem:[#allocation3 + $0xf8] sm:$0xff] %vm58_vm0, %v6006_v42  ;;  %6311 = vrot.lane.b32.xlu0 %v5839_v52, %s7612_s6  ;;  %v16225_v52 = vld [vmem:[#allocation368_spill] sm:$0xff]  ;;  %v16252_v51 = vld [vmem:[#allocation67_spill] sm:$0xff] }
 0x80b   : > { %6313 = vrot.lane.b32.xlu1 %v5840_v58, %s7612_s6  ;;  %v5852_v29 = vmul.f32 %v16225_v52, %v13922_v32  ;;  %v16227_v42 = vld [vmem:[#allocation172_spill] sm:$0xff] }
 0x80c   : > { %v6008_v57 = vpop.permute.xlu0 %6007  ;;  %v5854_v6 = vmul.f32 %v16227_v42, %v13930_v47  ;;  %v16228_v32 = vld [vmem:[#allocation276_spill] sm:$0xff]  ;;  %v16230_v47 = vld [vmem:[#allocation334_spill] sm:$0xff] }
 0x80d   : > { %v6010_v21 = vpop.permute.xlu1 %6009  ;;  %6167 = vst.msk [vmem:[#allocation3 + $0x100] sm:$0xff] %vm58_vm0, %v6008_v57 }
 0x80e   : > { %6168 = vst.msk [vmem:[#allocation3 + $0x108] sm:$0xff] %vm58_vm0, %v6010_v21  ;;  %6315 = vrot.lane.b32.xlu0 %v5841_v50, %s7612_s6  ;;  %v5855_v50 = vmul.f32 %v16228_v32, %v13936_v28  ;;  %v5857_v21 = vmul.f32 %v16230_v47, %v13944_v2  ;;  %v5858_v28 = vmul.f32 %v16231_v14, %v13946_v37  ;;  %v16234_v37 = vld [vmem:[#allocation393_spill] sm:$0xff] }
 0x80f   : > { %6317 = vrot.lane.b32.xlu1 %v5842_v34, %s7612_s6  ;;  %v5861_v62 = vmul.f32 %v16234_v37, %v13960_v4 }
 0x810   : > { %v6012_v40 = vpop.permute.xlu0 %6011 }
 0x811   : > { %v6014_v7 = vpop.permute.xlu1 %6013  ;;  %6169 = vst.msk [vmem:[#allocation3 + $0x110] sm:$0xff] %vm58_vm0, %v6012_v40  ;;  %v5859_v40 = vmul.f32 %v16232_v30, %v13952_v36 }
 0x812   : > { %6170 = vst.msk [vmem:[#allocation3 + $0x118] sm:$0xff] %vm58_vm0, %v6014_v7  ;;  %6319 = vrot.lane.b32.xlu0 %v5843_v8, %s7612_s6 }
 0x813   : > { %6321 = vrot.lane.b32.xlu1 %v5844_v3, %s7612_s6  ;;  %v16233_v3 = vld [vmem:[#allocation410_spill] sm:$0xff] }
 0x814   : > { %v6016_v27 = vpop.permute.xlu0 %6015  ;;  %v5860_v2 = vmul.f32 %v16233_v3, %v13954_v16  ;;  %v16236_v16 = vld [vmem:[#allocation320_spill] sm:$0xff] }
 0x815   : > { %v6018_v43 = vpop.permute.xlu1 %6017  ;;  %6171 = vst.msk [vmem:[#allocation3 + $0x120] sm:$0xff] %vm58_vm0, %v6016_v27 }
 0x816   : > { %6172 = vst.msk [vmem:[#allocation3 + $0x128] sm:$0xff] %vm58_vm0, %v6018_v43  ;;  %6323 = vrot.lane.b32.xlu0 %v5845_v60, %s7612_s6  ;;  %v16235_v60 = vld [vmem:[#allocation394_spill] sm:$0xff] }
 0x817   : > { %6325 = vrot.lane.b32.xlu1 %v5846_v17, %s7612_s6  ;;  %v5862_v36 = vmul.f32 %v16235_v60, %v13962_v39  ;;  %v5863_v17 = vmul.f32 %v16237_v24, %v16236_v16  ;;  %v16240_v39 = vld [vmem:[#allocation71_spill] sm:$0xff] }
 0x818   : > { %v6020_v53 = vpop.permute.xlu0 %6019 }
 0x819   : > { %v6022_v11 = vpop.permute.xlu1 %6021  ;;  %6173 = vst.msk [vmem:[#allocation3 + $0x130] sm:$0xff] %vm58_vm0, %v6020_v53 }
 0x81a   : > { %6174 = vst.msk [vmem:[#allocation3 + $0x138] sm:$0xff] %vm58_vm0, %v6022_v11  ;;  %6327 = vrot.lane.b32.xlu0 %v5847_v5, %s7612_s6  ;;  %v16239_v5 = vld [vmem:[#allocation256_spill] sm:$0xff] }
 0x81b   : > { %6329 = vrot.lane.b32.xlu1 %v5848_v48, %s7612_s6  ;;  %v5864_v4 = vmul.f32 %v16239_v5, %v16238_v56  ;;  %v5865_v48 = vmul.f32 %v16241_v55, %v16240_v39 }
 0x81c   : > { %v6024_v22 = vpop.permute.xlu0 %6023 }
 0x81d   : > { %v6026_v45 = vpop.permute.xlu1 %6025  ;;  %6175 = vst.msk [vmem:[#allocation3 + $0x140] sm:$0xff] %vm58_vm0, %v6024_v22 }
 0x81e   : > { %6176 = vst.msk [vmem:[#allocation3 + $0x148] sm:$0xff] %vm58_vm0, %v6026_v45  ;;  %6331 = vrot.lane.b32.xlu0 %v5849_v38, %s7612_s6  ;;  %v5866_v38 = vmul.f32 %v16242_v41, %v13978_v26  ;;  %v16246_v26 = vld [vmem:[#allocation66_spill] sm:$0xff] }
 0x81f   : > { %6333 = vrot.lane.b32.xlu1 %v5850_v33, %s7612_s6  ;;  %v16244_v33 = vld [vmem:[#allocation22_spill] sm:$0xff] }
 0x820   : > { %v6028_v9 = vpop.permute.xlu0 %6027  ;;  %v5867_v45 = vmul.f32 %v16244_v33, %v16243_v54 }
 0x821   : > { %v6030_v13 = vpop.permute.xlu1 %6029  ;;  %6177 = vst.msk [vmem:[#allocation3 + $0x150] sm:$0xff] %vm58_vm0, %v6028_v9 }
 0x822   : > { %6178 = vst.msk [vmem:[#allocation3 + $0x158] sm:$0xff] %vm58_vm0, %v6030_v13  ;;  %6335 = vrot.lane.b32.xlu0 %v5851_v63, %s7612_s6  ;;  %v16245_v63 = vld [vmem:[#allocation249_spill] sm:$0xff] }
 0x823   : > { %6337 = vrot.lane.b32.xlu1 %v5852_v29, %s7612_s6  ;;  %v5868_v9 = vmul.f32 %v16245_v63, %v13986_v23  ;;  %v5869_v29 = vmul.f32 %v16246_v26, %v13992_v35  ;;  %v16249_v23 = vld [vmem:[#allocation371_spill] sm:$0xff] }
 0x824   : > { %v6032_v58 = vpop.permute.xlu0 %6031  ;;  %v16251_v35 = vld [vmem:[#allocation319_spill] sm:$0xff] }
 0x825   : > { %v6034_v10 = vpop.permute.xlu1 %6033  ;;  %6179 = vst.msk [vmem:[#allocation3 + $0x160] sm:$0xff] %vm58_vm0, %v6032_v58 }
 0x826   : > { %6180 = vst.msk [vmem:[#allocation3 + $0x168] sm:$0xff] %vm58_vm0, %v6034_v10  ;;  %6339 = vrot.lane.b32.xlu0 %v5853_v19, %s7612_s6  ;;  %v16248_v19 = vld [vmem:[#allocation186_spill] sm:$0xff] }
 0x827   : > { %6341 = vrot.lane.b32.xlu1 %v5854_v6, %s7612_s6  ;;  %v5870_v58 = vmul.f32 %v16248_v19, %v16247_v46  ;;  %v16250_v6 = vld [vmem:[#allocation318_spill] sm:$0xff] }
 0x828   : > { %v6036_v57 = vpop.permute.xlu0 %6035  ;;  %v5871_v10 = vmul.f32 %v16250_v6, %v16249_v23 }
 0x829   : > { %v6038_v34 = vpop.permute.xlu1 %6037  ;;  %6181 = vst.msk [vmem:[#allocation3 + $0x170] sm:$0xff] %vm58_vm0, %v6036_v57 }
 0x82a   : > { %6182 = vst.msk [vmem:[#allocation3 + $0x178] sm:$0xff] %vm58_vm0, %v6038_v34  ;;  %6343 = vrot.lane.b32.xlu0 %v5855_v50, %s7612_s6  ;;  %v5872_v50 = vmul.f32 %v16251_v35, %v14002_v15  ;;  %v5873_v15 = vmul.f32 %v16252_v51, %v14008_v44  ;;  %v16253_v34 = vld [vmem:[#allocation187_spill] sm:$0xff]  ;;  %v16254_v44 = vld [vmem:[#allocation177_spill] sm:$0xff] }
 0x82b   : > { %6345 = vrot.lane.b32.xlu1 %v5856_v59, %s7612_s6  ;;  %v5874_v47 = vmul.f32 %v16253_v34, %v14010_v12  ;;  %v16255_v12 = vld [vmem:[#allocation369_spill] sm:$0xff] }
 0x82c   : > { %v6040_v1 = vpop.permute.xlu0 %6039 }
 0x82d   : > { %v6042_v8 = vpop.permute.xlu1 %6041  ;;  %6183 = vst.msk [vmem:[#allocation3 + $0x180] sm:$0xff] %vm58_vm0, %v6040_v1  ;;  %v5875_v1 = vmul.f32 %v16254_v44, %v14016_v49  ;;  %v16256_v49 = vld [vmem:[#allocation415_spill] sm:$0xff] }
 0x82e   : > { %6184 = vst.msk [vmem:[#allocation3 + $0x188] sm:$0xff] %vm58_vm0, %v6042_v8  ;;  %6347 = vrot.lane.b32.xlu0 %v5857_v21, %s7612_s6  ;;  %v5877_v30 = vmul.f32 %v16256_v49, %v14024_v31 }
 0x82f   : > { %6349 = vrot.lane.b32.xlu1 %v5858_v28, %s7612_s6  ;;  %v5876_v28 = vmul.f32 %v16255_v12, %v14018_v25  ;;  %v16257_v25 = vld [vmem:[#allocation370_spill] sm:$0xff] }
 0x830   : > { %v6044_v61 = vpop.permute.xlu0 %6043 }
 0x831   : > { %v6046_v7 = vpop.permute.xlu1 %6045  ;;  %6185 = vst.msk [vmem:[#allocation3 + $0x190] sm:$0xff] %vm58_vm0, %v6044_v61  ;;  %v5878_v61 = vmul.f32 %v16257_v25, %v14026_v20 }
 0x832   : > { %6186 = vst.msk [vmem:[#allocation3 + $0x198] sm:$0xff] %vm58_vm0, %v6046_v7  ;;  %6351 = vrot.lane.b32.xlu0 %v5859_v40, %s7612_s6 }
 0x833   : > { %6353 = vrot.lane.b32.xlu1 %v5860_v2, %s7612_s6 }
 0x834   : > { %v6048_v18 = vpop.permute.xlu0 %6047 }
 0x835   : > { %v6050_v27 = vpop.permute.xlu1 %6049  ;;  %6187 = vst.msk [vmem:[#allocation3 + $0x1a0] sm:$0xff] %vm58_vm0, %v6048_v18 }
 0x836   : > { %6188 = vst.msk [vmem:[#allocation3 + $0x1a8] sm:$0xff] %vm58_vm0, %v6050_v27  ;;  %6355 = vrot.lane.b32.xlu0 %v5861_v62, %s7612_s6 }
 0x837   : > { %6357 = vrot.lane.b32.xlu1 %v5862_v36, %s7612_s6 }
 0x838   : > { %v6052_v43 = vpop.permute.xlu0 %6051 }
 0x839   : > { %v6054_v53 = vpop.permute.xlu1 %6053  ;;  %6189 = vst.msk [vmem:[#allocation3 + $0x1b0] sm:$0xff] %vm58_vm0, %v6052_v43 }
 0x83a   : > { %6190 = vst.msk [vmem:[#allocation3 + $0x1b8] sm:$0xff] %vm58_vm0, %v6054_v53  ;;  %6359 = vrot.lane.b32.xlu0 %v5863_v17, %s7612_s6 }
 0x83b   : > { %6361 = vrot.lane.b32.xlu1 %v5864_v4, %s7612_s6 }
 0x83c   : > { %v6056_v11 = vpop.permute.xlu0 %6055 }
 0x83d   : > { %v6058_v22 = vpop.permute.xlu1 %6057  ;;  %6191 = vst.msk [vmem:[#allocation3 + $0x1c0] sm:$0xff] %vm58_vm0, %v6056_v11 }
 0x83e   : > { %6192 = vst.msk [vmem:[#allocation3 + $0x1c8] sm:$0xff] %vm58_vm0, %v6058_v22  ;;  %6363 = vrot.lane.b32.xlu0 %v5865_v48, %s7612_s6 }
 0x83f   : > { %6365 = vrot.lane.b32.xlu1 %v5866_v38, %s7612_s6 }
 0x840   : > { %v6060_v0 = vpop.permute.xlu0 %6059 }
 0x841   : > { %v6062_v52 = vpop.permute.xlu1 %6061  ;;  %6193 = vst.msk [vmem:[#allocation3 + $0x1d0] sm:$0xff] %vm58_vm0, %v6060_v0 }
 0x842   : > { %6194 = vst.msk [vmem:[#allocation3 + $0x1d8] sm:$0xff] %vm58_vm0, %v6062_v52  ;;  %6367 = vrot.lane.b32.xlu0 %v5867_v45, %s7612_s6 }
 0x843   : > { %6369 = vrot.lane.b32.xlu1 %v5868_v9, %s7612_s6 }
 0x844   : > { %v6064_v13 = vpop.permute.xlu0 %6063 }
 0x845   : > { %v6066_v42 = vpop.permute.xlu1 %6065  ;;  %6195 = vst.msk [vmem:[#allocation3 + $0x1e0] sm:$0xff] %vm58_vm0, %v6064_v13 }
 0x846   : > { %6196 = vst.msk [vmem:[#allocation3 + $0x1e8] sm:$0xff] %vm58_vm0, %v6066_v42  ;;  %6371 = vrot.lane.b32.xlu0 %v5869_v29, %s7612_s6 }
 0x847   : > { %6373 = vrot.lane.b32.xlu1 %v5870_v58, %s7612_s6 }
 0x848   : > { %v6068_v32 = vpop.permute.xlu0 %6067 }
 0x849   : > { %v6070_v57 = vpop.permute.xlu1 %6069  ;;  %6197 = vst.msk [vmem:[#allocation3 + $0x1f0] sm:$0xff] %vm58_vm0, %v6068_v32 }
 0x84a   : > { %6198 = vst.msk [vmem:[#allocation3 + $0x1f8] sm:$0xff] %vm58_vm0, %v6070_v57  ;;  %6375 = vrot.lane.b32.xlu0 %v5871_v10, %s7612_s6 }
 0x84b   : > { %6377 = vrot.lane.b32.xlu1 %v5872_v50, %s7612_s6 }
 0x84c   : > { %v6264_v59 = vpop.permute.xlu0 %6263 }
 0x84d   : > { %v6266_v21 = vpop.permute.xlu1 %6265  ;;  %6455 = vst.msk [vmem:[#allocation2] sm:$0xff] %vm58_vm0, %v6264_v59  ;;  %6521 = vst.msk [vmem:[%s14283_s14] sm:$0xff] %vm58_vm0, %v6264_v59 }
 0x84e   : > { %6456 = vst.msk [vmem:[#allocation2 + $0x8] sm:$0xff] %vm58_vm0, %v6266_v21  ;;  %6522 = vst.msk [vmem:[%s14283_s14 + $0x8] sm:$0xff] %vm58_vm0, %v6266_v21  ;;  %6379 = vrot.lane.b32.xlu0 %v5873_v15, %s7612_s6 }
 0x84f   : > { %6381 = vrot.lane.b32.xlu1 %v5874_v47, %s7612_s6 }
 0x850   : > { %v6268_v14 = vpop.permute.xlu0 %6267 }
 0x851   : > { %v6270_v8 = vpop.permute.xlu1 %6269  ;;  %6457 = vst.msk [vmem:[#allocation2 + $0x10] sm:$0xff] %vm58_vm0, %v6268_v14  ;;  %6523 = vst.msk [vmem:[%s14283_s14 + $0x10] sm:$0xff] %vm58_vm0, %v6268_v14 }
 0x852   : > { %6458 = vst.msk [vmem:[#allocation2 + $0x18] sm:$0xff] %vm58_vm0, %v6270_v8  ;;  %6524 = vst.msk [vmem:[%s14283_s14 + $0x18] sm:$0xff] %vm58_vm0, %v6270_v8  ;;  %6383 = vrot.lane.b32.xlu0 %v5875_v1, %s7612_s6 }
 0x853   : > { %6385 = vrot.lane.b32.xlu1 %v5876_v28, %s7612_s6 }
 0x854   : > { %v6272_v40 = vpop.permute.xlu0 %6271 }
 0x855   : > { %v6274_v3 = vpop.permute.xlu1 %6273  ;;  %6459 = vst.msk [vmem:[#allocation2 + $0x20] sm:$0xff] %vm58_vm0, %v6272_v40  ;;  %6525 = vst.msk [vmem:[%s14283_s14 + $0x20] sm:$0xff] %vm58_vm0, %v6272_v40 }
 0x856   : > { %6460 = vst.msk [vmem:[#allocation2 + $0x28] sm:$0xff] %vm58_vm0, %v6274_v3  ;;  %6526 = vst.msk [vmem:[%s14283_s14 + $0x28] sm:$0xff] %vm58_vm0, %v6274_v3  ;;  %6387 = vrot.lane.b32.xlu0 %v5877_v30, %s7612_s6 }
 0x857   : > { %6389 = vrot.lane.b32.xlu1 %v5878_v61, %s7612_s6 }
 0x858   : > { %v6276_v31 = vpop.permute.xlu0 %6275 }
 0x859   : > { %v6278_v2 = vpop.permute.xlu1 %6277  ;;  %6461 = vst.msk [vmem:[#allocation2 + $0x30] sm:$0xff] %vm58_vm0, %v6276_v31  ;;  %6527 = vst.msk [vmem:[%s14283_s14 + $0x30] sm:$0xff] %vm58_vm0, %v6276_v31 }
 0x85a   : > { %6462 = vst.msk [vmem:[#allocation2 + $0x38] sm:$0xff] %vm58_vm0, %v6278_v2  ;;  %6528 = vst.msk [vmem:[%s14283_s14 + $0x38] sm:$0xff] %vm58_vm0, %v6278_v2 }
 0x85c   : > { %v6280_v20 = vpop.permute.xlu0 %6279 }
 0x85d   : > { %v6282_v7 = vpop.permute.xlu1 %6281  ;;  %6463 = vst.msk [vmem:[#allocation2 + $0x40] sm:$0xff] %vm58_vm0, %v6280_v20  ;;  %6529 = vst.msk [vmem:[%s14283_s14 + $0x40] sm:$0xff] %vm58_vm0, %v6280_v20 }
 0x85e   : > { %6464 = vst.msk [vmem:[#allocation2 + $0x48] sm:$0xff] %vm58_vm0, %v6282_v7  ;;  %6530 = vst.msk [vmem:[%s14283_s14 + $0x48] sm:$0xff] %vm58_vm0, %v6282_v7 }
 0x860   : > { %v6284_v37 = vpop.permute.xlu0 %6283 }
 0x861   : > { %v6286_v62 = vpop.permute.xlu1 %6285  ;;  %6465 = vst.msk [vmem:[#allocation2 + $0x50] sm:$0xff] %vm58_vm0, %v6284_v37  ;;  %6531 = vst.msk [vmem:[%s14283_s14 + $0x50] sm:$0xff] %vm58_vm0, %v6284_v37 }
 0x862   : > { %6466 = vst.msk [vmem:[#allocation2 + $0x58] sm:$0xff] %vm58_vm0, %v6286_v62  ;;  %6532 = vst.msk [vmem:[%s14283_s14 + $0x58] sm:$0xff] %vm58_vm0, %v6286_v62 }
 0x864   : > { %v6288_v18 = vpop.permute.xlu0 %6287 }
 0x865   : > { %v6290_v60 = vpop.permute.xlu1 %6289  ;;  %6467 = vst.msk [vmem:[#allocation2 + $0x60] sm:$0xff] %vm58_vm0, %v6288_v18  ;;  %6533 = vst.msk [vmem:[%s14283_s14 + $0x60] sm:$0xff] %vm58_vm0, %v6288_v18 }
 0x866   : > { %6468 = vst.msk [vmem:[#allocation2 + $0x68] sm:$0xff] %vm58_vm0, %v6290_v60  ;;  %6534 = vst.msk [vmem:[%s14283_s14 + $0x68] sm:$0xff] %vm58_vm0, %v6290_v60 }
 0x868   : > { %v6292_v36 = vpop.permute.xlu0 %6291 }
 0x869   : > { %v6294_v27 = vpop.permute.xlu1 %6293  ;;  %6469 = vst.msk [vmem:[#allocation2 + $0x70] sm:$0xff] %vm58_vm0, %v6292_v36  ;;  %6535 = vst.msk [vmem:[%s14283_s14 + $0x70] sm:$0xff] %vm58_vm0, %v6292_v36 }
 0x86a   : > { %6470 = vst.msk [vmem:[#allocation2 + $0x78] sm:$0xff] %vm58_vm0, %v6294_v27  ;;  %6536 = vst.msk [vmem:[%s14283_s14 + $0x78] sm:$0xff] %vm58_vm0, %v6294_v27 }
 0x86c   : > { %v6296_v16 = vpop.permute.xlu0 %6295 }
 0x86d   : > { %v6298_v24 = vpop.permute.xlu1 %6297  ;;  %6471 = vst.msk [vmem:[#allocation2 + $0x80] sm:$0xff] %vm58_vm0, %v6296_v16  ;;  %6537 = vst.msk [vmem:[%s14283_s14 + $0x80] sm:$0xff] %vm58_vm0, %v6296_v16 }
 0x86e   : > { %6472 = vst.msk [vmem:[#allocation2 + $0x88] sm:$0xff] %vm58_vm0, %v6298_v24  ;;  %6538 = vst.msk [vmem:[%s14283_s14 + $0x88] sm:$0xff] %vm58_vm0, %v6298_v24 }
 0x870   : > { %v6300_v17 = vpop.permute.xlu0 %6299 }
 0x871   : > { %v6302_v43 = vpop.permute.xlu1 %6301  ;;  %6473 = vst.msk [vmem:[#allocation2 + $0x90] sm:$0xff] %vm58_vm0, %v6300_v17  ;;  %6539 = vst.msk [vmem:[%s14283_s14 + $0x90] sm:$0xff] %vm58_vm0, %v6300_v17 }
 0x872   : > { %6474 = vst.msk [vmem:[#allocation2 + $0x98] sm:$0xff] %vm58_vm0, %v6302_v43  ;;  %6540 = vst.msk [vmem:[%s14283_s14 + $0x98] sm:$0xff] %vm58_vm0, %v6302_v43 }
 0x874   : > { %v6304_v56 = vpop.permute.xlu0 %6303 }
 0x875   : > { %v6306_v5 = vpop.permute.xlu1 %6305  ;;  %6475 = vst.msk [vmem:[#allocation2 + $0xa0] sm:$0xff] %vm58_vm0, %v6304_v56  ;;  %6541 = vst.msk [vmem:[%s14283_s14 + $0xa0] sm:$0xff] %vm58_vm0, %v6304_v56 }
 0x876   : > { %6476 = vst.msk [vmem:[#allocation2 + $0xa8] sm:$0xff] %vm58_vm0, %v6306_v5  ;;  %6542 = vst.msk [vmem:[%s14283_s14 + $0xa8] sm:$0xff] %vm58_vm0, %v6306_v5 }
 0x878   : > { %v6308_v4 = vpop.permute.xlu0 %6307 }
 0x879   : > { %v6310_v53 = vpop.permute.xlu1 %6309  ;;  %6477 = vst.msk [vmem:[#allocation2 + $0xb0] sm:$0xff] %vm58_vm0, %v6308_v4  ;;  %6543 = vst.msk [vmem:[%s14283_s14 + $0xb0] sm:$0xff] %vm58_vm0, %v6308_v4 }
 0x87a   : > { %6478 = vst.msk [vmem:[#allocation2 + $0xb8] sm:$0xff] %vm58_vm0, %v6310_v53  ;;  %6544 = vst.msk [vmem:[%s14283_s14 + $0xb8] sm:$0xff] %vm58_vm0, %v6310_v53 }
 0x87c   : > { %v6312_v39 = vpop.permute.xlu0 %6311 }
 0x87d   : > { %v6314_v55 = vpop.permute.xlu1 %6313  ;;  %6479 = vst.msk [vmem:[#allocation2 + $0xc0] sm:$0xff] %vm58_vm0, %v6312_v39  ;;  %6545 = vst.msk [vmem:[%s14283_s14 + $0xc0] sm:$0xff] %vm58_vm0, %v6312_v39 }
 0x87e   : > { %6480 = vst.msk [vmem:[#allocation2 + $0xc8] sm:$0xff] %vm58_vm0, %v6314_v55  ;;  %6546 = vst.msk [vmem:[%s14283_s14 + $0xc8] sm:$0xff] %vm58_vm0, %v6314_v55 }
 0x880   : > { %v6316_v48 = vpop.permute.xlu0 %6315 }
 0x881   : > { %v6318_v11 = vpop.permute.xlu1 %6317  ;;  %6481 = vst.msk [vmem:[#allocation2 + $0xd0] sm:$0xff] %vm58_vm0, %v6316_v48  ;;  %6547 = vst.msk [vmem:[%s14283_s14 + $0xd0] sm:$0xff] %vm58_vm0, %v6316_v48 }
 0x882   : > { %6482 = vst.msk [vmem:[#allocation2 + $0xd8] sm:$0xff] %vm58_vm0, %v6318_v11  ;;  %6548 = vst.msk [vmem:[%s14283_s14 + $0xd8] sm:$0xff] %vm58_vm0, %v6318_v11 }
 0x884   : > { %v6320_v41 = vpop.permute.xlu0 %6319 }
 0x885   : > { %v6322_v38 = vpop.permute.xlu1 %6321  ;;  %6483 = vst.msk [vmem:[#allocation2 + $0xe0] sm:$0xff] %vm58_vm0, %v6320_v41  ;;  %6549 = vst.msk [vmem:[%s14283_s14 + $0xe0] sm:$0xff] %vm58_vm0, %v6320_v41 }
 0x886   : > { %6484 = vst.msk [vmem:[#allocation2 + $0xe8] sm:$0xff] %vm58_vm0, %v6322_v38  ;;  %6550 = vst.msk [vmem:[%s14283_s14 + $0xe8] sm:$0xff] %vm58_vm0, %v6322_v38 }
 0x888   : > { %v6324_v22 = vpop.permute.xlu0 %6323 }
 0x889   : > { %v6326_v54 = vpop.permute.xlu1 %6325  ;;  %6485 = vst.msk [vmem:[#allocation2 + $0xf0] sm:$0xff] %vm58_vm0, %v6324_v22  ;;  %6551 = vst.msk [vmem:[%s14283_s14 + $0xf0] sm:$0xff] %vm58_vm0, %v6324_v22 }
 0x88a   : > { %6486 = vst.msk [vmem:[#allocation2 + $0xf8] sm:$0xff] %vm58_vm0, %v6326_v54  ;;  %6552 = vst.msk [vmem:[%s14283_s14 + $0xf8] sm:$0xff] %vm58_vm0, %v6326_v54 }
 0x88c   : > { %v6328_v33 = vpop.permute.xlu0 %6327 }
 0x88d   : > { %v6330_v45 = vpop.permute.xlu1 %6329  ;;  %6487 = vst.msk [vmem:[#allocation2 + $0x100] sm:$0xff] %vm58_vm0, %v6328_v33  ;;  %6553 = vst.msk [vmem:[%s14283_s14 + $0x100] sm:$0xff] %vm58_vm0, %v6328_v33 }
 0x88e   : > { %6488 = vst.msk [vmem:[#allocation2 + $0x108] sm:$0xff] %vm58_vm0, %v6330_v45  ;;  %6554 = vst.msk [vmem:[%s14283_s14 + $0x108] sm:$0xff] %vm58_vm0, %v6330_v45 }
 0x890   : > { %v6332_v0 = vpop.permute.xlu0 %6331 }
 0x891   : > { %v6334_v63 = vpop.permute.xlu1 %6333  ;;  %6489 = vst.msk [vmem:[#allocation2 + $0x110] sm:$0xff] %vm58_vm0, %v6332_v0  ;;  %6555 = vst.msk [vmem:[%s14283_s14 + $0x110] sm:$0xff] %vm58_vm0, %v6332_v0 }
 0x892   : > { %6490 = vst.msk [vmem:[#allocation2 + $0x118] sm:$0xff] %vm58_vm0, %v6334_v63  ;;  %6556 = vst.msk [vmem:[%s14283_s14 + $0x118] sm:$0xff] %vm58_vm0, %v6334_v63 }
 0x894   : > { %v6336_v9 = vpop.permute.xlu0 %6335 }
 0x895   : > { %v6338_v52 = vpop.permute.xlu1 %6337  ;;  %6491 = vst.msk [vmem:[#allocation2 + $0x120] sm:$0xff] %vm58_vm0, %v6336_v9  ;;  %6557 = vst.msk [vmem:[%s14283_s14 + $0x120] sm:$0xff] %vm58_vm0, %v6336_v9 }
 0x896   : > { %6492 = vst.msk [vmem:[#allocation2 + $0x128] sm:$0xff] %vm58_vm0, %v6338_v52  ;;  %6558 = vst.msk [vmem:[%s14283_s14 + $0x128] sm:$0xff] %vm58_vm0, %v6338_v52 }
 0x898   : > { %v6340_v26 = vpop.permute.xlu0 %6339 }
 0x899   : > { %v6342_v29 = vpop.permute.xlu1 %6341  ;;  %6493 = vst.msk [vmem:[#allocation2 + $0x130] sm:$0xff] %vm58_vm0, %v6340_v26  ;;  %6559 = vst.msk [vmem:[%s14283_s14 + $0x130] sm:$0xff] %vm58_vm0, %v6340_v26 }
 0x89a   : > { %6494 = vst.msk [vmem:[#allocation2 + $0x138] sm:$0xff] %vm58_vm0, %v6342_v29  ;;  %6560 = vst.msk [vmem:[%s14283_s14 + $0x138] sm:$0xff] %vm58_vm0, %v6342_v29 }
 0x89c   : > { %v6344_v13 = vpop.permute.xlu0 %6343 }
 0x89d   : > { %v6346_v46 = vpop.permute.xlu1 %6345  ;;  %6495 = vst.msk [vmem:[#allocation2 + $0x140] sm:$0xff] %vm58_vm0, %v6344_v13  ;;  %6561 = vst.msk [vmem:[%s14283_s14 + $0x140] sm:$0xff] %vm58_vm0, %v6344_v13 }
 0x89e   : > { %6496 = vst.msk [vmem:[#allocation2 + $0x148] sm:$0xff] %vm58_vm0, %v6346_v46  ;;  %6562 = vst.msk [vmem:[%s14283_s14 + $0x148] sm:$0xff] %vm58_vm0, %v6346_v46 }
 0x8a0   : > { %v6348_v19 = vpop.permute.xlu0 %6347 }
 0x8a1   : > { %v6350_v58 = vpop.permute.xlu1 %6349  ;;  %6497 = vst.msk [vmem:[#allocation2 + $0x150] sm:$0xff] %vm58_vm0, %v6348_v19  ;;  %6563 = vst.msk [vmem:[%s14283_s14 + $0x150] sm:$0xff] %vm58_vm0, %v6348_v19 }
 0x8a2   : > { %6498 = vst.msk [vmem:[#allocation2 + $0x158] sm:$0xff] %vm58_vm0, %v6350_v58  ;;  %6564 = vst.msk [vmem:[%s14283_s14 + $0x158] sm:$0xff] %vm58_vm0, %v6350_v58 }
 0x8a4   : > { %v6352_v42 = vpop.permute.xlu0 %6351 }
 0x8a5   : > { %v6354_v23 = vpop.permute.xlu1 %6353  ;;  %6499 = vst.msk [vmem:[#allocation2 + $0x160] sm:$0xff] %vm58_vm0, %v6352_v42  ;;  %6565 = vst.msk [vmem:[%s14283_s14 + $0x160] sm:$0xff] %vm58_vm0, %v6352_v42 }
 0x8a6   : > { %6500 = vst.msk [vmem:[#allocation2 + $0x168] sm:$0xff] %vm58_vm0, %v6354_v23  ;;  %6566 = vst.msk [vmem:[%s14283_s14 + $0x168] sm:$0xff] %vm58_vm0, %v6354_v23 }
 0x8a8   : > { %v6356_v6 = vpop.permute.xlu0 %6355 }
 0x8a9   : > { %v6358_v10 = vpop.permute.xlu1 %6357  ;;  %6501 = vst.msk [vmem:[#allocation2 + $0x170] sm:$0xff] %vm58_vm0, %v6356_v6  ;;  %6567 = vst.msk [vmem:[%s14283_s14 + $0x170] sm:$0xff] %vm58_vm0, %v6356_v6 }
 0x8aa   : > { %6502 = vst.msk [vmem:[#allocation2 + $0x178] sm:$0xff] %vm58_vm0, %v6358_v10  ;;  %6568 = vst.msk [vmem:[%s14283_s14 + $0x178] sm:$0xff] %vm58_vm0, %v6358_v10 }
 0x8ac   : > { %v6360_v32 = vpop.permute.xlu0 %6359 }
 0x8ad   : > { %v6362_v35 = vpop.permute.xlu1 %6361  ;;  %6503 = vst.msk [vmem:[#allocation2 + $0x180] sm:$0xff] %vm58_vm0, %v6360_v32  ;;  %6569 = vst.msk [vmem:[%s14283_s14 + $0x180] sm:$0xff] %vm58_vm0, %v6360_v32 }
 0x8ae   : > { %6504 = vst.msk [vmem:[#allocation2 + $0x188] sm:$0xff] %vm58_vm0, %v6362_v35  ;;  %6570 = vst.msk [vmem:[%s14283_s14 + $0x188] sm:$0xff] %vm58_vm0, %v6362_v35 }
 0x8b0   : > { %v6364_v50 = vpop.permute.xlu0 %6363 }
 0x8b1   : > { %v6366_v57 = vpop.permute.xlu1 %6365  ;;  %6505 = vst.msk [vmem:[#allocation2 + $0x190] sm:$0xff] %vm58_vm0, %v6364_v50  ;;  %6571 = vst.msk [vmem:[%s14283_s14 + $0x190] sm:$0xff] %vm58_vm0, %v6364_v50 }
 0x8b2   : > { %6506 = vst.msk [vmem:[#allocation2 + $0x198] sm:$0xff] %vm58_vm0, %v6366_v57  ;;  %6572 = vst.msk [vmem:[%s14283_s14 + $0x198] sm:$0xff] %vm58_vm0, %v6366_v57 }
 0x8b4   : > { %v6368_v51 = vpop.permute.xlu0 %6367 }
 0x8b5   : > { %v6370_v15 = vpop.permute.xlu1 %6369  ;;  %6507 = vst.msk [vmem:[#allocation2 + $0x1a0] sm:$0xff] %vm58_vm0, %v6368_v51  ;;  %6573 = vst.msk [vmem:[%s14283_s14 + $0x1a0] sm:$0xff] %vm58_vm0, %v6368_v51 }
 0x8b6   : > { %6508 = vst.msk [vmem:[#allocation2 + $0x1a8] sm:$0xff] %vm58_vm0, %v6370_v15  ;;  %6574 = vst.msk [vmem:[%s14283_s14 + $0x1a8] sm:$0xff] %vm58_vm0, %v6370_v15 }
 0x8b8   : > { %v6372_v59 = vpop.permute.xlu0 %6371 }
 0x8b9   : > { %v6374_v34 = vpop.permute.xlu1 %6373  ;;  %6509 = vst.msk [vmem:[#allocation2 + $0x1b0] sm:$0xff] %vm58_vm0, %v6372_v59  ;;  %6575 = vst.msk [vmem:[%s14283_s14 + $0x1b0] sm:$0xff] %vm58_vm0, %v6372_v59 }
 0x8ba   : > { %6510 = vst.msk [vmem:[#allocation2 + $0x1b8] sm:$0xff] %vm58_vm0, %v6374_v34  ;;  %6576 = vst.msk [vmem:[%s14283_s14 + $0x1b8] sm:$0xff] %vm58_vm0, %v6374_v34 }
 0x8bc   : > { %v6376_v47 = vpop.permute.xlu0 %6375 }
 0x8bd   : > { %v6378_v21 = vpop.permute.xlu1 %6377  ;;  %6511 = vst.msk [vmem:[#allocation2 + $0x1c0] sm:$0xff] %vm58_vm0, %v6376_v47  ;;  %6577 = vst.msk [vmem:[%s14283_s14 + $0x1c0] sm:$0xff] %vm58_vm0, %v6376_v47 }
 0x8be   : > { %6512 = vst.msk [vmem:[#allocation2 + $0x1c8] sm:$0xff] %vm58_vm0, %v6378_v21  ;;  %6578 = vst.msk [vmem:[%s14283_s14 + $0x1c8] sm:$0xff] %vm58_vm0, %v6378_v21 }
 0x8c0   : > { %v6380_v44 = vpop.permute.xlu0 %6379 }
 0x8c1   : > { %v6382_v1 = vpop.permute.xlu1 %6381  ;;  %6513 = vst.msk [vmem:[#allocation2 + $0x1d0] sm:$0xff] %vm58_vm0, %v6380_v44  ;;  %6579 = vst.msk [vmem:[%s14283_s14 + $0x1d0] sm:$0xff] %vm58_vm0, %v6380_v44 }
 0x8c2   : > { %6514 = vst.msk [vmem:[#allocation2 + $0x1d8] sm:$0xff] %vm58_vm0, %v6382_v1  ;;  %6580 = vst.msk [vmem:[%s14283_s14 + $0x1d8] sm:$0xff] %vm58_vm0, %v6382_v1 }
 0x8c4   : > { %v6384_v14 = vpop.permute.xlu0 %6383  ;;  %193 = sbr.rel (!%p191_p10) target bundleno = 121 (0x79), region = 61 }
 0x8c5   : > { %v6386_v12 = vpop.permute.xlu1 %6385  ;;  %6515 = vst.msk [vmem:[#allocation2 + $0x1e0] sm:$0xff] %vm58_vm0, %v6384_v14  ;;  %6581 = vst.msk [vmem:[%s14283_s14 + $0x1e0] sm:$0xff] %vm58_vm0, %v6384_v14 }
 0x8c6   : > { %6516 = vst.msk [vmem:[#allocation2 + $0x1e8] sm:$0xff] %vm58_vm0, %v6386_v12  ;;  %6582 = vst.msk [vmem:[%s14283_s14 + $0x1e8] sm:$0xff] %vm58_vm0, %v6386_v12 }
 0x8c8   : > { %v6388_v28 = vpop.permute.xlu0 %6387 }
 0x8c9   : > { %v6390_v8 = vpop.permute.xlu1 %6389  ;;  %6517 = vst.msk [vmem:[#allocation2 + $0x1f0] sm:$0xff] %vm58_vm0, %v6388_v28  ;;  %6583 = vst.msk [vmem:[%s14283_s14 + $0x1f0] sm:$0xff] %vm58_vm0, %v6388_v28 }
 0x8ca   : > { %6518 = vst.msk [vmem:[#allocation2 + $0x1f8] sm:$0xff] %vm58_vm0, %v6390_v8  ;;  %6584 = vst.msk [vmem:[%s14283_s14 + $0x1f8] sm:$0xff] %vm58_vm0, %v6390_v8 }
 0x8cb   :  { %6589 = vsyncpa [#allocation5], 1 }
 0x8cc   :  { %6590 = vsyncpa [#allocation7], 1 }

</bundles_post_ra>
